<compile_context>
chip_gen: v7x
topology: tpu7x:2x2x1
jax: 0.10.0
libtpu: 0.0.40
codegen_flags: <defaults>
</compile_context>

<pallas_src>
import functools
import math

import jax
import jax.numpy as jnp
from jax.experimental import pallas as pl
from jax.experimental.pallas import tpu as pltpu

LN_EPS = 1e-5
_SQRT_2_OVER_PI = 0.7978845608028654
_PARAMS_PER_LAYER = 13  # lin_w, lin_b, ln1_g, ln1_b, wqkv, wo, bo, ln2_g, ln2_b, w1, b1, w2, b2


# ----------------------------------------------------------------------------- helpers
def _gelu(x):
    # tanh-approximate GELU (EUP tanh path); see TODO about erf parity.
    return 0.5 * x * (1.0 + jnp.tanh(_SQRT_2_OVER_PI * (x + 0.044715 * x * x * x)))


def _layernorm(x32, g_ref, b_ref):
    # x32: [rows, D] f32; g_ref/b_ref: (1, D).  Biased variance (torch.nn.LayerNorm).
    mean = jnp.mean(x32, axis=-1, keepdims=True)
    c = x32 - mean
    var = jnp.mean(c * c, axis=-1, keepdims=True)
    return (c * jax.lax.rsqrt(var + LN_EPS) * g_ref[...].astype(jnp.float32)
            + b_ref[...].astype(jnp.float32))


# ----------------------------------------------------------------------------- kernel
def _fused_block_kernel(*refs, channels, growth, depth, heads):
    """Entire DenseTransformerBlock for one batch element (one grid step)."""
    P = _PARAMS_PER_LAYER
    n_in = 1 + P * depth + 4
    x_ref = refs[0]
    o_ref = refs[n_in]
    cat_ref, qkv_ref, head_ref = refs[n_in + 1:]

    G = growth
    hd = G // heads
    scale = float(hd) ** -0.5

    # Seed the dense-connectivity buffer with this batch element (f32).
    cat_ref[:, :channels] = x_ref[0].astype(jnp.float32)

    for i in range(depth):  # static unroll over layers
        (lin_w, lin_b, ln1_g, ln1_b, wqkv, wo, bo,
         ln2_g, ln2_b, fw1, fb1, fw2, fb2) = refs[1 + i * P: 1 + (i + 1) * P]
        d_in = channels + i * G

        # ---- liner: x1 = concat(features) @ W + b  (MXU in weight dtype, f32 acc)
        x_cat = cat_ref[:, :d_in]
        x1 = (jnp.dot(x_cat.astype(lin_w.dtype), lin_w[...],
                      preferred_element_type=jnp.float32)
              + lin_b[...].astype(jnp.float32))

        # ---- PreNorm(attention) + residual
        y = _layernorm(x1, ln1_g, ln1_b).astype(wqkv.dtype)
        # one fused QKV matmul -> [N, 3G] f32 scratch
        qkv_ref[...] = jnp.dot(y, wqkv[...], preferred_element_type=jnp.float32)
        for h in range(heads):  # only the tiny [N,N] pieces are per-head
            q_h = qkv_ref[:, h * hd:(h + 1) * hd]
            k_h = qkv_ref[:, G + h * hd: G + (h + 1) * hd]
            v_h = qkv_ref[:, 2 * G + h * hd: 2 * G + (h + 1) * hd]
            dots = jax.lax.dot_general(q_h, k_h, (((1,), (1,)), ((), ())),
                                       preferred_element_type=jnp.float32) * scale
            m = jnp.max(dots, axis=-1, keepdims=True)
            p = jnp.exp(dots - m)
            inv = pl.reciprocal(jnp.sum(p, axis=-1, keepdims=True), approx=True)
            # head output written into a lane-contiguous [N, G] buffer
            head_ref[:, h * hd:(h + 1) * hd] = (
                jnp.dot(p, v_h, preferred_element_type=jnp.float32) * inv)
        attn_out = head_ref[...]
        # single output projection + bias + residual (attn(x) + x per the module)
        x2 = (jnp.dot(attn_out.astype(wo.dtype), wo[...],
                      preferred_element_type=jnp.float32)
              + bo[...].astype(jnp.float32) + x1)

        # ---- PreNorm(FeedForward)  (no residual in the module)
        y2 = _layernorm(x2, ln2_g, ln2_b).astype(fw1.dtype)
        h1 = _gelu(jnp.dot(y2, fw1[...], preferred_element_type=jnp.float32)
                   + fb1[...].astype(jnp.float32))
        x3 = (jnp.dot(h1.astype(fw2.dtype), fw2[...],
                      preferred_element_type=jnp.float32)
              + fb2[...].astype(jnp.float32))

        # append to the dense-connectivity buffer (stays in VMEM)
        cat_ref[:, channels + i * G: channels + (i + 1) * G] = x3

    # ---- out_layer: FeedForward on the full concat
    ow1, ob1, ow2, ob2 = refs[1 + P * depth: n_in]
    x_cat = cat_ref[...]
    h1 = _gelu(jnp.dot(x_cat.astype(ow1.dtype), ow1[...],
                       preferred_element_type=jnp.float32)
               + ob1[...].astype(jnp.float32))
    out = (jnp.dot(h1.astype(ow2.dtype), ow2[...],
                   preferred_element_type=jnp.float32)
           + ob2[...].astype(jnp.float32))
    o_ref[0] = out.astype(o_ref.dtype)


# ----------------------------------------------------------------------------- wrappers
def _const_spec(shape):
    nd = len(shape)
    return pl.BlockSpec(tuple(shape), lambda b: (0,) * nd)


def prepare_params(params, compute_dtype=jnp.float32):
    """One-time parameter prep, OUTSIDE jit.

    Casts matmul weights to the compute dtype (bf16 -> ~3x MXU throughput and half
    the weight DMA bytes), keeps LN params / biases in f32 (all non-matmul math is
    f32 -> safe on v5e), and reshapes 1-D vectors to (1, D) lane-major slabs.
    """
    def w(a):
        return jnp.asarray(a, compute_dtype)

    def v(a):
        return jnp.asarray(a, jnp.float32).reshape(1, -1)

    flat = []
    for lp in params["layers"]:
        ap, fp = lp["attn"], lp["ff"]
        flat += [w(lp["lin_w"]), v(lp["lin_b"]),
                 v(ap["ln_g"]), v(ap["ln_b"]), w(ap["wqkv"]), w(ap["wo"]), v(ap["bo"]),
                 v(fp["ln_g"]), v(fp["ln_b"]), w(fp["w1"]), v(fp["b1"]),
                 w(fp["w2"]), v(fp["b2"])]
    op = params["out"]
    flat += [w(op["w1"]), v(op["b1"]), w(op["w2"]), v(op["b2"])]
    return tuple(flat)


def _vmem_limit_bytes(flat_weights, x, out_nbytes, scratch_bytes):
    need = (2 * sum(int(a.size) * a.dtype.itemsize for a in flat_weights)
            + 2 * out_nbytes + 2 * int(x.size) * x.dtype.itemsize + scratch_bytes)
    try:
        cap = int(pltpu.get_tpu_info().vmem_capacity_bytes)   # 64 MiB on v7x
    except Exception:
        cap = 64 * 1024 * 1024
    # generous headroom for compiler-internal scratch, capped well under capacity
    return int(min(max(4 * need, 16 * 1024 * 1024), cap // 2))


@functools.partial(jax.jit, static_argnames=("channels", "growth", "depth", "heads"))
def dense_transformer_block(x, flat_weights, *, channels, growth, depth, heads):
    """Full DenseTransformerBlock forward (dropout = identity / eval mode)."""
    B, N, C = x.shape
    assert C == channels and growth % heads == 0
    G = growth
    cat_dim = channels + depth * G

    kernel = functools.partial(_fused_block_kernel, channels=channels,
                               growth=growth, depth=depth, heads=heads)

    in_specs = [pl.BlockSpec((1, N, C), lambda b: (b, 0, 0))]
    in_specs += [_const_spec(w.shape) for w in flat_weights]

    scratch_shapes = [
        pltpu.VMEM((N, cat_dim), jnp.float32),   # dense-connectivity concat buffer
        pltpu.VMEM((N, 3 * G), jnp.float32),     # fused QKV activations
        pltpu.VMEM((N, G), jnp.float32),         # lane-contiguous per-head outputs
    ]
    scratch_bytes = 4 * N * (cat_dim + 4 * G)
    out_nbytes = B * N * C * x.dtype.itemsize

    return pl.pallas_call(
        kernel,
        out_shape=jax.ShapeDtypeStruct((B, N, C), x.dtype),
        grid_spec=pltpu.PrefetchScalarGridSpec(
            num_scalar_prefetch=0,
            grid=(B,),
            in_specs=in_specs,
            out_specs=pl.BlockSpec((1, N, C), lambda b: (b, 0, 0)),
            scratch_shapes=scratch_shapes,
        ),
        compiler_params=pltpu.CompilerParams(
            dimension_semantics=("parallel",),
            vmem_limit_bytes=_vmem_limit_bytes(flat_weights, x, out_nbytes,
                                               scratch_bytes),
        ),
    )(x, *flat_weights)


# ----------------------------------------------------------------------------- params / reference
def init_params(key, out_channels, growth_rate=32, depth=4, heads=8):
    del heads
    G, M = growth_rate, growth_rate * 2
    keys = iter(jax.random.split(key, depth * 9 + 4))

    def lin(k, fan_in, fan_out):
        return jax.random.normal(k, (fan_in, fan_out), jnp.float32) / math.sqrt(fan_in)

    def vec(k, n):
        return jax.random.normal(k, (n,), jnp.float32) * 0.02

    layers = []
    for i in range(depth):
        d_in = out_channels + i * G
        layers.append({
            "lin_w": lin(next(keys), d_in, G),
            "lin_b": vec(next(keys), G),
            "attn": {
                "ln_g": jnp.ones((G,), jnp.float32),
                "ln_b": jnp.zeros((G,), jnp.float32),
                "wqkv": lin(next(keys), G, 3 * G),
                "wo": lin(next(keys), G, G),
                "bo": vec(next(keys), G),
            },
            "ff": {
                "ln_g": jnp.ones((G,), jnp.float32),
                "ln_b": jnp.zeros((G,), jnp.float32),
                "w1": lin(next(keys), G, M),
                "b1": vec(next(keys), M),
                "w2": lin(next(keys), M, G),
                "b2": vec(next(keys), G),
            },
        })
    cat_dim = out_channels + depth * G
    out = {
        "w1": lin(next(keys), cat_dim, M),
        "b1": vec(next(keys), M),
        "w2": lin(next(keys), M, out_channels),
        "b2": vec(next(keys), out_channels),
    }
    return {"layers": layers, "out": out}


def _ref_layernorm(x, g, b):
    mean = jnp.mean(x, axis=-1, keepdims=True)
    var = jnp.mean((x - mean) ** 2, axis=-1, keepdims=True)
    return (x - mean) * jax.lax.rsqrt(var + LN_EPS) * g + b


def _ref_attention(x, ap, heads):
    B, N, G = x.shape
    hd = G // heads
    y = _ref_layernorm(x, ap["ln_g"], ap["ln_b"])
    q, k, v = jnp.split(y @ ap["wqkv"], 3, axis=-1)
    split = lambda t: t.reshape(B, N, heads, hd).transpose(0, 2, 1, 3)
    q, k, v = split(q), split(k), split(v)
    dots = jnp.einsum("bhnd,bhmd->bhnm", q, k) * (hd ** -0.5)
    attn = jax.nn.softmax(dots, axis=-1)
    out = jnp.einsum("bhnm,bhmd->bhnd", attn, v)
    out = out.transpose(0, 2, 1, 3).reshape(B, N, G)
    return out @ ap["wo"] + ap["bo"]


def _ref_ffn(x, fp, ln):
    if ln:
        x = _ref_layernorm(x, fp["ln_g"], fp["ln_b"])
    h = _gelu(x @ fp["w1"] + fp["b1"])
    return h @ fp["w2"] + fp["b2"]


def _ref_forward(x, params, heads):
    features = [x]
    for lp in params["layers"]:
        xin = jnp.concatenate(features, axis=2)
        x1 = xin @ lp["lin_w"] + lp["lin_b"]
        x2 = _ref_attention(x1, lp["attn"], heads) + x1
        x3 = _ref_ffn(x2, lp["ff"], ln=True)
        features.append(x3)
    xcat = jnp.concatenate(features, axis=2)
    return _ref_ffn(xcat, params["out"], ln=False)


# ----------------------------------------------------------------------------- self-test
if __name__ == "__main__":
    B, N = 2, 8                                   # batch, sequence
    out_channels, growth_rate, depth, heads = 32, 32, 4, 8

    key = jax.random.PRNGKey(0)
    kx, kp = jax.random.split(key)
    x = jax.random.normal(kx, (B, N, out_channels), dtype=jnp.float32)
    params = init_params(kp, out_channels, growth_rate, depth, heads)
    ref = _ref_forward(x, params, heads)

    # f32 weights: tight parity check. Tolerance covers the EUP approximate
    # reciprocal in softmax and the MXU f32 multi-pass decomposition.
    flat_f32 = prepare_params(params, compute_dtype=jnp.float32)
    out_f32 = jax.block_until_ready(dense_transformer_block(
        x, flat_f32, channels=out_channels, growth=growth_rate,
        depth=depth, heads=heads))
    assert out_f32.shape == (B, N, out_channels)
    err_f32 = float(jnp.max(jnp.abs(out_f32 - ref)))
    assert err_f32 < 1e-2, f"f32 mismatch vs reference: max abs err {err_f32}"

    # bf16 fast path (half the weight DMA bytes, ~3x MXU throughput); loose check —
    # this is an intentional precision change vs the f32 reference.
    flat_bf16 = prepare_params(params, compute_dtype=jnp.bfloat16)
    out_bf16 = jax.block_until_ready(dense_transformer_block(
        x, flat_bf16, channels=out_channels, growth=growth_rate,
        depth=depth, heads=heads))
    assert out_bf16.shape == (B, N, out_channels)
    assert bool(jnp.all(jnp.isfinite(out_bf16)))
    err_bf16 = float(jnp.max(jnp.abs(out_bf16 - ref)))
    assert err_bf16 < 0.25, f"bf16 mismatch vs reference: max abs err {err_bf16}"

    print("KERNEL_OK")
</pallas_src>

<mosaic_0001>
module attributes {stable_mosaic.version = 11 : i64} {
  func.func @_fused_block_kernel(%arg0: i32, %arg1: memref<1x8x32xf32, #tpu.memory_space<vmem>>, %arg2: memref<32x32xf32, #tpu.memory_space<vmem>>, %arg3: memref<1x32xf32, #tpu.memory_space<vmem>>, %arg4: memref<1x32xf32, #tpu.memory_space<vmem>>, %arg5: memref<1x32xf32, #tpu.memory_space<vmem>>, %arg6: memref<32x96xf32, #tpu.memory_space<vmem>>, %arg7: memref<32x32xf32, #tpu.memory_space<vmem>>, %arg8: memref<1x32xf32, #tpu.memory_space<vmem>>, %arg9: memref<1x32xf32, #tpu.memory_space<vmem>>, %arg10: memref<1x32xf32, #tpu.memory_space<vmem>>, %arg11: memref<32x64xf32, #tpu.memory_space<vmem>>, %arg12: memref<1x64xf32, #tpu.memory_space<vmem>>, %arg13: memref<64x32xf32, #tpu.memory_space<vmem>>, %arg14: memref<1x32xf32, #tpu.memory_space<vmem>>, %arg15: memref<64x32xf32, #tpu.memory_space<vmem>>, %arg16: memref<1x32xf32, #tpu.memory_space<vmem>>, %arg17: memref<1x32xf32, #tpu.memory_space<vmem>>, %arg18: memref<1x32xf32, #tpu.memory_space<vmem>>, %arg19: memref<32x96xf32, #tpu.memory_space<vmem>>, %arg20: memref<32x32xf32, #tpu.memory_space<vmem>>, %arg21: memref<1x32xf32, #tpu.memory_space<vmem>>, %arg22: memref<1x32xf32, #tpu.memory_space<vmem>>, %arg23: memref<1x32xf32, #tpu.memory_space<vmem>>, %arg24: memref<32x64xf32, #tpu.memory_space<vmem>>, %arg25: memref<1x64xf32, #tpu.memory_space<vmem>>, %arg26: memref<64x32xf32, #tpu.memory_space<vmem>>, %arg27: memref<1x32xf32, #tpu.memory_space<vmem>>, %arg28: memref<96x32xf32, #tpu.memory_space<vmem>>, %arg29: memref<1x32xf32, #tpu.memory_space<vmem>>, %arg30: memref<1x32xf32, #tpu.memory_space<vmem>>, %arg31: memref<1x32xf32, #tpu.memory_space<vmem>>, %arg32: memref<32x96xf32, #tpu.memory_space<vmem>>, %arg33: memref<32x32xf32, #tpu.memory_space<vmem>>, %arg34: memref<1x32xf32, #tpu.memory_space<vmem>>, %arg35: memref<1x32xf32, #tpu.memory_space<vmem>>, %arg36: memref<1x32xf32, #tpu.memory_space<vmem>>, %arg37: memref<32x64xf32, #tpu.memory_space<vmem>>, %arg38: memref<1x64xf32, #tpu.memory_space<vmem>>, %arg39: memref<64x32xf32, #tpu.memory_space<vmem>>, %arg40: memref<1x32xf32, #tpu.memory_space<vmem>>, %arg41: memref<128x32xf32, #tpu.memory_space<vmem>>, %arg42: memref<1x32xf32, #tpu.memory_space<vmem>>, %arg43: memref<1x32xf32, #tpu.memory_space<vmem>>, %arg44: memref<1x32xf32, #tpu.memory_space<vmem>>, %arg45: memref<32x96xf32, #tpu.memory_space<vmem>>, %arg46: memref<32x32xf32, #tpu.memory_space<vmem>>, %arg47: memref<1x32xf32, #tpu.memory_space<vmem>>, %arg48: memref<1x32xf32, #tpu.memory_space<vmem>>, %arg49: memref<1x32xf32, #tpu.memory_space<vmem>>, %arg50: memref<32x64xf32, #tpu.memory_space<vmem>>, %arg51: memref<1x64xf32, #tpu.memory_space<vmem>>, %arg52: memref<64x32xf32, #tpu.memory_space<vmem>>, %arg53: memref<1x32xf32, #tpu.memory_space<vmem>>, %arg54: memref<160x64xf32, #tpu.memory_space<vmem>>, %arg55: memref<1x64xf32, #tpu.memory_space<vmem>>, %arg56: memref<64x32xf32, #tpu.memory_space<vmem>>, %arg57: memref<1x32xf32, #tpu.memory_space<vmem>>, %arg58: memref<1x8x32xf32, #tpu.memory_space<vmem>>, %arg59: memref<8x160xf32, #tpu.memory_space<vmem>>, %arg60: memref<8x96xf32, #tpu.memory_space<vmem>>, %arg61: memref<8x32xf32, #tpu.memory_space<vmem>>) attributes {dimension_semantics = [#tpu.dimension_semantics<parallel>], iteration_bounds = array<i64: 2>, scalar_prefetch = 0 : i64, scratch_operands = 3 : i64, tpu.core_type = #tpu.core_type<tc>, window_params = [{transform_indices = @transform_0, window_bounds = array<i64: 1, 8, 32>}, {pipeline_mode = #tpu.pipeline_mode<synchronous>, transform_indices = @transform_1, window_bounds = array<i64: 32, 32>}, {pipeline_mode = #tpu.pipeline_mode<synchronous>, transform_indices = @transform_2, window_bounds = array<i64: 1, 32>}, {pipeline_mode = #tpu.pipeline_mode<synchronous>, transform_indices = @transform_3, window_bounds = array<i64: 1, 32>}, {pipeline_mode = #tpu.pipeline_mode<synchronous>, transform_indices = @transform_4, window_bounds = array<i64: 1, 32>}, {pipeline_mode = #tpu.pipeline_mode<synchronous>, transform_indices = @transform_5, window_bounds = array<i64: 32, 96>}, {pipeline_mode = #tpu.pipeline_mode<synchronous>, transform_indices = @transform_6, window_bounds = array<i64: 32, 32>}, {pipeline_mode = #tpu.pipeline_mode<synchronous>, transform_indices = @transform_7, window_bounds = array<i64: 1, 32>}, {pipeline_mode = #tpu.pipeline_mode<synchronous>, transform_indices = @transform_8, window_bounds = array<i64: 1, 32>}, {pipeline_mode = #tpu.pipeline_mode<synchronous>, transform_indices = @transform_9, window_bounds = array<i64: 1, 32>}, {pipeline_mode = #tpu.pipeline_mode<synchronous>, transform_indices = @transform_10, window_bounds = array<i64: 32, 64>}, {pipeline_mode = #tpu.pipeline_mode<synchronous>, transform_indices = @transform_11, window_bounds = array<i64: 1, 64>}, {pipeline_mode = #tpu.pipeline_mode<synchronous>, transform_indices = @transform_12, window_bounds = array<i64: 64, 32>}, {pipeline_mode = #tpu.pipeline_mode<synchronous>, transform_indices = @transform_13, window_bounds = array<i64: 1, 32>}, {pipeline_mode = #tpu.pipeline_mode<synchronous>, transform_indices = @transform_14, window_bounds = array<i64: 64, 32>}, {pipeline_mode = #tpu.pipeline_mode<synchronous>, transform_indices = @transform_15, window_bounds = array<i64: 1, 32>}, {pipeline_mode = #tpu.pipeline_mode<synchronous>, transform_indices = @transform_16, window_bounds = array<i64: 1, 32>}, {pipeline_mode = #tpu.pipeline_mode<synchronous>, transform_indices = @transform_17, window_bounds = array<i64: 1, 32>}, {pipeline_mode = #tpu.pipeline_mode<synchronous>, transform_indices = @transform_18, window_bounds = array<i64: 32, 96>}, {pipeline_mode = #tpu.pipeline_mode<synchronous>, transform_indices = @transform_19, window_bounds = array<i64: 32, 32>}, {pipeline_mode = #tpu.pipeline_mode<synchronous>, transform_indices = @transform_20, window_bounds = array<i64: 1, 32>}, {pipeline_mode = #tpu.pipeline_mode<synchronous>, transform_indices = @transform_21, window_bounds = array<i64: 1, 32>}, {pipeline_mode = #tpu.pipeline_mode<synchronous>, transform_indices = @transform_22, window_bounds = array<i64: 1, 32>}, {pipeline_mode = #tpu.pipeline_mode<synchronous>, transform_indices = @transform_23, window_bounds = array<i64: 32, 64>}, {pipeline_mode = #tpu.pipeline_mode<synchronous>, transform_indices = @transform_24, window_bounds = array<i64: 1, 64>}, {pipeline_mode = #tpu.pipeline_mode<synchronous>, transform_indices = @transform_25, window_bounds = array<i64: 64, 32>}, {pipeline_mode = #tpu.pipeline_mode<synchronous>, transform_indices = @transform_26, window_bounds = array<i64: 1, 32>}, {pipeline_mode = #tpu.pipeline_mode<synchronous>, transform_indices = @transform_27, window_bounds = array<i64: 96, 32>}, {pipeline_mode = #tpu.pipeline_mode<synchronous>, transform_indices = @transform_28, window_bounds = array<i64: 1, 32>}, {pipeline_mode = #tpu.pipeline_mode<synchronous>, transform_indices = @transform_29, window_bounds = array<i64: 1, 32>}, {pipeline_mode = #tpu.pipeline_mode<synchronous>, transform_indices = @transform_30, window_bounds = array<i64: 1, 32>}, {pipeline_mode = #tpu.pipeline_mode<synchronous>, transform_indices = @transform_31, window_bounds = array<i64: 32, 96>}, {pipeline_mode = #tpu.pipeline_mode<synchronous>, transform_indices = @transform_32, window_bounds = array<i64: 32, 32>}, {pipeline_mode = #tpu.pipeline_mode<synchronous>, transform_indices = @transform_33, window_bounds = array<i64: 1, 32>}, {pipeline_mode = #tpu.pipeline_mode<synchronous>, transform_indices = @transform_34, window_bounds = array<i64: 1, 32>}, {pipeline_mode = #tpu.pipeline_mode<synchronous>, transform_indices = @transform_35, window_bounds = array<i64: 1, 32>}, {pipeline_mode = #tpu.pipeline_mode<synchronous>, transform_indices = @transform_36, window_bounds = array<i64: 32, 64>}, {pipeline_mode = #tpu.pipeline_mode<synchronous>, transform_indices = @transform_37, window_bounds = array<i64: 1, 64>}, {pipeline_mode = #tpu.pipeline_mode<synchronous>, transform_indices = @transform_38, window_bounds = array<i64: 64, 32>}, {pipeline_mode = #tpu.pipeline_mode<synchronous>, transform_indices = @transform_39, window_bounds = array<i64: 1, 32>}, {pipeline_mode = #tpu.pipeline_mode<synchronous>, transform_indices = @transform_40, window_bounds = array<i64: 128, 32>}, {pipeline_mode = #tpu.pipeline_mode<synchronous>, transform_indices = @transform_41, window_bounds = array<i64: 1, 32>}, {pipeline_mode = #tpu.pipeline_mode<synchronous>, transform_indices = @transform_42, window_bounds = array<i64: 1, 32>}, {pipeline_mode = #tpu.pipeline_mode<synchronous>, transform_indices = @transform_43, window_bounds = array<i64: 1, 32>}, {pipeline_mode = #tpu.pipeline_mode<synchronous>, transform_indices = @transform_44, window_bounds = array<i64: 32, 96>}, {pipeline_mode = #tpu.pipeline_mode<synchronous>, transform_indices = @transform_45, window_bounds = array<i64: 32, 32>}, {pipeline_mode = #tpu.pipeline_mode<synchronous>, transform_indices = @transform_46, window_bounds = array<i64: 1, 32>}, {pipeline_mode = #tpu.pipeline_mode<synchronous>, transform_indices = @transform_47, window_bounds = array<i64: 1, 32>}, {pipeline_mode = #tpu.pipeline_mode<synchronous>, transform_indices = @transform_48, window_bounds = array<i64: 1, 32>}, {pipeline_mode = #tpu.pipeline_mode<synchronous>, transform_indices = @transform_49, window_bounds = array<i64: 32, 64>}, {pipeline_mode = #tpu.pipeline_mode<synchronous>, transform_indices = @transform_50, window_bounds = array<i64: 1, 64>}, {pipeline_mode = #tpu.pipeline_mode<synchronous>, transform_indices = @transform_51, window_bounds = array<i64: 64, 32>}, {pipeline_mode = #tpu.pipeline_mode<synchronous>, transform_indices = @transform_52, window_bounds = array<i64: 1, 32>}, {pipeline_mode = #tpu.pipeline_mode<synchronous>, transform_indices = @transform_53, window_bounds = array<i64: 160, 64>}, {pipeline_mode = #tpu.pipeline_mode<synchronous>, transform_indices = @transform_54, window_bounds = array<i64: 1, 64>}, {pipeline_mode = #tpu.pipeline_mode<synchronous>, transform_indices = @transform_55, window_bounds = array<i64: 64, 32>}, {pipeline_mode = #tpu.pipeline_mode<synchronous>, transform_indices = @transform_56, window_bounds = array<i64: 1, 32>}, {transform_indices = @transform_57, window_bounds = array<i64: 1, 8, 32>}]} {
    %c0 = arith.constant 0 : index
    %c0_0 = arith.constant 0 : index
    %c0_1 = arith.constant 0 : index
    %0 = vector.load %arg1[%c0, %c0_0, %c0_1] : memref<1x8x32xf32, #tpu.memory_space<vmem>>, vector<1x8x32xf32>
    %1 = vector.shape_cast %0 : vector<1x8x32xf32> to vector<8x32xf32>
    %c0_2 = arith.constant 0 : index
    %c0_3 = arith.constant 0 : index
    %2 = vector.load %arg59[%c0_2, %c0_3] : memref<8x160xf32, #tpu.memory_space<vmem>>, vector<8x32xf32>
    tpu.vector_store %arg59[%c0_2, %c0_3], %1 {strides = array<i32>} : memref<8x160xf32, #tpu.memory_space<vmem>>, vector<8x32xf32>,
    %c0_4 = arith.constant 0 : index
    %c0_5 = arith.constant 0 : index
    %3 = vector.load %arg59[%c0_4, %c0_5] : memref<8x160xf32, #tpu.memory_space<vmem>>, vector<8x32xf32>
    %c0_6 = arith.constant 0 : index
    %c0_7 = arith.constant 0 : index
    %4 = vector.load %arg2[%c0_6, %c0_7] : memref<32x32xf32, #tpu.memory_space<vmem>>, vector<32x32xf32>
    %cst = arith.constant dense<0.000000e+00> : vector<8x32xf32>
    %5 = tpu.matmul %3, %4, %cst {dimension_numbers = #tpu.dot_dimension_numbers<[1], [0], [0], [1], [0, 0, 1, 1], [], []>} : vector<8x32xf32>, vector<32x32xf32>, vector<8x32xf32> -> vector<8x32xf32>
    %c0_8 = arith.constant 0 : index
    %c0_9 = arith.constant 0 : index
    %6 = vector.load %arg3[%c0_8, %c0_9] : memref<1x32xf32, #tpu.memory_space<vmem>>, vector<1x32xf32>
    %7 = vector.broadcast %6 : vector<1x32xf32> to vector<8x32xf32>
    %8 = arith.addf %5, %7 : vector<8x32xf32>
    %cst_10 = arith.constant dense<0.000000e+00> : vector<8xf32>
    %9 = vector.multi_reduction <add>, %8, %cst_10 [1] : vector<8x32xf32> to vector<8xf32>
    %10 = vector.shape_cast %9 : vector<8xf32> to vector<8x1xf32>
    %cst_11 = arith.constant 3.200000e+01 : f32
    %11 = vector.broadcast %cst_11 : f32 to vector<8x1xf32>
    %12 = arith.divf %10, %11 : vector<8x1xf32>
    %13 = vector.broadcast %12 : vector<8x1xf32> to vector<8x32xf32>
    %14 = arith.subf %8, %13 : vector<8x32xf32>
    %15 = arith.mulf %14, %14 : vector<8x32xf32>
    %cst_12 = arith.constant dense<0.000000e+00> : vector<8xf32>
    %16 = vector.multi_reduction <add>, %15, %cst_12 [1] : vector<8x32xf32> to vector<8xf32>
    %17 = vector.shape_cast %16 : vector<8xf32> to vector<8x1xf32>
    %cst_13 = arith.constant 3.200000e+01 : f32
    %18 = vector.broadcast %cst_13 : f32 to vector<8x1xf32>
    %19 = arith.divf %17, %18 : vector<8x1xf32>
    %cst_14 = arith.constant 9.99999974E-6 : f32
    %20 = vector.broadcast %cst_14 : f32 to vector<8x1xf32>
    %21 = arith.addf %19, %20 : vector<8x1xf32>
    %22 = math.rsqrt %21 : vector<8x1xf32>
    %23 = vector.broadcast %22 : vector<8x1xf32> to vector<8x32xf32>
    %24 = arith.mulf %14, %23 : vector<8x32xf32>
    %c0_15 = arith.constant 0 : index
    %c0_16 = arith.constant 0 : index
    %25 = vector.load %arg4[%c0_15, %c0_16] : memref<1x32xf32, #tpu.memory_space<vmem>>, vector<1x32xf32>
    %26 = vector.broadcast %25 : vector<1x32xf32> to vector<8x32xf32>
    %27 = arith.mulf %24, %26 : vector<8x32xf32>
    %c0_17 = arith.constant 0 : index
    %c0_18 = arith.constant 0 : index
    %28 = vector.load %arg5[%c0_17, %c0_18] : memref<1x32xf32, #tpu.memory_space<vmem>>, vector<1x32xf32>
    %29 = vector.broadcast %28 : vector<1x32xf32> to vector<8x32xf32>
    %30 = arith.addf %27, %29 : vector<8x32xf32>
    %c0_19 = arith.constant 0 : index
    %c0_20 = arith.constant 0 : index
    %31 = vector.load %arg6[%c0_19, %c0_20] : memref<32x96xf32, #tpu.memory_space<vmem>>, vector<32x96xf32>
    %cst_21 = arith.constant dense<0.000000e+00> : vector<8x96xf32>
    %32 = tpu.matmul %30, %31, %cst_21 {dimension_numbers = #tpu.dot_dimension_numbers<[1], [0], [0], [1], [0, 0, 1, 1], [], []>} : vector<8x32xf32>, vector<32x96xf32>, vector<8x96xf32> -> vector<8x96xf32>
    %c0_22 = arith.constant 0 : index
    %c0_23 = arith.constant 0 : index
    %33 = vector.load %arg60[%c0_22, %c0_23] : memref<8x96xf32, #tpu.memory_space<vmem>>, vector<8x96xf32>
    tpu.vector_store %arg60[%c0_22, %c0_23], %32 {strides = array<i32>} : memref<8x96xf32, #tpu.memory_space<vmem>>, vector<8x96xf32>,
    %c0_24 = arith.constant 0 : index
    %c0_25 = arith.constant 0 : index
    %34 = vector.load %arg60[%c0_24, %c0_25] : memref<8x96xf32, #tpu.memory_space<vmem>>, vector<8x4xf32>
    %c0_26 = arith.constant 0 : index
    %c32 = arith.constant 32 : index
    %35 = vector.load %arg60[%c0_26, %c32] : memref<8x96xf32, #tpu.memory_space<vmem>>, vector<8x4xf32>
    %c0_27 = arith.constant 0 : index
    %c64 = arith.constant 64 : index
    %36 = vector.load %arg60[%c0_27, %c64] : memref<8x96xf32, #tpu.memory_space<vmem>>, vector<8x4xf32>
    %cst_28 = arith.constant dense<0.000000e+00> : vector<8x8xf32>
    %37 = tpu.matmul %34, %35, %cst_28 {dimension_numbers = #tpu.dot_dimension_numbers<[1], [1], [0], [0], [0, 0, 1, 0], [], []>} : vector<8x4xf32>, vector<8x4xf32>, vector<8x8xf32> -> vector<8x8xf32>
    %cst_29 = arith.constant 5.000000e-01 : f32
    %38 = vector.broadcast %cst_29 : f32 to vector<8x8xf32>
    %39 = arith.mulf %37, %38 : vector<8x8xf32>
    %cst_30 = arith.constant dense<0xFF800000> : vector<8xf32>
    %40 = vector.multi_reduction <maximumf>, %39, %cst_30 [1] : vector<8x8xf32> to vector<8xf32>
    %41 = vector.shape_cast %40 : vector<8xf32> to vector<8x1xf32>
    %42 = vector.broadcast %41 : vector<8x1xf32> to vector<8x8xf32>
    %43 = arith.subf %39, %42 : vector<8x8xf32>
    %44 = math.exp %43 : vector<8x8xf32>
    %cst_31 = arith.constant dense<0.000000e+00> : vector<8xf32>
    %45 = vector.multi_reduction <add>, %44, %cst_31 [1] : vector<8x8xf32> to vector<8xf32>
    %46 = vector.shape_cast %45 : vector<8xf32> to vector<8x1xf32>
    %47 = tpu.reciprocal %46 {approx = true} : vector<8x1xf32> -> vector<8x1xf32>
    %cst_32 = arith.constant dense<0.000000e+00> : vector<8x4xf32>
    %48 = tpu.matmul %44, %36, %cst_32 {dimension_numbers = #tpu.dot_dimension_numbers<[1], [0], [0], [1], [0, 0, 1, 1], [], []>} : vector<8x8xf32>, vector<8x4xf32>, vector<8x4xf32> -> vector<8x4xf32>
    %49 = vector.broadcast %47 : vector<8x1xf32> to vector<8x4xf32>
    %50 = arith.mulf %48, %49 : vector<8x4xf32>
    %c0_33 = arith.constant 0 : index
    %c0_34 = arith.constant 0 : index
    %51 = vector.load %arg61[%c0_33, %c0_34] : memref<8x32xf32, #tpu.memory_space<vmem>>, vector<8x4xf32>
    tpu.vector_store %arg61[%c0_33, %c0_34], %50 {strides = array<i32>} : memref<8x32xf32, #tpu.memory_space<vmem>>, vector<8x4xf32>,
    %c0_35 = arith.constant 0 : index
    %c4 = arith.constant 4 : index
    %52 = vector.load %arg60[%c0_35, %c4] : memref<8x96xf32, #tpu.memory_space<vmem>>, vector<8x4xf32>
    %c0_36 = arith.constant 0 : index
    %c36 = arith.constant 36 : index
    %53 = vector.load %arg60[%c0_36, %c36] : memref<8x96xf32, #tpu.memory_space<vmem>>, vector<8x4xf32>
    %c0_37 = arith.constant 0 : index
    %c68 = arith.constant 68 : index
    %54 = vector.load %arg60[%c0_37, %c68] : memref<8x96xf32, #tpu.memory_space<vmem>>, vector<8x4xf32>
    %cst_38 = arith.constant dense<0.000000e+00> : vector<8x8xf32>
    %55 = tpu.matmul %52, %53, %cst_38 {dimension_numbers = #tpu.dot_dimension_numbers<[1], [1], [0], [0], [0, 0, 1, 0], [], []>} : vector<8x4xf32>, vector<8x4xf32>, vector<8x8xf32> -> vector<8x8xf32>
    %cst_39 = arith.constant 5.000000e-01 : f32
    %56 = vector.broadcast %cst_39 : f32 to vector<8x8xf32>
    %57 = arith.mulf %55, %56 : vector<8x8xf32>
    %cst_40 = arith.constant dense<0xFF800000> : vector<8xf32>
    %58 = vector.multi_reduction <maximumf>, %57, %cst_40 [1] : vector<8x8xf32> to vector<8xf32>
    %59 = vector.shape_cast %58 : vector<8xf32> to vector<8x1xf32>
    %60 = vector.broadcast %59 : vector<8x1xf32> to vector<8x8xf32>
    %61 = arith.subf %57, %60 : vector<8x8xf32>
    %62 = math.exp %61 : vector<8x8xf32>
    %cst_41 = arith.constant dense<0.000000e+00> : vector<8xf32>
    %63 = vector.multi_reduction <add>, %62, %cst_41 [1] : vector<8x8xf32> to vector<8xf32>
    %64 = vector.shape_cast %63 : vector<8xf32> to vector<8x1xf32>
    %65 = tpu.reciprocal %64 {approx = true} : vector<8x1xf32> -> vector<8x1xf32>
    %cst_42 = arith.constant dense<0.000000e+00> : vector<8x4xf32>
    %66 = tpu.matmul %62, %54, %cst_42 {dimension_numbers = #tpu.dot_dimension_numbers<[1], [0], [0], [1], [0, 0, 1, 1], [], []>} : vector<8x8xf32>, vector<8x4xf32>, vector<8x4xf32> -> vector<8x4xf32>
    %67 = vector.broadcast %65 : vector<8x1xf32> to vector<8x4xf32>
    %68 = arith.mulf %66, %67 : vector<8x4xf32>
    %c0_43 = arith.constant 0 : index
    %c4_44 = arith.constant 4 : index
    %69 = vector.load %arg61[%c0_43, %c4_44] : memref<8x32xf32, #tpu.memory_space<vmem>>, vector<8x4xf32>
    tpu.vector_store %arg61[%c0_43, %c4_44], %68 {strides = array<i32>} : memref<8x32xf32, #tpu.memory_space<vmem>>, vector<8x4xf32>,
    %c0_45 = arith.constant 0 : index
    %c8 = arith.constant 8 : index
    %70 = vector.load %arg60[%c0_45, %c8] : memref<8x96xf32, #tpu.memory_space<vmem>>, vector<8x4xf32>
    %c0_46 = arith.constant 0 : index
    %c40 = arith.constant 40 : index
    %71 = vector.load %arg60[%c0_46, %c40] : memref<8x96xf32, #tpu.memory_space<vmem>>, vector<8x4xf32>
    %c0_47 = arith.constant 0 : index
    %c72 = arith.constant 72 : index
    %72 = vector.load %arg60[%c0_47, %c72] : memref<8x96xf32, #tpu.memory_space<vmem>>, vector<8x4xf32>
    %cst_48 = arith.constant dense<0.000000e+00> : vector<8x8xf32>
    %73 = tpu.matmul %70, %71, %cst_48 {dimension_numbers = #tpu.dot_dimension_numbers<[1], [1], [0], [0], [0, 0, 1, 0], [], []>} : vector<8x4xf32>, vector<8x4xf32>, vector<8x8xf32> -> vector<8x8xf32>
    %cst_49 = arith.constant 5.000000e-01 : f32
    %74 = vector.broadcast %cst_49 : f32 to vector<8x8xf32>
    %75 = arith.mulf %73, %74 : vector<8x8xf32>
    %cst_50 = arith.constant dense<0xFF800000> : vector<8xf32>
    %76 = vector.multi_reduction <maximumf>, %75, %cst_50 [1] : vector<8x8xf32> to vector<8xf32>
    %77 = vector.shape_cast %76 : vector<8xf32> to vector<8x1xf32>
    %78 = vector.broadcast %77 : vector<8x1xf32> to vector<8x8xf32>
    %79 = arith.subf %75, %78 : vector<8x8xf32>
    %80 = math.exp %79 : vector<8x8xf32>
    %cst_51 = arith.constant dense<0.000000e+00> : vector<8xf32>
    %81 = vector.multi_reduction <add>, %80, %cst_51 [1] : vector<8x8xf32> to vector<8xf32>
    %82 = vector.shape_cast %81 : vector<8xf32> to vector<8x1xf32>
    %83 = tpu.reciprocal %82 {approx = true} : vector<8x1xf32> -> vector<8x1xf32>
    %cst_52 = arith.constant dense<0.000000e+00> : vector<8x4xf32>
    %84 = tpu.matmul %80, %72, %cst_52 {dimension_numbers = #tpu.dot_dimension_numbers<[1], [0], [0], [1], [0, 0, 1, 1], [], []>} : vector<8x8xf32>, vector<8x4xf32>, vector<8x4xf32> -> vector<8x4xf32>
    %85 = vector.broadcast %83 : vector<8x1xf32> to vector<8x4xf32>
    %86 = arith.mulf %84, %85 : vector<8x4xf32>
    %c0_53 = arith.constant 0 : index
    %c8_54 = arith.constant 8 : index
    %87 = vector.load %arg61[%c0_53, %c8_54] : memref<8x32xf32, #tpu.memory_space<vmem>>, vector<8x4xf32>
    tpu.vector_store %arg61[%c0_53, %c8_54], %86 {strides = array<i32>} : memref<8x32xf32, #tpu.memory_space<vmem>>, vector<8x4xf32>,
    %c0_55 = arith.constant 0 : index
    %c12 = arith.constant 12 : index
    %88 = vector.load %arg60[%c0_55, %c12] : memref<8x96xf32, #tpu.memory_space<vmem>>, vector<8x4xf32>
    %c0_56 = arith.constant 0 : index
    %c44 = arith.constant 44 : index
    %89 = vector.load %arg60[%c0_56, %c44] : memref<8x96xf32, #tpu.memory_space<vmem>>, vector<8x4xf32>
    %c0_57 = arith.constant 0 : index
    %c76 = arith.constant 76 : index
    %90 = vector.load %arg60[%c0_57, %c76] : memref<8x96xf32, #tpu.memory_space<vmem>>, vector<8x4xf32>
    %cst_58 = arith.constant dense<0.000000e+00> : vector<8x8xf32>
    %91 = tpu.matmul %88, %89, %cst_58 {dimension_numbers = #tpu.dot_dimension_numbers<[1], [1], [0], [0], [0, 0, 1, 0], [], []>} : vector<8x4xf32>, vector<8x4xf32>, vector<8x8xf32> -> vector<8x8xf32>
    %cst_59 = arith.constant 5.000000e-01 : f32
    %92 = vector.broadcast %cst_59 : f32 to vector<8x8xf32>
    %93 = arith.mulf %91, %92 : vector<8x8xf32>
    %cst_60 = arith.constant dense<0xFF800000> : vector<8xf32>
    %94 = vector.multi_reduction <maximumf>, %93, %cst_60 [1] : vector<8x8xf32> to vector<8xf32>
    %95 = vector.shape_cast %94 : vector<8xf32> to vector<8x1xf32>
    %96 = vector.broadcast %95 : vector<8x1xf32> to vector<8x8xf32>
    %97 = arith.subf %93, %96 : vector<8x8xf32>
    %98 = math.exp %97 : vector<8x8xf32>
    %cst_61 = arith.constant dense<0.000000e+00> : vector<8xf32>
    %99 = vector.multi_reduction <add>, %98, %cst_61 [1] : vector<8x8xf32> to vector<8xf32>
    %100 = vector.shape_cast %99 : vector<8xf32> to vector<8x1xf32>
    %101 = tpu.reciprocal %100 {approx = true} : vector<8x1xf32> -> vector<8x1xf32>
    %cst_62 = arith.constant dense<0.000000e+00> : vector<8x4xf32>
    %102 = tpu.matmul %98, %90, %cst_62 {dimension_numbers = #tpu.dot_dimension_numbers<[1], [0], [0], [1], [0, 0, 1, 1], [], []>} : vector<8x8xf32>, vector<8x4xf32>, vector<8x4xf32> -> vector<8x4xf32>
    %103 = vector.broadcast %101 : vector<8x1xf32> to vector<8x4xf32>
    %104 = arith.mulf %102, %103 : vector<8x4xf32>
    %c0_63 = arith.constant 0 : index
    %c12_64 = arith.constant 12 : index
    %105 = vector.load %arg61[%c0_63, %c12_64] : memref<8x32xf32, #tpu.memory_space<vmem>>, vector<8x4xf32>
    tpu.vector_store %arg61[%c0_63, %c12_64], %104 {strides = array<i32>} : memref<8x32xf32, #tpu.memory_space<vmem>>, vector<8x4xf32>,
    %c0_65 = arith.constant 0 : index
    %c16 = arith.constant 16 : index
    %106 = vector.load %arg60[%c0_65, %c16] : memref<8x96xf32, #tpu.memory_space<vmem>>, vector<8x4xf32>
    %c0_66 = arith.constant 0 : index
    %c48 = arith.constant 48 : index
    %107 = vector.load %arg60[%c0_66, %c48] : memref<8x96xf32, #tpu.memory_space<vmem>>, vector<8x4xf32>
    %c0_67 = arith.constant 0 : index
    %c80 = arith.constant 80 : index
    %108 = vector.load %arg60[%c0_67, %c80] : memref<8x96xf32, #tpu.memory_space<vmem>>, vector<8x4xf32>
    %cst_68 = arith.constant dense<0.000000e+00> : vector<8x8xf32>
    %109 = tpu.matmul %106, %107, %cst_68 {dimension_numbers = #tpu.dot_dimension_numbers<[1], [1], [0], [0], [0, 0, 1, 0], [], []>} : vector<8x4xf32>, vector<8x4xf32>, vector<8x8xf32> -> vector<8x8xf32>
    %cst_69 = arith.constant 5.000000e-01 : f32
    %110 = vector.broadcast %cst_69 : f32 to vector<8x8xf32>
    %111 = arith.mulf %109, %110 : vector<8x8xf32>
    %cst_70 = arith.constant dense<0xFF800000> : vector<8xf32>
    %112 = vector.multi_reduction <maximumf>, %111, %cst_70 [1] : vector<8x8xf32> to vector<8xf32>
    %113 = vector.shape_cast %112 : vector<8xf32> to vector<8x1xf32>
    %114 = vector.broadcast %113 : vector<8x1xf32> to vector<8x8xf32>
    %115 = arith.subf %111, %114 : vector<8x8xf32>
    %116 = math.exp %115 : vector<8x8xf32>
    %cst_71 = arith.constant dense<0.000000e+00> : vector<8xf32>
    %117 = vector.multi_reduction <add>, %116, %cst_71 [1] : vector<8x8xf32> to vector<8xf32>
    %118 = vector.shape_cast %117 : vector<8xf32> to vector<8x1xf32>
    %119 = tpu.reciprocal %118 {approx = true} : vector<8x1xf32> -> vector<8x1xf32>
    %cst_72 = arith.constant dense<0.000000e+00> : vector<8x4xf32>
    %120 = tpu.matmul %116, %108, %cst_72 {dimension_numbers = #tpu.dot_dimension_numbers<[1], [0], [0], [1], [0, 0, 1, 1], [], []>} : vector<8x8xf32>, vector<8x4xf32>, vector<8x4xf32> -> vector<8x4xf32>
    %121 = vector.broadcast %119 : vector<8x1xf32> to vector<8x4xf32>
    %122 = arith.mulf %120, %121 : vector<8x4xf32>
    %c0_73 = arith.constant 0 : index
    %c16_74 = arith.constant 16 : index
    %123 = vector.load %arg61[%c0_73, %c16_74] : memref<8x32xf32, #tpu.memory_space<vmem>>, vector<8x4xf32>
    tpu.vector_store %arg61[%c0_73, %c16_74], %122 {strides = array<i32>} : memref<8x32xf32, #tpu.memory_space<vmem>>, vector<8x4xf32>,
    %c0_75 = arith.constant 0 : index
    %c20 = arith.constant 20 : index
    %124 = vector.load %arg60[%c0_75, %c20] : memref<8x96xf32, #tpu.memory_space<vmem>>, vector<8x4xf32>
    %c0_76 = arith.constant 0 : index
    %c52 = arith.constant 52 : index
    %125 = vector.load %arg60[%c0_76, %c52] : memref<8x96xf32, #tpu.memory_space<vmem>>, vector<8x4xf32>
    %c0_77 = arith.constant 0 : index
    %c84 = arith.constant 84 : index
    %126 = vector.load %arg60[%c0_77, %c84] : memref<8x96xf32, #tpu.memory_space<vmem>>, vector<8x4xf32>
    %cst_78 = arith.constant dense<0.000000e+00> : vector<8x8xf32>
    %127 = tpu.matmul %124, %125, %cst_78 {dimension_numbers = #tpu.dot_dimension_numbers<[1], [1], [0], [0], [0, 0, 1, 0], [], []>} : vector<8x4xf32>, vector<8x4xf32>, vector<8x8xf32> -> vector<8x8xf32>
    %cst_79 = arith.constant 5.000000e-01 : f32
    %128 = vector.broadcast %cst_79 : f32 to vector<8x8xf32>
    %129 = arith.mulf %127, %128 : vector<8x8xf32>
    %cst_80 = arith.constant dense<0xFF800000> : vector<8xf32>
    %130 = vector.multi_reduction <maximumf>, %129, %cst_80 [1] : vector<8x8xf32> to vector<8xf32>
    %131 = vector.shape_cast %130 : vector<8xf32> to vector<8x1xf32>
    %132 = vector.broadcast %131 : vector<8x1xf32> to vector<8x8xf32>
    %133 = arith.subf %129, %132 : vector<8x8xf32>
    %134 = math.exp %133 : vector<8x8xf32>
    %cst_81 = arith.constant dense<0.000000e+00> : vector<8xf32>
    %135 = vector.multi_reduction <add>, %134, %cst_81 [1] : vector<8x8xf32> to vector<8xf32>
    %136 = vector.shape_cast %135 : vector<8xf32> to vector<8x1xf32>
    %137 = tpu.reciprocal %136 {approx = true} : vector<8x1xf32> -> vector<8x1xf32>
    %cst_82 = arith.constant dense<0.000000e+00> : vector<8x4xf32>
    %138 = tpu.matmul %134, %126, %cst_82 {dimension_numbers = #tpu.dot_dimension_numbers<[1], [0], [0], [1], [0, 0, 1, 1], [], []>} : vector<8x8xf32>, vector<8x4xf32>, vector<8x4xf32> -> vector<8x4xf32>
    %139 = vector.broadcast %137 : vector<8x1xf32> to vector<8x4xf32>
    %140 = arith.mulf %138, %139 : vector<8x4xf32>
    %c0_83 = arith.constant 0 : index
    %c20_84 = arith.constant 20 : index
    %141 = vector.load %arg61[%c0_83, %c20_84] : memref<8x32xf32, #tpu.memory_space<vmem>>, vector<8x4xf32>
    tpu.vector_store %arg61[%c0_83, %c20_84], %140 {strides = array<i32>} : memref<8x32xf32, #tpu.memory_space<vmem>>, vector<8x4xf32>,
    %c0_85 = arith.constant 0 : index
    %c24 = arith.constant 24 : index
    %142 = vector.load %arg60[%c0_85, %c24] : memref<8x96xf32, #tpu.memory_space<vmem>>, vector<8x4xf32>
    %c0_86 = arith.constant 0 : index
    %c56 = arith.constant 56 : index
    %143 = vector.load %arg60[%c0_86, %c56] : memref<8x96xf32, #tpu.memory_space<vmem>>, vector<8x4xf32>
    %c0_87 = arith.constant 0 : index
    %c88 = arith.constant 88 : index
    %144 = vector.load %arg60[%c0_87, %c88] : memref<8x96xf32, #tpu.memory_space<vmem>>, vector<8x4xf32>
    %cst_88 = arith.constant dense<0.000000e+00> : vector<8x8xf32>
    %145 = tpu.matmul %142, %143, %cst_88 {dimension_numbers = #tpu.dot_dimension_numbers<[1], [1], [0], [0], [0, 0, 1, 0], [], []>} : vector<8x4xf32>, vector<8x4xf32>, vector<8x8xf32> -> vector<8x8xf32>
    %cst_89 = arith.constant 5.000000e-01 : f32
    %146 = vector.broadcast %cst_89 : f32 to vector<8x8xf32>
    %147 = arith.mulf %145, %146 : vector<8x8xf32>
    %cst_90 = arith.constant dense<0xFF800000> : vector<8xf32>
    %148 = vector.multi_reduction <maximumf>, %147, %cst_90 [1] : vector<8x8xf32> to vector<8xf32>
    %149 = vector.shape_cast %148 : vector<8xf32> to vector<8x1xf32>
    %150 = vector.broadcast %149 : vector<8x1xf32> to vector<8x8xf32>
    %151 = arith.subf %147, %150 : vector<8x8xf32>
    %152 = math.exp %151 : vector<8x8xf32>
    %cst_91 = arith.constant dense<0.000000e+00> : vector<8xf32>
    %153 = vector.multi_reduction <add>, %152, %cst_91 [1] : vector<8x8xf32> to vector<8xf32>
    %154 = vector.shape_cast %153 : vector<8xf32> to vector<8x1xf32>
    %155 = tpu.reciprocal %154 {approx = true} : vector<8x1xf32> -> vector<8x1xf32>
    %cst_92 = arith.constant dense<0.000000e+00> : vector<8x4xf32>
    %156 = tpu.matmul %152, %144, %cst_92 {dimension_numbers = #tpu.dot_dimension_numbers<[1], [0], [0], [1], [0, 0, 1, 1], [], []>} : vector<8x8xf32>, vector<8x4xf32>, vector<8x4xf32> -> vector<8x4xf32>
    %157 = vector.broadcast %155 : vector<8x1xf32> to vector<8x4xf32>
    %158 = arith.mulf %156, %157 : vector<8x4xf32>
    %c0_93 = arith.constant 0 : index
    %c24_94 = arith.constant 24 : index
    %159 = vector.load %arg61[%c0_93, %c24_94] : memref<8x32xf32, #tpu.memory_space<vmem>>, vector<8x4xf32>
    tpu.vector_store %arg61[%c0_93, %c24_94], %158 {strides = array<i32>} : memref<8x32xf32, #tpu.memory_space<vmem>>, vector<8x4xf32>,
    %c0_95 = arith.constant 0 : index
    %c28 = arith.constant 28 : index
    %160 = vector.load %arg60[%c0_95, %c28] : memref<8x96xf32, #tpu.memory_space<vmem>>, vector<8x4xf32>
    %c0_96 = arith.constant 0 : index
    %c60 = arith.constant 60 : index
    %161 = vector.load %arg60[%c0_96, %c60] : memref<8x96xf32, #tpu.memory_space<vmem>>, vector<8x4xf32>
    %c0_97 = arith.constant 0 : index
    %c92 = arith.constant 92 : index
    %162 = vector.load %arg60[%c0_97, %c92] : memref<8x96xf32, #tpu.memory_space<vmem>>, vector<8x4xf32>
    %cst_98 = arith.constant dense<0.000000e+00> : vector<8x8xf32>
    %163 = tpu.matmul %160, %161, %cst_98 {dimension_numbers = #tpu.dot_dimension_numbers<[1], [1], [0], [0], [0, 0, 1, 0], [], []>} : vector<8x4xf32>, vector<8x4xf32>, vector<8x8xf32> -> vector<8x8xf32>
    %cst_99 = arith.constant 5.000000e-01 : f32
    %164 = vector.broadcast %cst_99 : f32 to vector<8x8xf32>
    %165 = arith.mulf %163, %164 : vector<8x8xf32>
    %cst_100 = arith.constant dense<0xFF800000> : vector<8xf32>
    %166 = vector.multi_reduction <maximumf>, %165, %cst_100 [1] : vector<8x8xf32> to vector<8xf32>
    %167 = vector.shape_cast %166 : vector<8xf32> to vector<8x1xf32>
    %168 = vector.broadcast %167 : vector<8x1xf32> to vector<8x8xf32>
    %169 = arith.subf %165, %168 : vector<8x8xf32>
    %170 = math.exp %169 : vector<8x8xf32>
    %cst_101 = arith.constant dense<0.000000e+00> : vector<8xf32>
    %171 = vector.multi_reduction <add>, %170, %cst_101 [1] : vector<8x8xf32> to vector<8xf32>
    %172 = vector.shape_cast %171 : vector<8xf32> to vector<8x1xf32>
    %173 = tpu.reciprocal %172 {approx = true} : vector<8x1xf32> -> vector<8x1xf32>
    %cst_102 = arith.constant dense<0.000000e+00> : vector<8x4xf32>
    %174 = tpu.matmul %170, %162, %cst_102 {dimension_numbers = #tpu.dot_dimension_numbers<[1], [0], [0], [1], [0, 0, 1, 1], [], []>} : vector<8x8xf32>, vector<8x4xf32>, vector<8x4xf32> -> vector<8x4xf32>
    %175 = vector.broadcast %173 : vector<8x1xf32> to vector<8x4xf32>
    %176 = arith.mulf %174, %175 : vector<8x4xf32>
    %c0_103 = arith.constant 0 : index
    %c28_104 = arith.constant 28 : index
    %177 = vector.load %arg61[%c0_103, %c28_104] : memref<8x32xf32, #tpu.memory_space<vmem>>, vector<8x4xf32>
    tpu.vector_store %arg61[%c0_103, %c28_104], %176 {strides = array<i32>} : memref<8x32xf32, #tpu.memory_space<vmem>>, vector<8x4xf32>,
    %c0_105 = arith.constant 0 : index
    %c0_106 = arith.constant 0 : index
    %178 = vector.load %arg61[%c0_105, %c0_106] : memref<8x32xf32, #tpu.memory_space<vmem>>, vector<8x32xf32>
    %c0_107 = arith.constant 0 : index
    %c0_108 = arith.constant 0 : index
    %179 = vector.load %arg7[%c0_107, %c0_108] : memref<32x32xf32, #tpu.memory_space<vmem>>, vector<32x32xf32>
    %cst_109 = arith.constant dense<0.000000e+00> : vector<8x32xf32>
    %180 = tpu.matmul %178, %179, %cst_109 {dimension_numbers = #tpu.dot_dimension_numbers<[1], [0], [0], [1], [0, 0, 1, 1], [], []>} : vector<8x32xf32>, vector<32x32xf32>, vector<8x32xf32> -> vector<8x32xf32>
    %c0_110 = arith.constant 0 : index
    %c0_111 = arith.constant 0 : index
    %181 = vector.load %arg8[%c0_110, %c0_111] : memref<1x32xf32, #tpu.memory_space<vmem>>, vector<1x32xf32>
    %182 = vector.broadcast %181 : vector<1x32xf32> to vector<8x32xf32>
    %183 = arith.addf %180, %182 : vector<8x32xf32>
    %184 = arith.addf %183, %8 : vector<8x32xf32>
    %cst_112 = arith.constant dense<0.000000e+00> : vector<8xf32>
    %185 = vector.multi_reduction <add>, %184, %cst_112 [1] : vector<8x32xf32> to vector<8xf32>
    %186 = vector.shape_cast %185 : vector<8xf32> to vector<8x1xf32>
    %cst_113 = arith.constant 3.200000e+01 : f32
    %187 = vector.broadcast %cst_113 : f32 to vector<8x1xf32>
    %188 = arith.divf %186, %187 : vector<8x1xf32>
    %189 = vector.broadcast %188 : vector<8x1xf32> to vector<8x32xf32>
    %190 = arith.subf %184, %189 : vector<8x32xf32>
    %191 = arith.mulf %190, %190 : vector<8x32xf32>
    %cst_114 = arith.constant dense<0.000000e+00> : vector<8xf32>
    %192 = vector.multi_reduction <add>, %191, %cst_114 [1] : vector<8x32xf32> to vector<8xf32>
    %193 = vector.shape_cast %192 : vector<8xf32> to vector<8x1xf32>
    %cst_115 = arith.constant 3.200000e+01 : f32
    %194 = vector.broadcast %cst_115 : f32 to vector<8x1xf32>
    %195 = arith.divf %193, %194 : vector<8x1xf32>
    %cst_116 = arith.constant 9.99999974E-6 : f32
    %196 = vector.broadcast %cst_116 : f32 to vector<8x1xf32>
    %197 = arith.addf %195, %196 : vector<8x1xf32>
    %198 = math.rsqrt %197 : vector<8x1xf32>
    %199 = vector.broadcast %198 : vector<8x1xf32> to vector<8x32xf32>
    %200 = arith.mulf %190, %199 : vector<8x32xf32>
    %c0_117 = arith.constant 0 : index
    %c0_118 = arith.constant 0 : index
    %201 = vector.load %arg9[%c0_117, %c0_118] : memref<1x32xf32, #tpu.memory_space<vmem>>, vector<1x32xf32>
    %202 = vector.broadcast %201 : vector<1x32xf32> to vector<8x32xf32>
    %203 = arith.mulf %200, %202 : vector<8x32xf32>
    %c0_119 = arith.constant 0 : index
    %c0_120 = arith.constant 0 : index
    %204 = vector.load %arg10[%c0_119, %c0_120] : memref<1x32xf32, #tpu.memory_space<vmem>>, vector<1x32xf32>
    %205 = vector.broadcast %204 : vector<1x32xf32> to vector<8x32xf32>
    %206 = arith.addf %203, %205 : vector<8x32xf32>
    %c0_121 = arith.constant 0 : index
    %c0_122 = arith.constant 0 : index
    %207 = vector.load %arg11[%c0_121, %c0_122] : memref<32x64xf32, #tpu.memory_space<vmem>>, vector<32x64xf32>
    %cst_123 = arith.constant dense<0.000000e+00> : vector<8x64xf32>
    %208 = tpu.matmul %206, %207, %cst_123 {dimension_numbers = #tpu.dot_dimension_numbers<[1], [0], [0], [1], [0, 0, 1, 1], [], []>} : vector<8x32xf32>, vector<32x64xf32>, vector<8x64xf32> -> vector<8x64xf32>
    %c0_124 = arith.constant 0 : index
    %c0_125 = arith.constant 0 : index
    %209 = vector.load %arg12[%c0_124, %c0_125] : memref<1x64xf32, #tpu.memory_space<vmem>>, vector<1x64xf32>
    %210 = vector.broadcast %209 : vector<1x64xf32> to vector<8x64xf32>
    %211 = arith.addf %208, %210 : vector<8x64xf32>
    %cst_126 = arith.constant 5.000000e-01 : f32
    %212 = vector.broadcast %cst_126 : f32 to vector<8x64xf32>
    %213 = arith.mulf %212, %211 : vector<8x64xf32>
    %cst_127 = arith.constant 4.471500e-02 : f32
    %214 = vector.broadcast %cst_127 : f32 to vector<8x64xf32>
    %215 = arith.mulf %214, %211 : vector<8x64xf32>
    %216 = arith.mulf %215, %211 : vector<8x64xf32>
    %217 = arith.mulf %216, %211 : vector<8x64xf32>
    %218 = arith.addf %211, %217 : vector<8x64xf32>
    %cst_128 = arith.constant 0.797884583 : f32
    %219 = vector.broadcast %cst_128 : f32 to vector<8x64xf32>
    %220 = arith.mulf %219, %218 : vector<8x64xf32>
    %221 = math.tanh %220 : vector<8x64xf32>
    %cst_129 = arith.constant 1.000000e+00 : f32
    %222 = vector.broadcast %cst_129 : f32 to vector<8x64xf32>
    %223 = arith.addf %222, %221 : vector<8x64xf32>
    %224 = arith.mulf %213, %223 : vector<8x64xf32>
    %c0_130 = arith.constant 0 : index
    %c0_131 = arith.constant 0 : index
    %225 = vector.load %arg13[%c0_130, %c0_131] : memref<64x32xf32, #tpu.memory_space<vmem>>, vector<64x32xf32>
    %cst_132 = arith.constant dense<0.000000e+00> : vector<8x32xf32>
    %226 = tpu.matmul %224, %225, %cst_132 {dimension_numbers = #tpu.dot_dimension_numbers<[1], [0], [0], [1], [0, 0, 1, 1], [], []>} : vector<8x64xf32>, vector<64x32xf32>, vector<8x32xf32> -> vector<8x32xf32>
    %c0_133 = arith.constant 0 : index
    %c0_134 = arith.constant 0 : index
    %227 = vector.load %arg14[%c0_133, %c0_134] : memref<1x32xf32, #tpu.memory_space<vmem>>, vector<1x32xf32>
    %228 = vector.broadcast %227 : vector<1x32xf32> to vector<8x32xf32>
    %229 = arith.addf %226, %228 : vector<8x32xf32>
    %c0_135 = arith.constant 0 : index
    %c32_136 = arith.constant 32 : index
    %230 = vector.load %arg59[%c0_135, %c32_136] : memref<8x160xf32, #tpu.memory_space<vmem>>, vector<8x32xf32>
    tpu.vector_store %arg59[%c0_135, %c32_136], %229 {strides = array<i32>} : memref<8x160xf32, #tpu.memory_space<vmem>>, vector<8x32xf32>,
    %c0_137 = arith.constant 0 : index
    %c0_138 = arith.constant 0 : index
    %231 = vector.load %arg59[%c0_137, %c0_138] : memref<8x160xf32, #tpu.memory_space<vmem>>, vector<8x64xf32>
    %c0_139 = arith.constant 0 : index
    %c0_140 = arith.constant 0 : index
    %232 = vector.load %arg15[%c0_139, %c0_140] : memref<64x32xf32, #tpu.memory_space<vmem>>, vector<64x32xf32>
    %cst_141 = arith.constant dense<0.000000e+00> : vector<8x32xf32>
    %233 = tpu.matmul %231, %232, %cst_141 {dimension_numbers = #tpu.dot_dimension_numbers<[1], [0], [0], [1], [0, 0, 1, 1], [], []>} : vector<8x64xf32>, vector<64x32xf32>, vector<8x32xf32> -> vector<8x32xf32>
    %c0_142 = arith.constant 0 : index
    %c0_143 = arith.constant 0 : index
    %234 = vector.load %arg16[%c0_142, %c0_143] : memref<1x32xf32, #tpu.memory_space<vmem>>, vector<1x32xf32>
    %235 = vector.broadcast %234 : vector<1x32xf32> to vector<8x32xf32>
    %236 = arith.addf %233, %235 : vector<8x32xf32>
    %cst_144 = arith.constant dense<0.000000e+00> : vector<8xf32>
    %237 = vector.multi_reduction <add>, %236, %cst_144 [1] : vector<8x32xf32> to vector<8xf32>
    %238 = vector.shape_cast %237 : vector<8xf32> to vector<8x1xf32>
    %cst_145 = arith.constant 3.200000e+01 : f32
    %239 = vector.broadcast %cst_145 : f32 to vector<8x1xf32>
    %240 = arith.divf %238, %239 : vector<8x1xf32>
    %241 = vector.broadcast %240 : vector<8x1xf32> to vector<8x32xf32>
    %242 = arith.subf %236, %241 : vector<8x32xf32>
    %243 = arith.mulf %242, %242 : vector<8x32xf32>
    %cst_146 = arith.constant dense<0.000000e+00> : vector<8xf32>
    %244 = vector.multi_reduction <add>, %243, %cst_146 [1] : vector<8x32xf32> to vector<8xf32>
    %245 = vector.shape_cast %244 : vector<8xf32> to vector<8x1xf32>
    %cst_147 = arith.constant 3.200000e+01 : f32
    %246 = vector.broadcast %cst_147 : f32 to vector<8x1xf32>
    %247 = arith.divf %245, %246 : vector<8x1xf32>
    %cst_148 = arith.constant 9.99999974E-6 : f32
    %248 = vector.broadcast %cst_148 : f32 to vector<8x1xf32>
    %249 = arith.addf %247, %248 : vector<8x1xf32>
    %250 = math.rsqrt %249 : vector<8x1xf32>
    %251 = vector.broadcast %250 : vector<8x1xf32> to vector<8x32xf32>
    %252 = arith.mulf %242, %251 : vector<8x32xf32>
    %c0_149 = arith.constant 0 : index
    %c0_150 = arith.constant 0 : index
    %253 = vector.load %arg17[%c0_149, %c0_150] : memref<1x32xf32, #tpu.memory_space<vmem>>, vector<1x32xf32>
    %254 = vector.broadcast %253 : vector<1x32xf32> to vector<8x32xf32>
    %255 = arith.mulf %252, %254 : vector<8x32xf32>
    %c0_151 = arith.constant 0 : index
    %c0_152 = arith.constant 0 : index
    %256 = vector.load %arg18[%c0_151, %c0_152] : memref<1x32xf32, #tpu.memory_space<vmem>>, vector<1x32xf32>
    %257 = vector.broadcast %256 : vector<1x32xf32> to vector<8x32xf32>
    %258 = arith.addf %255, %257 : vector<8x32xf32>
    %c0_153 = arith.constant 0 : index
    %c0_154 = arith.constant 0 : index
    %259 = vector.load %arg19[%c0_153, %c0_154] : memref<32x96xf32, #tpu.memory_space<vmem>>, vector<32x96xf32>
    %cst_155 = arith.constant dense<0.000000e+00> : vector<8x96xf32>
    %260 = tpu.matmul %258, %259, %cst_155 {dimension_numbers = #tpu.dot_dimension_numbers<[1], [0], [0], [1], [0, 0, 1, 1], [], []>} : vector<8x32xf32>, vector<32x96xf32>, vector<8x96xf32> -> vector<8x96xf32>
    %c0_156 = arith.constant 0 : index
    %c0_157 = arith.constant 0 : index
    %261 = vector.load %arg60[%c0_156, %c0_157] : memref<8x96xf32, #tpu.memory_space<vmem>>, vector<8x96xf32>
    tpu.vector_store %arg60[%c0_156, %c0_157], %260 {strides = array<i32>} : memref<8x96xf32, #tpu.memory_space<vmem>>, vector<8x96xf32>,
    %c0_158 = arith.constant 0 : index
    %c0_159 = arith.constant 0 : index
    %262 = vector.load %arg60[%c0_158, %c0_159] : memref<8x96xf32, #tpu.memory_space<vmem>>, vector<8x4xf32>
    %c0_160 = arith.constant 0 : index
    %c32_161 = arith.constant 32 : index
    %263 = vector.load %arg60[%c0_160, %c32_161] : memref<8x96xf32, #tpu.memory_space<vmem>>, vector<8x4xf32>
    %c0_162 = arith.constant 0 : index
    %c64_163 = arith.constant 64 : index
    %264 = vector.load %arg60[%c0_162, %c64_163] : memref<8x96xf32, #tpu.memory_space<vmem>>, vector<8x4xf32>
    %cst_164 = arith.constant dense<0.000000e+00> : vector<8x8xf32>
    %265 = tpu.matmul %262, %263, %cst_164 {dimension_numbers = #tpu.dot_dimension_numbers<[1], [1], [0], [0], [0, 0, 1, 0], [], []>} : vector<8x4xf32>, vector<8x4xf32>, vector<8x8xf32> -> vector<8x8xf32>
    %cst_165 = arith.constant 5.000000e-01 : f32
    %266 = vector.broadcast %cst_165 : f32 to vector<8x8xf32>
    %267 = arith.mulf %265, %266 : vector<8x8xf32>
    %cst_166 = arith.constant dense<0xFF800000> : vector<8xf32>
    %268 = vector.multi_reduction <maximumf>, %267, %cst_166 [1] : vector<8x8xf32> to vector<8xf32>
    %269 = vector.shape_cast %268 : vector<8xf32> to vector<8x1xf32>
    %270 = vector.broadcast %269 : vector<8x1xf32> to vector<8x8xf32>
    %271 = arith.subf %267, %270 : vector<8x8xf32>
    %272 = math.exp %271 : vector<8x8xf32>
    %cst_167 = arith.constant dense<0.000000e+00> : vector<8xf32>
    %273 = vector.multi_reduction <add>, %272, %cst_167 [1] : vector<8x8xf32> to vector<8xf32>
    %274 = vector.shape_cast %273 : vector<8xf32> to vector<8x1xf32>
    %275 = tpu.reciprocal %274 {approx = true} : vector<8x1xf32> -> vector<8x1xf32>
    %cst_168 = arith.constant dense<0.000000e+00> : vector<8x4xf32>
    %276 = tpu.matmul %272, %264, %cst_168 {dimension_numbers = #tpu.dot_dimension_numbers<[1], [0], [0], [1], [0, 0, 1, 1], [], []>} : vector<8x8xf32>, vector<8x4xf32>, vector<8x4xf32> -> vector<8x4xf32>
    %277 = vector.broadcast %275 : vector<8x1xf32> to vector<8x4xf32>
    %278 = arith.mulf %276, %277 : vector<8x4xf32>
    %c0_169 = arith.constant 0 : index
    %c0_170 = arith.constant 0 : index
    %279 = vector.load %arg61[%c0_169, %c0_170] : memref<8x32xf32, #tpu.memory_space<vmem>>, vector<8x4xf32>
    tpu.vector_store %arg61[%c0_169, %c0_170], %278 {strides = array<i32>} : memref<8x32xf32, #tpu.memory_space<vmem>>, vector<8x4xf32>,
    %c0_171 = arith.constant 0 : index
    %c4_172 = arith.constant 4 : index
    %280 = vector.load %arg60[%c0_171, %c4_172] : memref<8x96xf32, #tpu.memory_space<vmem>>, vector<8x4xf32>
    %c0_173 = arith.constant 0 : index
    %c36_174 = arith.constant 36 : index
    %281 = vector.load %arg60[%c0_173, %c36_174] : memref<8x96xf32, #tpu.memory_space<vmem>>, vector<8x4xf32>
    %c0_175 = arith.constant 0 : index
    %c68_176 = arith.constant 68 : index
    %282 = vector.load %arg60[%c0_175, %c68_176] : memref<8x96xf32, #tpu.memory_space<vmem>>, vector<8x4xf32>
    %cst_177 = arith.constant dense<0.000000e+00> : vector<8x8xf32>
    %283 = tpu.matmul %280, %281, %cst_177 {dimension_numbers = #tpu.dot_dimension_numbers<[1], [1], [0], [0], [0, 0, 1, 0], [], []>} : vector<8x4xf32>, vector<8x4xf32>, vector<8x8xf32> -> vector<8x8xf32>
    %cst_178 = arith.constant 5.000000e-01 : f32
    %284 = vector.broadcast %cst_178 : f32 to vector<8x8xf32>
    %285 = arith.mulf %283, %284 : vector<8x8xf32>
    %cst_179 = arith.constant dense<0xFF800000> : vector<8xf32>
    %286 = vector.multi_reduction <maximumf>, %285, %cst_179 [1] : vector<8x8xf32> to vector<8xf32>
    %287 = vector.shape_cast %286 : vector<8xf32> to vector<8x1xf32>
    %288 = vector.broadcast %287 : vector<8x1xf32> to vector<8x8xf32>
    %289 = arith.subf %285, %288 : vector<8x8xf32>
    %290 = math.exp %289 : vector<8x8xf32>
    %cst_180 = arith.constant dense<0.000000e+00> : vector<8xf32>
    %291 = vector.multi_reduction <add>, %290, %cst_180 [1] : vector<8x8xf32> to vector<8xf32>
    %292 = vector.shape_cast %291 : vector<8xf32> to vector<8x1xf32>
    %293 = tpu.reciprocal %292 {approx = true} : vector<8x1xf32> -> vector<8x1xf32>
    %cst_181 = arith.constant dense<0.000000e+00> : vector<8x4xf32>
    %294 = tpu.matmul %290, %282, %cst_181 {dimension_numbers = #tpu.dot_dimension_numbers<[1], [0], [0], [1], [0, 0, 1, 1], [], []>} : vector<8x8xf32>, vector<8x4xf32>, vector<8x4xf32> -> vector<8x4xf32>
    %295 = vector.broadcast %293 : vector<8x1xf32> to vector<8x4xf32>
    %296 = arith.mulf %294, %295 : vector<8x4xf32>
    %c0_182 = arith.constant 0 : index
    %c4_183 = arith.constant 4 : index
    %297 = vector.load %arg61[%c0_182, %c4_183] : memref<8x32xf32, #tpu.memory_space<vmem>>, vector<8x4xf32>
    tpu.vector_store %arg61[%c0_182, %c4_183], %296 {strides = array<i32>} : memref<8x32xf32, #tpu.memory_space<vmem>>, vector<8x4xf32>,
    %c0_184 = arith.constant 0 : index
    %c8_185 = arith.constant 8 : index
    %298 = vector.load %arg60[%c0_184, %c8_185] : memref<8x96xf32, #tpu.memory_space<vmem>>, vector<8x4xf32>
    %c0_186 = arith.constant 0 : index
    %c40_187 = arith.constant 40 : index
    %299 = vector.load %arg60[%c0_186, %c40_187] : memref<8x96xf32, #tpu.memory_space<vmem>>, vector<8x4xf32>
    %c0_188 = arith.constant 0 : index
    %c72_189 = arith.constant 72 : index
    %300 = vector.load %arg60[%c0_188, %c72_189] : memref<8x96xf32, #tpu.memory_space<vmem>>, vector<8x4xf32>
    %cst_190 = arith.constant dense<0.000000e+00> : vector<8x8xf32>
    %301 = tpu.matmul %298, %299, %cst_190 {dimension_numbers = #tpu.dot_dimension_numbers<[1], [1], [0], [0], [0, 0, 1, 0], [], []>} : vector<8x4xf32>, vector<8x4xf32>, vector<8x8xf32> -> vector<8x8xf32>
    %cst_191 = arith.constant 5.000000e-01 : f32
    %302 = vector.broadcast %cst_191 : f32 to vector<8x8xf32>
    %303 = arith.mulf %301, %302 : vector<8x8xf32>
    %cst_192 = arith.constant dense<0xFF800000> : vector<8xf32>
    %304 = vector.multi_reduction <maximumf>, %303, %cst_192 [1] : vector<8x8xf32> to vector<8xf32>
    %305 = vector.shape_cast %304 : vector<8xf32> to vector<8x1xf32>
    %306 = vector.broadcast %305 : vector<8x1xf32> to vector<8x8xf32>
    %307 = arith.subf %303, %306 : vector<8x8xf32>
    %308 = math.exp %307 : vector<8x8xf32>
    %cst_193 = arith.constant dense<0.000000e+00> : vector<8xf32>
    %309 = vector.multi_reduction <add>, %308, %cst_193 [1] : vector<8x8xf32> to vector<8xf32>
    %310 = vector.shape_cast %309 : vector<8xf32> to vector<8x1xf32>
    %311 = tpu.reciprocal %310 {approx = true} : vector<8x1xf32> -> vector<8x1xf32>
    %cst_194 = arith.constant dense<0.000000e+00> : vector<8x4xf32>
    %312 = tpu.matmul %308, %300, %cst_194 {dimension_numbers = #tpu.dot_dimension_numbers<[1], [0], [0], [1], [0, 0, 1, 1], [], []>} : vector<8x8xf32>, vector<8x4xf32>, vector<8x4xf32> -> vector<8x4xf32>
    %313 = vector.broadcast %311 : vector<8x1xf32> to vector<8x4xf32>
    %314 = arith.mulf %312, %313 : vector<8x4xf32>
    %c0_195 = arith.constant 0 : index
    %c8_196 = arith.constant 8 : index
    %315 = vector.load %arg61[%c0_195, %c8_196] : memref<8x32xf32, #tpu.memory_space<vmem>>, vector<8x4xf32>
    tpu.vector_store %arg61[%c0_195, %c8_196], %314 {strides = array<i32>} : memref<8x32xf32, #tpu.memory_space<vmem>>, vector<8x4xf32>,
    %c0_197 = arith.constant 0 : index
    %c12_198 = arith.constant 12 : index
    %316 = vector.load %arg60[%c0_197, %c12_198] : memref<8x96xf32, #tpu.memory_space<vmem>>, vector<8x4xf32>
    %c0_199 = arith.constant 0 : index
    %c44_200 = arith.constant 44 : index
    %317 = vector.load %arg60[%c0_199, %c44_200] : memref<8x96xf32, #tpu.memory_space<vmem>>, vector<8x4xf32>
    %c0_201 = arith.constant 0 : index
    %c76_202 = arith.constant 76 : index
    %318 = vector.load %arg60[%c0_201, %c76_202] : memref<8x96xf32, #tpu.memory_space<vmem>>, vector<8x4xf32>
    %cst_203 = arith.constant dense<0.000000e+00> : vector<8x8xf32>
    %319 = tpu.matmul %316, %317, %cst_203 {dimension_numbers = #tpu.dot_dimension_numbers<[1], [1], [0], [0], [0, 0, 1, 0], [], []>} : vector<8x4xf32>, vector<8x4xf32>, vector<8x8xf32> -> vector<8x8xf32>
    %cst_204 = arith.constant 5.000000e-01 : f32
    %320 = vector.broadcast %cst_204 : f32 to vector<8x8xf32>
    %321 = arith.mulf %319, %320 : vector<8x8xf32>
    %cst_205 = arith.constant dense<0xFF800000> : vector<8xf32>
    %322 = vector.multi_reduction <maximumf>, %321, %cst_205 [1] : vector<8x8xf32> to vector<8xf32>
    %323 = vector.shape_cast %322 : vector<8xf32> to vector<8x1xf32>
    %324 = vector.broadcast %323 : vector<8x1xf32> to vector<8x8xf32>
    %325 = arith.subf %321, %324 : vector<8x8xf32>
    %326 = math.exp %325 : vector<8x8xf32>
    %cst_206 = arith.constant dense<0.000000e+00> : vector<8xf32>
    %327 = vector.multi_reduction <add>, %326, %cst_206 [1] : vector<8x8xf32> to vector<8xf32>
    %328 = vector.shape_cast %327 : vector<8xf32> to vector<8x1xf32>
    %329 = tpu.reciprocal %328 {approx = true} : vector<8x1xf32> -> vector<8x1xf32>
    %cst_207 = arith.constant dense<0.000000e+00> : vector<8x4xf32>
    %330 = tpu.matmul %326, %318, %cst_207 {dimension_numbers = #tpu.dot_dimension_numbers<[1], [0], [0], [1], [0, 0, 1, 1], [], []>} : vector<8x8xf32>, vector<8x4xf32>, vector<8x4xf32> -> vector<8x4xf32>
    %331 = vector.broadcast %329 : vector<8x1xf32> to vector<8x4xf32>
    %332 = arith.mulf %330, %331 : vector<8x4xf32>
    %c0_208 = arith.constant 0 : index
    %c12_209 = arith.constant 12 : index
    %333 = vector.load %arg61[%c0_208, %c12_209] : memref<8x32xf32, #tpu.memory_space<vmem>>, vector<8x4xf32>
    tpu.vector_store %arg61[%c0_208, %c12_209], %332 {strides = array<i32>} : memref<8x32xf32, #tpu.memory_space<vmem>>, vector<8x4xf32>,
    %c0_210 = arith.constant 0 : index
    %c16_211 = arith.constant 16 : index
    %334 = vector.load %arg60[%c0_210, %c16_211] : memref<8x96xf32, #tpu.memory_space<vmem>>, vector<8x4xf32>
    %c0_212 = arith.constant 0 : index
    %c48_213 = arith.constant 48 : index
    %335 = vector.load %arg60[%c0_212, %c48_213] : memref<8x96xf32, #tpu.memory_space<vmem>>, vector<8x4xf32>
    %c0_214 = arith.constant 0 : index
    %c80_215 = arith.constant 80 : index
    %336 = vector.load %arg60[%c0_214, %c80_215] : memref<8x96xf32, #tpu.memory_space<vmem>>, vector<8x4xf32>
    %cst_216 = arith.constant dense<0.000000e+00> : vector<8x8xf32>
    %337 = tpu.matmul %334, %335, %cst_216 {dimension_numbers = #tpu.dot_dimension_numbers<[1], [1], [0], [0], [0, 0, 1, 0], [], []>} : vector<8x4xf32>, vector<8x4xf32>, vector<8x8xf32> -> vector<8x8xf32>
    %cst_217 = arith.constant 5.000000e-01 : f32
    %338 = vector.broadcast %cst_217 : f32 to vector<8x8xf32>
    %339 = arith.mulf %337, %338 : vector<8x8xf32>
    %cst_218 = arith.constant dense<0xFF800000> : vector<8xf32>
    %340 = vector.multi_reduction <maximumf>, %339, %cst_218 [1] : vector<8x8xf32> to vector<8xf32>
    %341 = vector.shape_cast %340 : vector<8xf32> to vector<8x1xf32>
    %342 = vector.broadcast %341 : vector<8x1xf32> to vector<8x8xf32>
    %343 = arith.subf %339, %342 : vector<8x8xf32>
    %344 = math.exp %343 : vector<8x8xf32>
    %cst_219 = arith.constant dense<0.000000e+00> : vector<8xf32>
    %345 = vector.multi_reduction <add>, %344, %cst_219 [1] : vector<8x8xf32> to vector<8xf32>
    %346 = vector.shape_cast %345 : vector<8xf32> to vector<8x1xf32>
    %347 = tpu.reciprocal %346 {approx = true} : vector<8x1xf32> -> vector<8x1xf32>
    %cst_220 = arith.constant dense<0.000000e+00> : vector<8x4xf32>
    %348 = tpu.matmul %344, %336, %cst_220 {dimension_numbers = #tpu.dot_dimension_numbers<[1], [0], [0], [1], [0, 0, 1, 1], [], []>} : vector<8x8xf32>, vector<8x4xf32>, vector<8x4xf32> -> vector<8x4xf32>
    %349 = vector.broadcast %347 : vector<8x1xf32> to vector<8x4xf32>
    %350 = arith.mulf %348, %349 : vector<8x4xf32>
    %c0_221 = arith.constant 0 : index
    %c16_222 = arith.constant 16 : index
    %351 = vector.load %arg61[%c0_221, %c16_222] : memref<8x32xf32, #tpu.memory_space<vmem>>, vector<8x4xf32>
    tpu.vector_store %arg61[%c0_221, %c16_222], %350 {strides = array<i32>} : memref<8x32xf32, #tpu.memory_space<vmem>>, vector<8x4xf32>,
    %c0_223 = arith.constant 0 : index
    %c20_224 = arith.constant 20 : index
    %352 = vector.load %arg60[%c0_223, %c20_224] : memref<8x96xf32, #tpu.memory_space<vmem>>, vector<8x4xf32>
    %c0_225 = arith.constant 0 : index
    %c52_226 = arith.constant 52 : index
    %353 = vector.load %arg60[%c0_225, %c52_226] : memref<8x96xf32, #tpu.memory_space<vmem>>, vector<8x4xf32>
    %c0_227 = arith.constant 0 : index
    %c84_228 = arith.constant 84 : index
    %354 = vector.load %arg60[%c0_227, %c84_228] : memref<8x96xf32, #tpu.memory_space<vmem>>, vector<8x4xf32>
    %cst_229 = arith.constant dense<0.000000e+00> : vector<8x8xf32>
    %355 = tpu.matmul %352, %353, %cst_229 {dimension_numbers = #tpu.dot_dimension_numbers<[1], [1], [0], [0], [0, 0, 1, 0], [], []>} : vector<8x4xf32>, vector<8x4xf32>, vector<8x8xf32> -> vector<8x8xf32>
    %cst_230 = arith.constant 5.000000e-01 : f32
    %356 = vector.broadcast %cst_230 : f32 to vector<8x8xf32>
    %357 = arith.mulf %355, %356 : vector<8x8xf32>
    %cst_231 = arith.constant dense<0xFF800000> : vector<8xf32>
    %358 = vector.multi_reduction <maximumf>, %357, %cst_231 [1] : vector<8x8xf32> to vector<8xf32>
    %359 = vector.shape_cast %358 : vector<8xf32> to vector<8x1xf32>
    %360 = vector.broadcast %359 : vector<8x1xf32> to vector<8x8xf32>
    %361 = arith.subf %357, %360 : vector<8x8xf32>
    %362 = math.exp %361 : vector<8x8xf32>
    %cst_232 = arith.constant dense<0.000000e+00> : vector<8xf32>
    %363 = vector.multi_reduction <add>, %362, %cst_232 [1] : vector<8x8xf32> to vector<8xf32>
    %364 = vector.shape_cast %363 : vector<8xf32> to vector<8x1xf32>
    %365 = tpu.reciprocal %364 {approx = true} : vector<8x1xf32> -> vector<8x1xf32>
    %cst_233 = arith.constant dense<0.000000e+00> : vector<8x4xf32>
    %366 = tpu.matmul %362, %354, %cst_233 {dimension_numbers = #tpu.dot_dimension_numbers<[1], [0], [0], [1], [0, 0, 1, 1], [], []>} : vector<8x8xf32>, vector<8x4xf32>, vector<8x4xf32> -> vector<8x4xf32>
    %367 = vector.broadcast %365 : vector<8x1xf32> to vector<8x4xf32>
    %368 = arith.mulf %366, %367 : vector<8x4xf32>
    %c0_234 = arith.constant 0 : index
    %c20_235 = arith.constant 20 : index
    %369 = vector.load %arg61[%c0_234, %c20_235] : memref<8x32xf32, #tpu.memory_space<vmem>>, vector<8x4xf32>
    tpu.vector_store %arg61[%c0_234, %c20_235], %368 {strides = array<i32>} : memref<8x32xf32, #tpu.memory_space<vmem>>, vector<8x4xf32>,
    %c0_236 = arith.constant 0 : index
    %c24_237 = arith.constant 24 : index
    %370 = vector.load %arg60[%c0_236, %c24_237] : memref<8x96xf32, #tpu.memory_space<vmem>>, vector<8x4xf32>
    %c0_238 = arith.constant 0 : index
    %c56_239 = arith.constant 56 : index
    %371 = vector.load %arg60[%c0_238, %c56_239] : memref<8x96xf32, #tpu.memory_space<vmem>>, vector<8x4xf32>
    %c0_240 = arith.constant 0 : index
    %c88_241 = arith.constant 88 : index
    %372 = vector.load %arg60[%c0_240, %c88_241] : memref<8x96xf32, #tpu.memory_space<vmem>>, vector<8x4xf32>
    %cst_242 = arith.constant dense<0.000000e+00> : vector<8x8xf32>
    %373 = tpu.matmul %370, %371, %cst_242 {dimension_numbers = #tpu.dot_dimension_numbers<[1], [1], [0], [0], [0, 0, 1, 0], [], []>} : vector<8x4xf32>, vector<8x4xf32>, vector<8x8xf32> -> vector<8x8xf32>
    %cst_243 = arith.constant 5.000000e-01 : f32
    %374 = vector.broadcast %cst_243 : f32 to vector<8x8xf32>
    %375 = arith.mulf %373, %374 : vector<8x8xf32>
    %cst_244 = arith.constant dense<0xFF800000> : vector<8xf32>
    %376 = vector.multi_reduction <maximumf>, %375, %cst_244 [1] : vector<8x8xf32> to vector<8xf32>
    %377 = vector.shape_cast %376 : vector<8xf32> to vector<8x1xf32>
    %378 = vector.broadcast %377 : vector<8x1xf32> to vector<8x8xf32>
    %379 = arith.subf %375, %378 : vector<8x8xf32>
    %380 = math.exp %379 : vector<8x8xf32>
    %cst_245 = arith.constant dense<0.000000e+00> : vector<8xf32>
    %381 = vector.multi_reduction <add>, %380, %cst_245 [1] : vector<8x8xf32> to vector<8xf32>
    %382 = vector.shape_cast %381 : vector<8xf32> to vector<8x1xf32>
    %383 = tpu.reciprocal %382 {approx = true} : vector<8x1xf32> -> vector<8x1xf32>
    %cst_246 = arith.constant dense<0.000000e+00> : vector<8x4xf32>
    %384 = tpu.matmul %380, %372, %cst_246 {dimension_numbers = #tpu.dot_dimension_numbers<[1], [0], [0], [1], [0, 0, 1, 1], [], []>} : vector<8x8xf32>, vector<8x4xf32>, vector<8x4xf32> -> vector<8x4xf32>
    %385 = vector.broadcast %383 : vector<8x1xf32> to vector<8x4xf32>
    %386 = arith.mulf %384, %385 : vector<8x4xf32>
    %c0_247 = arith.constant 0 : index
    %c24_248 = arith.constant 24 : index
    %387 = vector.load %arg61[%c0_247, %c24_248] : memref<8x32xf32, #tpu.memory_space<vmem>>, vector<8x4xf32>
    tpu.vector_store %arg61[%c0_247, %c24_248], %386 {strides = array<i32>} : memref<8x32xf32, #tpu.memory_space<vmem>>, vector<8x4xf32>,
    %c0_249 = arith.constant 0 : index
    %c28_250 = arith.constant 28 : index
    %388 = vector.load %arg60[%c0_249, %c28_250] : memref<8x96xf32, #tpu.memory_space<vmem>>, vector<8x4xf32>
    %c0_251 = arith.constant 0 : index
    %c60_252 = arith.constant 60 : index
    %389 = vector.load %arg60[%c0_251, %c60_252] : memref<8x96xf32, #tpu.memory_space<vmem>>, vector<8x4xf32>
    %c0_253 = arith.constant 0 : index
    %c92_254 = arith.constant 92 : index
    %390 = vector.load %arg60[%c0_253, %c92_254] : memref<8x96xf32, #tpu.memory_space<vmem>>, vector<8x4xf32>
    %cst_255 = arith.constant dense<0.000000e+00> : vector<8x8xf32>
    %391 = tpu.matmul %388, %389, %cst_255 {dimension_numbers = #tpu.dot_dimension_numbers<[1], [1], [0], [0], [0, 0, 1, 0], [], []>} : vector<8x4xf32>, vector<8x4xf32>, vector<8x8xf32> -> vector<8x8xf32>
    %cst_256 = arith.constant 5.000000e-01 : f32
    %392 = vector.broadcast %cst_256 : f32 to vector<8x8xf32>
    %393 = arith.mulf %391, %392 : vector<8x8xf32>
    %cst_257 = arith.constant dense<0xFF800000> : vector<8xf32>
    %394 = vector.multi_reduction <maximumf>, %393, %cst_257 [1] : vector<8x8xf32> to vector<8xf32>
    %395 = vector.shape_cast %394 : vector<8xf32> to vector<8x1xf32>
    %396 = vector.broadcast %395 : vector<8x1xf32> to vector<8x8xf32>
    %397 = arith.subf %393, %396 : vector<8x8xf32>
    %398 = math.exp %397 : vector<8x8xf32>
    %cst_258 = arith.constant dense<0.000000e+00> : vector<8xf32>
    %399 = vector.multi_reduction <add>, %398, %cst_258 [1] : vector<8x8xf32> to vector<8xf32>
    %400 = vector.shape_cast %399 : vector<8xf32> to vector<8x1xf32>
    %401 = tpu.reciprocal %400 {approx = true} : vector<8x1xf32> -> vector<8x1xf32>
    %cst_259 = arith.constant dense<0.000000e+00> : vector<8x4xf32>
    %402 = tpu.matmul %398, %390, %cst_259 {dimension_numbers = #tpu.dot_dimension_numbers<[1], [0], [0], [1], [0, 0, 1, 1], [], []>} : vector<8x8xf32>, vector<8x4xf32>, vector<8x4xf32> -> vector<8x4xf32>
    %403 = vector.broadcast %401 : vector<8x1xf32> to vector<8x4xf32>
    %404 = arith.mulf %402, %403 : vector<8x4xf32>
    %c0_260 = arith.constant 0 : index
    %c28_261 = arith.constant 28 : index
    %405 = vector.load %arg61[%c0_260, %c28_261] : memref<8x32xf32, #tpu.memory_space<vmem>>, vector<8x4xf32>
    tpu.vector_store %arg61[%c0_260, %c28_261], %404 {strides = array<i32>} : memref<8x32xf32, #tpu.memory_space<vmem>>, vector<8x4xf32>,
    %c0_262 = arith.constant 0 : index
    %c0_263 = arith.constant 0 : index
    %406 = vector.load %arg61[%c0_262, %c0_263] : memref<8x32xf32, #tpu.memory_space<vmem>>, vector<8x32xf32>
    %c0_264 = arith.constant 0 : index
    %c0_265 = arith.constant 0 : index
    %407 = vector.load %arg20[%c0_264, %c0_265] : memref<32x32xf32, #tpu.memory_space<vmem>>, vector<32x32xf32>
    %cst_266 = arith.constant dense<0.000000e+00> : vector<8x32xf32>
    %408 = tpu.matmul %406, %407, %cst_266 {dimension_numbers = #tpu.dot_dimension_numbers<[1], [0], [0], [1], [0, 0, 1, 1], [], []>} : vector<8x32xf32>, vector<32x32xf32>, vector<8x32xf32> -> vector<8x32xf32>
    %c0_267 = arith.constant 0 : index
    %c0_268 = arith.constant 0 : index
    %409 = vector.load %arg21[%c0_267, %c0_268] : memref<1x32xf32, #tpu.memory_space<vmem>>, vector<1x32xf32>
    %410 = vector.broadcast %409 : vector<1x32xf32> to vector<8x32xf32>
    %411 = arith.addf %408, %410 : vector<8x32xf32>
    %412 = arith.addf %411, %236 : vector<8x32xf32>
    %cst_269 = arith.constant dense<0.000000e+00> : vector<8xf32>
    %413 = vector.multi_reduction <add>, %412, %cst_269 [1] : vector<8x32xf32> to vector<8xf32>
    %414 = vector.shape_cast %413 : vector<8xf32> to vector<8x1xf32>
    %cst_270 = arith.constant 3.200000e+01 : f32
    %415 = vector.broadcast %cst_270 : f32 to vector<8x1xf32>
    %416 = arith.divf %414, %415 : vector<8x1xf32>
    %417 = vector.broadcast %416 : vector<8x1xf32> to vector<8x32xf32>
    %418 = arith.subf %412, %417 : vector<8x32xf32>
    %419 = arith.mulf %418, %418 : vector<8x32xf32>
    %cst_271 = arith.constant dense<0.000000e+00> : vector<8xf32>
    %420 = vector.multi_reduction <add>, %419, %cst_271 [1] : vector<8x32xf32> to vector<8xf32>
    %421 = vector.shape_cast %420 : vector<8xf32> to vector<8x1xf32>
    %cst_272 = arith.constant 3.200000e+01 : f32
    %422 = vector.broadcast %cst_272 : f32 to vector<8x1xf32>
    %423 = arith.divf %421, %422 : vector<8x1xf32>
    %cst_273 = arith.constant 9.99999974E-6 : f32
    %424 = vector.broadcast %cst_273 : f32 to vector<8x1xf32>
    %425 = arith.addf %423, %424 : vector<8x1xf32>
    %426 = math.rsqrt %425 : vector<8x1xf32>
    %427 = vector.broadcast %426 : vector<8x1xf32> to vector<8x32xf32>
    %428 = arith.mulf %418, %427 : vector<8x32xf32>
    %c0_274 = arith.constant 0 : index
    %c0_275 = arith.constant 0 : index
    %429 = vector.load %arg22[%c0_274, %c0_275] : memref<1x32xf32, #tpu.memory_space<vmem>>, vector<1x32xf32>
    %430 = vector.broadcast %429 : vector<1x32xf32> to vector<8x32xf32>
    %431 = arith.mulf %428, %430 : vector<8x32xf32>
    %c0_276 = arith.constant 0 : index
    %c0_277 = arith.constant 0 : index
    %432 = vector.load %arg23[%c0_276, %c0_277] : memref<1x32xf32, #tpu.memory_space<vmem>>, vector<1x32xf32>
    %433 = vector.broadcast %432 : vector<1x32xf32> to vector<8x32xf32>
    %434 = arith.addf %431, %433 : vector<8x32xf32>
    %c0_278 = arith.constant 0 : index
    %c0_279 = arith.constant 0 : index
    %435 = vector.load %arg24[%c0_278, %c0_279] : memref<32x64xf32, #tpu.memory_space<vmem>>, vector<32x64xf32>
    %cst_280 = arith.constant dense<0.000000e+00> : vector<8x64xf32>
    %436 = tpu.matmul %434, %435, %cst_280 {dimension_numbers = #tpu.dot_dimension_numbers<[1], [0], [0], [1], [0, 0, 1, 1], [], []>} : vector<8x32xf32>, vector<32x64xf32>, vector<8x64xf32> -> vector<8x64xf32>
    %c0_281 = arith.constant 0 : index
    %c0_282 = arith.constant 0 : index
    %437 = vector.load %arg25[%c0_281, %c0_282] : memref<1x64xf32, #tpu.memory_space<vmem>>, vector<1x64xf32>
    %438 = vector.broadcast %437 : vector<1x64xf32> to vector<8x64xf32>
    %439 = arith.addf %436, %438 : vector<8x64xf32>
    %cst_283 = arith.constant 5.000000e-01 : f32
    %440 = vector.broadcast %cst_283 : f32 to vector<8x64xf32>
    %441 = arith.mulf %440, %439 : vector<8x64xf32>
    %cst_284 = arith.constant 4.471500e-02 : f32
    %442 = vector.broadcast %cst_284 : f32 to vector<8x64xf32>
    %443 = arith.mulf %442, %439 : vector<8x64xf32>
    %444 = arith.mulf %443, %439 : vector<8x64xf32>
    %445 = arith.mulf %444, %439 : vector<8x64xf32>
    %446 = arith.addf %439, %445 : vector<8x64xf32>
    %cst_285 = arith.constant 0.797884583 : f32
    %447 = vector.broadcast %cst_285 : f32 to vector<8x64xf32>
    %448 = arith.mulf %447, %446 : vector<8x64xf32>
    %449 = math.tanh %448 : vector<8x64xf32>
    %cst_286 = arith.constant 1.000000e+00 : f32
    %450 = vector.broadcast %cst_286 : f32 to vector<8x64xf32>
    %451 = arith.addf %450, %449 : vector<8x64xf32>
    %452 = arith.mulf %441, %451 : vector<8x64xf32>
    %c0_287 = arith.constant 0 : index
    %c0_288 = arith.constant 0 : index
    %453 = vector.load %arg26[%c0_287, %c0_288] : memref<64x32xf32, #tpu.memory_space<vmem>>, vector<64x32xf32>
    %cst_289 = arith.constant dense<0.000000e+00> : vector<8x32xf32>
    %454 = tpu.matmul %452, %453, %cst_289 {dimension_numbers = #tpu.dot_dimension_numbers<[1], [0], [0], [1], [0, 0, 1, 1], [], []>} : vector<8x64xf32>, vector<64x32xf32>, vector<8x32xf32> -> vector<8x32xf32>
    %c0_290 = arith.constant 0 : index
    %c0_291 = arith.constant 0 : index
    %455 = vector.load %arg27[%c0_290, %c0_291] : memref<1x32xf32, #tpu.memory_space<vmem>>, vector<1x32xf32>
    %456 = vector.broadcast %455 : vector<1x32xf32> to vector<8x32xf32>
    %457 = arith.addf %454, %456 : vector<8x32xf32>
    %c0_292 = arith.constant 0 : index
    %c64_293 = arith.constant 64 : index
    %458 = vector.load %arg59[%c0_292, %c64_293] : memref<8x160xf32, #tpu.memory_space<vmem>>, vector<8x32xf32>
    tpu.vector_store %arg59[%c0_292, %c64_293], %457 {strides = array<i32>} : memref<8x160xf32, #tpu.memory_space<vmem>>, vector<8x32xf32>,
    %c0_294 = arith.constant 0 : index
    %c0_295 = arith.constant 0 : index
    %459 = vector.load %arg59[%c0_294, %c0_295] : memref<8x160xf32, #tpu.memory_space<vmem>>, vector<8x96xf32>
    %c0_296 = arith.constant 0 : index
    %c0_297 = arith.constant 0 : index
    %460 = vector.load %arg28[%c0_296, %c0_297] : memref<96x32xf32, #tpu.memory_space<vmem>>, vector<96x32xf32>
    %cst_298 = arith.constant dense<0.000000e+00> : vector<8x32xf32>
    %461 = tpu.matmul %459, %460, %cst_298 {dimension_numbers = #tpu.dot_dimension_numbers<[1], [0], [0], [1], [0, 0, 1, 1], [], []>} : vector<8x96xf32>, vector<96x32xf32>, vector<8x32xf32> -> vector<8x32xf32>
    %c0_299 = arith.constant 0 : index
    %c0_300 = arith.constant 0 : index
    %462 = vector.load %arg29[%c0_299, %c0_300] : memref<1x32xf32, #tpu.memory_space<vmem>>, vector<1x32xf32>
    %463 = vector.broadcast %462 : vector<1x32xf32> to vector<8x32xf32>
    %464 = arith.addf %461, %463 : vector<8x32xf32>
    %cst_301 = arith.constant dense<0.000000e+00> : vector<8xf32>
    %465 = vector.multi_reduction <add>, %464, %cst_301 [1] : vector<8x32xf32> to vector<8xf32>
    %466 = vector.shape_cast %465 : vector<8xf32> to vector<8x1xf32>
    %cst_302 = arith.constant 3.200000e+01 : f32
    %467 = vector.broadcast %cst_302 : f32 to vector<8x1xf32>
    %468 = arith.divf %466, %467 : vector<8x1xf32>
    %469 = vector.broadcast %468 : vector<8x1xf32> to vector<8x32xf32>
    %470 = arith.subf %464, %469 : vector<8x32xf32>
    %471 = arith.mulf %470, %470 : vector<8x32xf32>
    %cst_303 = arith.constant dense<0.000000e+00> : vector<8xf32>
    %472 = vector.multi_reduction <add>, %471, %cst_303 [1] : vector<8x32xf32> to vector<8xf32>
    %473 = vector.shape_cast %472 : vector<8xf32> to vector<8x1xf32>
    %cst_304 = arith.constant 3.200000e+01 : f32
    %474 = vector.broadcast %cst_304 : f32 to vector<8x1xf32>
    %475 = arith.divf %473, %474 : vector<8x1xf32>
    %cst_305 = arith.constant 9.99999974E-6 : f32
    %476 = vector.broadcast %cst_305 : f32 to vector<8x1xf32>
    %477 = arith.addf %475, %476 : vector<8x1xf32>
    %478 = math.rsqrt %477 : vector<8x1xf32>
    %479 = vector.broadcast %478 : vector<8x1xf32> to vector<8x32xf32>
    %480 = arith.mulf %470, %479 : vector<8x32xf32>
    %c0_306 = arith.constant 0 : index
    %c0_307 = arith.constant 0 : index
    %481 = vector.load %arg30[%c0_306, %c0_307] : memref<1x32xf32, #tpu.memory_space<vmem>>, vector<1x32xf32>
    %482 = vector.broadcast %481 : vector<1x32xf32> to vector<8x32xf32>
    %483 = arith.mulf %480, %482 : vector<8x32xf32>
    %c0_308 = arith.constant 0 : index
    %c0_309 = arith.constant 0 : index
    %484 = vector.load %arg31[%c0_308, %c0_309] : memref<1x32xf32, #tpu.memory_space<vmem>>, vector<1x32xf32>
    %485 = vector.broadcast %484 : vector<1x32xf32> to vector<8x32xf32>
    %486 = arith.addf %483, %485 : vector<8x32xf32>
    %c0_310 = arith.constant 0 : index
    %c0_311 = arith.constant 0 : index
    %487 = vector.load %arg32[%c0_310, %c0_311] : memref<32x96xf32, #tpu.memory_space<vmem>>, vector<32x96xf32>
    %cst_312 = arith.constant dense<0.000000e+00> : vector<8x96xf32>
    %488 = tpu.matmul %486, %487, %cst_312 {dimension_numbers = #tpu.dot_dimension_numbers<[1], [0], [0], [1], [0, 0, 1, 1], [], []>} : vector<8x32xf32>, vector<32x96xf32>, vector<8x96xf32> -> vector<8x96xf32>
    %c0_313 = arith.constant 0 : index
    %c0_314 = arith.constant 0 : index
    %489 = vector.load %arg60[%c0_313, %c0_314] : memref<8x96xf32, #tpu.memory_space<vmem>>, vector<8x96xf32>
    tpu.vector_store %arg60[%c0_313, %c0_314], %488 {strides = array<i32>} : memref<8x96xf32, #tpu.memory_space<vmem>>, vector<8x96xf32>,
    %c0_315 = arith.constant 0 : index
    %c0_316 = arith.constant 0 : index
    %490 = vector.load %arg60[%c0_315, %c0_316] : memref<8x96xf32, #tpu.memory_space<vmem>>, vector<8x4xf32>
    %c0_317 = arith.constant 0 : index
    %c32_318 = arith.constant 32 : index
    %491 = vector.load %arg60[%c0_317, %c32_318] : memref<8x96xf32, #tpu.memory_space<vmem>>, vector<8x4xf32>
    %c0_319 = arith.constant 0 : index
    %c64_320 = arith.constant 64 : index
    %492 = vector.load %arg60[%c0_319, %c64_320] : memref<8x96xf32, #tpu.memory_space<vmem>>, vector<8x4xf32>
    %cst_321 = arith.constant dense<0.000000e+00> : vector<8x8xf32>
    %493 = tpu.matmul %490, %491, %cst_321 {dimension_numbers = #tpu.dot_dimension_numbers<[1], [1], [0], [0], [0, 0, 1, 0], [], []>} : vector<8x4xf32>, vector<8x4xf32>, vector<8x8xf32> -> vector<8x8xf32>
    %cst_322 = arith.constant 5.000000e-01 : f32
    %494 = vector.broadcast %cst_322 : f32 to vector<8x8xf32>
    %495 = arith.mulf %493, %494 : vector<8x8xf32>
    %cst_323 = arith.constant dense<0xFF800000> : vector<8xf32>
    %496 = vector.multi_reduction <maximumf>, %495, %cst_323 [1] : vector<8x8xf32> to vector<8xf32>
    %497 = vector.shape_cast %496 : vector<8xf32> to vector<8x1xf32>
    %498 = vector.broadcast %497 : vector<8x1xf32> to vector<8x8xf32>
    %499 = arith.subf %495, %498 : vector<8x8xf32>
    %500 = math.exp %499 : vector<8x8xf32>
    %cst_324 = arith.constant dense<0.000000e+00> : vector<8xf32>
    %501 = vector.multi_reduction <add>, %500, %cst_324 [1] : vector<8x8xf32> to vector<8xf32>
    %502 = vector.shape_cast %501 : vector<8xf32> to vector<8x1xf32>
    %503 = tpu.reciprocal %502 {approx = true} : vector<8x1xf32> -> vector<8x1xf32>
    %cst_325 = arith.constant dense<0.000000e+00> : vector<8x4xf32>
    %504 = tpu.matmul %500, %492, %cst_325 {dimension_numbers = #tpu.dot_dimension_numbers<[1], [0], [0], [1], [0, 0, 1, 1], [], []>} : vector<8x8xf32>, vector<8x4xf32>, vector<8x4xf32> -> vector<8x4xf32>
    %505 = vector.broadcast %503 : vector<8x1xf32> to vector<8x4xf32>
    %506 = arith.mulf %504, %505 : vector<8x4xf32>
    %c0_326 = arith.constant 0 : index
    %c0_327 = arith.constant 0 : index
    %507 = vector.load %arg61[%c0_326, %c0_327] : memref<8x32xf32, #tpu.memory_space<vmem>>, vector<8x4xf32>
    tpu.vector_store %arg61[%c0_326, %c0_327], %506 {strides = array<i32>} : memref<8x32xf32, #tpu.memory_space<vmem>>, vector<8x4xf32>,
    %c0_328 = arith.constant 0 : index
    %c4_329 = arith.constant 4 : index
    %508 = vector.load %arg60[%c0_328, %c4_329] : memref<8x96xf32, #tpu.memory_space<vmem>>, vector<8x4xf32>
    %c0_330 = arith.constant 0 : index
    %c36_331 = arith.constant 36 : index
    %509 = vector.load %arg60[%c0_330, %c36_331] : memref<8x96xf32, #tpu.memory_space<vmem>>, vector<8x4xf32>
    %c0_332 = arith.constant 0 : index
    %c68_333 = arith.constant 68 : index
    %510 = vector.load %arg60[%c0_332, %c68_333] : memref<8x96xf32, #tpu.memory_space<vmem>>, vector<8x4xf32>
    %cst_334 = arith.constant dense<0.000000e+00> : vector<8x8xf32>
    %511 = tpu.matmul %508, %509, %cst_334 {dimension_numbers = #tpu.dot_dimension_numbers<[1], [1], [0], [0], [0, 0, 1, 0], [], []>} : vector<8x4xf32>, vector<8x4xf32>, vector<8x8xf32> -> vector<8x8xf32>
    %cst_335 = arith.constant 5.000000e-01 : f32
    %512 = vector.broadcast %cst_335 : f32 to vector<8x8xf32>
    %513 = arith.mulf %511, %512 : vector<8x8xf32>
    %cst_336 = arith.constant dense<0xFF800000> : vector<8xf32>
    %514 = vector.multi_reduction <maximumf>, %513, %cst_336 [1] : vector<8x8xf32> to vector<8xf32>
    %515 = vector.shape_cast %514 : vector<8xf32> to vector<8x1xf32>
    %516 = vector.broadcast %515 : vector<8x1xf32> to vector<8x8xf32>
    %517 = arith.subf %513, %516 : vector<8x8xf32>
    %518 = math.exp %517 : vector<8x8xf32>
    %cst_337 = arith.constant dense<0.000000e+00> : vector<8xf32>
    %519 = vector.multi_reduction <add>, %518, %cst_337 [1] : vector<8x8xf32> to vector<8xf32>
    %520 = vector.shape_cast %519 : vector<8xf32> to vector<8x1xf32>
    %521 = tpu.reciprocal %520 {approx = true} : vector<8x1xf32> -> vector<8x1xf32>
    %cst_338 = arith.constant dense<0.000000e+00> : vector<8x4xf32>
    %522 = tpu.matmul %518, %510, %cst_338 {dimension_numbers = #tpu.dot_dimension_numbers<[1], [0], [0], [1], [0, 0, 1, 1], [], []>} : vector<8x8xf32>, vector<8x4xf32>, vector<8x4xf32> -> vector<8x4xf32>
    %523 = vector.broadcast %521 : vector<8x1xf32> to vector<8x4xf32>
    %524 = arith.mulf %522, %523 : vector<8x4xf32>
    %c0_339 = arith.constant 0 : index
    %c4_340 = arith.constant 4 : index
    %525 = vector.load %arg61[%c0_339, %c4_340] : memref<8x32xf32, #tpu.memory_space<vmem>>, vector<8x4xf32>
    tpu.vector_store %arg61[%c0_339, %c4_340], %524 {strides = array<i32>} : memref<8x32xf32, #tpu.memory_space<vmem>>, vector<8x4xf32>,
    %c0_341 = arith.constant 0 : index
    %c8_342 = arith.constant 8 : index
    %526 = vector.load %arg60[%c0_341, %c8_342] : memref<8x96xf32, #tpu.memory_space<vmem>>, vector<8x4xf32>
    %c0_343 = arith.constant 0 : index
    %c40_344 = arith.constant 40 : index
    %527 = vector.load %arg60[%c0_343, %c40_344] : memref<8x96xf32, #tpu.memory_space<vmem>>, vector<8x4xf32>
    %c0_345 = arith.constant 0 : index
    %c72_346 = arith.constant 72 : index
    %528 = vector.load %arg60[%c0_345, %c72_346] : memref<8x96xf32, #tpu.memory_space<vmem>>, vector<8x4xf32>
    %cst_347 = arith.constant dense<0.000000e+00> : vector<8x8xf32>
    %529 = tpu.matmul %526, %527, %cst_347 {dimension_numbers = #tpu.dot_dimension_numbers<[1], [1], [0], [0], [0, 0, 1, 0], [], []>} : vector<8x4xf32>, vector<8x4xf32>, vector<8x8xf32> -> vector<8x8xf32>
    %cst_348 = arith.constant 5.000000e-01 : f32
    %530 = vector.broadcast %cst_348 : f32 to vector<8x8xf32>
    %531 = arith.mulf %529, %530 : vector<8x8xf32>
    %cst_349 = arith.constant dense<0xFF800000> : vector<8xf32>
    %532 = vector.multi_reduction <maximumf>, %531, %cst_349 [1] : vector<8x8xf32> to vector<8xf32>
    %533 = vector.shape_cast %532 : vector<8xf32> to vector<8x1xf32>
    %534 = vector.broadcast %533 : vector<8x1xf32> to vector<8x8xf32>
    %535 = arith.subf %531, %534 : vector<8x8xf32>
    %536 = math.exp %535 : vector<8x8xf32>
    %cst_350 = arith.constant dense<0.000000e+00> : vector<8xf32>
    %537 = vector.multi_reduction <add>, %536, %cst_350 [1] : vector<8x8xf32> to vector<8xf32>
    %538 = vector.shape_cast %537 : vector<8xf32> to vector<8x1xf32>
    %539 = tpu.reciprocal %538 {approx = true} : vector<8x1xf32> -> vector<8x1xf32>
    %cst_351 = arith.constant dense<0.000000e+00> : vector<8x4xf32>
    %540 = tpu.matmul %536, %528, %cst_351 {dimension_numbers = #tpu.dot_dimension_numbers<[1], [0], [0], [1], [0, 0, 1, 1], [], []>} : vector<8x8xf32>, vector<8x4xf32>, vector<8x4xf32> -> vector<8x4xf32>
    %541 = vector.broadcast %539 : vector<8x1xf32> to vector<8x4xf32>
    %542 = arith.mulf %540, %541 : vector<8x4xf32>
    %c0_352 = arith.constant 0 : index
    %c8_353 = arith.constant 8 : index
    %543 = vector.load %arg61[%c0_352, %c8_353] : memref<8x32xf32, #tpu.memory_space<vmem>>, vector<8x4xf32>
    tpu.vector_store %arg61[%c0_352, %c8_353], %542 {strides = array<i32>} : memref<8x32xf32, #tpu.memory_space<vmem>>, vector<8x4xf32>,
    %c0_354 = arith.constant 0 : index
    %c12_355 = arith.constant 12 : index
    %544 = vector.load %arg60[%c0_354, %c12_355] : memref<8x96xf32, #tpu.memory_space<vmem>>, vector<8x4xf32>
    %c0_356 = arith.constant 0 : index
    %c44_357 = arith.constant 44 : index
    %545 = vector.load %arg60[%c0_356, %c44_357] : memref<8x96xf32, #tpu.memory_space<vmem>>, vector<8x4xf32>
    %c0_358 = arith.constant 0 : index
    %c76_359 = arith.constant 76 : index
    %546 = vector.load %arg60[%c0_358, %c76_359] : memref<8x96xf32, #tpu.memory_space<vmem>>, vector<8x4xf32>
    %cst_360 = arith.constant dense<0.000000e+00> : vector<8x8xf32>
    %547 = tpu.matmul %544, %545, %cst_360 {dimension_numbers = #tpu.dot_dimension_numbers<[1], [1], [0], [0], [0, 0, 1, 0], [], []>} : vector<8x4xf32>, vector<8x4xf32>, vector<8x8xf32> -> vector<8x8xf32>
    %cst_361 = arith.constant 5.000000e-01 : f32
    %548 = vector.broadcast %cst_361 : f32 to vector<8x8xf32>
    %549 = arith.mulf %547, %548 : vector<8x8xf32>
    %cst_362 = arith.constant dense<0xFF800000> : vector<8xf32>
    %550 = vector.multi_reduction <maximumf>, %549, %cst_362 [1] : vector<8x8xf32> to vector<8xf32>
    %551 = vector.shape_cast %550 : vector<8xf32> to vector<8x1xf32>
    %552 = vector.broadcast %551 : vector<8x1xf32> to vector<8x8xf32>
    %553 = arith.subf %549, %552 : vector<8x8xf32>
    %554 = math.exp %553 : vector<8x8xf32>
    %cst_363 = arith.constant dense<0.000000e+00> : vector<8xf32>
    %555 = vector.multi_reduction <add>, %554, %cst_363 [1] : vector<8x8xf32> to vector<8xf32>
    %556 = vector.shape_cast %555 : vector<8xf32> to vector<8x1xf32>
    %557 = tpu.reciprocal %556 {approx = true} : vector<8x1xf32> -> vector<8x1xf32>
    %cst_364 = arith.constant dense<0.000000e+00> : vector<8x4xf32>
    %558 = tpu.matmul %554, %546, %cst_364 {dimension_numbers = #tpu.dot_dimension_numbers<[1], [0], [0], [1], [0, 0, 1, 1], [], []>} : vector<8x8xf32>, vector<8x4xf32>, vector<8x4xf32> -> vector<8x4xf32>
    %559 = vector.broadcast %557 : vector<8x1xf32> to vector<8x4xf32>
    %560 = arith.mulf %558, %559 : vector<8x4xf32>
    %c0_365 = arith.constant 0 : index
    %c12_366 = arith.constant 12 : index
    %561 = vector.load %arg61[%c0_365, %c12_366] : memref<8x32xf32, #tpu.memory_space<vmem>>, vector<8x4xf32>
    tpu.vector_store %arg61[%c0_365, %c12_366], %560 {strides = array<i32>} : memref<8x32xf32, #tpu.memory_space<vmem>>, vector<8x4xf32>,
    %c0_367 = arith.constant 0 : index
    %c16_368 = arith.constant 16 : index
    %562 = vector.load %arg60[%c0_367, %c16_368] : memref<8x96xf32, #tpu.memory_space<vmem>>, vector<8x4xf32>
    %c0_369 = arith.constant 0 : index
    %c48_370 = arith.constant 48 : index
    %563 = vector.load %arg60[%c0_369, %c48_370] : memref<8x96xf32, #tpu.memory_space<vmem>>, vector<8x4xf32>
    %c0_371 = arith.constant 0 : index
    %c80_372 = arith.constant 80 : index
    %564 = vector.load %arg60[%c0_371, %c80_372] : memref<8x96xf32, #tpu.memory_space<vmem>>, vector<8x4xf32>
    %cst_373 = arith.constant dense<0.000000e+00> : vector<8x8xf32>
    %565 = tpu.matmul %562, %563, %cst_373 {dimension_numbers = #tpu.dot_dimension_numbers<[1], [1], [0], [0], [0, 0, 1, 0], [], []>} : vector<8x4xf32>, vector<8x4xf32>, vector<8x8xf32> -> vector<8x8xf32>
    %cst_374 = arith.constant 5.000000e-01 : f32
    %566 = vector.broadcast %cst_374 : f32 to vector<8x8xf32>
    %567 = arith.mulf %565, %566 : vector<8x8xf32>
    %cst_375 = arith.constant dense<0xFF800000> : vector<8xf32>
    %568 = vector.multi_reduction <maximumf>, %567, %cst_375 [1] : vector<8x8xf32> to vector<8xf32>
    %569 = vector.shape_cast %568 : vector<8xf32> to vector<8x1xf32>
    %570 = vector.broadcast %569 : vector<8x1xf32> to vector<8x8xf32>
    %571 = arith.subf %567, %570 : vector<8x8xf32>
    %572 = math.exp %571 : vector<8x8xf32>
    %cst_376 = arith.constant dense<0.000000e+00> : vector<8xf32>
    %573 = vector.multi_reduction <add>, %572, %cst_376 [1] : vector<8x8xf32> to vector<8xf32>
    %574 = vector.shape_cast %573 : vector<8xf32> to vector<8x1xf32>
    %575 = tpu.reciprocal %574 {approx = true} : vector<8x1xf32> -> vector<8x1xf32>
    %cst_377 = arith.constant dense<0.000000e+00> : vector<8x4xf32>
    %576 = tpu.matmul %572, %564, %cst_377 {dimension_numbers = #tpu.dot_dimension_numbers<[1], [0], [0], [1], [0, 0, 1, 1], [], []>} : vector<8x8xf32>, vector<8x4xf32>, vector<8x4xf32> -> vector<8x4xf32>
    %577 = vector.broadcast %575 : vector<8x1xf32> to vector<8x4xf32>
    %578 = arith.mulf %576, %577 : vector<8x4xf32>
    %c0_378 = arith.constant 0 : index
    %c16_379 = arith.constant 16 : index
    %579 = vector.load %arg61[%c0_378, %c16_379] : memref<8x32xf32, #tpu.memory_space<vmem>>, vector<8x4xf32>
    tpu.vector_store %arg61[%c0_378, %c16_379], %578 {strides = array<i32>} : memref<8x32xf32, #tpu.memory_space<vmem>>, vector<8x4xf32>,
    %c0_380 = arith.constant 0 : index
    %c20_381 = arith.constant 20 : index
    %580 = vector.load %arg60[%c0_380, %c20_381] : memref<8x96xf32, #tpu.memory_space<vmem>>, vector<8x4xf32>
    %c0_382 = arith.constant 0 : index
    %c52_383 = arith.constant 52 : index
    %581 = vector.load %arg60[%c0_382, %c52_383] : memref<8x96xf32, #tpu.memory_space<vmem>>, vector<8x4xf32>
    %c0_384 = arith.constant 0 : index
    %c84_385 = arith.constant 84 : index
    %582 = vector.load %arg60[%c0_384, %c84_385] : memref<8x96xf32, #tpu.memory_space<vmem>>, vector<8x4xf32>
    %cst_386 = arith.constant dense<0.000000e+00> : vector<8x8xf32>
    %583 = tpu.matmul %580, %581, %cst_386 {dimension_numbers = #tpu.dot_dimension_numbers<[1], [1], [0], [0], [0, 0, 1, 0], [], []>} : vector<8x4xf32>, vector<8x4xf32>, vector<8x8xf32> -> vector<8x8xf32>
    %cst_387 = arith.constant 5.000000e-01 : f32
    %584 = vector.broadcast %cst_387 : f32 to vector<8x8xf32>
    %585 = arith.mulf %583, %584 : vector<8x8xf32>
    %cst_388 = arith.constant dense<0xFF800000> : vector<8xf32>
    %586 = vector.multi_reduction <maximumf>, %585, %cst_388 [1] : vector<8x8xf32> to vector<8xf32>
    %587 = vector.shape_cast %586 : vector<8xf32> to vector<8x1xf32>
    %588 = vector.broadcast %587 : vector<8x1xf32> to vector<8x8xf32>
    %589 = arith.subf %585, %588 : vector<8x8xf32>
    %590 = math.exp %589 : vector<8x8xf32>
    %cst_389 = arith.constant dense<0.000000e+00> : vector<8xf32>
    %591 = vector.multi_reduction <add>, %590, %cst_389 [1] : vector<8x8xf32> to vector<8xf32>
    %592 = vector.shape_cast %591 : vector<8xf32> to vector<8x1xf32>
    %593 = tpu.reciprocal %592 {approx = true} : vector<8x1xf32> -> vector<8x1xf32>
    %cst_390 = arith.constant dense<0.000000e+00> : vector<8x4xf32>
    %594 = tpu.matmul %590, %582, %cst_390 {dimension_numbers = #tpu.dot_dimension_numbers<[1], [0], [0], [1], [0, 0, 1, 1], [], []>} : vector<8x8xf32>, vector<8x4xf32>, vector<8x4xf32> -> vector<8x4xf32>
    %595 = vector.broadcast %593 : vector<8x1xf32> to vector<8x4xf32>
    %596 = arith.mulf %594, %595 : vector<8x4xf32>
    %c0_391 = arith.constant 0 : index
    %c20_392 = arith.constant 20 : index
    %597 = vector.load %arg61[%c0_391, %c20_392] : memref<8x32xf32, #tpu.memory_space<vmem>>, vector<8x4xf32>
    tpu.vector_store %arg61[%c0_391, %c20_392], %596 {strides = array<i32>} : memref<8x32xf32, #tpu.memory_space<vmem>>, vector<8x4xf32>,
    %c0_393 = arith.constant 0 : index
    %c24_394 = arith.constant 24 : index
    %598 = vector.load %arg60[%c0_393, %c24_394] : memref<8x96xf32, #tpu.memory_space<vmem>>, vector<8x4xf32>
    %c0_395 = arith.constant 0 : index
    %c56_396 = arith.constant 56 : index
    %599 = vector.load %arg60[%c0_395, %c56_396] : memref<8x96xf32, #tpu.memory_space<vmem>>, vector<8x4xf32>
    %c0_397 = arith.constant 0 : index
    %c88_398 = arith.constant 88 : index
    %600 = vector.load %arg60[%c0_397, %c88_398] : memref<8x96xf32, #tpu.memory_space<vmem>>, vector<8x4xf32>
    %cst_399 = arith.constant dense<0.000000e+00> : vector<8x8xf32>
    %601 = tpu.matmul %598, %599, %cst_399 {dimension_numbers = #tpu.dot_dimension_numbers<[1], [1], [0], [0], [0, 0, 1, 0], [], []>} : vector<8x4xf32>, vector<8x4xf32>, vector<8x8xf32> -> vector<8x8xf32>
    %cst_400 = arith.constant 5.000000e-01 : f32
    %602 = vector.broadcast %cst_400 : f32 to vector<8x8xf32>
    %603 = arith.mulf %601, %602 : vector<8x8xf32>
    %cst_401 = arith.constant dense<0xFF800000> : vector<8xf32>
    %604 = vector.multi_reduction <maximumf>, %603, %cst_401 [1] : vector<8x8xf32> to vector<8xf32>
    %605 = vector.shape_cast %604 : vector<8xf32> to vector<8x1xf32>
    %606 = vector.broadcast %605 : vector<8x1xf32> to vector<8x8xf32>
    %607 = arith.subf %603, %606 : vector<8x8xf32>
    %608 = math.exp %607 : vector<8x8xf32>
    %cst_402 = arith.constant dense<0.000000e+00> : vector<8xf32>
    %609 = vector.multi_reduction <add>, %608, %cst_402 [1] : vector<8x8xf32> to vector<8xf32>
    %610 = vector.shape_cast %609 : vector<8xf32> to vector<8x1xf32>
    %611 = tpu.reciprocal %610 {approx = true} : vector<8x1xf32> -> vector<8x1xf32>
    %cst_403 = arith.constant dense<0.000000e+00> : vector<8x4xf32>
    %612 = tpu.matmul %608, %600, %cst_403 {dimension_numbers = #tpu.dot_dimension_numbers<[1], [0], [0], [1], [0, 0, 1, 1], [], []>} : vector<8x8xf32>, vector<8x4xf32>, vector<8x4xf32> -> vector<8x4xf32>
    %613 = vector.broadcast %611 : vector<8x1xf32> to vector<8x4xf32>
    %614 = arith.mulf %612, %613 : vector<8x4xf32>
    %c0_404 = arith.constant 0 : index
    %c24_405 = arith.constant 24 : index
    %615 = vector.load %arg61[%c0_404, %c24_405] : memref<8x32xf32, #tpu.memory_space<vmem>>, vector<8x4xf32>
    tpu.vector_store %arg61[%c0_404, %c24_405], %614 {strides = array<i32>} : memref<8x32xf32, #tpu.memory_space<vmem>>, vector<8x4xf32>,
    %c0_406 = arith.constant 0 : index
    %c28_407 = arith.constant 28 : index
    %616 = vector.load %arg60[%c0_406, %c28_407] : memref<8x96xf32, #tpu.memory_space<vmem>>, vector<8x4xf32>
    %c0_408 = arith.constant 0 : index
    %c60_409 = arith.constant 60 : index
    %617 = vector.load %arg60[%c0_408, %c60_409] : memref<8x96xf32, #tpu.memory_space<vmem>>, vector<8x4xf32>
    %c0_410 = arith.constant 0 : index
    %c92_411 = arith.constant 92 : index
    %618 = vector.load %arg60[%c0_410, %c92_411] : memref<8x96xf32, #tpu.memory_space<vmem>>, vector<8x4xf32>
    %cst_412 = arith.constant dense<0.000000e+00> : vector<8x8xf32>
    %619 = tpu.matmul %616, %617, %cst_412 {dimension_numbers = #tpu.dot_dimension_numbers<[1], [1], [0], [0], [0, 0, 1, 0], [], []>} : vector<8x4xf32>, vector<8x4xf32>, vector<8x8xf32> -> vector<8x8xf32>
    %cst_413 = arith.constant 5.000000e-01 : f32
    %620 = vector.broadcast %cst_413 : f32 to vector<8x8xf32>
    %621 = arith.mulf %619, %620 : vector<8x8xf32>
    %cst_414 = arith.constant dense<0xFF800000> : vector<8xf32>
    %622 = vector.multi_reduction <maximumf>, %621, %cst_414 [1] : vector<8x8xf32> to vector<8xf32>
    %623 = vector.shape_cast %622 : vector<8xf32> to vector<8x1xf32>
    %624 = vector.broadcast %623 : vector<8x1xf32> to vector<8x8xf32>
    %625 = arith.subf %621, %624 : vector<8x8xf32>
    %626 = math.exp %625 : vector<8x8xf32>
    %cst_415 = arith.constant dense<0.000000e+00> : vector<8xf32>
    %627 = vector.multi_reduction <add>, %626, %cst_415 [1] : vector<8x8xf32> to vector<8xf32>
    %628 = vector.shape_cast %627 : vector<8xf32> to vector<8x1xf32>
    %629 = tpu.reciprocal %628 {approx = true} : vector<8x1xf32> -> vector<8x1xf32>
    %cst_416 = arith.constant dense<0.000000e+00> : vector<8x4xf32>
    %630 = tpu.matmul %626, %618, %cst_416 {dimension_numbers = #tpu.dot_dimension_numbers<[1], [0], [0], [1], [0, 0, 1, 1], [], []>} : vector<8x8xf32>, vector<8x4xf32>, vector<8x4xf32> -> vector<8x4xf32>
    %631 = vector.broadcast %629 : vector<8x1xf32> to vector<8x4xf32>
    %632 = arith.mulf %630, %631 : vector<8x4xf32>
    %c0_417 = arith.constant 0 : index
    %c28_418 = arith.constant 28 : index
    %633 = vector.load %arg61[%c0_417, %c28_418] : memref<8x32xf32, #tpu.memory_space<vmem>>, vector<8x4xf32>
    tpu.vector_store %arg61[%c0_417, %c28_418], %632 {strides = array<i32>} : memref<8x32xf32, #tpu.memory_space<vmem>>, vector<8x4xf32>,
    %c0_419 = arith.constant 0 : index
    %c0_420 = arith.constant 0 : index
    %634 = vector.load %arg61[%c0_419, %c0_420] : memref<8x32xf32, #tpu.memory_space<vmem>>, vector<8x32xf32>
    %c0_421 = arith.constant 0 : index
    %c0_422 = arith.constant 0 : index
    %635 = vector.load %arg33[%c0_421, %c0_422] : memref<32x32xf32, #tpu.memory_space<vmem>>, vector<32x32xf32>
    %cst_423 = arith.constant dense<0.000000e+00> : vector<8x32xf32>
    %636 = tpu.matmul %634, %635, %cst_423 {dimension_numbers = #tpu.dot_dimension_numbers<[1], [0], [0], [1], [0, 0, 1, 1], [], []>} : vector<8x32xf32>, vector<32x32xf32>, vector<8x32xf32> -> vector<8x32xf32>
    %c0_424 = arith.constant 0 : index
    %c0_425 = arith.constant 0 : index
    %637 = vector.load %arg34[%c0_424, %c0_425] : memref<1x32xf32, #tpu.memory_space<vmem>>, vector<1x32xf32>
    %638 = vector.broadcast %637 : vector<1x32xf32> to vector<8x32xf32>
    %639 = arith.addf %636, %638 : vector<8x32xf32>
    %640 = arith.addf %639, %464 : vector<8x32xf32>
    %cst_426 = arith.constant dense<0.000000e+00> : vector<8xf32>
    %641 = vector.multi_reduction <add>, %640, %cst_426 [1] : vector<8x32xf32> to vector<8xf32>
    %642 = vector.shape_cast %641 : vector<8xf32> to vector<8x1xf32>
    %cst_427 = arith.constant 3.200000e+01 : f32
    %643 = vector.broadcast %cst_427 : f32 to vector<8x1xf32>
    %644 = arith.divf %642, %643 : vector<8x1xf32>
    %645 = vector.broadcast %644 : vector<8x1xf32> to vector<8x32xf32>
    %646 = arith.subf %640, %645 : vector<8x32xf32>
    %647 = arith.mulf %646, %646 : vector<8x32xf32>
    %cst_428 = arith.constant dense<0.000000e+00> : vector<8xf32>
    %648 = vector.multi_reduction <add>, %647, %cst_428 [1] : vector<8x32xf32> to vector<8xf32>
    %649 = vector.shape_cast %648 : vector<8xf32> to vector<8x1xf32>
    %cst_429 = arith.constant 3.200000e+01 : f32
    %650 = vector.broadcast %cst_429 : f32 to vector<8x1xf32>
    %651 = arith.divf %649, %650 : vector<8x1xf32>
    %cst_430 = arith.constant 9.99999974E-6 : f32
    %652 = vector.broadcast %cst_430 : f32 to vector<8x1xf32>
    %653 = arith.addf %651, %652 : vector<8x1xf32>
    %654 = math.rsqrt %653 : vector<8x1xf32>
    %655 = vector.broadcast %654 : vector<8x1xf32> to vector<8x32xf32>
    %656 = arith.mulf %646, %655 : vector<8x32xf32>
    %c0_431 = arith.constant 0 : index
    %c0_432 = arith.constant 0 : index
    %657 = vector.load %arg35[%c0_431, %c0_432] : memref<1x32xf32, #tpu.memory_space<vmem>>, vector<1x32xf32>
    %658 = vector.broadcast %657 : vector<1x32xf32> to vector<8x32xf32>
    %659 = arith.mulf %656, %658 : vector<8x32xf32>
    %c0_433 = arith.constant 0 : index
    %c0_434 = arith.constant 0 : index
    %660 = vector.load %arg36[%c0_433, %c0_434] : memref<1x32xf32, #tpu.memory_space<vmem>>, vector<1x32xf32>
    %661 = vector.broadcast %660 : vector<1x32xf32> to vector<8x32xf32>
    %662 = arith.addf %659, %661 : vector<8x32xf32>
    %c0_435 = arith.constant 0 : index
    %c0_436 = arith.constant 0 : index
    %663 = vector.load %arg37[%c0_435, %c0_436] : memref<32x64xf32, #tpu.memory_space<vmem>>, vector<32x64xf32>
    %cst_437 = arith.constant dense<0.000000e+00> : vector<8x64xf32>
    %664 = tpu.matmul %662, %663, %cst_437 {dimension_numbers = #tpu.dot_dimension_numbers<[1], [0], [0], [1], [0, 0, 1, 1], [], []>} : vector<8x32xf32>, vector<32x64xf32>, vector<8x64xf32> -> vector<8x64xf32>
    %c0_438 = arith.constant 0 : index
    %c0_439 = arith.constant 0 : index
    %665 = vector.load %arg38[%c0_438, %c0_439] : memref<1x64xf32, #tpu.memory_space<vmem>>, vector<1x64xf32>
    %666 = vector.broadcast %665 : vector<1x64xf32> to vector<8x64xf32>
    %667 = arith.addf %664, %666 : vector<8x64xf32>
    %cst_440 = arith.constant 5.000000e-01 : f32
    %668 = vector.broadcast %cst_440 : f32 to vector<8x64xf32>
    %669 = arith.mulf %668, %667 : vector<8x64xf32>
    %cst_441 = arith.constant 4.471500e-02 : f32
    %670 = vector.broadcast %cst_441 : f32 to vector<8x64xf32>
    %671 = arith.mulf %670, %667 : vector<8x64xf32>
    %672 = arith.mulf %671, %667 : vector<8x64xf32>
    %673 = arith.mulf %672, %667 : vector<8x64xf32>
    %674 = arith.addf %667, %673 : vector<8x64xf32>
    %cst_442 = arith.constant 0.797884583 : f32
    %675 = vector.broadcast %cst_442 : f32 to vector<8x64xf32>
    %676 = arith.mulf %675, %674 : vector<8x64xf32>
    %677 = math.tanh %676 : vector<8x64xf32>
    %cst_443 = arith.constant 1.000000e+00 : f32
    %678 = vector.broadcast %cst_443 : f32 to vector<8x64xf32>
    %679 = arith.addf %678, %677 : vector<8x64xf32>
    %680 = arith.mulf %669, %679 : vector<8x64xf32>
    %c0_444 = arith.constant 0 : index
    %c0_445 = arith.constant 0 : index
    %681 = vector.load %arg39[%c0_444, %c0_445] : memref<64x32xf32, #tpu.memory_space<vmem>>, vector<64x32xf32>
    %cst_446 = arith.constant dense<0.000000e+00> : vector<8x32xf32>
    %682 = tpu.matmul %680, %681, %cst_446 {dimension_numbers = #tpu.dot_dimension_numbers<[1], [0], [0], [1], [0, 0, 1, 1], [], []>} : vector<8x64xf32>, vector<64x32xf32>, vector<8x32xf32> -> vector<8x32xf32>
    %c0_447 = arith.constant 0 : index
    %c0_448 = arith.constant 0 : index
    %683 = vector.load %arg40[%c0_447, %c0_448] : memref<1x32xf32, #tpu.memory_space<vmem>>, vector<1x32xf32>
    %684 = vector.broadcast %683 : vector<1x32xf32> to vector<8x32xf32>
    %685 = arith.addf %682, %684 : vector<8x32xf32>
    %c0_449 = arith.constant 0 : index
    %c96 = arith.constant 96 : index
    %686 = vector.load %arg59[%c0_449, %c96] : memref<8x160xf32, #tpu.memory_space<vmem>>, vector<8x32xf32>
    tpu.vector_store %arg59[%c0_449, %c96], %685 {strides = array<i32>} : memref<8x160xf32, #tpu.memory_space<vmem>>, vector<8x32xf32>,
    %c0_450 = arith.constant 0 : index
    %c0_451 = arith.constant 0 : index
    %687 = vector.load %arg59[%c0_450, %c0_451] : memref<8x160xf32, #tpu.memory_space<vmem>>, vector<8x128xf32>
    %c0_452 = arith.constant 0 : index
    %c0_453 = arith.constant 0 : index
    %688 = vector.load %arg41[%c0_452, %c0_453] : memref<128x32xf32, #tpu.memory_space<vmem>>, vector<128x32xf32>
    %cst_454 = arith.constant dense<0.000000e+00> : vector<8x32xf32>
    %689 = tpu.matmul %687, %688, %cst_454 {dimension_numbers = #tpu.dot_dimension_numbers<[1], [0], [0], [1], [0, 0, 1, 1], [], []>} : vector<8x128xf32>, vector<128x32xf32>, vector<8x32xf32> -> vector<8x32xf32>
    %c0_455 = arith.constant 0 : index
    %c0_456 = arith.constant 0 : index
    %690 = vector.load %arg42[%c0_455, %c0_456] : memref<1x32xf32, #tpu.memory_space<vmem>>, vector<1x32xf32>
    %691 = vector.broadcast %690 : vector<1x32xf32> to vector<8x32xf32>
    %692 = arith.addf %689, %691 : vector<8x32xf32>
    %cst_457 = arith.constant dense<0.000000e+00> : vector<8xf32>
    %693 = vector.multi_reduction <add>, %692, %cst_457 [1] : vector<8x32xf32> to vector<8xf32>
    %694 = vector.shape_cast %693 : vector<8xf32> to vector<8x1xf32>
    %cst_458 = arith.constant 3.200000e+01 : f32
    %695 = vector.broadcast %cst_458 : f32 to vector<8x1xf32>
    %696 = arith.divf %694, %695 : vector<8x1xf32>
    %697 = vector.broadcast %696 : vector<8x1xf32> to vector<8x32xf32>
    %698 = arith.subf %692, %697 : vector<8x32xf32>
    %699 = arith.mulf %698, %698 : vector<8x32xf32>
    %cst_459 = arith.constant dense<0.000000e+00> : vector<8xf32>
    %700 = vector.multi_reduction <add>, %699, %cst_459 [1] : vector<8x32xf32> to vector<8xf32>
    %701 = vector.shape_cast %700 : vector<8xf32> to vector<8x1xf32>
    %cst_460 = arith.constant 3.200000e+01 : f32
    %702 = vector.broadcast %cst_460 : f32 to vector<8x1xf32>
    %703 = arith.divf %701, %702 : vector<8x1xf32>
    %cst_461 = arith.constant 9.99999974E-6 : f32
    %704 = vector.broadcast %cst_461 : f32 to vector<8x1xf32>
    %705 = arith.addf %703, %704 : vector<8x1xf32>
    %706 = math.rsqrt %705 : vector<8x1xf32>
    %707 = vector.broadcast %706 : vector<8x1xf32> to vector<8x32xf32>
    %708 = arith.mulf %698, %707 : vector<8x32xf32>
    %c0_462 = arith.constant 0 : index
    %c0_463 = arith.constant 0 : index
    %709 = vector.load %arg43[%c0_462, %c0_463] : memref<1x32xf32, #tpu.memory_space<vmem>>, vector<1x32xf32>
    %710 = vector.broadcast %709 : vector<1x32xf32> to vector<8x32xf32>
    %711 = arith.mulf %708, %710 : vector<8x32xf32>
    %c0_464 = arith.constant 0 : index
    %c0_465 = arith.constant 0 : index
    %712 = vector.load %arg44[%c0_464, %c0_465] : memref<1x32xf32, #tpu.memory_space<vmem>>, vector<1x32xf32>
    %713 = vector.broadcast %712 : vector<1x32xf32> to vector<8x32xf32>
    %714 = arith.addf %711, %713 : vector<8x32xf32>
    %c0_466 = arith.constant 0 : index
    %c0_467 = arith.constant 0 : index
    %715 = vector.load %arg45[%c0_466, %c0_467] : memref<32x96xf32, #tpu.memory_space<vmem>>, vector<32x96xf32>
    %cst_468 = arith.constant dense<0.000000e+00> : vector<8x96xf32>
    %716 = tpu.matmul %714, %715, %cst_468 {dimension_numbers = #tpu.dot_dimension_numbers<[1], [0], [0], [1], [0, 0, 1, 1], [], []>} : vector<8x32xf32>, vector<32x96xf32>, vector<8x96xf32> -> vector<8x96xf32>
    %c0_469 = arith.constant 0 : index
    %c0_470 = arith.constant 0 : index
    %717 = vector.load %arg60[%c0_469, %c0_470] : memref<8x96xf32, #tpu.memory_space<vmem>>, vector<8x96xf32>
    tpu.vector_store %arg60[%c0_469, %c0_470], %716 {strides = array<i32>} : memref<8x96xf32, #tpu.memory_space<vmem>>, vector<8x96xf32>,
    %c0_471 = arith.constant 0 : index
    %c0_472 = arith.constant 0 : index
    %718 = vector.load %arg60[%c0_471, %c0_472] : memref<8x96xf32, #tpu.memory_space<vmem>>, vector<8x4xf32>
    %c0_473 = arith.constant 0 : index
    %c32_474 = arith.constant 32 : index
    %719 = vector.load %arg60[%c0_473, %c32_474] : memref<8x96xf32, #tpu.memory_space<vmem>>, vector<8x4xf32>
    %c0_475 = arith.constant 0 : index
    %c64_476 = arith.constant 64 : index
    %720 = vector.load %arg60[%c0_475, %c64_476] : memref<8x96xf32, #tpu.memory_space<vmem>>, vector<8x4xf32>
    %cst_477 = arith.constant dense<0.000000e+00> : vector<8x8xf32>
    %721 = tpu.matmul %718, %719, %cst_477 {dimension_numbers = #tpu.dot_dimension_numbers<[1], [1], [0], [0], [0, 0, 1, 0], [], []>} : vector<8x4xf32>, vector<8x4xf32>, vector<8x8xf32> -> vector<8x8xf32>
    %cst_478 = arith.constant 5.000000e-01 : f32
    %722 = vector.broadcast %cst_478 : f32 to vector<8x8xf32>
    %723 = arith.mulf %721, %722 : vector<8x8xf32>
    %cst_479 = arith.constant dense<0xFF800000> : vector<8xf32>
    %724 = vector.multi_reduction <maximumf>, %723, %cst_479 [1] : vector<8x8xf32> to vector<8xf32>
    %725 = vector.shape_cast %724 : vector<8xf32> to vector<8x1xf32>
    %726 = vector.broadcast %725 : vector<8x1xf32> to vector<8x8xf32>
    %727 = arith.subf %723, %726 : vector<8x8xf32>
    %728 = math.exp %727 : vector<8x8xf32>
    %cst_480 = arith.constant dense<0.000000e+00> : vector<8xf32>
    %729 = vector.multi_reduction <add>, %728, %cst_480 [1] : vector<8x8xf32> to vector<8xf32>
    %730 = vector.shape_cast %729 : vector<8xf32> to vector<8x1xf32>
    %731 = tpu.reciprocal %730 {approx = true} : vector<8x1xf32> -> vector<8x1xf32>
    %cst_481 = arith.constant dense<0.000000e+00> : vector<8x4xf32>
    %732 = tpu.matmul %728, %720, %cst_481 {dimension_numbers = #tpu.dot_dimension_numbers<[1], [0], [0], [1], [0, 0, 1, 1], [], []>} : vector<8x8xf32>, vector<8x4xf32>, vector<8x4xf32> -> vector<8x4xf32>
    %733 = vector.broadcast %731 : vector<8x1xf32> to vector<8x4xf32>
    %734 = arith.mulf %732, %733 : vector<8x4xf32>
    %c0_482 = arith.constant 0 : index
    %c0_483 = arith.constant 0 : index
    %735 = vector.load %arg61[%c0_482, %c0_483] : memref<8x32xf32, #tpu.memory_space<vmem>>, vector<8x4xf32>
    tpu.vector_store %arg61[%c0_482, %c0_483], %734 {strides = array<i32>} : memref<8x32xf32, #tpu.memory_space<vmem>>, vector<8x4xf32>,
    %c0_484 = arith.constant 0 : index
    %c4_485 = arith.constant 4 : index
    %736 = vector.load %arg60[%c0_484, %c4_485] : memref<8x96xf32, #tpu.memory_space<vmem>>, vector<8x4xf32>
    %c0_486 = arith.constant 0 : index
    %c36_487 = arith.constant 36 : index
    %737 = vector.load %arg60[%c0_486, %c36_487] : memref<8x96xf32, #tpu.memory_space<vmem>>, vector<8x4xf32>
    %c0_488 = arith.constant 0 : index
    %c68_489 = arith.constant 68 : index
    %738 = vector.load %arg60[%c0_488, %c68_489] : memref<8x96xf32, #tpu.memory_space<vmem>>, vector<8x4xf32>
    %cst_490 = arith.constant dense<0.000000e+00> : vector<8x8xf32>
    %739 = tpu.matmul %736, %737, %cst_490 {dimension_numbers = #tpu.dot_dimension_numbers<[1], [1], [0], [0], [0, 0, 1, 0], [], []>} : vector<8x4xf32>, vector<8x4xf32>, vector<8x8xf32> -> vector<8x8xf32>
    %cst_491 = arith.constant 5.000000e-01 : f32
    %740 = vector.broadcast %cst_491 : f32 to vector<8x8xf32>
    %741 = arith.mulf %739, %740 : vector<8x8xf32>
    %cst_492 = arith.constant dense<0xFF800000> : vector<8xf32>
    %742 = vector.multi_reduction <maximumf>, %741, %cst_492 [1] : vector<8x8xf32> to vector<8xf32>
    %743 = vector.shape_cast %742 : vector<8xf32> to vector<8x1xf32>
    %744 = vector.broadcast %743 : vector<8x1xf32> to vector<8x8xf32>
    %745 = arith.subf %741, %744 : vector<8x8xf32>
    %746 = math.exp %745 : vector<8x8xf32>
    %cst_493 = arith.constant dense<0.000000e+00> : vector<8xf32>
    %747 = vector.multi_reduction <add>, %746, %cst_493 [1] : vector<8x8xf32> to vector<8xf32>
    %748 = vector.shape_cast %747 : vector<8xf32> to vector<8x1xf32>
    %749 = tpu.reciprocal %748 {approx = true} : vector<8x1xf32> -> vector<8x1xf32>
    %cst_494 = arith.constant dense<0.000000e+00> : vector<8x4xf32>
    %750 = tpu.matmul %746, %738, %cst_494 {dimension_numbers = #tpu.dot_dimension_numbers<[1], [0], [0], [1], [0, 0, 1, 1], [], []>} : vector<8x8xf32>, vector<8x4xf32>, vector<8x4xf32> -> vector<8x4xf32>
    %751 = vector.broadcast %749 : vector<8x1xf32> to vector<8x4xf32>
    %752 = arith.mulf %750, %751 : vector<8x4xf32>
    %c0_495 = arith.constant 0 : index
    %c4_496 = arith.constant 4 : index
    %753 = vector.load %arg61[%c0_495, %c4_496] : memref<8x32xf32, #tpu.memory_space<vmem>>, vector<8x4xf32>
    tpu.vector_store %arg61[%c0_495, %c4_496], %752 {strides = array<i32>} : memref<8x32xf32, #tpu.memory_space<vmem>>, vector<8x4xf32>,
    %c0_497 = arith.constant 0 : index
    %c8_498 = arith.constant 8 : index
    %754 = vector.load %arg60[%c0_497, %c8_498] : memref<8x96xf32, #tpu.memory_space<vmem>>, vector<8x4xf32>
    %c0_499 = arith.constant 0 : index
    %c40_500 = arith.constant 40 : index
    %755 = vector.load %arg60[%c0_499, %c40_500] : memref<8x96xf32, #tpu.memory_space<vmem>>, vector<8x4xf32>
    %c0_501 = arith.constant 0 : index
    %c72_502 = arith.constant 72 : index
    %756 = vector.load %arg60[%c0_501, %c72_502] : memref<8x96xf32, #tpu.memory_space<vmem>>, vector<8x4xf32>
    %cst_503 = arith.constant dense<0.000000e+00> : vector<8x8xf32>
    %757 = tpu.matmul %754, %755, %cst_503 {dimension_numbers = #tpu.dot_dimension_numbers<[1], [1], [0], [0], [0, 0, 1, 0], [], []>} : vector<8x4xf32>, vector<8x4xf32>, vector<8x8xf32> -> vector<8x8xf32>
    %cst_504 = arith.constant 5.000000e-01 : f32
    %758 = vector.broadcast %cst_504 : f32 to vector<8x8xf32>
    %759 = arith.mulf %757, %758 : vector<8x8xf32>
    %cst_505 = arith.constant dense<0xFF800000> : vector<8xf32>
    %760 = vector.multi_reduction <maximumf>, %759, %cst_505 [1] : vector<8x8xf32> to vector<8xf32>
    %761 = vector.shape_cast %760 : vector<8xf32> to vector<8x1xf32>
    %762 = vector.broadcast %761 : vector<8x1xf32> to vector<8x8xf32>
    %763 = arith.subf %759, %762 : vector<8x8xf32>
    %764 = math.exp %763 : vector<8x8xf32>
    %cst_506 = arith.constant dense<0.000000e+00> : vector<8xf32>
    %765 = vector.multi_reduction <add>, %764, %cst_506 [1] : vector<8x8xf32> to vector<8xf32>
    %766 = vector.shape_cast %765 : vector<8xf32> to vector<8x1xf32>
    %767 = tpu.reciprocal %766 {approx = true} : vector<8x1xf32> -> vector<8x1xf32>
    %cst_507 = arith.constant dense<0.000000e+00> : vector<8x4xf32>
    %768 = tpu.matmul %764, %756, %cst_507 {dimension_numbers = #tpu.dot_dimension_numbers<[1], [0], [0], [1], [0, 0, 1, 1], [], []>} : vector<8x8xf32>, vector<8x4xf32>, vector<8x4xf32> -> vector<8x4xf32>
    %769 = vector.broadcast %767 : vector<8x1xf32> to vector<8x4xf32>
    %770 = arith.mulf %768, %769 : vector<8x4xf32>
    %c0_508 = arith.constant 0 : index
    %c8_509 = arith.constant 8 : index
    %771 = vector.load %arg61[%c0_508, %c8_509] : memref<8x32xf32, #tpu.memory_space<vmem>>, vector<8x4xf32>
    tpu.vector_store %arg61[%c0_508, %c8_509], %770 {strides = array<i32>} : memref<8x32xf32, #tpu.memory_space<vmem>>, vector<8x4xf32>,
    %c0_510 = arith.constant 0 : index
    %c12_511 = arith.constant 12 : index
    %772 = vector.load %arg60[%c0_510, %c12_511] : memref<8x96xf32, #tpu.memory_space<vmem>>, vector<8x4xf32>
    %c0_512 = arith.constant 0 : index
    %c44_513 = arith.constant 44 : index
    %773 = vector.load %arg60[%c0_512, %c44_513] : memref<8x96xf32, #tpu.memory_space<vmem>>, vector<8x4xf32>
    %c0_514 = arith.constant 0 : index
    %c76_515 = arith.constant 76 : index
    %774 = vector.load %arg60[%c0_514, %c76_515] : memref<8x96xf32, #tpu.memory_space<vmem>>, vector<8x4xf32>
    %cst_516 = arith.constant dense<0.000000e+00> : vector<8x8xf32>
    %775 = tpu.matmul %772, %773, %cst_516 {dimension_numbers = #tpu.dot_dimension_numbers<[1], [1], [0], [0], [0, 0, 1, 0], [], []>} : vector<8x4xf32>, vector<8x4xf32>, vector<8x8xf32> -> vector<8x8xf32>
    %cst_517 = arith.constant 5.000000e-01 : f32
    %776 = vector.broadcast %cst_517 : f32 to vector<8x8xf32>
    %777 = arith.mulf %775, %776 : vector<8x8xf32>
    %cst_518 = arith.constant dense<0xFF800000> : vector<8xf32>
    %778 = vector.multi_reduction <maximumf>, %777, %cst_518 [1] : vector<8x8xf32> to vector<8xf32>
    %779 = vector.shape_cast %778 : vector<8xf32> to vector<8x1xf32>
    %780 = vector.broadcast %779 : vector<8x1xf32> to vector<8x8xf32>
    %781 = arith.subf %777, %780 : vector<8x8xf32>
    %782 = math.exp %781 : vector<8x8xf32>
    %cst_519 = arith.constant dense<0.000000e+00> : vector<8xf32>
    %783 = vector.multi_reduction <add>, %782, %cst_519 [1] : vector<8x8xf32> to vector<8xf32>
    %784 = vector.shape_cast %783 : vector<8xf32> to vector<8x1xf32>
    %785 = tpu.reciprocal %784 {approx = true} : vector<8x1xf32> -> vector<8x1xf32>
    %cst_520 = arith.constant dense<0.000000e+00> : vector<8x4xf32>
    %786 = tpu.matmul %782, %774, %cst_520 {dimension_numbers = #tpu.dot_dimension_numbers<[1], [0], [0], [1], [0, 0, 1, 1], [], []>} : vector<8x8xf32>, vector<8x4xf32>, vector<8x4xf32> -> vector<8x4xf32>
    %787 = vector.broadcast %785 : vector<8x1xf32> to vector<8x4xf32>
    %788 = arith.mulf %786, %787 : vector<8x4xf32>
    %c0_521 = arith.constant 0 : index
    %c12_522 = arith.constant 12 : index
    %789 = vector.load %arg61[%c0_521, %c12_522] : memref<8x32xf32, #tpu.memory_space<vmem>>, vector<8x4xf32>
    tpu.vector_store %arg61[%c0_521, %c12_522], %788 {strides = array<i32>} : memref<8x32xf32, #tpu.memory_space<vmem>>, vector<8x4xf32>,
    %c0_523 = arith.constant 0 : index
    %c16_524 = arith.constant 16 : index
    %790 = vector.load %arg60[%c0_523, %c16_524] : memref<8x96xf32, #tpu.memory_space<vmem>>, vector<8x4xf32>
    %c0_525 = arith.constant 0 : index
    %c48_526 = arith.constant 48 : index
    %791 = vector.load %arg60[%c0_525, %c48_526] : memref<8x96xf32, #tpu.memory_space<vmem>>, vector<8x4xf32>
    %c0_527 = arith.constant 0 : index
    %c80_528 = arith.constant 80 : index
    %792 = vector.load %arg60[%c0_527, %c80_528] : memref<8x96xf32, #tpu.memory_space<vmem>>, vector<8x4xf32>
    %cst_529 = arith.constant dense<0.000000e+00> : vector<8x8xf32>
    %793 = tpu.matmul %790, %791, %cst_529 {dimension_numbers = #tpu.dot_dimension_numbers<[1], [1], [0], [0], [0, 0, 1, 0], [], []>} : vector<8x4xf32>, vector<8x4xf32>, vector<8x8xf32> -> vector<8x8xf32>
    %cst_530 = arith.constant 5.000000e-01 : f32
    %794 = vector.broadcast %cst_530 : f32 to vector<8x8xf32>
    %795 = arith.mulf %793, %794 : vector<8x8xf32>
    %cst_531 = arith.constant dense<0xFF800000> : vector<8xf32>
    %796 = vector.multi_reduction <maximumf>, %795, %cst_531 [1] : vector<8x8xf32> to vector<8xf32>
    %797 = vector.shape_cast %796 : vector<8xf32> to vector<8x1xf32>
    %798 = vector.broadcast %797 : vector<8x1xf32> to vector<8x8xf32>
    %799 = arith.subf %795, %798 : vector<8x8xf32>
    %800 = math.exp %799 : vector<8x8xf32>
    %cst_532 = arith.constant dense<0.000000e+00> : vector<8xf32>
    %801 = vector.multi_reduction <add>, %800, %cst_532 [1] : vector<8x8xf32> to vector<8xf32>
    %802 = vector.shape_cast %801 : vector<8xf32> to vector<8x1xf32>
    %803 = tpu.reciprocal %802 {approx = true} : vector<8x1xf32> -> vector<8x1xf32>
    %cst_533 = arith.constant dense<0.000000e+00> : vector<8x4xf32>
    %804 = tpu.matmul %800, %792, %cst_533 {dimension_numbers = #tpu.dot_dimension_numbers<[1], [0], [0], [1], [0, 0, 1, 1], [], []>} : vector<8x8xf32>, vector<8x4xf32>, vector<8x4xf32> -> vector<8x4xf32>
    %805 = vector.broadcast %803 : vector<8x1xf32> to vector<8x4xf32>
    %806 = arith.mulf %804, %805 : vector<8x4xf32>
    %c0_534 = arith.constant 0 : index
    %c16_535 = arith.constant 16 : index
    %807 = vector.load %arg61[%c0_534, %c16_535] : memref<8x32xf32, #tpu.memory_space<vmem>>, vector<8x4xf32>
    tpu.vector_store %arg61[%c0_534, %c16_535], %806 {strides = array<i32>} : memref<8x32xf32, #tpu.memory_space<vmem>>, vector<8x4xf32>,
    %c0_536 = arith.constant 0 : index
    %c20_537 = arith.constant 20 : index
    %808 = vector.load %arg60[%c0_536, %c20_537] : memref<8x96xf32, #tpu.memory_space<vmem>>, vector<8x4xf32>
    %c0_538 = arith.constant 0 : index
    %c52_539 = arith.constant 52 : index
    %809 = vector.load %arg60[%c0_538, %c52_539] : memref<8x96xf32, #tpu.memory_space<vmem>>, vector<8x4xf32>
    %c0_540 = arith.constant 0 : index
    %c84_541 = arith.constant 84 : index
    %810 = vector.load %arg60[%c0_540, %c84_541] : memref<8x96xf32, #tpu.memory_space<vmem>>, vector<8x4xf32>
    %cst_542 = arith.constant dense<0.000000e+00> : vector<8x8xf32>
    %811 = tpu.matmul %808, %809, %cst_542 {dimension_numbers = #tpu.dot_dimension_numbers<[1], [1], [0], [0], [0, 0, 1, 0], [], []>} : vector<8x4xf32>, vector<8x4xf32>, vector<8x8xf32> -> vector<8x8xf32>
    %cst_543 = arith.constant 5.000000e-01 : f32
    %812 = vector.broadcast %cst_543 : f32 to vector<8x8xf32>
    %813 = arith.mulf %811, %812 : vector<8x8xf32>
    %cst_544 = arith.constant dense<0xFF800000> : vector<8xf32>
    %814 = vector.multi_reduction <maximumf>, %813, %cst_544 [1] : vector<8x8xf32> to vector<8xf32>
    %815 = vector.shape_cast %814 : vector<8xf32> to vector<8x1xf32>
    %816 = vector.broadcast %815 : vector<8x1xf32> to vector<8x8xf32>
    %817 = arith.subf %813, %816 : vector<8x8xf32>
    %818 = math.exp %817 : vector<8x8xf32>
    %cst_545 = arith.constant dense<0.000000e+00> : vector<8xf32>
    %819 = vector.multi_reduction <add>, %818, %cst_545 [1] : vector<8x8xf32> to vector<8xf32>
    %820 = vector.shape_cast %819 : vector<8xf32> to vector<8x1xf32>
    %821 = tpu.reciprocal %820 {approx = true} : vector<8x1xf32> -> vector<8x1xf32>
    %cst_546 = arith.constant dense<0.000000e+00> : vector<8x4xf32>
    %822 = tpu.matmul %818, %810, %cst_546 {dimension_numbers = #tpu.dot_dimension_numbers<[1], [0], [0], [1], [0, 0, 1, 1], [], []>} : vector<8x8xf32>, vector<8x4xf32>, vector<8x4xf32> -> vector<8x4xf32>
    %823 = vector.broadcast %821 : vector<8x1xf32> to vector<8x4xf32>
    %824 = arith.mulf %822, %823 : vector<8x4xf32>
    %c0_547 = arith.constant 0 : index
    %c20_548 = arith.constant 20 : index
    %825 = vector.load %arg61[%c0_547, %c20_548] : memref<8x32xf32, #tpu.memory_space<vmem>>, vector<8x4xf32>
    tpu.vector_store %arg61[%c0_547, %c20_548], %824 {strides = array<i32>} : memref<8x32xf32, #tpu.memory_space<vmem>>, vector<8x4xf32>,
    %c0_549 = arith.constant 0 : index
    %c24_550 = arith.constant 24 : index
    %826 = vector.load %arg60[%c0_549, %c24_550] : memref<8x96xf32, #tpu.memory_space<vmem>>, vector<8x4xf32>
    %c0_551 = arith.constant 0 : index
    %c56_552 = arith.constant 56 : index
    %827 = vector.load %arg60[%c0_551, %c56_552] : memref<8x96xf32, #tpu.memory_space<vmem>>, vector<8x4xf32>
    %c0_553 = arith.constant 0 : index
    %c88_554 = arith.constant 88 : index
    %828 = vector.load %arg60[%c0_553, %c88_554] : memref<8x96xf32, #tpu.memory_space<vmem>>, vector<8x4xf32>
    %cst_555 = arith.constant dense<0.000000e+00> : vector<8x8xf32>
    %829 = tpu.matmul %826, %827, %cst_555 {dimension_numbers = #tpu.dot_dimension_numbers<[1], [1], [0], [0], [0, 0, 1, 0], [], []>} : vector<8x4xf32>, vector<8x4xf32>, vector<8x8xf32> -> vector<8x8xf32>
    %cst_556 = arith.constant 5.000000e-01 : f32
    %830 = vector.broadcast %cst_556 : f32 to vector<8x8xf32>
    %831 = arith.mulf %829, %830 : vector<8x8xf32>
    %cst_557 = arith.constant dense<0xFF800000> : vector<8xf32>
    %832 = vector.multi_reduction <maximumf>, %831, %cst_557 [1] : vector<8x8xf32> to vector<8xf32>
    %833 = vector.shape_cast %832 : vector<8xf32> to vector<8x1xf32>
    %834 = vector.broadcast %833 : vector<8x1xf32> to vector<8x8xf32>
    %835 = arith.subf %831, %834 : vector<8x8xf32>
    %836 = math.exp %835 : vector<8x8xf32>
    %cst_558 = arith.constant dense<0.000000e+00> : vector<8xf32>
    %837 = vector.multi_reduction <add>, %836, %cst_558 [1] : vector<8x8xf32> to vector<8xf32>
    %838 = vector.shape_cast %837 : vector<8xf32> to vector<8x1xf32>
    %839 = tpu.reciprocal %838 {approx = true} : vector<8x1xf32> -> vector<8x1xf32>
    %cst_559 = arith.constant dense<0.000000e+00> : vector<8x4xf32>
    %840 = tpu.matmul %836, %828, %cst_559 {dimension_numbers = #tpu.dot_dimension_numbers<[1], [0], [0], [1], [0, 0, 1, 1], [], []>} : vector<8x8xf32>, vector<8x4xf32>, vector<8x4xf32> -> vector<8x4xf32>
    %841 = vector.broadcast %839 : vector<8x1xf32> to vector<8x4xf32>
    %842 = arith.mulf %840, %841 : vector<8x4xf32>
    %c0_560 = arith.constant 0 : index
    %c24_561 = arith.constant 24 : index
    %843 = vector.load %arg61[%c0_560, %c24_561] : memref<8x32xf32, #tpu.memory_space<vmem>>, vector<8x4xf32>
    tpu.vector_store %arg61[%c0_560, %c24_561], %842 {strides = array<i32>} : memref<8x32xf32, #tpu.memory_space<vmem>>, vector<8x4xf32>,
    %c0_562 = arith.constant 0 : index
    %c28_563 = arith.constant 28 : index
    %844 = vector.load %arg60[%c0_562, %c28_563] : memref<8x96xf32, #tpu.memory_space<vmem>>, vector<8x4xf32>
    %c0_564 = arith.constant 0 : index
    %c60_565 = arith.constant 60 : index
    %845 = vector.load %arg60[%c0_564, %c60_565] : memref<8x96xf32, #tpu.memory_space<vmem>>, vector<8x4xf32>
    %c0_566 = arith.constant 0 : index
    %c92_567 = arith.constant 92 : index
    %846 = vector.load %arg60[%c0_566, %c92_567] : memref<8x96xf32, #tpu.memory_space<vmem>>, vector<8x4xf32>
    %cst_568 = arith.constant dense<0.000000e+00> : vector<8x8xf32>
    %847 = tpu.matmul %844, %845, %cst_568 {dimension_numbers = #tpu.dot_dimension_numbers<[1], [1], [0], [0], [0, 0, 1, 0], [], []>} : vector<8x4xf32>, vector<8x4xf32>, vector<8x8xf32> -> vector<8x8xf32>
    %cst_569 = arith.constant 5.000000e-01 : f32
    %848 = vector.broadcast %cst_569 : f32 to vector<8x8xf32>
    %849 = arith.mulf %847, %848 : vector<8x8xf32>
    %cst_570 = arith.constant dense<0xFF800000> : vector<8xf32>
    %850 = vector.multi_reduction <maximumf>, %849, %cst_570 [1] : vector<8x8xf32> to vector<8xf32>
    %851 = vector.shape_cast %850 : vector<8xf32> to vector<8x1xf32>
    %852 = vector.broadcast %851 : vector<8x1xf32> to vector<8x8xf32>
    %853 = arith.subf %849, %852 : vector<8x8xf32>
    %854 = math.exp %853 : vector<8x8xf32>
    %cst_571 = arith.constant dense<0.000000e+00> : vector<8xf32>
    %855 = vector.multi_reduction <add>, %854, %cst_571 [1] : vector<8x8xf32> to vector<8xf32>
    %856 = vector.shape_cast %855 : vector<8xf32> to vector<8x1xf32>
    %857 = tpu.reciprocal %856 {approx = true} : vector<8x1xf32> -> vector<8x1xf32>
    %cst_572 = arith.constant dense<0.000000e+00> : vector<8x4xf32>
    %858 = tpu.matmul %854, %846, %cst_572 {dimension_numbers = #tpu.dot_dimension_numbers<[1], [0], [0], [1], [0, 0, 1, 1], [], []>} : vector<8x8xf32>, vector<8x4xf32>, vector<8x4xf32> -> vector<8x4xf32>
    %859 = vector.broadcast %857 : vector<8x1xf32> to vector<8x4xf32>
    %860 = arith.mulf %858, %859 : vector<8x4xf32>
    %c0_573 = arith.constant 0 : index
    %c28_574 = arith.constant 28 : index
    %861 = vector.load %arg61[%c0_573, %c28_574] : memref<8x32xf32, #tpu.memory_space<vmem>>, vector<8x4xf32>
    tpu.vector_store %arg61[%c0_573, %c28_574], %860 {strides = array<i32>} : memref<8x32xf32, #tpu.memory_space<vmem>>, vector<8x4xf32>,
    %c0_575 = arith.constant 0 : index
    %c0_576 = arith.constant 0 : index
    %862 = vector.load %arg61[%c0_575, %c0_576] : memref<8x32xf32, #tpu.memory_space<vmem>>, vector<8x32xf32>
    %c0_577 = arith.constant 0 : index
    %c0_578 = arith.constant 0 : index
    %863 = vector.load %arg46[%c0_577, %c0_578] : memref<32x32xf32, #tpu.memory_space<vmem>>, vector<32x32xf32>
    %cst_579 = arith.constant dense<0.000000e+00> : vector<8x32xf32>
    %864 = tpu.matmul %862, %863, %cst_579 {dimension_numbers = #tpu.dot_dimension_numbers<[1], [0], [0], [1], [0, 0, 1, 1], [], []>} : vector<8x32xf32>, vector<32x32xf32>, vector<8x32xf32> -> vector<8x32xf32>
    %c0_580 = arith.constant 0 : index
    %c0_581 = arith.constant 0 : index
    %865 = vector.load %arg47[%c0_580, %c0_581] : memref<1x32xf32, #tpu.memory_space<vmem>>, vector<1x32xf32>
    %866 = vector.broadcast %865 : vector<1x32xf32> to vector<8x32xf32>
    %867 = arith.addf %864, %866 : vector<8x32xf32>
    %868 = arith.addf %867, %692 : vector<8x32xf32>
    %cst_582 = arith.constant dense<0.000000e+00> : vector<8xf32>
    %869 = vector.multi_reduction <add>, %868, %cst_582 [1] : vector<8x32xf32> to vector<8xf32>
    %870 = vector.shape_cast %869 : vector<8xf32> to vector<8x1xf32>
    %cst_583 = arith.constant 3.200000e+01 : f32
    %871 = vector.broadcast %cst_583 : f32 to vector<8x1xf32>
    %872 = arith.divf %870, %871 : vector<8x1xf32>
    %873 = vector.broadcast %872 : vector<8x1xf32> to vector<8x32xf32>
    %874 = arith.subf %868, %873 : vector<8x32xf32>
    %875 = arith.mulf %874, %874 : vector<8x32xf32>
    %cst_584 = arith.constant dense<0.000000e+00> : vector<8xf32>
    %876 = vector.multi_reduction <add>, %875, %cst_584 [1] : vector<8x32xf32> to vector<8xf32>
    %877 = vector.shape_cast %876 : vector<8xf32> to vector<8x1xf32>
    %cst_585 = arith.constant 3.200000e+01 : f32
    %878 = vector.broadcast %cst_585 : f32 to vector<8x1xf32>
    %879 = arith.divf %877, %878 : vector<8x1xf32>
    %cst_586 = arith.constant 9.99999974E-6 : f32
    %880 = vector.broadcast %cst_586 : f32 to vector<8x1xf32>
    %881 = arith.addf %879, %880 : vector<8x1xf32>
    %882 = math.rsqrt %881 : vector<8x1xf32>
    %883 = vector.broadcast %882 : vector<8x1xf32> to vector<8x32xf32>
    %884 = arith.mulf %874, %883 : vector<8x32xf32>
    %c0_587 = arith.constant 0 : index
    %c0_588 = arith.constant 0 : index
    %885 = vector.load %arg48[%c0_587, %c0_588] : memref<1x32xf32, #tpu.memory_space<vmem>>, vector<1x32xf32>
    %886 = vector.broadcast %885 : vector<1x32xf32> to vector<8x32xf32>
    %887 = arith.mulf %884, %886 : vector<8x32xf32>
    %c0_589 = arith.constant 0 : index
    %c0_590 = arith.constant 0 : index
    %888 = vector.load %arg49[%c0_589, %c0_590] : memref<1x32xf32, #tpu.memory_space<vmem>>, vector<1x32xf32>
    %889 = vector.broadcast %888 : vector<1x32xf32> to vector<8x32xf32>
    %890 = arith.addf %887, %889 : vector<8x32xf32>
    %c0_591 = arith.constant 0 : index
    %c0_592 = arith.constant 0 : index
    %891 = vector.load %arg50[%c0_591, %c0_592] : memref<32x64xf32, #tpu.memory_space<vmem>>, vector<32x64xf32>
    %cst_593 = arith.constant dense<0.000000e+00> : vector<8x64xf32>
    %892 = tpu.matmul %890, %891, %cst_593 {dimension_numbers = #tpu.dot_dimension_numbers<[1], [0], [0], [1], [0, 0, 1, 1], [], []>} : vector<8x32xf32>, vector<32x64xf32>, vector<8x64xf32> -> vector<8x64xf32>
    %c0_594 = arith.constant 0 : index
    %c0_595 = arith.constant 0 : index
    %893 = vector.load %arg51[%c0_594, %c0_595] : memref<1x64xf32, #tpu.memory_space<vmem>>, vector<1x64xf32>
    %894 = vector.broadcast %893 : vector<1x64xf32> to vector<8x64xf32>
    %895 = arith.addf %892, %894 : vector<8x64xf32>
    %cst_596 = arith.constant 5.000000e-01 : f32
    %896 = vector.broadcast %cst_596 : f32 to vector<8x64xf32>
    %897 = arith.mulf %896, %895 : vector<8x64xf32>
    %cst_597 = arith.constant 4.471500e-02 : f32
    %898 = vector.broadcast %cst_597 : f32 to vector<8x64xf32>
    %899 = arith.mulf %898, %895 : vector<8x64xf32>
    %900 = arith.mulf %899, %895 : vector<8x64xf32>
    %901 = arith.mulf %900, %895 : vector<8x64xf32>
    %902 = arith.addf %895, %901 : vector<8x64xf32>
    %cst_598 = arith.constant 0.797884583 : f32
    %903 = vector.broadcast %cst_598 : f32 to vector<8x64xf32>
    %904 = arith.mulf %903, %902 : vector<8x64xf32>
    %905 = math.tanh %904 : vector<8x64xf32>
    %cst_599 = arith.constant 1.000000e+00 : f32
    %906 = vector.broadcast %cst_599 : f32 to vector<8x64xf32>
    %907 = arith.addf %906, %905 : vector<8x64xf32>
    %908 = arith.mulf %897, %907 : vector<8x64xf32>
    %c0_600 = arith.constant 0 : index
    %c0_601 = arith.constant 0 : index
    %909 = vector.load %arg52[%c0_600, %c0_601] : memref<64x32xf32, #tpu.memory_space<vmem>>, vector<64x32xf32>
    %cst_602 = arith.constant dense<0.000000e+00> : vector<8x32xf32>
    %910 = tpu.matmul %908, %909, %cst_602 {dimension_numbers = #tpu.dot_dimension_numbers<[1], [0], [0], [1], [0, 0, 1, 1], [], []>} : vector<8x64xf32>, vector<64x32xf32>, vector<8x32xf32> -> vector<8x32xf32>
    %c0_603 = arith.constant 0 : index
    %c0_604 = arith.constant 0 : index
    %911 = vector.load %arg53[%c0_603, %c0_604] : memref<1x32xf32, #tpu.memory_space<vmem>>, vector<1x32xf32>
    %912 = vector.broadcast %911 : vector<1x32xf32> to vector<8x32xf32>
    %913 = arith.addf %910, %912 : vector<8x32xf32>
    %c0_605 = arith.constant 0 : index
    %c128 = arith.constant 128 : index
    %914 = vector.load %arg59[%c0_605, %c128] : memref<8x160xf32, #tpu.memory_space<vmem>>, vector<8x32xf32>
    tpu.vector_store %arg59[%c0_605, %c128], %913 {strides = array<i32>} : memref<8x160xf32, #tpu.memory_space<vmem>>, vector<8x32xf32>,
    %c0_606 = arith.constant 0 : index
    %c0_607 = arith.constant 0 : index
    %915 = vector.load %arg59[%c0_606, %c0_607] : memref<8x160xf32, #tpu.memory_space<vmem>>, vector<8x160xf32>
    %c0_608 = arith.constant 0 : index
    %c0_609 = arith.constant 0 : index
    %916 = vector.load %arg54[%c0_608, %c0_609] : memref<160x64xf32, #tpu.memory_space<vmem>>, vector<160x64xf32>
    %cst_610 = arith.constant dense<0.000000e+00> : vector<8x64xf32>
    %917 = tpu.matmul %915, %916, %cst_610 {dimension_numbers = #tpu.dot_dimension_numbers<[1], [0], [0], [1], [0, 0, 1, 1], [], []>} : vector<8x160xf32>, vector<160x64xf32>, vector<8x64xf32> -> vector<8x64xf32>
    %c0_611 = arith.constant 0 : index
    %c0_612 = arith.constant 0 : index
    %918 = vector.load %arg55[%c0_611, %c0_612] : memref<1x64xf32, #tpu.memory_space<vmem>>, vector<1x64xf32>
    %919 = vector.broadcast %918 : vector<1x64xf32> to vector<8x64xf32>
    %920 = arith.addf %917, %919 : vector<8x64xf32>
    %cst_613 = arith.constant 5.000000e-01 : f32
    %921 = vector.broadcast %cst_613 : f32 to vector<8x64xf32>
    %922 = arith.mulf %921, %920 : vector<8x64xf32>
    %cst_614 = arith.constant 4.471500e-02 : f32
    %923 = vector.broadcast %cst_614 : f32 to vector<8x64xf32>
    %924 = arith.mulf %923, %920 : vector<8x64xf32>
    %925 = arith.mulf %924, %920 : vector<8x64xf32>
    %926 = arith.mulf %925, %920 : vector<8x64xf32>
    %927 = arith.addf %920, %926 : vector<8x64xf32>
    %cst_615 = arith.constant 0.797884583 : f32
    %928 = vector.broadcast %cst_615 : f32 to vector<8x64xf32>
    %929 = arith.mulf %928, %927 : vector<8x64xf32>
    %930 = math.tanh %929 : vector<8x64xf32>
    %cst_616 = arith.constant 1.000000e+00 : f32
    %931 = vector.broadcast %cst_616 : f32 to vector<8x64xf32>
    %932 = arith.addf %931, %930 : vector<8x64xf32>
    %933 = arith.mulf %922, %932 : vector<8x64xf32>
    %c0_617 = arith.constant 0 : index
    %c0_618 = arith.constant 0 : index
    %934 = vector.load %arg56[%c0_617, %c0_618] : memref<64x32xf32, #tpu.memory_space<vmem>>, vector<64x32xf32>
    %cst_619 = arith.constant dense<0.000000e+00> : vector<8x32xf32>
    %935 = tpu.matmul %933, %934, %cst_619 {dimension_numbers = #tpu.dot_dimension_numbers<[1], [0], [0], [1], [0, 0, 1, 1], [], []>} : vector<8x64xf32>, vector<64x32xf32>, vector<8x32xf32> -> vector<8x32xf32>
    %c0_620 = arith.constant 0 : index
    %c0_621 = arith.constant 0 : index
    %936 = vector.load %arg57[%c0_620, %c0_621] : memref<1x32xf32, #tpu.memory_space<vmem>>, vector<1x32xf32>
    %937 = vector.broadcast %936 : vector<1x32xf32> to vector<8x32xf32>
    %938 = arith.addf %935, %937 : vector<8x32xf32>
    %c0_622 = arith.constant 0 : index
    %c0_623 = arith.constant 0 : index
    %c0_624 = arith.constant 0 : index
    %939 = vector.load %arg58[%c0_622, %c0_623, %c0_624] : memref<1x8x32xf32, #tpu.memory_space<vmem>>, vector<1x8x32xf32>
    %940 = vector.shape_cast %939 : vector<1x8x32xf32> to vector<8x32xf32>
    %941 = vector.shape_cast %938 : vector<8x32xf32> to vector<1x8x32xf32>
    tpu.vector_store %arg58[%c0_622, %c0_623, %c0_624], %941 {strides = array<i32>} : memref<1x8x32xf32, #tpu.memory_space<vmem>>, vector<1x8x32xf32>,
    return
  }
  func.func @transform_0(%arg0: i32) -> (i32, i32, i32) {
    %c0_i32 = arith.constant 0 : i32
    %c0_i32_0 = arith.constant 0 : i32
    %c0_i32_1 = arith.constant 0 : i32
    return %arg0, %c0_i32, %c0_i32_0 : i32, i32, i32
  }
  func.func @transform_1(%arg0: i32) -> (i32, i32) {
    %c0_i32 = arith.constant 0 : i32
    %c0_i32_0 = arith.constant 0 : i32
    %c0_i32_1 = arith.constant 0 : i32
    return %c0_i32, %c0_i32_0 : i32, i32
  }
  func.func @transform_2(%arg0: i32) -> (i32, i32) {
    %c0_i32 = arith.constant 0 : i32
    %c0_i32_0 = arith.constant 0 : i32
    %c0_i32_1 = arith.constant 0 : i32
    return %c0_i32, %c0_i32_0 : i32, i32
  }
  func.func @transform_3(%arg0: i32) -> (i32, i32) {
    %c0_i32 = arith.constant 0 : i32
    %c0_i32_0 = arith.constant 0 : i32
    %c0_i32_1 = arith.constant 0 : i32
    return %c0_i32, %c0_i32_0 : i32, i32
  }
  func.func @transform_4(%arg0: i32) -> (i32, i32) {
    %c0_i32 = arith.constant 0 : i32
    %c0_i32_0 = arith.constant 0 : i32
    %c0_i32_1 = arith.constant 0 : i32
    return %c0_i32, %c0_i32_0 : i32, i32
  }
  func.func @transform_5(%arg0: i32) -> (i32, i32) {
    %c0_i32 = arith.constant 0 : i32
    %c0_i32_0 = arith.constant 0 : i32
    %c0_i32_1 = arith.constant 0 : i32
    return %c0_i32, %c0_i32_0 : i32, i32
  }
  func.func @transform_6(%arg0: i32) -> (i32, i32) {
    %c0_i32 = arith.constant 0 : i32
    %c0_i32_0 = arith.constant 0 : i32
    %c0_i32_1 = arith.constant 0 : i32
    return %c0_i32, %c0_i32_0 : i32, i32
  }
  func.func @transform_7(%arg0: i32) -> (i32, i32) {
    %c0_i32 = arith.constant 0 : i32
    %c0_i32_0 = arith.constant 0 : i32
    %c0_i32_1 = arith.constant 0 : i32
    return %c0_i32, %c0_i32_0 : i32, i32
  }
  func.func @transform_8(%arg0: i32) -> (i32, i32) {
    %c0_i32 = arith.constant 0 : i32
    %c0_i32_0 = arith.constant 0 : i32
    %c0_i32_1 = arith.constant 0 : i32
    return %c0_i32, %c0_i32_0 : i32, i32
  }
  func.func @transform_9(%arg0: i32) -> (i32, i32) {
    %c0_i32 = arith.constant 0 : i32
    %c0_i32_0 = arith.constant 0 : i32
    %c0_i32_1 = arith.constant 0 : i32
    return %c0_i32, %c0_i32_0 : i32, i32
  }
  func.func @transform_10(%arg0: i32) -> (i32, i32) {
    %c0_i32 = arith.constant 0 : i32
    %c0_i32_0 = arith.constant 0 : i32
    %c0_i32_1 = arith.constant 0 : i32
    return %c0_i32, %c0_i32_0 : i32, i32
  }
  func.func @transform_11(%arg0: i32) -> (i32, i32) {
    %c0_i32 = arith.constant 0 : i32
    %c0_i32_0 = arith.constant 0 : i32
    %c0_i32_1 = arith.constant 0 : i32
    return %c0_i32, %c0_i32_0 : i32, i32
  }
  func.func @transform_12(%arg0: i32) -> (i32, i32) {
    %c0_i32 = arith.constant 0 : i32
    %c0_i32_0 = arith.constant 0 : i32
    %c0_i32_1 = arith.constant 0 : i32
    return %c0_i32, %c0_i32_0 : i32, i32
  }
  func.func @transform_13(%arg0: i32) -> (i32, i32) {
    %c0_i32 = arith.constant 0 : i32
    %c0_i32_0 = arith.constant 0 : i32
    %c0_i32_1 = arith.constant 0 : i32
    return %c0_i32, %c0_i32_0 : i32, i32
  }
  func.func @transform_14(%arg0: i32) -> (i32, i32) {
    %c0_i32 = arith.constant 0 : i32
    %c0_i32_0 = arith.constant 0 : i32
    %c0_i32_1 = arith.constant 0 : i32
    return %c0_i32, %c0_i32_0 : i32, i32
  }
  func.func @transform_15(%arg0: i32) -> (i32, i32) {
    %c0_i32 = arith.constant 0 : i32
    %c0_i32_0 = arith.constant 0 : i32
    %c0_i32_1 = arith.constant 0 : i32
    return %c0_i32, %c0_i32_0 : i32, i32
  }
  func.func @transform_16(%arg0: i32) -> (i32, i32) {
    %c0_i32 = arith.constant 0 : i32
    %c0_i32_0 = arith.constant 0 : i32
    %c0_i32_1 = arith.constant 0 : i32
    return %c0_i32, %c0_i32_0 : i32, i32
  }
  func.func @transform_17(%arg0: i32) -> (i32, i32) {
    %c0_i32 = arith.constant 0 : i32
    %c0_i32_0 = arith.constant 0 : i32
    %c0_i32_1 = arith.constant 0 : i32
    return %c0_i32, %c0_i32_0 : i32, i32
  }
  func.func @transform_18(%arg0: i32) -> (i32, i32) {
    %c0_i32 = arith.constant 0 : i32
    %c0_i32_0 = arith.constant 0 : i32
    %c0_i32_1 = arith.constant 0 : i32
    return %c0_i32, %c0_i32_0 : i32, i32
  }
  func.func @transform_19(%arg0: i32) -> (i32, i32) {
    %c0_i32 = arith.constant 0 : i32
    %c0_i32_0 = arith.constant 0 : i32
    %c0_i32_1 = arith.constant 0 : i32
    return %c0_i32, %c0_i32_0 : i32, i32
  }
  func.func @transform_20(%arg0: i32) -> (i32, i32) {
    %c0_i32 = arith.constant 0 : i32
    %c0_i32_0 = arith.constant 0 : i32
    %c0_i32_1 = arith.constant 0 : i32
    return %c0_i32, %c0_i32_0 : i32, i32
  }
  func.func @transform_21(%arg0: i32) -> (i32, i32) {
    %c0_i32 = arith.constant 0 : i32
    %c0_i32_0 = arith.constant 0 : i32
    %c0_i32_1 = arith.constant 0 : i32
    return %c0_i32, %c0_i32_0 : i32, i32
  }
  func.func @transform_22(%arg0: i32) -> (i32, i32) {
    %c0_i32 = arith.constant 0 : i32
    %c0_i32_0 = arith.constant 0 : i32
    %c0_i32_1 = arith.constant 0 : i32
    return %c0_i32, %c0_i32_0 : i32, i32
  }
  func.func @transform_23(%arg0: i32) -> (i32, i32) {
    %c0_i32 = arith.constant 0 : i32
    %c0_i32_0 = arith.constant 0 : i32
    %c0_i32_1 = arith.constant 0 : i32
    return %c0_i32, %c0_i32_0 : i32, i32
  }
  func.func @transform_24(%arg0: i32) -> (i32, i32) {
    %c0_i32 = arith.constant 0 : i32
    %c0_i32_0 = arith.constant 0 : i32
    %c0_i32_1 = arith.constant 0 : i32
    return %c0_i32, %c0_i32_0 : i32, i32
  }
  func.func @transform_25(%arg0: i32) -> (i32, i32) {
    %c0_i32 = arith.constant 0 : i32
    %c0_i32_0 = arith.constant 0 : i32
    %c0_i32_1 = arith.constant 0 : i32
    return %c0_i32, %c0_i32_0 : i32, i32
  }
  func.func @transform_26(%arg0: i32) -> (i32, i32) {
    %c0_i32 = arith.constant 0 : i32
    %c0_i32_0 = arith.constant 0 : i32
    %c0_i32_1 = arith.constant 0 : i32
    return %c0_i32, %c0_i32_0 : i32, i32
  }
  func.func @transform_27(%arg0: i32) -> (i32, i32) {
    %c0_i32 = arith.constant 0 : i32
    %c0_i32_0 = arith.constant 0 : i32
    %c0_i32_1 = arith.constant 0 : i32
    return %c0_i32, %c0_i32_0 : i32, i32
  }
  func.func @transform_28(%arg0: i32) -> (i32, i32) {
    %c0_i32 = arith.constant 0 : i32
    %c0_i32_0 = arith.constant 0 : i32
    %c0_i32_1 = arith.constant 0 : i32
    return %c0_i32, %c0_i32_0 : i32, i32
  }
  func.func @transform_29(%arg0: i32) -> (i32, i32) {
    %c0_i32 = arith.constant 0 : i32
    %c0_i32_0 = arith.constant 0 : i32
    %c0_i32_1 = arith.constant 0 : i32
    return %c0_i32, %c0_i32_0 : i32, i32
  }
  func.func @transform_30(%arg0: i32) -> (i32, i32) {
    %c0_i32 = arith.constant 0 : i32
    %c0_i32_0 = arith.constant 0 : i32
    %c0_i32_1 = arith.constant 0 : i32
    return %c0_i32, %c0_i32_0 : i32, i32
  }
  func.func @transform_31(%arg0: i32) -> (i32, i32) {
    %c0_i32 = arith.constant 0 : i32
    %c0_i32_0 = arith.constant 0 : i32
    %c0_i32_1 = arith.constant 0 : i32
    return %c0_i32, %c0_i32_0 : i32, i32
  }
  func.func @transform_32(%arg0: i32) -> (i32, i32) {
    %c0_i32 = arith.constant 0 : i32
    %c0_i32_0 = arith.constant 0 : i32
    %c0_i32_1 = arith.constant 0 : i32
    return %c0_i32, %c0_i32_0 : i32, i32
  }
  func.func @transform_33(%arg0: i32) -> (i32, i32) {
    %c0_i32 = arith.constant 0 : i32
    %c0_i32_0 = arith.constant 0 : i32
    %c0_i32_1 = arith.constant 0 : i32
    return %c0_i32, %c0_i32_0 : i32, i32
  }
  func.func @transform_34(%arg0: i32) -> (i32, i32) {
    %c0_i32 = arith.constant 0 : i32
    %c0_i32_0 = arith.constant 0 : i32
    %c0_i32_1 = arith.constant 0 : i32
    return %c0_i32, %c0_i32_0 : i32, i32
  }
  func.func @transform_35(%arg0: i32) -> (i32, i32) {
    %c0_i32 = arith.constant 0 : i32
    %c0_i32_0 = arith.constant 0 : i32
    %c0_i32_1 = arith.constant 0 : i32
    return %c0_i32, %c0_i32_0 : i32, i32
  }
  func.func @transform_36(%arg0: i32) -> (i32, i32) {
    %c0_i32 = arith.constant 0 : i32
    %c0_i32_0 = arith.constant 0 : i32
    %c0_i32_1 = arith.constant 0 : i32
    return %c0_i32, %c0_i32_0 : i32, i32
  }
  func.func @transform_37(%arg0: i32) -> (i32, i32) {
    %c0_i32 = arith.constant 0 : i32
    %c0_i32_0 = arith.constant 0 : i32
    %c0_i32_1 = arith.constant 0 : i32
    return %c0_i32, %c0_i32_0 : i32, i32
  }
  func.func @transform_38(%arg0: i32) -> (i32, i32) {
    %c0_i32 = arith.constant 0 : i32
    %c0_i32_0 = arith.constant 0 : i32
    %c0_i32_1 = arith.constant 0 : i32
    return %c0_i32, %c0_i32_0 : i32, i32
  }
  func.func @transform_39(%arg0: i32) -> (i32, i32) {
    %c0_i32 = arith.constant 0 : i32
    %c0_i32_0 = arith.constant 0 : i32
    %c0_i32_1 = arith.constant 0 : i32
    return %c0_i32, %c0_i32_0 : i32, i32
  }
  func.func @transform_40(%arg0: i32) -> (i32, i32) {
    %c0_i32 = arith.constant 0 : i32
    %c0_i32_0 = arith.constant 0 : i32
    %c0_i32_1 = arith.constant 0 : i32
    return %c0_i32, %c0_i32_0 : i32, i32
  }
  func.func @transform_41(%arg0: i32) -> (i32, i32) {
    %c0_i32 = arith.constant 0 : i32
    %c0_i32_0 = arith.constant 0 : i32
    %c0_i32_1 = arith.constant 0 : i32
    return %c0_i32, %c0_i32_0 : i32, i32
  }
  func.func @transform_42(%arg0: i32) -> (i32, i32) {
    %c0_i32 = arith.constant 0 : i32
    %c0_i32_0 = arith.constant 0 : i32
    %c0_i32_1 = arith.constant 0 : i32
    return %c0_i32, %c0_i32_0 : i32, i32
  }
  func.func @transform_43(%arg0: i32) -> (i32, i32) {
    %c0_i32 = arith.constant 0 : i32
    %c0_i32_0 = arith.constant 0 : i32
    %c0_i32_1 = arith.constant 0 : i32
    return %c0_i32, %c0_i32_0 : i32, i32
  }
  func.func @transform_44(%arg0: i32) -> (i32, i32) {
    %c0_i32 = arith.constant 0 : i32
    %c0_i32_0 = arith.constant 0 : i32
    %c0_i32_1 = arith.constant 0 : i32
    return %c0_i32, %c0_i32_0 : i32, i32
  }
  func.func @transform_45(%arg0: i32) -> (i32, i32) {
    %c0_i32 = arith.constant 0 : i32
    %c0_i32_0 = arith.constant 0 : i32
    %c0_i32_1 = arith.constant 0 : i32
    return %c0_i32, %c0_i32_0 : i32, i32
  }
  func.func @transform_46(%arg0: i32) -> (i32, i32) {
    %c0_i32 = arith.constant 0 : i32
    %c0_i32_0 = arith.constant 0 : i32
    %c0_i32_1 = arith.constant 0 : i32
    return %c0_i32, %c0_i32_0 : i32, i32
  }
  func.func @transform_47(%arg0: i32) -> (i32, i32) {
    %c0_i32 = arith.constant 0 : i32
    %c0_i32_0 = arith.constant 0 : i32
    %c0_i32_1 = arith.constant 0 : i32
    return %c0_i32, %c0_i32_0 : i32, i32
  }
  func.func @transform_48(%arg0: i32) -> (i32, i32) {
    %c0_i32 = arith.constant 0 : i32
    %c0_i32_0 = arith.constant 0 : i32
    %c0_i32_1 = arith.constant 0 : i32
    return %c0_i32, %c0_i32_0 : i32, i32
  }
  func.func @transform_49(%arg0: i32) -> (i32, i32) {
    %c0_i32 = arith.constant 0 : i32
    %c0_i32_0 = arith.constant 0 : i32
    %c0_i32_1 = arith.constant 0 : i32
    return %c0_i32, %c0_i32_0 : i32, i32
  }
  func.func @transform_50(%arg0: i32) -> (i32, i32) {
    %c0_i32 = arith.constant 0 : i32
    %c0_i32_0 = arith.constant 0 : i32
    %c0_i32_1 = arith.constant 0 : i32
    return %c0_i32, %c0_i32_0 : i32, i32
  }
  func.func @transform_51(%arg0: i32) -> (i32, i32) {
    %c0_i32 = arith.constant 0 : i32
    %c0_i32_0 = arith.constant 0 : i32
    %c0_i32_1 = arith.constant 0 : i32
    return %c0_i32, %c0_i32_0 : i32, i32
  }
  func.func @transform_52(%arg0: i32) -> (i32, i32) {
    %c0_i32 = arith.constant 0 : i32
    %c0_i32_0 = arith.constant 0 : i32
    %c0_i32_1 = arith.constant 0 : i32
    return %c0_i32, %c0_i32_0 : i32, i32
  }
  func.func @transform_53(%arg0: i32) -> (i32, i32) {
    %c0_i32 = arith.constant 0 : i32
    %c0_i32_0 = arith.constant 0 : i32
    %c0_i32_1 = arith.constant 0 : i32
    return %c0_i32, %c0_i32_0 : i32, i32
  }
  func.func @transform_54(%arg0: i32) -> (i32, i32) {
    %c0_i32 = arith.constant 0 : i32
    %c0_i32_0 = arith.constant 0 : i32
    %c0_i32_1 = arith.constant 0 : i32
    return %c0_i32, %c0_i32_0 : i32, i32
  }
  func.func @transform_55(%arg0: i32) -> (i32, i32) {
    %c0_i32 = arith.constant 0 : i32
    %c0_i32_0 = arith.constant 0 : i32
    %c0_i32_1 = arith.constant 0 : i32
    return %c0_i32, %c0_i32_0 : i32, i32
  }
  func.func @transform_56(%arg0: i32) -> (i32, i32) {
    %c0_i32 = arith.constant 0 : i32
    %c0_i32_0 = arith.constant 0 : i32
    %c0_i32_1 = arith.constant 0 : i32
    return %c0_i32, %c0_i32_0 : i32, i32
  }
  func.func @transform_57(%arg0: i32) -> (i32, i32, i32) {
    %c0_i32 = arith.constant 0 : i32
    %c0_i32_0 = arith.constant 0 : i32
    %c0_i32_1 = arith.constant 0 : i32
    return %arg0, %c0_i32, %c0_i32_0 : i32, i32, i32
  }
}

</mosaic_0001>

<bundles_post_ra>
// kernel: dense_transformer_block.1
= control target key start
LH: loop header
LB: loop body
LE: loop exit
PB: predicated region body
PF: predicated region fallthrough
CT: control target
= control target key end

     0   :  { %s12016_s6 = smov 1   ;;  %s12017_s10 = smov 2   ;;  %s13712_s0 = inlined_call_operand.smem [shape: u32[58], index: -1, kind: input, shape index: {}] }
   0x1   :  { %s12129_s5 = sld [smem:[%s13712_s0]]   ;;  %s12018_s14 = smov 3  }
   0x2   :  { %s12134_s9 = sld [smem:[%s13712_s0 + %s12016_s6]]   ;;  %s12019_s18 = smov 4  }
   0x3   :  { %s12139_s13 = sld [smem:[%s13712_s0 + %s12017_s10]]   ;;  %s12020_s22 = smov 5  }
   0x4   :  { %s12144_s17 = sld [smem:[%s13712_s0 + %s12018_s14]]   ;;  %s12021_s26 = smov 6  }
   0x5   :  { %s12149_s21 = sld [smem:[%s13712_s0 + %s12019_s18]]   ;;  %s12022_s30 = smov 7  }
   0x6   :  { %s12154_s25 = sld [smem:[%s13712_s0 + %s12020_s22]]   ;;  %s12023_s4 = smov 8  }
   0x7   :  { %13836 = sst [smem:[#allocation35_spill]] %s12129_s5  ;;  %s12024_s10 = smov 9  }
   0x8   :  { %13837 = sst [smem:[#allocation36_spill]] %s12134_s9  ;;  %s12025_s15 = smov 10  }
   0x9   :  { %13838 = sst [smem:[#allocation37_spill]] %s12139_s13  ;;  %s12026_s20 = smov 11  }
   0xa   :  { %13839 = sst [smem:[#allocation38_spill]] %s12144_s17  ;;  %s12028_s1 = smov 13  }
   0xb   :  { %13840 = sst [smem:[#allocation39_spill]] %s12149_s21  ;;  %s12029_s7 = smov 14  }
   0xc   :  { %13841 = sst [smem:[#allocation40_spill]] %s12154_s25  ;;  %s12031_s22 = smov 16  }
   0xd   :  { %s12159_s29 = sld [smem:[%s13712_s0 + %s12021_s26]]   ;;  %s12027_s26 = smov 12  }
   0xe   :  { %s12164_s3 = sld [smem:[%s13712_s0 + %s12022_s30]]   ;;  %s12032_s28 = smov 17  }
   0xf   :  { %s12169_s8 = sld [smem:[%s13712_s0 + %s12023_s4]]  }
  0x10   :  { %s12174_s14 = sld [smem:[%s13712_s0 + %s12024_s10]]  }
  0x11   :  { %s12179_s19 = sld [smem:[%s13712_s0 + %s12025_s15]]   ;;  %s12030_s15 = smov 15  }
  0x12   :  { %s12184_s24 = sld [smem:[%s13712_s0 + %s12026_s20]]  }
  0x13   :  { %13842 = sst [smem:[#allocation41_spill]] %s12159_s29 }
  0x14   :  { %13843 = sst [smem:[#allocation42_spill]] %s12164_s3 }
  0x15   :  { %13844 = sst [smem:[#allocation43_spill]] %s12169_s8 }
  0x16   :  { %13845 = sst [smem:[#allocation44_spill]] %s12174_s14 }
  0x17   :  { %13846 = sst [smem:[#allocation45_spill]] %s12179_s19 }
  0x18   :  { %13847 = sst [smem:[#allocation46_spill]] %s12184_s24 }
  0x19   :  { %s12189_s30 = sld [smem:[%s13712_s0 + %s12027_s26]]  }
  0x1a   :  { %s12194_s6 = sld [smem:[%s13712_s0 + %s12028_s1]]  }
  0x1b   :  { %s12199_s12 = sld [smem:[%s13712_s0 + %s12029_s7]]   ;;  %s12033_s7 = smov 18  }
  0x1c   :  { %s12204_s20 = sld [smem:[%s13712_s0 + %s12030_s15]]   ;;  %s12034_s15 = smov 19  }
  0x1d   :  { %s12209_s27 = sld [smem:[%s13712_s0 + %s12031_s22]]   ;;  %s12035_s22 = smov 20  }
  0x1e   :  { %s12214_s4 = sld [smem:[%s13712_s0 + %s12032_s28]]   ;;  %s12036_s28 = smov 21  }
  0x1f   :  { %13848 = sst [smem:[#allocation47_spill]] %s12189_s30 }
  0x20   :  { %13849 = sst [smem:[#allocation48_spill]] %s12194_s6 }
  0x21   :  { %13850 = sst [smem:[#allocation49_spill]] %s12199_s12 }
  0x22   :  { %13851 = sst [smem:[#allocation50_spill]] %s12204_s20 }
  0x23   :  { %13852 = sst [smem:[#allocation51_spill]] %s12209_s27 }
  0x24   :  { %13853 = sst [smem:[#allocation52_spill]] %s12214_s4 }
  0x25   :  { %s12219_s6 = sld [smem:[%s13712_s0 + %s12033_s7]]   ;;  %s12037_s7 = smov 22  }
  0x26   :  { %s12224_s20 = sld [smem:[%s13712_s0 + %s12034_s15]]   ;;  %s12038_s15 = smov 23  }
  0x27   :  { %s12229_s27 = sld [smem:[%s13712_s0 + %s12035_s22]]   ;;  %s12039_s22 = smov 24  }
  0x28   :  { %s12234_s4 = sld [smem:[%s13712_s0 + %s12036_s28]]   ;;  %s12040_s28 = smov 25  }
  0x2b   :  { %13854 = sst [smem:[#allocation53_spill]] %s12219_s6 }
  0x2c   :  { %13855 = sst [smem:[#allocation54_spill]] %s12224_s20 }
  0x2d   :  { %13856 = sst [smem:[#allocation55_spill]] %s12229_s27 }
  0x2e   :  { %13857 = sst [smem:[#allocation56_spill]] %s12234_s4 }
  0x2f   :  { %s12239_s6 = sld [smem:[%s13712_s0 + %s12037_s7]]   ;;  %s12041_s7 = smov 26  }
  0x30   :  { %s12244_s20 = sld [smem:[%s13712_s0 + %s12038_s15]]   ;;  %s12042_s15 = smov 27  }
  0x31   :  { %s12249_s27 = sld [smem:[%s13712_s0 + %s12039_s22]]   ;;  %s12043_s22 = smov 28  }
  0x32   :  { %s12254_s4 = sld [smem:[%s13712_s0 + %s12040_s28]]   ;;  %s12044_s28 = smov 29  }
  0x35   :  { %13858 = sst [smem:[#allocation57_spill]] %s12239_s6 }
  0x36   :  { %13859 = sst [smem:[#allocation58_spill]] %s12244_s20 }
  0x37   :  { %13860 = sst [smem:[#allocation59_spill]] %s12249_s27 }
  0x38   :  { %13861 = sst [smem:[#allocation60_spill]] %s12254_s4 }
  0x39   :  { %s12259_s6 = sld [smem:[%s13712_s0 + %s12041_s7]]   ;;  %s12045_s7 = smov 30  }
  0x3a   :  { %s12264_s20 = sld [smem:[%s13712_s0 + %s12042_s15]]   ;;  %s12046_s15 = smov 31  }
  0x3b   :  { %s12269_s27 = sld [smem:[%s13712_s0 + %s12043_s22]]   ;;  %s12047_s22 = smov 32  }
  0x3c   :  { %s12274_s4 = sld [smem:[%s13712_s0 + %s12044_s28]]   ;;  %s12048_s28 = smov 33  }
  0x3f   :  { %13862 = sst [smem:[#allocation61_spill]] %s12259_s6 }
  0x40   :  { %13863 = sst [smem:[#allocation62_spill]] %s12264_s20 }
  0x41   :  { %13864 = sst [smem:[#allocation63_spill]] %s12269_s27 }
  0x42   :  { %13865 = sst [smem:[#allocation64_spill]] %s12274_s4 }
  0x43   :  { %s12279_s6 = sld [smem:[%s13712_s0 + %s12045_s7]]   ;;  %s12049_s7 = smov 34  }
  0x44   :  { %s12284_s20 = sld [smem:[%s13712_s0 + %s12046_s15]]   ;;  %s12050_s15 = smov 35  }
  0x45   :  { %s12289_s27 = sld [smem:[%s13712_s0 + %s12047_s22]]   ;;  %s12051_s22 = smov 36  }
  0x46   :  { %s12294_s4 = sld [smem:[%s13712_s0 + %s12048_s28]]   ;;  %s12052_s28 = smov 37  }
  0x49   :  { %13866 = sst [smem:[#allocation65_spill]] %s12279_s6 }
  0x4a   :  { %13867 = sst [smem:[#allocation66_spill]] %s12284_s20 }
  0x4b   :  { %13868 = sst [smem:[#allocation67_spill]] %s12289_s27 }
  0x4c   :  { %13869 = sst [smem:[#allocation68_spill]] %s12294_s4 }
  0x4d   :  { %s12299_s6 = sld [smem:[%s13712_s0 + %s12049_s7]]   ;;  %s12053_s7 = smov 38  }
  0x4e   :  { %s12304_s20 = sld [smem:[%s13712_s0 + %s12050_s15]]   ;;  %s12054_s15 = smov 39  }
  0x4f   :  { %s12309_s27 = sld [smem:[%s13712_s0 + %s12051_s22]]   ;;  %s12055_s22 = smov 40  }
  0x50   :  { %s12314_s4 = sld [smem:[%s13712_s0 + %s12052_s28]]   ;;  %s12056_s28 = smov 41  }
  0x51   :  { %s12324_s12 = sld [smem:[%s13712_s0 + %s12054_s15]]   ;;  %s12058_s15 = smov 43  }
  0x52   :  { %s12334_s24 = sld [smem:[%s13712_s0 + %s12056_s28]]   ;;  %s12060_s28 = smov 45  }
  0x53   :  { %13870 = sst [smem:[#allocation69_spill]] %s12299_s6 }
  0x54   :  { %13871 = sst [smem:[#allocation70_spill]] %s12304_s20 }
  0x55   :  { %13872 = sst [smem:[#allocation71_spill]] %s12309_s27 }
  0x56   :  { %13873 = sst [smem:[#allocation72_spill]] %s12314_s4 }
  0x57   :  { %s12319_s6 = sld [smem:[%s13712_s0 + %s12053_s7]]   ;;  %s12057_s7 = smov 42  }
  0x58   :  { %13875 = sst [smem:[#allocation74_spill]] %s12324_s12 }
  0x59   :  { %s12329_s27 = sld [smem:[%s13712_s0 + %s12055_s22]]   ;;  %s12059_s22 = smov 44  }
  0x5a   :  { %13877 = sst [smem:[#allocation76_spill]] %s12334_s24 }
  0x5b   :  { %s12344_s30 = sld [smem:[%s13712_s0 + %s12058_s15]]   ;;  %s12062_s15 = smov 47  }
  0x5c   :  { %s12354_s14 = sld [smem:[%s13712_s0 + %s12060_s28]]   ;;  %s12064_s28 = smov 49  }
  0x5d   :  { %13874 = sst [smem:[#allocation73_spill]] %s12319_s6 }
  0x5e   :  { %s12339_s6 = sld [smem:[%s13712_s0 + %s12057_s7]]   ;;  %s12061_s7 = smov 46  }
  0x5f   :  { %13876 = sst [smem:[#allocation75_spill]] %s12329_s27 }
  0x60   :  { %s12349_s27 = sld [smem:[%s13712_s0 + %s12059_s22]]   ;;  %s12063_s22 = smov 48  }
  0x61   :  { %13879 = sst [smem:[#allocation78_spill]] %s12344_s30 }
  0x62   :  { %13881 = sst [smem:[#allocation80_spill]] %s12354_s14 }
  0x63   :  { %s12359_s8 = sld [smem:[%s13712_s0 + %s12061_s7]]   ;;  %s12065_s7 = smov 50  }
  0x64   :  { %13878 = sst [smem:[#allocation77_spill]] %s12339_s6 }
  0x65   :  { %s12364_s19 = sld [smem:[%s13712_s0 + %s12062_s15]]   ;;  %s12066_s15 = smov 51  }
  0x66   :  { %13880 = sst [smem:[#allocation79_spill]] %s12349_s27 }
  0x67   :  { %s12369_s27 = sld [smem:[%s13712_s0 + %s12063_s22]]   ;;  %s12067_s22 = smov 52  }
  0x68   :  { %s12374_s14 = sld [smem:[%s13712_s0 + %s12064_s28]]   ;;  %s12068_s28 = smov 53  }
  0x69   :  { %13882 = sst [smem:[#allocation81_spill]] %s12359_s8 }
  0x6a   :  { %s12379_s3 = sld [smem:[%s13712_s0 + %s12065_s7]]   ;;  %s12069_s7 = smov 54  }
  0x6b   :  { %13883 = sst [smem:[#allocation82_spill]] %s12364_s19 }
  0x6c   :  { %s12384_s29 = sld [smem:[%s13712_s0 + %s12066_s15]]   ;;  %s12070_s15 = smov 55  }
  0x6d   :  { %13884 = sst [smem:[#allocation83_spill]] %s12369_s27 }
  0x6e   :  { %13885 = sst [smem:[#allocation84_spill]] %s12374_s14 }
  0x6f   :  { %s12389_s21 = sld [smem:[%s13712_s0 + %s12067_s22]]   ;;  %s12071_s22 = smov 56  }
  0x70   :  { %13886 = sst [smem:[#allocation85_spill]] %s12379_s3 }
  0x71   :  { %s12394_s14 = sld [smem:[%s13712_s0 + %s12068_s28]]   ;;  %s12072_s28 = smov 57  }
  0x72   :  { %13887 = sst [smem:[#allocation86_spill]] %s12384_s29 }
  0x73   :  { %s12399_s17 = sld [smem:[%s13712_s0 + %s12069_s7]]  }
  0x74   :  { %s12404_s29 = sld [smem:[%s13712_s0 + %s12070_s15]]  }
  0x75   :  { %13888 = sst [smem:[#allocation87_spill]] %s12389_s21 }
  0x76   :  { %s12409_s25 = sld [smem:[%s13712_s0 + %s12071_s22]]  }
  0x77   :  { %13889 = sst [smem:[#allocation88_spill]] %s12394_s14 }
  0x78   :  { %s12414_s14 = sld [smem:[%s13712_s0 + %s12072_s28]]  }
  0x79   :  { %13890 = sst [smem:[#allocation89_spill]] %s12399_s17 }
  0x7a   :  { %13891 = sst [smem:[#allocation90_spill]] %s12404_s29 }
  0x7c   :  { %13892 = sst [smem:[#allocation91_spill]] %s12409_s25 }
  0x7e   :  { %13893 = sst [smem:[#allocation92_spill]] %s12414_s14 }
  0x7f   :  { %120 = vsyncpa [#allocation6], 0 }
  0x80   :  { %121 = vsyncpa [#allocation9], 0 }
  0x81   :  { %122 = vsyncpa [#allocation12], 0 }
  0x82   :  { %123 = vsyncpa [#allocation15], 0 }
  0x83   :  { %124 = vsyncpa [#allocation18], 0 }
  0x84   :  { %125 = vsyncpa [#allocation21], 0 }
  0x85   :  { %126 = vsyncpa [#allocation24], 0 }
  0x86   :  { %127 = vsyncpa [#allocation7], 0 }
  0x87   :  { %129 = vsyncpa [#allocation7 + $0x1], 0  ;;  %s12416_s7 = smov 0   ;;  %s12418_s10 = smov 0  }
  0x88   :  { %s12420_s11 = smov 0   ;;  %s12422_s15 = smov 0  }
  0x89 LB: > { %s13894_s30 = sld [smem:[#allocation78_spill]]  ;;  %s13895_s27 = sld [smem:[#allocation83_spill]]  ;;  %s12006_s10 = sphi %s12418_s10, %s14030_s10   ;;  %s12002_s7 = sphi %s12416_s7, %s14029_s7   ;;  %s12014_s15 = sphi %s12422_s15, %s14028_s15   ;;  %s12010_s11 = sphi %s12420_s11, %s14031_s11  }
  0x8a   : > { %s13896_s25 = sld [smem:[#allocation91_spill]]  ;;  %s13897_s21 = sld [smem:[#allocation87_spill]] }
  0x8b   : > { %s13898_s20 = sld [smem:[#allocation70_spill]]  ;;  %s13899_s19 = sld [smem:[#allocation82_spill]] }
  0x8c   : > { %s13900_s17 = sld [smem:[#allocation89_spill]]  ;;  %s13901_s12 = sld [smem:[#allocation74_spill]] }
  0x8d   : > { %s13902_s9 = sld [smem:[#allocation36_spill]]  ;;  %s13903_s8 = sld [smem:[#allocation81_spill]] }
  0x8e   : > { %s13904_s6 = sld [smem:[#allocation77_spill]]  ;;  %s13906_s24 = sld [smem:[#allocation76_spill]] }
  0x8f   : > { %s13905_s3 = sld [smem:[#allocation85_spill]]  ;;  %s13907_s4 = sld [smem:[#allocation72_spill]] }
  0x90   : > { %13908 = sst [smem:[#allocation93_spill]] %s12002_s7  ;;  %s12437_s0 = sadd.s32 4294967295, %s12014_s15  }
  0x91   : > { %13909 = sst [smem:[#allocation94_spill]] %s12006_s10  ;;  %s9820_s16 = sadd.s32 4294967294, %s12014_s15  }
  0x92   : > { %13910 = sst [smem:[#allocation95_spill]] %s12010_s11  ;;  %s12441_s18 = sadd.s32 1, %s12014_s15  }
  0x93   : > { %13911 = sst [smem:[#allocation96_spill]] %s12014_s15  ;;  %s1344_s22 = sadd.s32 1, %s12010_s11 }
  0x94   : > { %13912 = sst [smem:[#allocation97_spill]] %s12437_s0  ;;  %s1341_s23 = ssub.s32 %s12014_s15, %s12441_s18 }
  0x95   : > { %13913 = sst [smem:[#allocation98_spill]] %s12441_s18  ;;  %p1354_p0 = scmp.ne.s32.totalorder %s12010_s11, %s12006_s10 }
  0x96   : > { %p1342_p1 = scmp.eq.s32.totalorder %s1341_s23, 0  ;;  %p1355_p2 = scmp.eq.s32.totalorder %s12437_s0, 1 }
  0x97   : > { %p1360_p3 = scmp.ne.s32.totalorder %s12006_s10, %s12002_s7  ;;  %p1361_p4 = scmp.eq.s32.totalorder %s9820_s16, 1 }
  0x98   : > { %s12452_s26 = scalar_select %p1342_p1, %s12010_s11, %s1344_s22  }
  0x99   : > { %p12454_p5 = por %p1355_p2, %p1354_p0  ;;  %p12458_p6 = por %p1361_p4, %p1360_p3 }
  0x9a   : > { %13914 = sst [smem:[#allocation99_spill]] %s12452_s26  ;;  %p9821_p7 = scmp.ge.s32.totalorder %s12014_s15, 1 }
  0x9b   : > { %s13915_s28 = scalar_select %p12454_p5, 1, 0 }
  0x9c   : > { %s13917_s1 = scalar_select %p12458_p6, 1, 0 }
  0x9d   : > { %13916 = sst [smem:[#allocation100_spill]] %s13915_s28  ;;  %p1368_p8 = scmp.lt.s32.totalorder %s12014_s15, 3 }
  0x9e   : > { %13918 = sst [smem:[#allocation101_spill]] %s13917_s1  ;;  %p13738_p9 = scmp.eq.s32.totalorder %s12437_s0, 0 }
  0x9f   : > { %p12465_p10 = pnand %p9821_p7, %p1368_p8  ;;  %s12073_s16 = smov [#allocation8]  }
  0xa0   : > { %s1497_s22 = sshll.u32 %s12073_s16, 4  ;;  %s12074_s23 = smov [#allocation11]   ;;  %s1498_s22 = int_to_ptr.vmem [resolvable:$true] %s1497_s22 }
  0xa1   : > { %s13919_s2 = scalar_select %p12465_p10, 1, 0 }
  0xa2   : > { %p11199_p11 = pneg %p12465_p10  ;;  %s1525_s26 = sshll.u32 %s12074_s23, 4  ;;  %s12477_s26 = int_to_ptr.vmem [resolvable:$true] %s1525_s26 }
  0xa3   : > { %s12075_s18 = smov [#allocation14]   ;;  %s11560_s7 = scalar_lea.hbm %s13907_s4, 16 }
  0xa4   : > { %p12473_p12 = pnand %p13738_p9, %p11199_p11  ;;  %s1547_s1 = sshll.u32 %s12075_s18, 4  ;;  %s12479_s1 = int_to_ptr.vmem [resolvable:$true] %s1547_s1 }
  0xa5   : > { %p11561_p13 = scmp.ne.s32.totalorder %s13907_s4, %s11560_s7  ;;  %p11567_p3 = scmp.lt.u32.totalorder %s11560_s7, %s13907_s4 }
  0xa6   : > { %p12485_p0 = pneg %p12473_p12 }
  0xa8   : > { %p11563_p1 = pnand %p12485_p0, %p11561_p13 }
  0xaa   : > { %p11564_p2 = pneg %p11563_p1 }
  0xac   : > { %p11569_p4 = pnand %p11567_p3, %p11564_p2 }
  0xae   : > { %11572 = shalt.err (!%p11569_p4)
}
  0xaf   : > { %s11573_s23 = scalar_lea.vmem %s1498_s22, 16  ;;  %s11580_s18 = scalar_lea.vmem %s1498_s22, 32 }
  0xb0   : > { %p11574_p7 = scmp.ne.s32.totalorder %s1498_s22, %s11573_s23  ;;  %p11581_p9 = scmp.lt.s32.totalorder %s1498_s22, %s1498_s22 }
  0xb1   : > { %p11582_p6 = scmp.lt.s32.totalorder %s11580_s18, %s11573_s23 }
  0xb2   : > { %p11576_p8 = pnand %p11574_p7, %p12485_p0 }
  0xb3   : > { %p11583_p5 = por %p11582_p6, %p11581_p9 }
  0xb4   : > { %p11577_p11 = pneg %p11576_p8 }
  0xb6   : > { %p11584_p10 = pnand %p11583_p5, %p11577_p11 }
  0xb8   : > { %11587 = shalt.err (!%p11584_p10)
}
  0xb9   : > { %11205 = dma.hbm_to_vmem [thread:$0]  (!%p12473_p12), %s13907_s4, 16, %s1498_s22, [#allocation9]  }
  0xba   : > { %s11588_s7 = scalar_lea.hbm %s13906_s24, 16 }
  0xbb   : > { %p11589_p13 = scmp.ne.s32.totalorder %s13906_s24, %s11588_s7  ;;  %p11595_p3 = scmp.lt.u32.totalorder %s11588_s7, %s13906_s24 }
  0xbd   : > { %p11591_p1 = pnand %p11589_p13, %p12485_p0 }
  0xbf   : > { %p11592_p2 = pneg %p11591_p1 }
  0xc1   : > { %p11597_p4 = pnand %p11595_p3, %p11592_p2 }
  0xc3   : > { %11600 = shalt.err (!%p11597_p4)
}
  0xc4   : > { %s11601_s23 = scalar_lea.vmem %s12477_s26, 16  ;;  %s11608_s18 = scalar_lea.vmem %s12477_s26, 32 }
  0xc5   : > { %p11602_p5 = scmp.ne.s32.totalorder %s12477_s26, %s11601_s23  ;;  %p11609_p10 = scmp.lt.s32.totalorder %s12477_s26, %s12477_s26 }
  0xc6   : > { %p11610_p7 = scmp.lt.s32.totalorder %s11608_s18, %s11601_s23 }
  0xc7   : > { %p11604_p6 = pnand %p11602_p5, %p12485_p0 }
  0xc8   : > { %p11611_p8 = por %p11610_p7, %p11609_p10 }
  0xc9   : > { %p11605_p9 = pneg %p11604_p6 }
  0xcb   : > { %p11612_p11 = pnand %p11611_p8, %p11605_p9 }
  0xcd   : > { %11615 = shalt.err (!%p11612_p11)
}
  0xce   : > { %11211 = dma.hbm_to_vmem [thread:$0]  (!%p12473_p12), %s13906_s24, 16, %s12477_s26, [#allocation12]  }
  0xcf   : > { %s11616_s22 = scalar_lea.hbm %s13894_s30, 16 }
  0xd0   : > { %p11617_p13 = scmp.ne.s32.totalorder %s13894_s30, %s11616_s22  ;;  %p11623_p3 = scmp.lt.u32.totalorder %s11616_s22, %s13894_s30 }
  0xd2   : > { %p11619_p1 = pnand %p11617_p13, %p12485_p0 }
  0xd4   : > { %p11620_p2 = pneg %p11619_p1 }
  0xd6   : > { %p11625_p4 = pnand %p11623_p3, %p11620_p2 }
  0xd8   : > { %11628 = shalt.err (!%p11625_p4)
}
  0xd9   : > { %s11629_s7 = scalar_lea.vmem %s12479_s1, 16  ;;  %s11636_s23 = scalar_lea.vmem %s12479_s1, 32 }
  0xda   : > { %p11630_p5 = scmp.ne.s32.totalorder %s12479_s1, %s11629_s7  ;;  %p11637_p10 = scmp.lt.s32.totalorder %s12479_s1, %s12479_s1 }
  0xdb   : > { %p11638_p7 = scmp.lt.s32.totalorder %s11636_s23, %s11629_s7 }
  0xdc   : > { %p11632_p6 = pnand %p11630_p5, %p12485_p0 }
  0xdd   : > { %p11639_p8 = por %p11638_p7, %p11637_p10 }
  0xde   : > { %p11633_p9 = pneg %p11632_p6 }
  0xe0   : > { %p11640_p11 = pnand %p11639_p8, %p11633_p9 }
  0xe2   : > { %11643 = shalt.err (!%p11640_p11)
}
  0xe3   : > { %11217 = dma.hbm_to_vmem [thread:$0]  (!%p12473_p12), %s13894_s30, 16, %s12479_s1, [#allocation15]  }
  0xe4   : > { %s12076_s26 = smov [#allocation17]   ;;  %s12077_s22 = smov [#allocation20]  }
  0xe5   : > { %s1575_s18 = sshll.u32 %s12076_s26, 4  ;;  %s1600_s4 = sshll.u32 %s12077_s22, 4  ;;  %s1576_s18 = int_to_ptr.vmem [resolvable:$true] %s1575_s18  ;;  %s1601_s4 = int_to_ptr.vmem [resolvable:$true] %s1600_s4 }
  0xe6   : > { %s11644_s24 = scalar_lea.hbm %s13899_s19, 16 }
  0xe7   : > { %p11645_p13 = scmp.ne.s32.totalorder %s13899_s19, %s11644_s24  ;;  %p11651_p3 = scmp.lt.u32.totalorder %s11644_s24, %s13899_s19 }
  0xe9   : > { %p11647_p1 = pnand %p11645_p13, %p12485_p0 }
  0xeb   : > { %p11648_p2 = pneg %p11647_p1 }
  0xed   : > { %p11653_p4 = pnand %p11651_p3, %p11648_p2 }
  0xef   : > { %11656 = shalt.err (!%p11653_p4)
}
  0xf0   : > { %s11657_s7 = scalar_lea.vmem %s1576_s18, 16  ;;  %s11664_s1 = scalar_lea.vmem %s1576_s18, 32 }
  0xf1   : > { %p11658_p5 = scmp.ne.s32.totalorder %s1576_s18, %s11657_s7  ;;  %p11665_p10 = scmp.lt.s32.totalorder %s1576_s18, %s1576_s18 }
  0xf2   : > { %p11666_p7 = scmp.lt.s32.totalorder %s11664_s1, %s11657_s7 }
  0xf3   : > { %p11660_p6 = pnand %p11658_p5, %p12485_p0 }
  0xf4   : > { %p11667_p8 = por %p11666_p7, %p11665_p10 }
  0xf5   : > { %p11661_p9 = pneg %p11660_p6 }
  0xf7   : > { %p11668_p11 = pnand %p11667_p8, %p11661_p9 }
  0xf9   : > { %11671 = shalt.err (!%p11668_p11)
}
  0xfa   : > { %11223 = dma.hbm_to_vmem [thread:$0]  (!%p12473_p12), %s13899_s19, 16, %s1576_s18, [#allocation18]  }
  0xfb   : > { %s11672_s24 = scalar_lea.hbm %s13905_s3, 16 }
  0xfc   : > { %p11673_p13 = scmp.ne.s32.totalorder %s13905_s3, %s11672_s24  ;;  %p11679_p3 = scmp.lt.u32.totalorder %s11672_s24, %s13905_s3 }
  0xfe   : > { %p11675_p1 = pnand %p11673_p13, %p12485_p0 }
 0x100   : > { %p11676_p2 = pneg %p11675_p1 }
 0x102   : > { %p11681_p4 = pnand %p11679_p3, %p11676_p2 }
 0x104   : > { %11684 = shalt.err (!%p11681_p4)
}
 0x105   : > { %s11685_s23 = scalar_lea.vmem %s1601_s4, 16  ;;  %s11692_s26 = scalar_lea.vmem %s1601_s4, 32 }
 0x106   : > { %p11686_p5 = scmp.ne.s32.totalorder %s1601_s4, %s11685_s23  ;;  %p11693_p10 = scmp.lt.s32.totalorder %s1601_s4, %s1601_s4 }
 0x107   : > { %p11694_p7 = scmp.lt.s32.totalorder %s11692_s26, %s11685_s23 }
 0x108   : > { %p11688_p6 = pnand %p11686_p5, %p12485_p0 }
 0x109   : > { %p11695_p8 = por %p11694_p7, %p11693_p10 }
 0x10a   : > { %p11689_p9 = pneg %p11688_p6 }
 0x10c   : > { %p11696_p11 = pnand %p11695_p8, %p11689_p9 }
 0x10e   : > { %11699 = shalt.err (!%p11696_p11)
}
 0x10f   : > { %11229 = dma.hbm_to_vmem [thread:$0]  (!%p12473_p12), %s13905_s3, 16, %s1601_s4, [#allocation21]  }
 0x110   : > { %s12078_s18 = smov [#allocation23]   ;;  %s12079_s7 = smov [#allocation5]  }
 0x111   : > { %s1628_s22 = sshll.u32 %s12078_s18, 4  ;;  %s1483_s1 = sshll.u32 %s12079_s7, 4  ;;  %s1629_s22 = int_to_ptr.vmem [resolvable:$true] %s1628_s22  ;;  %s1484_s1 = int_to_ptr.vmem [resolvable:$true] %s1483_s1 }
 0x112   : > { %s11700_s24 = scalar_lea.hbm %s13900_s17, 16 }
 0x113   : > { %p11701_p13 = scmp.ne.s32.totalorder %s13900_s17, %s11700_s24  ;;  %p11707_p3 = scmp.lt.u32.totalorder %s11700_s24, %s13900_s17 }
 0x115   : > { %p11703_p1 = pnand %p11701_p13, %p12485_p0 }
 0x117   : > { %p11704_p2 = pneg %p11703_p1 }
 0x119   : > { %p11709_p4 = pnand %p11707_p3, %p11704_p2 }
 0x11b   : > { %11712 = shalt.err (!%p11709_p4)
}
 0x11c   : > { %s11713_s23 = scalar_lea.vmem %s1629_s22, 16  ;;  %s11720_s4 = scalar_lea.vmem %s1629_s22, 32 }
 0x11d   : > { %p11714_p5 = scmp.ne.s32.totalorder %s1629_s22, %s11713_s23  ;;  %p11721_p10 = scmp.lt.s32.totalorder %s1629_s22, %s1629_s22 }
 0x11e   : > { %p11722_p7 = scmp.lt.s32.totalorder %s11720_s4, %s11713_s23 }
 0x11f   : > { %p11716_p6 = pnand %p11714_p5, %p12485_p0 }
 0x120   : > { %p11723_p8 = por %p11722_p7, %p11721_p10 }
 0x121   : > { %p11717_p9 = pneg %p11716_p6 }
 0x123   : > { %p11724_p11 = pnand %p11723_p8, %p11717_p9 }
 0x125   : > { %11727 = shalt.err (!%p11724_p11)
}
 0x126   : > { %11235 = dma.hbm_to_vmem [thread:$0]  (!%p12473_p12), %s13900_s17, 16, %s1629_s22, [#allocation24]  }
 0x127   : > { %s11728_s26 = scalar_lea.hbm %s13898_s20, 16 }
 0x128   : > { %p11729_p13 = scmp.ne.s32.totalorder %s13898_s20, %s11728_s26  ;;  %p11735_p3 = scmp.lt.u32.totalorder %s11728_s26, %s13898_s20 }
 0x12a   : > { %p11731_p1 = pnand %p11729_p13, %p12485_p0 }
 0x12c   : > { %p11732_p2 = pneg %p11731_p1 }
 0x12e   : > { %p11737_p4 = pnand %p11735_p3, %p11732_p2 }
 0x130   : > { %11740 = shalt.err (!%p11737_p4)
}
 0x131   : > { %s11741_s18 = scalar_lea.vmem %s1484_s1, 16  ;;  %s11748_s7 = scalar_lea.vmem %s1484_s1, 32 }
 0x132   : > { %p11742_p5 = scmp.ne.s32.totalorder %s1484_s1, %s11741_s18  ;;  %p11749_p10 = scmp.lt.s32.totalorder %s1484_s1, %s1484_s1 }
 0x133   : > { %p11750_p7 = scmp.lt.s32.totalorder %s11748_s7, %s11741_s18 }
 0x134   : > { %p11744_p6 = pnand %p11742_p5, %p12485_p0 }
 0x135   : > { %p11751_p8 = por %p11750_p7, %p11749_p10 }
 0x136   : > { %p11745_p9 = pneg %p11744_p6 }
 0x138   : > { %p11752_p11 = pnand %p11751_p8, %p11745_p9 }
 0x13a   : > { %11755 = shalt.err (!%p11752_p11)
}
 0x13b   : > { %11202 = dma.hbm_to_vmem [thread:$0]  (!%p12473_p12), %s13898_s20, 16, %s1484_s1, [#allocation6]  }
 0x13c   : > { %s12080_s22 = smov [#allocation10]   ;;  %s12081_s23 = smov [#allocation13]  }
 0x13d   : > { %s1511_s24 = sshll.u32 %s12080_s22, 4  ;;  %s1536_s4 = sshll.u32 %s12081_s23, 4  ;;  %s1512_s24 = int_to_ptr.vmem [resolvable:$true] %s1511_s24  ;;  %s1537_s4 = int_to_ptr.vmem [resolvable:$true] %s1536_s4 }
 0x13e   : > { %s11756_s26 = scalar_lea.hbm %s13901_s12, 16 }
 0x13f   : > { %p11757_p13 = scmp.ne.s32.totalorder %s13901_s12, %s11756_s26  ;;  %p11763_p3 = scmp.lt.u32.totalorder %s11756_s26, %s13901_s12 }
 0x141   : > { %p11759_p1 = pnand %p11757_p13, %p12485_p0 }
 0x143   : > { %p11760_p2 = pneg %p11759_p1 }
 0x145   : > { %p11765_p4 = pnand %p11763_p3, %p11760_p2 }
 0x147   : > { %11768 = shalt.err (!%p11765_p4)
}
 0x148   : > { %s11769_s18 = scalar_lea.vmem %s1512_s24, 16  ;;  %s11776_s1 = scalar_lea.vmem %s1512_s24, 32 }
 0x149   : > { %p11770_p5 = scmp.ne.s32.totalorder %s1512_s24, %s11769_s18  ;;  %p11777_p10 = scmp.lt.s32.totalorder %s1512_s24, %s1512_s24 }
 0x14a   : > { %p11778_p7 = scmp.lt.s32.totalorder %s11776_s1, %s11769_s18 }
 0x14b   : > { %p11772_p6 = pnand %p11770_p5, %p12485_p0 }
 0x14c   : > { %p11779_p8 = por %p11778_p7, %p11777_p10 }
 0x14d   : > { %p11773_p9 = pneg %p11772_p6 }
 0x14f   : > { %p11780_p11 = pnand %p11779_p8, %p11773_p9 }
 0x151   : > { %11783 = shalt.err (!%p11780_p11)
}
 0x152   : > { %11208 = dma.hbm_to_vmem [thread:$0]  (!%p12473_p12), %s13901_s12, 16, %s1512_s24, [#allocation9]  }
 0x153   : > { %s11784_s7 = scalar_lea.hbm %s13904_s6, 16 }
 0x154   : > { %p11785_p13 = scmp.ne.s32.totalorder %s13904_s6, %s11784_s7  ;;  %p11791_p3 = scmp.lt.u32.totalorder %s11784_s7, %s13904_s6 }
 0x156   : > { %p11787_p1 = pnand %p11785_p13, %p12485_p0 }
 0x158   : > { %p11788_p2 = pneg %p11787_p1 }
 0x15a   : > { %p11793_p4 = pnand %p11791_p3, %p11788_p2 }
 0x15c   : > { %11796 = shalt.err (!%p11793_p4)
}
 0x15d   : > { %s11797_s22 = scalar_lea.vmem %s1537_s4, 16  ;;  %s11804_s23 = scalar_lea.vmem %s1537_s4, 32 }
 0x15e   : > { %p11798_p5 = scmp.ne.s32.totalorder %s1537_s4, %s11797_s22  ;;  %p11805_p10 = scmp.lt.s32.totalorder %s1537_s4, %s1537_s4 }
 0x15f   : > { %p11806_p7 = scmp.lt.s32.totalorder %s11804_s23, %s11797_s22 }
 0x160   : > { %p11800_p6 = pnand %p11798_p5, %p12485_p0 }
 0x161   : > { %p11807_p8 = por %p11806_p7, %p11805_p10 }
 0x162   : > { %p11801_p9 = pneg %p11800_p6 }
 0x164   : > { %p11808_p11 = pnand %p11807_p8, %p11801_p9 }
 0x166   : > { %11811 = shalt.err (!%p11808_p11)
}
 0x167   : > { %11214 = dma.hbm_to_vmem [thread:$0]  (!%p12473_p12), %s13904_s6, 16, %s1537_s4, [#allocation12]  }
 0x168   : > { %s12082_s24 = smov [#allocation16]   ;;  %s12083_s18 = smov [#allocation19]  }
 0x169   : > { %s1564_s26 = sshll.u32 %s12082_s24, 4  ;;  %s1586_s1 = sshll.u32 %s12083_s18, 4  ;;  %s1565_s26 = int_to_ptr.vmem [resolvable:$true] %s1564_s26  ;;  %s1587_s1 = int_to_ptr.vmem [resolvable:$true] %s1586_s1 }
 0x16a   : > { %s11812_s7 = scalar_lea.hbm %s13903_s8, 16 }
 0x16b   : > { %p11813_p13 = scmp.ne.s32.totalorder %s13903_s8, %s11812_s7  ;;  %p11819_p3 = scmp.lt.u32.totalorder %s11812_s7, %s13903_s8 }
 0x16d   : > { %p11815_p1 = pnand %p11813_p13, %p12485_p0 }
 0x16f   : > { %p11816_p2 = pneg %p11815_p1 }
 0x171   : > { %p11821_p4 = pnand %p11819_p3, %p11816_p2 }
 0x173   : > { %11824 = shalt.err (!%p11821_p4)
}
 0x174   : > { %s11825_s22 = scalar_lea.vmem %s1565_s26, 16  ;;  %s11832_s4 = scalar_lea.vmem %s1565_s26, 32 }
 0x175   : > { %p11826_p5 = scmp.ne.s32.totalorder %s1565_s26, %s11825_s22  ;;  %p11833_p10 = scmp.lt.s32.totalorder %s1565_s26, %s1565_s26 }
 0x176   : > { %p11834_p7 = scmp.lt.s32.totalorder %s11832_s4, %s11825_s22 }
 0x177   : > { %p11828_p6 = pnand %p11826_p5, %p12485_p0 }
 0x178   : > { %p11835_p8 = por %p11834_p7, %p11833_p10 }
 0x179   : > { %p11829_p9 = pneg %p11828_p6 }
 0x17b   : > { %p11836_p11 = pnand %p11835_p8, %p11829_p9 }
 0x17d   : > { %11839 = shalt.err (!%p11836_p11)
}
 0x17e   : > { %11220 = dma.hbm_to_vmem [thread:$0]  (!%p12473_p12), %s13903_s8, 16, %s1565_s26, [#allocation15]  }
 0x17f   : > { %s11840_s23 = scalar_lea.hbm %s13895_s27, 16 }
 0x180   : > { %p11841_p13 = scmp.ne.s32.totalorder %s13895_s27, %s11840_s23  ;;  %p11847_p3 = scmp.lt.u32.totalorder %s11840_s23, %s13895_s27 }
 0x182   : > { %p11843_p1 = pnand %p11841_p13, %p12485_p0 }
 0x184   : > { %p11844_p2 = pneg %p11843_p1 }
 0x186   : > { %p11849_p4 = pnand %p11847_p3, %p11844_p2 }
 0x188   : > { %11852 = shalt.err (!%p11849_p4)
}
 0x189   : > { %s11853_s24 = scalar_lea.vmem %s1587_s1, 16  ;;  %s11860_s18 = scalar_lea.vmem %s1587_s1, 32 }
 0x18a   : > { %p11854_p5 = scmp.ne.s32.totalorder %s1587_s1, %s11853_s24  ;;  %p11861_p10 = scmp.lt.s32.totalorder %s1587_s1, %s1587_s1 }
 0x18b   : > { %p11862_p7 = scmp.lt.s32.totalorder %s11860_s18, %s11853_s24 }
 0x18c   : > { %p11856_p6 = pnand %p11854_p5, %p12485_p0 }
 0x18d   : > { %p11863_p8 = por %p11862_p7, %p11861_p10 }
 0x18e   : > { %p11857_p9 = pneg %p11856_p6 }
 0x190   : > { %p11864_p11 = pnand %p11863_p8, %p11857_p9 }
 0x192   : > { %11867 = shalt.err (!%p11864_p11)
}
 0x193   : > { %11226 = dma.hbm_to_vmem [thread:$0]  (!%p12473_p12), %s13895_s27, 16, %s1587_s1, [#allocation18]  }
 0x194   : > { %s12084_s26 = smov [#allocation22]   ;;  %s12085_s22 = smov [#allocation25]  }
 0x195   : > { %s1614_s7 = sshll.u32 %s12084_s26, 4  ;;  %s1642_s4 = sshll.u32 %s12085_s22, 4  ;;  %s1615_s7 = int_to_ptr.vmem [resolvable:$true] %s1614_s7  ;;  %s1643_s4 = int_to_ptr.vmem [resolvable:$true] %s1642_s4 }
 0x196   : > { %s11868_s23 = scalar_lea.hbm %s13897_s21, 16 }
 0x197   : > { %p11869_p13 = scmp.ne.s32.totalorder %s13897_s21, %s11868_s23  ;;  %p11875_p3 = scmp.lt.u32.totalorder %s11868_s23, %s13897_s21 }
 0x199   : > { %p11871_p1 = pnand %p11869_p13, %p12485_p0 }
 0x19b   : > { %p11872_p2 = pneg %p11871_p1 }
 0x19d   : > { %p11877_p4 = pnand %p11875_p3, %p11872_p2 }
 0x19f   : > { %11880 = shalt.err (!%p11877_p4)
}
 0x1a0   : > { %s11881_s24 = scalar_lea.vmem %s1615_s7, 16  ;;  %s11888_s1 = scalar_lea.vmem %s1615_s7, 32 }
 0x1a1   : > { %p11882_p5 = scmp.ne.s32.totalorder %s1615_s7, %s11881_s24  ;;  %p11889_p10 = scmp.lt.s32.totalorder %s1615_s7, %s1615_s7 }
 0x1a2   : > { %p11890_p7 = scmp.lt.s32.totalorder %s11888_s1, %s11881_s24 }
 0x1a3   : > { %p11884_p6 = pnand %p11882_p5, %p12485_p0 }
 0x1a4   : > { %p11891_p8 = por %p11890_p7, %p11889_p10 }
 0x1a5   : > { %p11885_p9 = pneg %p11884_p6 }
 0x1a7   : > { %p11892_p11 = pnand %p11891_p8, %p11885_p9 }
 0x1a9   : > { %11895 = shalt.err (!%p11892_p11)
}
 0x1aa   : > { %11232 = dma.hbm_to_vmem [thread:$0]  (!%p12473_p12), %s13897_s21, 16, %s1615_s7, [#allocation21]  }
 0x1ab   : > { %s11896_s18 = scalar_lea.hbm %s13896_s25, 16 }
 0x1ac   : > { %p11897_p13 = scmp.ne.s32.totalorder %s13896_s25, %s11896_s18  ;;  %p11903_p3 = scmp.lt.u32.totalorder %s11896_s18, %s13896_s25 }
 0x1ae   : > { %p11899_p1 = pnand %p11897_p13, %p12485_p0 }
 0x1b0   : > { %p11900_p2 = pneg %p11899_p1 }
 0x1b2   : > { %p11905_p4 = pnand %p11903_p3, %p11900_p2 }
 0x1b4   : > { %11908 = shalt.err (!%p11905_p4)
}
 0x1b5   : > { %s11909_s26 = scalar_lea.vmem %s1643_s4, 16  ;;  %s11916_s22 = scalar_lea.vmem %s1643_s4, 32 }
 0x1b6   : > { %p11910_p5 = scmp.ne.s32.totalorder %s1643_s4, %s11909_s26  ;;  %p11917_p10 = scmp.lt.s32.totalorder %s1643_s4, %s1643_s4 }
 0x1b7   : > { %p11918_p7 = scmp.lt.s32.totalorder %s11916_s22, %s11909_s26 }
 0x1b8   : > { %p11912_p6 = pnand %p11910_p5, %p12485_p0 }
 0x1b9   : > { %p11919_p8 = por %p11918_p7, %p11917_p10 }
 0x1ba   : > { %p11913_p9 = pneg %p11912_p6 }
 0x1bc   : > { %p11920_p11 = pnand %p11919_p8, %p11913_p9 }
 0x1be   : > { %11923 = shalt.err (!%p11920_p11)
}
 0x1bf   : > { %11238 = dma.hbm_to_vmem [thread:$0]  (!%p12473_p12), %s13896_s25, 16, %s1643_s4, [#allocation24]  }
 0x1c0   : > { %p13922_p13 = scmp.ne.s32.totalorder %s13919_s2, 0 }
 0x1c1   : > { %p13923_p1 = scmp.eq.s32.totalorder (!%p13922_p13), %s12437_s0, 0 }
 0x1c2   : > { %1662 = sbr.rel (%p13922_p13) target bundleno = 12589 (0x312d), region = 248 }
 0x1c9   : > { %11969 = dma.done.wait (%p13923_p1), [#allocation6], 16   ;;  %p13924_p2 = pmov %p13923_p1 }
 0x1ca   : > { %p13925_p0 = pmov %p13923_p1 }
 0x1cb   : > { %11971 = vsyncadd (%p13924_p2), [#allocation6], 4294967280 }
 0x1cc   : > { %11973 = dma.done.wait (%p13925_p0), [#allocation9], 32   ;;  %p13926_p3 = pmov %p13925_p0 }
 0x1cd   : > { %p13927_p4 = pmov %p13925_p0 }
 0x1ce   : > { %11975 = vsyncadd (%p13926_p3), [#allocation9], 4294967264 }
 0x1cf   : > { %11977 = dma.done.wait (%p13927_p4), [#allocation12], 32   ;;  %p13928_p12 = pmov %p13925_p0 }
 0x1d0   : > { %p13929_p5 = pmov %p13925_p0 }
 0x1d1   : > { %11979 = vsyncadd (%p13928_p12), [#allocation12], 4294967264 }
 0x1d2   : > { %11981 = dma.done.wait (%p13929_p5), [#allocation15], 32   ;;  %p13930_p6 = pmov %p13925_p0 }
 0x1d3   : > { %p13931_p9 = pmov %p13925_p0 }
 0x1d4   : > { %11983 = vsyncadd (%p13930_p6), [#allocation15], 4294967264 }
 0x1d5   : > { %11985 = dma.done.wait (%p13931_p9), [#allocation18], 32   ;;  %p13932_p10 = pmov %p13925_p0 }
 0x1d6   : > { %p13933_p7 = pmov %p13925_p0 }
 0x1d7   : > { %11987 = vsyncadd (%p13932_p10), [#allocation18], 4294967264 }
 0x1d8   : > { %11989 = dma.done.wait (%p13933_p7), [#allocation21], 32   ;;  %p13934_p8 = pmov %p13925_p0 }
 0x1d9   : > { %p13935_p11 = pmov %p13925_p0 }
 0x1da   : > { %11991 = vsyncadd (%p13934_p8), [#allocation21], 4294967264 }
 0x1db   : > { %11993 = dma.done.wait (%p13935_p11), [#allocation24], 32   ;;  %p13936_p13 = pmov %p13925_p0 }
 0x1dc   : > { %s13937_s5 = sld [smem:[#allocation35_spill]]  ;;  %p1841_p1 = scmp.lt.s32.totalorder %s12437_s0, 1  ;;  %v12086_v0 = vmov 0.0|0.0   ;;  %vm12087_vm0 = vmmov 0   ;;  %v12088_v1 = vmov 0.0   ;;  %vm1846_vm1 = vcmask 261120  }
 0x1dd   : > { %11995 = vsyncadd (%p13936_p13), [#allocation24], 4294967264  ;;  %10923 = vmatprep.subr.bf16.mxu0 %v12086_v0  ;;  %10292 = vmatprep.mubr.msk.f32.mxu0 %vm12087_vm0, %v12088_v1  ;;  %s13938_s13 = sld [smem:[#allocation37_spill]]  ;;  %v1849_v2 = vld [vmem:[%s13902_s9] sm:$0xff]  ;;  %v1850_v3 = vld [vmem:[%s13902_s9 + $0x8] sm:$0xff]  ;;  %s13939_s7 = sld [smem:[#allocation40_spill]] }
 0x1de   : > { %s1842_s11 = scalar_select %p1841_p1, %s12437_s0, 1  ;;  %10929 = vmatprep.subr.bf16.mxu1 %v12086_v0  ;;  %10303 = vmatprep.mubr.msk.f32.mxu1 %vm12087_vm0, %v12088_v1  ;;  %v1851_v4 = vld [vmem:[%s13902_s9 + $0x10] sm:$0xff]  ;;  %v10924_v5 = vpack.c.bf16 %v1850_v3, %v1849_v2  ;;  %v1852_v6 = vld [vmem:[%s13902_s9 + $0x18] sm:$0xff]  ;;  %vm2040_vm2 = vcmask 785408   ;;  %vm2046_vm3 = vcmask 31744   ;;  %vm2122_vm4 = vcmask 64512  }
 0x1df   : > { %v10927_v8 = vpack.c.bf16 %v1852_v6, %v1851_v4  ;;  %s13941_s23 = sld [smem:[#allocation38_spill]]  ;;  %s13942_s24 = sld [smem:[#allocation39_spill]]  ;;  %vm2383_vm5 = vcmask 64544   ;;  %vm2557_vm6 = vcmask 97344   ;;  %vm2731_vm7 = vcmask 130144  }
 0x1e0   : > { %s9851_s2 = sshll.u32 %s1842_s11, 3  ;;  %10925 = vmatpush3.bf16.msra.mxu0 %v10924_v5  ;;  %s13743_s1 = smov 64   ;;  %vm2905_vm8 = vcmask 162944   ;;  %vm3079_vm9 = vcmask 195744   ;;  %vm3253_vm10 = vcmask 228544   ;;  %vm3427_vm11 = vcmask 261344  }
 0x1e1   : > { %10926 = vmatprep.subr.bf16.mxu0 %v12086_v0  ;;  %s13804_s18 = smov 96   ;;  %s13802_s26 = smov 92   ;;  %vm3652_vm12 = vcmask 523264   ;;  %vm3730_vm13 = vcmask 523520   ;;  %vm5606_vm14 = vcmask 785920   ;;  %vm7486_vm15 = vcmask 1048320  }
 0x1e2   : > { %s1844_s16 = scalar_lea.vmem %s13937_s5, %s9851_s2  ;;  %s13797_s22 = smov 124  }
 0x1e3   : > { %v1845_v7 = vld [vmem:[%s1844_s16] sm:$0xff]  ;;  %s13940_s4 = smov %s13939_s7  ;;  %s13793_s11 = smov 88  }
 0x1e4   : > { %1847 = vst.msk [vmem:[#allocation2] sm:$0xff] %vm1846_vm1, %v1845_v7  ;;  %10928 = vmatpush3.bf16.msra.mxu0 %v10927_v8  ;;  %v9852_v10 = vld [vmem:[%s13938_s13] ss:$0 sm:$0xff]  ;;  %v1964_v21 = vld [vmem:[%s13940_s4 + $0x8] sm:$0xff]  ;;  %v1965_v22 = vld [vmem:[%s13940_s4 + $0x10] sm:$0xff]  ;;  %s13745_s2 = smov 84  }
 0x1e5   : > { %10306 = vmatprep.subr.mxu0 %v12088_v1  ;;  %v1963_v20 = vld [vmem:[%s13939_s7] sm:$0xff]  ;;  %v1966_v24 = vld [vmem:[%s13940_s4 + $0x18] sm:$0xff]  ;;  %s13747_s16 = smov 116   ;;  %s13757_s7 = smov 80  }
 0x1e6   : > { %v10930_v23 = vpack.c.bf16 %v1964_v21, %v1963_v20  ;;  %v10933_v25 = vpack.c.bf16 %v1966_v24, %v1965_v22  ;;  %v9854_v30 = vld [vmem:[%s13941_s23] ss:$0 sm:$0xff]  ;;  %s13759_s23 = smov 112   ;;  %s13962_s3 = smov 112  }
 0x1e7   : > { %v9855_v32 = vld [vmem:[%s13942_s24] ss:$0 sm:$0xff]  ;;  %s13755_s24 = smov 108   ;;  %s13965_s4 = smov 76  }
 0x1e8   : > { %10931 = vmatpush3.bf16.msra.mxu1 %v10930_v23  ;;  %s13966_s5 = smov 104   ;;  %s13967_s6 = smov 72  }
 0x1e9   : > { %10932 = vmatprep.subr.bf16.mxu1 %v12086_v0  ;;  %s13968_s8 = smov 100   ;;  %s13969_s9 = smov 68  }
 0x1ea   : > { %s13970_s12 = smov 64   ;;  %s13971_s13 = smov 56  }
 0x1eb   : > { %v1848_v9 = vld [vmem:[#allocation2] sm:$0xff]  ;;  %s13972_s17 = smov 52   ;;  %s13973_s19 = smov 48  }
 0x1ec   : > { %10293 = vmatmul.mubr.msk.f32.vlgmr.msra.gmra.mrb[0].mxu0 %vm1846_vm1, %v1848_v9  ;;  %10934 = vmatpush3.bf16.msra.mxu1 %v10933_v25  ;;  %s13974_s20 = smov 44   ;;  %s13975_s21 = smov 60  }
 0x1ed   : > { %10308 = vmatprep.mubr.msk.f32.mxu0 %vm12087_vm0, %v12088_v1  ;;  %10321 = vmatprep.subr.mxu1 %v12088_v1  ;;  %s13979_s25 = sld [smem:[#allocation54_spill]]  ;;  %s13980_s27 = smov 8  }
 0x1ee   : > { %s13981_s30 = smov 12   ;;  %s13982_s15 = smov 16  }
 0x1ef   : > { %s13983_s28 = smov 20   ;;  %s13985_s14 = smov 28  }
 0x1f0   : > { %s13986_s0 = sld [smem:[#allocation55_spill]]  ;;  %s13987_s10 = sld [smem:[#allocation58_spill]] }
 0x1f6   : > { %s13988_s29 = smov %s13987_s10 }
 0x2bf   : > { %v1929_v11 = vpop.f32.mrb[0].mxu0 }
 0x2c0   : > { %v12679_v12 = vadd.f32 %v9852_v10, %v1929_v11  ;;  %v10294_v13 = vpop.f32.mrb[1].mxu0 }
 0x2c2   : > { %v1933_v14 = vsel %vm1846_vm1, %v12679_v12, 0.0 }
 0x2c3   : > { %1934 = vadd.xlane.f32.xlu0 %v1933_v14 }
 0x350   : > { %v1935_v15 = vpop.xlane.xlu0 %1934 }
 0x351   : > { %v1937_v16 = vmul.f32 0.03125, %v1935_v15 }
 0x353   : > { %v1938_v17 = vsub.f32 %v12679_v12, %v1937_v16 }
 0x355   : > { %v1939_v18 = vmul.f32 %v1938_v17, %v1938_v17 }
 0x357   : > { %v1940_v19 = vsel %vm1846_vm1, %v1939_v18, 0.0 }
 0x358   : > { %1941 = vadd.xlane.f32.xlu0 %v1940_v19 }
 0x3e5   : > { %v1942_v26 = vpop.xlane.xlu0 %1941 }
 0x3e6   : > { %v1943_v27 = vmul.f32 0.03125, %v1942_v26 }
 0x3e8   : > { %v1944_v28 = vadd.f32 1e-05, %v1943_v27 }
 0x3ea   : > { %11406 = vrsqrt.f32 %v1944_v28 }
 0x3f4   : > { %v11407_v29 = vpop.eup %11406 }
 0x3f5   : > { %v1946_v31 = vmul.f32 %v11407_v29, %v1938_v17 }
 0x3f7   : > { %v1954_v33 = vmul.f32 %v9854_v30, %v1946_v31 }
 0x3f9   : > { %v1962_v34 = vadd.f32 %v9855_v32, %v1954_v33 }
 0x3fb   : > { %10304 = vmatmul.mubr.msk.f32.vlgmr.msra.gmra.mrb[0].mxu1 %vm1846_vm1, %v1962_v34 }
 0x3fc   : > { %10323 = vmatprep.mubr.msk.f32.mxu1 %vm12087_vm0, %v12088_v1 }
 0x4ce   : > { %v2036_v35 = vpop.f32.mrb[0].mxu1 }
 0x4cf   : > { %2041 = vst.msk [vmem:[#allocation3] sm:$0xff] %vm2040_vm2, %v2036_v35  ;;  %v10305_v36 = vpop.f32.mrb[1].mxu1 }
 0x4d6   : > { %v12697_v37 = vld [vmem:[#allocation3] sm:$0xff] }
 0x4d7   : > { %2133 = vrot.lane.b32.xlu0 %v12697_v37, %s13743_s1  ;;  %2044 = vrot.lane.b32.xlu1 %v12697_v37, %s13804_s18  ;;  %s13753_s1 = smov 104  }
 0x4db   : > { %2215 = vrot.lane.b32.xlu0 %v12697_v37, %s13802_s26 }
 0x4df   : > { %2213 = vrot.lane.b32.xlu0 %v12697_v37, %s13797_s22  ;;  %s13954_s22 = sld [smem:[#allocation53_spill]] }
 0x4e3   : > { %2389 = vrot.lane.b32.xlu0 %v12697_v37, %s13793_s11  ;;  %s13950_s11 = sld [smem:[#allocation46_spill]] }
 0x4e7   : > { %2563 = vrot.lane.b32.xlu0 %v12697_v37, %s13745_s2  ;;  %s13751_s2 = smov 100  }
 0x4eb   : > { %2561 = vrot.lane.b32.xlu0 %v12697_v37, %s13747_s16  ;;  %s13749_s16 = smov 60  }
 0x4ef   : > { %2737 = vrot.lane.b32.xlu0 %v12697_v37, %s13757_s7  ;;  %s13763_s7 = smov 56  }
 0x4f3   : > { %2735 = vrot.lane.b32.xlu0 %v12697_v37, %s13759_s23  ;;  %s13761_s23 = smov 52  }
 0x4f7   : > { %2909 = vrot.lane.b32.xlu0 %v12697_v37, %s13755_s24  ;;  %s13765_s24 = smov 68  }
 0x4fb   : > { %3083 = vrot.lane.b32.xlu0 %v12697_v37, %s13753_s1  ;;  %s13775_s1 = smov 72  }
 0x4ff   : > { %3257 = vrot.lane.b32.xlu0 %v12697_v37, %s13751_s2  ;;  %s13777_s2 = smov 76  }
 0x503   : > { %2302 = vrot.lane.b32.xlu0 %v12697_v37, %s13749_s16  ;;  %s13795_s16 = smov 120  }
 0x549   : > { %v2134_v38 = vpop.permute.xlu0 %2133  ;;  %v2045_v39 = vpop.permute.xlu1 %2044 }
 0x54a   : > { %10307 = vmatpush3.xpose.msk.msra.mxu0 %vm2046_vm3, %v2045_v39 }
 0x54b   : > { %10311 = vmatprep.subr.mxu0 %v12088_v1 }
 0x54d   : > { %v2216_v40 = vpop.permute.xlu0 %2215  ;;  %10309 = vmatmul.mubr.msk.f32.vlgmr.msra.gmra.mrb[2].mxu0 %vm2046_vm3, %v12697_v37 }
 0x54e   : > { %10312 = vmatpush3.msra.mxu0 %v2134_v38  ;;  %10313 = vmatprep.mubr.msk.f32.mxu0 %vm12087_vm0, %v12088_v1 }
 0x54f   : > { %10316 = vmatprep.subr.mxu0 %v12088_v1 }
 0x551   : > { %v2214_v41 = vpop.permute.xlu0 %2213 }
 0x555   : > { %v2390_v42 = vpop.permute.xlu0 %2389 }
 0x559   : > { %v2564_v43 = vpop.permute.xlu0 %2563 }
 0x55d   : > { %v2562_v44 = vpop.permute.xlu0 %2561 }
 0x561   : > { %v2738_v45 = vpop.permute.xlu0 %2737 }
 0x565   : > { %v2736_v46 = vpop.permute.xlu0 %2735 }
 0x569   : > { %v2910_v47 = vpop.permute.xlu0 %2909 }
 0x56d   : > { %v3084_v48 = vpop.permute.xlu0 %3083 }
 0x571   : > { %v3258_v49 = vpop.permute.xlu0 %3257 }
 0x575   : > { %v2303_v50 = vpop.permute.xlu0 %2302 }
 0x576   : > { %10322 = vmatpush3.msra.mxu1 %v2303_v50 }
 0x577   : > { %10331 = vmatprep.subr.mxu1 %v12088_v1 }
 0x620   : > { %v2117_v51 = vpop.f32.mrb[2].mxu0 }
 0x621   : > { %v2121_v52 = vmul.f32 0.5, %v2117_v51  ;;  %v10310_v53 = vpop.f32.mrb[3].mxu0 }
 0x623   : > { %v2123_v54 = vsel %vm2122_vm4, %v2121_v52, -inf }
 0x624   : > { %2124 = vmax.xlane.f32.xlu1 %v2123_v54 }
 0x635   : > { %2387 = vrot.lane.b32.xlu1 %v12697_v37, %s13795_s16  ;;  %s12119_s16 = smov 32  }
 0x639   : > { %2911 = vrot.lane.b32.xlu1 %v12697_v37, %s13777_s2  ;;  %s13781_s2 = smov 12  }
 0x63d   : > { %3085 = vrot.lane.b32.xlu1 %v12697_v37, %s13775_s1 }
 0x641   : > { %3259 = vrot.lane.b32.xlu1 %v12697_v37, %s13765_s24  ;;  %s13771_s24 = smov 36  }
 0x645   : > { %2476 = vrot.lane.b32.xlu1 %v12697_v37, %s13763_s7  ;;  %s13773_s7 = smov 44  }
 0x649   : > { %2650 = vrot.lane.b32.xlu1 %v12697_v37, %s13761_s23  ;;  %s13767_s23 = smov 48  }
 0x6b1   : > { %v2125_v55 = vpop.xlane.xlu1 %2124 }
 0x6b2   : > { %v2126_v56 = vsub.f32 %v2121_v52, %v2125_v55 }
 0x6b4   : > { %v2127_v57 = vmul.f32 1.442695, %v2126_v56 }
 0x6b5   : > { %v2388_v59 = vpop.permute.xlu1 %2387 }
 0x6b6   : > { %11408 = vpow2.f32 %v2127_v57 }
 0x6b9   : > { %v2912_v60 = vpop.permute.xlu1 %2911 }
 0x6bd   : > { %v3086_v61 = vpop.permute.xlu1 %3085 }
 0x6c0   : > { %v12746_v58 = vpop.eup %11408 }
 0x6c1   : > { %10314 = vmatmul.mubr.msk.f32.vlgmr.msra.gmra.mrb[4].mxu0 %vm2122_vm4, %v12746_v58  ;;  %v3260_v62 = vpop.permute.xlu1 %3259 }
 0x6c2   : > { %10317 = vmatpush3.xpose.msk.msra.mxu0 %vm2046_vm3, %v2216_v40  ;;  %10318 = vmatprep.mubr.msk.f32.mxu0 %vm12087_vm0, %v12088_v1 }
 0x6c3   : > { %10326 = vmatprep.subr.mxu0 %v12088_v1 }
 0x6c5   : > { %10319 = vmatmul.mubr.msk.f32.vlgmr.msra.gmra.mrb[6].mxu0 %vm2046_vm3, %v2214_v41  ;;  %v2477_v32 = vpop.permute.xlu1 %2476 }
 0x6c6   : > { %10327 = vmatpush3.xpose.msk.msra.mxu0 %vm2046_vm3, %v2390_v42  ;;  %10328 = vmatprep.mubr.msk.f32.mxu0 %vm12087_vm0, %v12088_v1 }
 0x6c7   : > { %10336 = vmatprep.subr.mxu0 %v12088_v1 }
 0x6c9   : > { %10329 = vmatmul.mubr.msk.f32.vlgmr.msra.gmra.mrb[8].mxu0 %vm2046_vm3, %v2388_v59  ;;  %v2651_v33 = vpop.permute.xlu1 %2650 }
 0x6ca   : > { %10337 = vmatpush3.xpose.msk.msra.mxu0 %vm2046_vm3, %v2564_v43  ;;  %10338 = vmatprep.mubr.msk.f32.mxu0 %vm12087_vm0, %v12088_v1 }
 0x6cb   : > { %10346 = vmatprep.subr.mxu0 %v12088_v1 }
 0x6cd   : > { %10339 = vmatmul.mubr.msk.f32.vlgmr.msra.gmra.mrb[10].mxu0 %vm2046_vm3, %v2562_v44 }
 0x6ce   : > { %10347 = vmatpush3.xpose.msk.msra.mxu0 %vm2046_vm3, %v2738_v45  ;;  %10348 = vmatprep.mubr.msk.f32.mxu0 %vm12087_vm0, %v12088_v1 }
 0x6cf   : > { %10356 = vmatprep.subr.mxu0 %v12088_v1 }
 0x6d1   : > { %10349 = vmatmul.mubr.msk.f32.vlgmr.msra.gmra.mrb[12].mxu0 %vm2046_vm3, %v2736_v46 }
 0x6d2   : > { %10357 = vmatpush3.xpose.msk.msra.mxu0 %vm2046_vm3, %v2912_v60  ;;  %10358 = vmatprep.mubr.msk.f32.mxu0 %vm12087_vm0, %v12088_v1 }
 0x6d3   : > { %10366 = vmatprep.subr.mxu0 %v12088_v1 }
 0x6d5   : > { %10359 = vmatmul.mubr.msk.f32.vlgmr.msra.gmra.mrb[14].mxu0 %vm2046_vm3, %v2910_v47 }
 0x6d6   : > { %10367 = vmatpush3.xpose.msk.msra.mxu0 %vm2046_vm3, %v3086_v61  ;;  %10368 = vmatprep.mubr.msk.f32.mxu0 %vm12087_vm0, %v12088_v1 }
 0x6d7   : > { %10376 = vmatprep.subr.mxu0 %v12088_v1 }
 0x6d9   : > { %10369 = vmatmul.mubr.msk.f32.vlgmr.msra.gmra.mrb[16].mxu0 %vm2046_vm3, %v3084_v48 }
 0x6da   : > { %10377 = vmatpush3.xpose.msk.msra.mxu0 %vm2046_vm3, %v3260_v62  ;;  %10378 = vmatprep.mubr.msk.f32.mxu0 %vm12087_vm0, %v12088_v1  ;;  %v2129_v62 = vsel %vm2122_vm4, %v12746_v58, 0.0 }
 0x6db   : > { %10935 = vmatprep.subr.bf16.mxu0 %v12086_v0 }
 0x6dd   : > { %10379 = vmatmul.mubr.msk.f32.vlgmr.msra.gmra.mrb[18].mxu0 %vm2046_vm3, %v3258_v49 }
 0x6de   : > { %10394 = vmatprep.mubr.msk.f32.mxu0 %vm12087_vm0, %v12088_v1 }
 0x794   : > { %v12787_v63 = vpop.f32.mrb[4].mxu0 }
 0x795   : > { %v10315_v2 = vpop.f32.mrb[5].mxu0 }
 0x798   : > { %v2287_v3 = vpop.f32.mrb[6].mxu0 }
 0x799   : > { %v2291_v4 = vmul.f32 0.5, %v2287_v3  ;;  %v10320_v5 = vpop.f32.mrb[7].mxu0 }
 0x79b   : > { %v2292_v6 = vsel %vm2122_vm4, %v2291_v4, -inf }
 0x79c   : > { %2293 = vmax.xlane.f32.xlu1 %v2292_v6  ;;  %v2461_v7 = vpop.f32.mrb[8].mxu0 }
 0x79d   : > { %v2465_v8 = vmul.f32 0.5, %v2461_v7  ;;  %v10330_v9 = vpop.f32.mrb[9].mxu0 }
 0x79f   : > { %v2466_v10 = vsel %vm2122_vm4, %v2465_v8, -inf }
 0x7a0   : > { %2467 = vmax.xlane.f32.xlu0 %v2466_v10  ;;  %v2635_v11 = vpop.f32.mrb[10].mxu0 }
 0x7a1   : > { %v2639_v13 = vmul.f32 0.5, %v2635_v11  ;;  %v10340_v14 = vpop.f32.mrb[11].mxu0 }
 0x7a3   : > { %v2640_v15 = vsel %vm2122_vm4, %v2639_v13, -inf }
 0x7a4   : > { %2641 = vmax.xlane.f32.xlu0 %v2640_v15  ;;  %v2809_v16 = vpop.f32.mrb[12].mxu0 }
 0x7a5   : > { %v2813_v17 = vmul.f32 0.5, %v2809_v16  ;;  %v10350_v18 = vpop.f32.mrb[13].mxu0 }
 0x7a7   : > { %v2814_v19 = vsel %vm2122_vm4, %v2813_v17, -inf }
 0x7a8   : > { %2815 = vmax.xlane.f32.xlu0 %v2814_v19  ;;  %v2983_v20 = vpop.f32.mrb[14].mxu0 }
 0x7a9   : > { %v10360_v21 = vpop.f32.mrb[15].mxu0  ;;  %v12800_v28 = vmul.f32 0.5, %v2983_v20 }
 0x7ab   : > { %v2988_v30 = vsel %vm2122_vm4, %v12800_v28, -inf }
 0x7ac   : > { %v3157_v22 = vpop.f32.mrb[16].mxu0 }
 0x7ad   : > { %v3161_v23 = vmul.f32 0.5, %v3157_v22  ;;  %2824 = vrot.lane.b32.xlu1 %v12697_v37, %s13767_s23  ;;  %v10370_v24 = vpop.f32.mrb[17].mxu0  ;;  %s13769_s23 = smov 40  }
 0x7af   : > { %v3162_v25 = vsel %vm2122_vm4, %v3161_v23, -inf }
 0x7b0   : > { %3163 = vmax.xlane.f32.xlu0 %v3162_v25  ;;  %v3331_v26 = vpop.f32.mrb[18].mxu0 }
 0x7b1   : > { %v10380_v27 = vpop.f32.mrb[19].mxu0  ;;  %v12802_v29 = vmul.f32 0.5, %v3331_v26 }
 0x7b3   : > { %v3336_v31 = vsel %vm2122_vm4, %v12802_v29, -inf }
 0x7c6   : > { %2998 = vrot.lane.b32.xlu0 %v12697_v37, %s13773_s7  ;;  %s13943_s7 = sld [smem:[#allocation41_spill]] }
 0x7ca   : > { %3346 = vrot.lane.b32.xlu0 %v12697_v37, %s13771_s24  ;;  %s13791_s24 = smov 8  }
 0x7cc   : > { %s13944_s1 = smov %s13943_s7 }
 0x7d1   : > { %2989 = vmax.xlane.f32.xlu1 %v2988_v30 }
 0x7d5   : > { %3337 = vmax.xlane.f32.xlu1 %v3336_v31 }
 0x7e6   : > { %3172 = vrot.lane.b32.xlu1 %v12697_v37, %s13769_s23  ;;  %s13779_s23 = smov 4  }
 0x829   : > { %v2294_v34 = vpop.xlane.xlu1 %2293 }
 0x82a   : > { %v2295_v35 = vsub.f32 %v2291_v4, %v2294_v34 }
 0x82c   : > { %v2296_v36 = vmul.f32 1.442695, %v2295_v35 }
 0x82d   : > { %v2468_v38 = vpop.xlane.xlu0 %2467  ;;  %v2825_v54 = vpop.permute.xlu1 %2824 }
 0x82e   : > { %11410 = vpow2.f32 %v2296_v36  ;;  %v2469_v39 = vsub.f32 %v2465_v8, %v2468_v38 }
 0x830   : > { %v2470_v40 = vmul.f32 1.442695, %v2469_v39 }
 0x831   : > { %v2642_v41 = vpop.xlane.xlu0 %2641 }
 0x832   : > { %11412 = vpow2.f32 %v2470_v40  ;;  %v2643_v42 = vsub.f32 %v2639_v13, %v2642_v41  ;;  %v3430_v40 = vld [vmem:[%s13943_s7] sm:$0xff]  ;;  %v3431_v41 = vld [vmem:[%s13944_s1 + $0x8] sm:$0xff]  ;;  %s13785_s7 = smov 24  }
 0x834   : > { %v2644_v43 = vmul.f32 1.442695, %v2643_v42  ;;  %v10936_v42 = vpack.c.bf16 %v3431_v41, %v3430_v40 }
 0x835   : > { %v2816_v44 = vpop.xlane.xlu0 %2815 }
 0x836   : > { %11414 = vpow2.f32 %v2644_v43  ;;  %v2817_v45 = vsub.f32 %v2813_v17, %v2816_v44  ;;  %v3432_v43 = vld [vmem:[%s13944_s1 + $0x10] sm:$0xff]  ;;  %v3433_v44 = vld [vmem:[%s13944_s1 + $0x18] sm:$0xff]  ;;  %10937 = vmatpush3.bf16.msra.mxu0 %v10936_v42  ;;  %v9885_v42 = vld [vmem:[%s13950_s11] ss:$0 sm:$0xff]  ;;  %s13952_s11 = sld [smem:[#allocation48_spill]]  ;;  %s13960_s1 = smov 116  }
 0x837   : > { %10938 = vmatprep.subr.bf16.mxu0 %v12086_v0 }
 0x838   : > { %v11411_v46 = vpop.eup %11410  ;;  %v2818_v47 = vmul.f32 1.442695, %v2817_v45 }
 0x839   : > { %10324 = vmatmul.mubr.msk.f32.vlgmr.msra.gmra.mrb[2].mxu1 %vm2122_vm4, %v11411_v46  ;;  %v2298_v37 = vsel %vm2122_vm4, %v11411_v46, 0.0 }
 0x83a   : > { %11416 = vpow2.f32 %v2818_v47  ;;  %10332 = vmatpush3.msra.mxu1 %v2477_v32  ;;  %2299 = vadd.xlane.f32.xlu1 %v2298_v37  ;;  %v10939_v47 = vpack.c.bf16 %v3433_v44, %v3432_v43 }
 0x83b   : > { %10333 = vmatprep.mubr.msk.f32.mxu1 %vm12087_vm0, %v12088_v1  ;;  %10341 = vmatprep.subr.mxu1 %v12088_v1 }
 0x83c   : > { %v11413_v48 = vpop.eup %11412  ;;  %10940 = vmatpush3.bf16.msra.mxu0 %v10939_v47 }
 0x83d   : > { %10334 = vmatmul.mubr.msk.f32.vlgmr.msra.gmra.mrb[4].mxu1 %vm2122_vm4, %v11413_v48  ;;  %v3164_v49 = vpop.xlane.xlu0 %3163  ;;  %v2472_v50 = vsel %vm2122_vm4, %v11413_v48, 0.0  ;;  %10947 = vmatprep.subr.bf16.mxu0 %v12086_v0 }
 0x83e   : > { %10342 = vmatpush3.msra.mxu1 %v2651_v33  ;;  %v3165_v51 = vsub.f32 %v3161_v23, %v3164_v49  ;;  %2473 = vadd.xlane.f32.xlu0 %v2472_v50 }
 0x83f   : > { %10343 = vmatprep.mubr.msk.f32.mxu1 %vm12087_vm0, %v12088_v1  ;;  %10351 = vmatprep.subr.mxu1 %v12088_v1 }
 0x840   : > { %v11415_v52 = vpop.eup %11414  ;;  %v3166_v53 = vmul.f32 1.442695, %v3165_v51 }
 0x841   : > { %10344 = vmatmul.mubr.msk.f32.vlgmr.msra.gmra.mrb[6].mxu1 %vm2122_vm4, %v11415_v52  ;;  %v2646_v55 = vsel %vm2122_vm4, %v11415_v52, 0.0  ;;  %v2999_v57 = vpop.permute.xlu0 %2998 }
 0x842   : > { %11418 = vpow2.f32 %v3166_v53  ;;  %10352 = vmatpush3.msra.mxu1 %v2825_v54  ;;  %2647 = vadd.xlane.f32.xlu0 %v2646_v55 }
 0x843   : > { %10353 = vmatprep.mubr.msk.f32.mxu1 %vm12087_vm0, %v12088_v1  ;;  %10361 = vmatprep.subr.mxu1 %v12088_v1 }
 0x844   : > { %v11417_v56 = vpop.eup %11416 }
 0x845   : > { %10354 = vmatmul.mubr.msk.f32.vlgmr.msra.gmra.mrb[8].mxu1 %vm2122_vm4, %v11417_v56  ;;  %v2820_v59 = vsel %vm2122_vm4, %v11417_v56, 0.0  ;;  %v3347_v11 = vpop.permute.xlu0 %3346 }
 0x846   : > { %10362 = vmatpush3.msra.mxu1 %v2999_v57  ;;  %2821 = vadd.xlane.f32.xlu0 %v2820_v59 }
 0x847   : > { %10363 = vmatprep.mubr.msk.f32.mxu1 %vm12087_vm0, %v12088_v1  ;;  %10371 = vmatprep.subr.mxu1 %v12088_v1 }
 0x84c   : > { %v11419_v60 = vpop.eup %11418 }
 0x84d   : > { %v3168_v61 = vsel %vm2122_vm4, %v11419_v60, 0.0 }
 0x84e   : > { %3169 = vadd.xlane.f32.xlu0 %v3168_v61 }
 0x852   : > { %2130 = vadd.xlane.f32.xlu0 %v2129_v62 }
 0x85e   : > { %v2990_v2 = vpop.xlane.xlu1 %2989 }
 0x85f   : > { %v2991_v3 = vsub.f32 %v12800_v28, %v2990_v2 }
 0x861   : > { %v2992_v4 = vmul.f32 1.442695, %v2991_v3 }
 0x862   : > { %v3338_v5 = vpop.xlane.xlu1 %3337 }
 0x863   : > { %11420 = vpow2.f32 %v2992_v4  ;;  %v3339_v6 = vsub.f32 %v12802_v29, %v3338_v5 }
 0x865   : > { %v3340_v7 = vmul.f32 1.442695, %v3339_v6 }
 0x866   : > { %v3173_v9 = vpop.permute.xlu1 %3172 }
 0x867   : > { %11422 = vpow2.f32 %v3340_v7 }
 0x86d   : > { %v11421_v8 = vpop.eup %11420 }
 0x86e   : > { %10364 = vmatmul.mubr.msk.f32.vlgmr.msra.gmra.mrb[10].mxu1 %vm2122_vm4, %v11421_v8  ;;  %v2994_v10 = vsel %vm2122_vm4, %v11421_v8, 0.0 }
 0x86f   : > { %10372 = vmatpush3.msra.mxu1 %v3173_v9  ;;  %2995 = vadd.xlane.f32.xlu1 %v2994_v10 }
 0x870   : > { %10373 = vmatprep.mubr.msk.f32.mxu1 %vm12087_vm0, %v12088_v1  ;;  %10381 = vmatprep.subr.mxu1 %v12088_v1 }
 0x871   : > { %v11423_v58 = vpop.eup %11422 }
 0x872   : > { %10374 = vmatmul.mubr.msk.f32.vlgmr.msra.gmra.mrb[12].mxu1 %vm2122_vm4, %v11419_v60  ;;  %v3342_v13 = vsel %vm2122_vm4, %v11423_v58, 0.0 }
 0x873   : > { %10382 = vmatpush3.msra.mxu1 %v3347_v11  ;;  %3343 = vadd.xlane.f32.xlu1 %v3342_v13 }
 0x874   : > { %10383 = vmatprep.mubr.msk.f32.mxu1 %vm12087_vm0, %v12088_v1  ;;  %10941 = vmatprep.subr.bf16.mxu1 %v12086_v0 }
 0x876   : > { %10384 = vmatmul.mubr.msk.f32.vlgmr.msra.gmra.mrb[14].mxu1 %vm2122_vm4, %v11423_v58 }
 0x877   : > { %10405 = vmatprep.mubr.msk.f32.mxu1 %vm12087_vm0, %v12088_v1 }
 0x8c7   : > { %v2300_v21 = vpop.xlane.xlu1 %2299 }
 0x8cb   : > { %v2474_v14 = vpop.xlane.xlu0 %2473 }
 0x8cf   : > { %v2648_v15 = vpop.xlane.xlu0 %2647 }
 0x8d3   : > { %v2822_v16 = vpop.xlane.xlu0 %2821 }
 0x8db   : > { %v3170_v17 = vpop.xlane.xlu0 %3169 }
 0x8df   : > { %v2131_v18 = vpop.xlane.xlu0 %2130 }
 0x8e0   : > { %11424 = vrcp.f32 %v2131_v18 }
 0x8e1   : > { %11426 = vrcp.f32 %v2300_v21 }
 0x8e2   : > { %11428 = vrcp.f32 %v2474_v14 }
 0x8e3   : > { %11430 = vrcp.f32 %v2648_v15 }
 0x8e4   : > { %11432 = vrcp.f32 %v2822_v16 }
 0x8ea   : > { %v11425_v19 = vpop.eup %11424 }
 0x8eb   : > { %v2209_v20 = vmul.f32 %v11425_v19, %v12787_v63  ;;  %v11427_v22 = vpop.eup %11426 }
 0x8ec   : > { %v11429_v26 = vpop.eup %11428 }
 0x8ed   : > { %2210 = vst.msk [vmem:[#allocation4] sm:$0xff] %vm2046_vm3, %v2209_v20  ;;  %v11431_v63 = vpop.eup %11430 }
 0x8ee   : > { %v11433_v33 = vpop.eup %11432 }
 0x8fc   : > { %v2996_v38 = vpop.xlane.xlu1 %2995 }
 0x8fd   : > { %11434 = vrcp.f32 %v2996_v38 }
 0x8fe   : > { %11436 = vrcp.f32 %v3170_v17 }
 0x900   : > { %v3344_v39 = vpop.xlane.xlu1 %3343 }
 0x901   : > { %11438 = vrcp.f32 %v3344_v39 }
 0x907   : > { %v11435_v45 = vpop.eup %11434 }
 0x908   : > { %v11437_v49 = vpop.eup %11436 }
 0x90b   : > { %v11439_v53 = vpop.eup %11438 }
 0x90c   : > { %v2374_v23 = vpop.f32.mrb[2].mxu1 }
 0x90d   : > { %v2378_v24 = vmul.f32 %v11427_v22, %v2374_v23  ;;  %v10325_v25 = vpop.f32.mrb[3].mxu1 }
 0x90f   : > { %2380 = vrot.lane.b32.xlu1 %v2378_v24, %s13779_s23  ;;  %s13783_s23 = smov 16  }
 0x910   : > { %v2548_v27 = vpop.f32.mrb[4].mxu1 }
 0x911   : > { %v2552_v28 = vmul.f32 %v11429_v26, %v2548_v27  ;;  %v10335_v29 = vpop.f32.mrb[5].mxu1 }
 0x913   : > { %2554 = vrot.lane.b32.xlu0 %v2552_v28, %s13791_s24  ;;  %s13949_s24 = sld [smem:[#allocation47_spill]] }
 0x914   : > { %v2722_v30 = vpop.f32.mrb[6].mxu1 }
 0x915   : > { %v2726_v31 = vmul.f32 %v11431_v63, %v2722_v30  ;;  %v10345_v32 = vpop.f32.mrb[7].mxu1 }
 0x917   : > { %2728 = vrot.lane.b32.xlu1 %v2726_v31, %s13781_s2  ;;  %s13789_s2 = smov 20  }
 0x918   : > { %v2896_v34 = vpop.f32.mrb[8].mxu1 }
 0x919   : > { %v2900_v35 = vmul.f32 %v11433_v33, %v2896_v34  ;;  %v10355_v36 = vpop.f32.mrb[9].mxu1  ;;  %v3637_v63 = vld [vmem:[%s13949_s24] sm:$0xff]  ;;  %v3638_v30 = vld [vmem:[%s13949_s24 + $0x8] sm:$0xff]  ;;  %v3639_v32 = vld [vmem:[%s13949_s24 + $0x10] sm:$0xff] }
 0x91a   : > { %v10948_v31 = vpack.c.bf16 %v3638_v30, %v3637_v63  ;;  %v3640_v33 = vld [vmem:[%s13949_s24 + $0x18] sm:$0xff]  ;;  %v3642_v36 = vld [vmem:[%s13949_s24 + $0x28] sm:$0xff]  ;;  %v3643_v39 = vld [vmem:[%s13949_s24 + $0x30] sm:$0xff] }
 0x91b   : > { %2902 = vrot.lane.b32.xlu1 %v2900_v35, %s13783_s23  ;;  %s13787_s23 = smov 28   ;;  %v10951_v34 = vpack.c.bf16 %v3640_v33, %v3639_v32  ;;  %v3641_v35 = vld [vmem:[%s13949_s24 + $0x20] sm:$0xff]  ;;  %v3644_v40 = vld [vmem:[%s13949_s24 + $0x38] sm:$0xff]  ;;  %s13978_s24 = smov 4  }
 0x91c   : > { %v10954_v38 = vpack.c.bf16 %v3642_v36, %v3641_v35  ;;  %v10957_v41 = vpack.c.bf16 %v3644_v40, %v3643_v39 }
 0x941   : > { %v3070_v46 = vpop.f32.mrb[10].mxu1 }
 0x942   : > { %v3074_v37 = vmul.f32 %v11435_v45, %v3070_v46  ;;  %v10365_v48 = vpop.f32.mrb[11].mxu1 }
 0x944   : > { %3076 = vrot.lane.b32.xlu1 %v3074_v37, %s13789_s2  ;;  %s13947_s2 = sld [smem:[#allocation43_spill]] }
 0x945   : > { %v3244_v50 = vpop.f32.mrb[12].mxu1 }
 0x946   : > { %v3248_v51 = vmul.f32 %v11437_v49, %v3244_v50  ;;  %v10375_v52 = vpop.f32.mrb[13].mxu1 }
 0x948   : > { %3250 = vrot.lane.b32.xlu0 %v3248_v51, %s13785_s7  ;;  %s13945_s7 = sld [smem:[#allocation42_spill]] }
 0x949   : > { %v3418_v54 = vpop.f32.mrb[14].mxu1 }
 0x94a   : > { %v3422_v55 = vmul.f32 %v11439_v53, %v3418_v54  ;;  %v10385_v56 = vpop.f32.mrb[15].mxu1  ;;  %v9883_v25 = vld [vmem:[%s13947_s2] ss:$0 sm:$0xff]  ;;  %s13951_s2 = sld [smem:[#allocation49_spill]] }
 0x94c   : > { %3424 = vrot.lane.b32.xlu1 %v3422_v55, %s13787_s23  ;;  %s13946_s23 = sld [smem:[#allocation45_spill]] }
 0x94e   : > { %v9881_v5 = vld [vmem:[%s13945_s7] ss:$0 sm:$0xff]  ;;  %s13948_s7 = sld [smem:[#allocation44_spill]] }
 0x950   : > { %v3733_v54 = vld [vmem:[%s13951_s2] sm:$0xff]  ;;  %v3734_v55 = vld [vmem:[%s13951_s2 + $0x8] sm:$0xff]  ;;  %v3735_v56 = vld [vmem:[%s13951_s2 + $0x10] sm:$0xff] }
 0x952   : > { %v3544_v16 = vld [vmem:[%s13946_s23] sm:$0xff]  ;;  %v3545_v17 = vld [vmem:[%s13946_s23 + $0x8] sm:$0xff]  ;;  %v3546_v19 = vld [vmem:[%s13946_s23 + $0x10] sm:$0xff] }
 0x953   : > { %v10942_v18 = vpack.c.bf16 %v3545_v17, %v3544_v16  ;;  %v3547_v20 = vld [vmem:[%s13946_s23 + $0x18] sm:$0xff]  ;;  %s13977_s23 = smov 40  }
 0x954   : > { %v9884_v27 = vld [vmem:[%s13948_s7] ss:$0 sm:$0xff]  ;;  %s13953_s7 = sld [smem:[#allocation50_spill]] }
 0x955   : > { %10943 = vmatpush3.bf16.msra.mxu1 %v10942_v18 }
 0x956   : > { %10944 = vmatprep.subr.bf16.mxu1 %v12086_v0 }
 0x981   : > { %v2381_v57 = vpop.permute.xlu1 %2380 }
 0x982   : > { %2384 = vst.msk [vmem:[#allocation4] sm:$0xff] %vm2383_vm5, %v2381_v57  ;;  %v10960_v57 = vpack.c.bf16 %v3734_v55, %v3733_v54 }
 0x985   : > { %v2555_v59 = vpop.permute.xlu0 %2554 }
 0x986   : > { %2558 = vst.msk [vmem:[#allocation4] sm:$0xff] %vm2557_vm6, %v2555_v59  ;;  %v3736_v59 = vld [vmem:[%s13951_s2 + $0x18] sm:$0xff] }
 0x989   : > { %v2729_v60 = vpop.permute.xlu1 %2728 }
 0x98a   : > { %2732 = vst.msk [vmem:[#allocation4] sm:$0xff] %vm2731_vm7, %v2729_v60  ;;  %v10963_v60 = vpack.c.bf16 %v3736_v59, %v3735_v56 }
 0x98d   : > { %v2903_v61 = vpop.permute.xlu1 %2902 }
 0x98e   : > { %2906 = vst.msk [vmem:[#allocation4] sm:$0xff] %vm2905_vm8, %v2903_v61  ;;  %v3737_v61 = vld [vmem:[%s13951_s2 + $0x20] sm:$0xff] }
 0x9b6   : > { %v3077_v62 = vpop.permute.xlu1 %3076 }
 0x9b7   : > { %3080 = vst.msk [vmem:[#allocation4] sm:$0xff] %vm3079_vm9, %v3077_v62  ;;  %v3738_v62 = vld [vmem:[%s13951_s2 + $0x28] sm:$0xff] }
 0x9ba   : > { %v3251_v2 = vpop.permute.xlu0 %3250 }
 0x9bb   : > { %3254 = vst.msk [vmem:[#allocation4] sm:$0xff] %vm3253_vm10, %v3251_v2  ;;  %v10966_v2 = vpack.c.bf16 %v3738_v62, %v3737_v61 }
 0x9be   : > { %v3425_v3 = vpop.permute.xlu1 %3424 }
 0x9bf   : > { %3428 = vst.msk [vmem:[#allocation4] sm:$0xff] %vm3427_vm11, %v3425_v3  ;;  %v3739_v3 = vld [vmem:[%s13951_s2 + $0x30] sm:$0xff] }
 0x9c6   : > { %v3429_v4 = vld [vmem:[#allocation4] sm:$0xff] }
 0x9c7   : > { %10395 = vmatmul.mubr.msk.f32.vlgmr.msra.gmra.mrb[20].mxu0 %vm1846_vm1, %v3429_v4  ;;  %v3740_v4 = vld [vmem:[%s13951_s2 + $0x38] sm:$0xff]  ;;  %s13961_s2 = smov 84  }
 0x9c8   : > { %10424 = vmatprep.mubr.msk.f32.mxu0 %vm12087_vm0, %v12088_v1  ;;  %10949 = vmatpush3.bf16.msra.mxu0 %v10948_v31 }
 0x9c9   : > { %10950 = vmatprep.subr.bf16.mxu0 %v12086_v0 }
 0x9cc   : > { %10952 = vmatpush3.bf16.msra.mxu0 %v10951_v34 }
 0x9cd   : > { %10953 = vmatprep.subr.bf16.mxu0 %v12086_v0 }
 0x9d0   : > { %10955 = vmatpush3.bf16.msra.mxu0 %v10954_v38 }
 0x9d1   : > { %10956 = vmatprep.subr.bf16.mxu0 %v12086_v0 }
 0x9d4   : > { %10958 = vmatpush3.bf16.msra.mxu0 %v10957_v41 }
 0x9d5   : > { %10971 = vmatprep.subr.bf16.mxu0 %v12086_v0 }
 0xa9a   : > { %v3510_v6 = vpop.f32.mrb[20].mxu0 }
 0xa9b   : > { %v3511_v7 = vadd.f32 %v9881_v5, %v3510_v6  ;;  %v10396_v8 = vpop.f32.mrb[21].mxu0  ;;  %v10969_v5 = vpack.c.bf16 %v3740_v4, %v3739_v3  ;;  %v9887_v6 = vld [vmem:[%s13952_s11] ss:$0 sm:$0xff]  ;;  %s13956_s11 = sld [smem:[#allocation52_spill]] }
 0xa9d   : > { %v3514_v9 = vadd.f32 %v3511_v7, %v12679_v12  ;;  %v10945_v12 = vpack.c.bf16 %v3547_v20, %v3546_v19 }
 0xa9f   : > { %v3515_v10 = vsel %vm1846_vm1, %v3514_v9, 0.0  ;;  %10946 = vmatpush3.bf16.msra.mxu1 %v10945_v12 }
 0xaa0   : > { %3516 = vadd.xlane.f32.xlu0 %v3515_v10  ;;  %10959 = vmatprep.subr.bf16.mxu1 %v12086_v0 }
 0xaa1   : > { %v9892_v32 = vld [vmem:[%s13956_s11] ss:$0 sm:$0xff]  ;;  %s13959_s11 = smov 88  }
 0xb2d   : > { %v3517_v58 = vpop.xlane.xlu0 %3516 }
 0xb2e   : > { %v3518_v11 = vmul.f32 0.03125, %v3517_v58 }
 0xb30   : > { %v3519_v13 = vsub.f32 %v3514_v9, %v3518_v11  ;;  %v9889_v11 = vld [vmem:[%s13953_s7] ss:$0 sm:$0xff]  ;;  %s13957_s7 = smov 124  }
 0xb32   : > { %v3520_v14 = vmul.f32 %v3519_v13, %v3519_v13 }
 0xb34   : > { %v3521_v15 = vsel %vm1846_vm1, %v3520_v14, 0.0 }
 0xb35   : > { %3522 = vadd.xlane.f32.xlu1 %v3521_v15 }
 0xbc2   : > { %v3523_v21 = vpop.xlane.xlu1 %3522 }
 0xbc3   : > { %v3524_v22 = vmul.f32 0.03125, %v3523_v21  ;;  %v3850_v21 = vld [vmem:[%s13954_s22] sm:$0xff] }
 0xbc5   : > { %v3525_v23 = vadd.f32 1e-05, %v3524_v22  ;;  %v3851_v22 = vld [vmem:[%s13954_s22 + $0x8] sm:$0xff] }
 0xbc7   : > { %11440 = vrsqrt.f32 %v3525_v23  ;;  %v10972_v23 = vpack.c.bf16 %v3851_v22, %v3850_v21 }
 0xbd1   : > { %v11441_v24 = vpop.eup %11440 }
 0xbd2   : > { %v3527_v26 = vmul.f32 %v11441_v24, %v3519_v13  ;;  %v3852_v24 = vld [vmem:[%s13954_s22 + $0x10] sm:$0xff] }
 0xbd4   : > { %v3535_v28 = vmul.f32 %v9883_v25, %v3527_v26  ;;  %v3853_v25 = vld [vmem:[%s13954_s22 + $0x18] sm:$0xff]  ;;  %s13976_s22 = smov 36  }
 0xbd5   : > { %v10975_v26 = vpack.c.bf16 %v3853_v25, %v3852_v24 }
 0xbd6   : > { %v3543_v29 = vadd.f32 %v9884_v27, %v3535_v28 }
 0xbd8   : > { %10406 = vmatmul.mubr.msk.f32.vlgmr.msra.gmra.mrb[16].mxu1 %vm1846_vm1, %v3543_v29 }
 0xbd9   : > { %10443 = vmatprep.mubr.msk.f32.mxu1 %vm12087_vm0, %v12088_v1  ;;  %10961 = vmatpush3.bf16.msra.mxu1 %v10960_v57 }
 0xbda   : > { %10962 = vmatprep.subr.bf16.mxu1 %v12086_v0 }
 0xbdd   : > { %10964 = vmatpush3.bf16.msra.mxu1 %v10963_v60 }
 0xbde   : > { %10965 = vmatprep.subr.bf16.mxu1 %v12086_v0 }
 0xbe1   : > { %10967 = vmatpush3.bf16.msra.mxu1 %v10966_v2 }
 0xbe2   : > { %10968 = vmatprep.subr.bf16.mxu1 %v12086_v0 }
 0xbe5   : > { %10970 = vmatpush3.bf16.msra.mxu1 %v10969_v5 }
 0xbe6   : > { %10457 = vmatprep.subr.mxu1 %v12088_v1 }
 0xcab   : > { %v3624_v43 = vpop.f32.mrb[16].mxu1 }
 0xcac   : > { %v3625_v44 = vadd.f32 %v9885_v42, %v3624_v43  ;;  %v10407_v45 = vpop.f32.mrb[17].mxu1 }
 0xcae   : > { %v3629_v46 = vmul.f32 0.044715, %v3625_v44  ;;  %v3628_v51 = vmul.f32 0.5, %v3625_v44 }
 0xcb0   : > { %v3630_v47 = vmul.f32 %v3629_v46, %v3625_v44 }
 0xcb2   : > { %v3631_v37 = vmul.f32 %v3630_v47, %v3625_v44 }
 0xcb4   : > { %v3632_v48 = vadd.f32 %v3631_v37, %v3625_v44 }
 0xcb6   : > { %v3633_v49 = vmul.f32 0.7978846, %v3632_v48 }
 0xcb8   : > { %11442 = vtanh.f32 %v3633_v49 }
 0xcc2   : > { %v11443_v50 = vpop.eup %11442 }
 0xcc3   : > { %v3635_v52 = vadd.f32 1.0, %v11443_v50 }
 0xcc5   : > { %v3636_v53 = vmul.f32 %v3635_v52, %v3628_v51 }
 0xcc7   : > { %10425 = vmatmul.mubr.msk.f32.vlgmr.msra.gmra.mrb[22].mxu0 %vm3652_vm12, %v3636_v53 }
 0xcc8   : > { %10454 = vmatprep.mubr.msk.f32.mxu0 %vm12087_vm0, %v12088_v1  ;;  %10973 = vmatpush3.bf16.msra.mxu0 %v10972_v23 }
 0xcc9   : > { %10974 = vmatprep.subr.bf16.mxu0 %v12086_v0 }
 0xccc   : > { %10976 = vmatpush3.bf16.msra.mxu0 %v10975_v26 }
 0xccd   : > { %10467 = vmatprep.subr.mxu0 %v12088_v1 }
 0xd9a   : > { %v3722_v7 = vpop.f32.mrb[22].mxu0 }
 0xd9b   : > { %v3723_v8 = vadd.f32 %v9887_v6, %v3722_v7  ;;  %v10426_v9 = vpop.f32.mrb[23].mxu0 }
 0xd9d   : > { %3727 = vrot.lane.b32.xlu0 %v3723_v8, %s12119_s16  ;;  %s13955_s16 = sld [smem:[#allocation51_spill]] }
 0xda3   : > { %v9891_v30 = vld [vmem:[%s13955_s16] ss:$0 sm:$0xff]  ;;  %s13958_s16 = smov 120  }
 0xe0f   : > { %v3728_v10 = vpop.permute.xlu0 %3727 }
 0xe10   : > { %3731 = vst.msk [vmem:[#allocation2] sm:$0xff] %vm3730_vm13, %v3728_v10 }
 0xe17   : > { %v3732_v58 = vld [vmem:[#allocation2] sm:$0xff] }
 0xe18   : > { %10444 = vmatmul.mubr.msk.f32.vlgmr.msra.gmra.mrb[18].mxu1 %vm3652_vm12, %v3732_v58 }
 0xe19   : > { %10459 = vmatprep.mubr.msk.f32.mxu1 %vm12087_vm0, %v12088_v1 }
 0xeeb   : > { %v3817_v13 = vpop.f32.mrb[18].mxu1 }
 0xeec   : > { %v12921_v14 = vadd.f32 %v9889_v11, %v3817_v13  ;;  %v10445_v15 = vpop.f32.mrb[19].mxu1 }
 0xeee   : > { %v3821_v16 = vsel %vm1846_vm1, %v12921_v14, 0.0 }
 0xeef   : > { %3822 = vadd.xlane.f32.xlu1 %v3821_v16 }
 0xf7c   : > { %v3823_v17 = vpop.xlane.xlu1 %3822 }
 0xf7d   : > { %v3824_v18 = vmul.f32 0.03125, %v3823_v17 }
 0xf7f   : > { %v3825_v19 = vsub.f32 %v12921_v14, %v3824_v18 }
 0xf81   : > { %v3826_v20 = vmul.f32 %v3825_v19, %v3825_v19 }
 0xf83   : > { %v3827_v12 = vsel %vm1846_vm1, %v3826_v20, 0.0 }
 0xf84   : > { %3828 = vadd.xlane.f32.xlu1 %v3827_v12 }
0x1011   : > { %v3829_v27 = vpop.xlane.xlu1 %3828 }
0x1012   : > { %v3830_v28 = vmul.f32 0.03125, %v3829_v27 }
0x1014   : > { %v3831_v29 = vadd.f32 1e-05, %v3830_v28 }
0x1016   : > { %11444 = vrsqrt.f32 %v3831_v29 }
0x1020   : > { %v11445_v63 = vpop.eup %11444 }
0x1021   : > { %v3833_v31 = vmul.f32 %v11445_v63, %v3825_v19 }
0x1023   : > { %v3841_v33 = vmul.f32 %v9891_v30, %v3833_v31 }
0x1025   : > { %v3849_v34 = vadd.f32 %v9892_v32, %v3841_v33 }
0x1027   : > { %10455 = vmatmul.mubr.msk.f32.vlgmr.msra.gmra.mrb[24].mxu0 %vm1846_vm1, %v3849_v34 }
0x1028   : > { %10469 = vmatprep.mubr.msk.f32.mxu0 %vm12087_vm0, %v12088_v1 }
0x10fa   : > { %v3923_v35 = vpop.f32.mrb[24].mxu0 }
0x10fb   : > { %3927 = vst.msk [vmem:[#allocation3] sm:$0xff] %vm2040_vm2, %v3923_v35  ;;  %v10456_v36 = vpop.f32.mrb[25].mxu0 }
0x1102   : > { %v12939_v38 = vld [vmem:[#allocation3] sm:$0xff] }
0x1103   : > { %4099 = vrot.lane.b32.xlu0 %v12939_v38, %s13802_s26  ;;  %3930 = vrot.lane.b32.xlu1 %v12939_v38, %s13804_s18  ;;  %s13963_s26 = smov 80   ;;  %s13964_s18 = smov 108  }
0x1107   : > { %4097 = vrot.lane.b32.xlu0 %v12939_v38, %s13957_s7  ;;  %4270 = vrot.lane.b32.xlu1 %v12939_v38, %s13958_s16 }
0x110b   : > { %4272 = vrot.lane.b32.xlu0 %v12939_v38, %s13959_s11  ;;  %4443 = vrot.lane.b32.xlu1 %v12939_v38, %s13960_s1 }
0x110f   : > { %4445 = vrot.lane.b32.xlu0 %v12939_v38, %s13961_s2  ;;  %4616 = vrot.lane.b32.xlu1 %v12939_v38, %s13962_s3 }
0x1113   : > { %4618 = vrot.lane.b32.xlu0 %v12939_v38, %s13963_s26  ;;  %4789 = vrot.lane.b32.xlu1 %v12939_v38, %s13964_s18 }
0x1117   : > { %4791 = vrot.lane.b32.xlu0 %v12939_v38, %s13965_s4  ;;  %4962 = vrot.lane.b32.xlu1 %v12939_v38, %s13966_s5 }
0x111b   : > { %4964 = vrot.lane.b32.xlu0 %v12939_v38, %s13967_s6  ;;  %5135 = vrot.lane.b32.xlu1 %v12939_v38, %s13968_s8 }
0x111f   : > { %5137 = vrot.lane.b32.xlu0 %v12939_v38, %s13969_s9  ;;  %4017 = vrot.lane.b32.xlu1 %v12939_v38, %s13970_s12 }
0x1123   : > { %4359 = vrot.lane.b32.xlu1 %v12939_v38, %s13971_s13 }
0x1127   : > { %4532 = vrot.lane.b32.xlu1 %v12939_v38, %s13972_s17 }
0x112b   : > { %4705 = vrot.lane.b32.xlu1 %v12939_v38, %s13973_s19 }
0x1175   : > { %v4100_v39 = vpop.permute.xlu0 %4099  ;;  %v3931_v40 = vpop.permute.xlu1 %3930 }
0x1176   : > { %10458 = vmatpush3.xpose.msk.msra.mxu1 %vm2046_vm3, %v3931_v40  ;;  %10468 = vmatpush3.xpose.msk.msra.mxu0 %vm2046_vm3, %v4100_v39 }
0x1177   : > { %10477 = vmatprep.subr.mxu0 %v12088_v1  ;;  %10462 = vmatprep.subr.mxu1 %v12088_v1 }
0x1179   : > { %v4098_v41 = vpop.permute.xlu0 %4097  ;;  %10460 = vmatmul.mubr.msk.f32.vlgmr.msra.gmra.mrb[20].mxu1 %vm2046_vm3, %v12939_v38  ;;  %v4271_v42 = vpop.permute.xlu1 %4270 }
0x117a   : > { %10470 = vmatmul.mubr.msk.f32.vlgmr.msra.gmra.mrb[26].mxu0 %vm2046_vm3, %v4098_v41  ;;  %10464 = vmatprep.mubr.msk.f32.mxu1 %vm12087_vm0, %v12088_v1 }
0x117b   : > { %10479 = vmatprep.mubr.msk.f32.mxu0 %vm12087_vm0, %v12088_v1 }
0x117d   : > { %v4273_v43 = vpop.permute.xlu0 %4272  ;;  %v4444_v44 = vpop.permute.xlu1 %4443 }
0x117e   : > { %10478 = vmatpush3.xpose.msk.msra.mxu0 %vm2046_vm3, %v4273_v43 }
0x117f   : > { %10487 = vmatprep.subr.mxu0 %v12088_v1 }
0x1181   : > { %v4446_v45 = vpop.permute.xlu0 %4445  ;;  %10480 = vmatmul.mubr.msk.f32.vlgmr.msra.gmra.mrb[28].mxu0 %vm2046_vm3, %v4271_v42  ;;  %v4617_v46 = vpop.permute.xlu1 %4616 }
0x1182   : > { %10488 = vmatpush3.xpose.msk.msra.mxu0 %vm2046_vm3, %v4446_v45  ;;  %10489 = vmatprep.mubr.msk.f32.mxu0 %vm12087_vm0, %v12088_v1 }
0x1183   : > { %10497 = vmatprep.subr.mxu0 %v12088_v1 }
0x1185   : > { %v4619_v47 = vpop.permute.xlu0 %4618  ;;  %10490 = vmatmul.mubr.msk.f32.vlgmr.msra.gmra.mrb[30].mxu0 %vm2046_vm3, %v4444_v44  ;;  %v4790_v37 = vpop.permute.xlu1 %4789 }
0x1186   : > { %10498 = vmatpush3.xpose.msk.msra.mxu0 %vm2046_vm3, %v4619_v47  ;;  %10499 = vmatprep.mubr.msk.f32.mxu0 %vm12087_vm0, %v12088_v1 }
0x1187   : > { %10507 = vmatprep.subr.mxu0 %v12088_v1 }
0x1189   : > { %v4792_v48 = vpop.permute.xlu0 %4791  ;;  %10500 = vmatmul.mubr.msk.f32.vlgmr.msra.gmra.mrb[32].mxu0 %vm2046_vm3, %v4617_v46  ;;  %v4963_v49 = vpop.permute.xlu1 %4962 }
0x118a   : > { %10508 = vmatpush3.xpose.msk.msra.mxu0 %vm2046_vm3, %v4792_v48  ;;  %10509 = vmatprep.mubr.msk.f32.mxu0 %vm12087_vm0, %v12088_v1 }
0x118b   : > { %10517 = vmatprep.subr.mxu0 %v12088_v1 }
0x118d   : > { %v4965_v50 = vpop.permute.xlu0 %4964  ;;  %10510 = vmatmul.mubr.msk.f32.vlgmr.msra.gmra.mrb[34].mxu0 %vm2046_vm3, %v4790_v37  ;;  %v5136_v51 = vpop.permute.xlu1 %5135 }
0x118e   : > { %10518 = vmatpush3.xpose.msk.msra.mxu0 %vm2046_vm3, %v4965_v50  ;;  %10519 = vmatprep.mubr.msk.f32.mxu0 %vm12087_vm0, %v12088_v1 }
0x118f   : > { %10527 = vmatprep.subr.mxu0 %v12088_v1 }
0x1191   : > { %v5138_v52 = vpop.permute.xlu0 %5137  ;;  %10520 = vmatmul.mubr.msk.f32.vlgmr.msra.gmra.mrb[36].mxu0 %vm2046_vm3, %v4963_v49  ;;  %v4018_v53 = vpop.permute.xlu1 %4017 }
0x1192   : > { %10463 = vmatpush3.msra.mxu1 %v4018_v53  ;;  %10528 = vmatpush3.xpose.msk.msra.mxu0 %vm2046_vm3, %v5138_v52 }
0x1193   : > { %10529 = vmatprep.mubr.msk.f32.mxu0 %vm12087_vm0, %v12088_v1  ;;  %10472 = vmatprep.subr.mxu1 %v12088_v1 }
0x1194   : > { %10977 = vmatprep.subr.bf16.mxu0 %v12086_v0 }
0x1195   : > { %10530 = vmatmul.mubr.msk.f32.vlgmr.msra.gmra.mrb[38].mxu0 %vm2046_vm3, %v5136_v51  ;;  %v4360_v26 = vpop.permute.xlu1 %4359 }
0x1196   : > { %10545 = vmatprep.mubr.msk.f32.mxu0 %vm12087_vm0, %v12088_v1 }
0x1199   : > { %v4533_v27 = vpop.permute.xlu1 %4532 }
0x119d   : > { %v4706_v28 = vpop.permute.xlu1 %4705 }
0x124c   : > { %v4002_v54 = vpop.f32.mrb[20].mxu1 }
0x124d   : > { %v4006_v55 = vmul.f32 0.5, %v4002_v54  ;;  %v10461_v56 = vpop.f32.mrb[21].mxu1  ;;  %v4171_v57 = vpop.f32.mrb[26].mxu0 }
0x124e   : > { %v4175_v59 = vmul.f32 0.5, %v4171_v57  ;;  %v10471_v60 = vpop.f32.mrb[27].mxu0 }
0x124f   : > { %v4007_v61 = vsel %vm2122_vm4, %v4006_v55, -inf }
0x1250   : > { %4008 = vmax.xlane.f32.xlu0 %v4007_v61  ;;  %v4176_v62 = vsel %vm2122_vm4, %v4175_v59, -inf }
0x1251   : > { %4177 = vmax.xlane.f32.xlu1 %v4176_v62 }
0x1254   : > { %v4344_v2 = vpop.f32.mrb[28].mxu0 }
0x1255   : > { %v10481_v3 = vpop.f32.mrb[29].mxu0  ;;  %v4348_v15 = vmul.f32 0.5, %v4344_v2 }
0x1257   : > { %v4349_v18 = vsel %vm2122_vm4, %v4348_v15, -inf }
0x1258   : > { %v4517_v4 = vpop.f32.mrb[30].mxu0 }
0x1259   : > { %v10491_v5 = vpop.f32.mrb[31].mxu0  ;;  %v4521_v17 = vmul.f32 0.5, %v4517_v4 }
0x125b   : > { %v4522_v12 = vsel %vm2122_vm4, %v4521_v17, -inf }
0x125c   : > { %v4690_v6 = vpop.f32.mrb[32].mxu0 }
0x125d   : > { %v10501_v7 = vpop.f32.mrb[33].mxu0  ;;  %v4694_v20 = vmul.f32 0.5, %v4690_v6 }
0x125f   : > { %v4695_v22 = vsel %vm2122_vm4, %v4694_v20, -inf }
0x1260   : > { %v4863_v8 = vpop.f32.mrb[34].mxu0 }
0x1261   : > { %v10511_v9 = vpop.f32.mrb[35].mxu0  ;;  %v4867_v16 = vmul.f32 0.5, %v4863_v8 }
0x1262   : > { %4878 = vrot.lane.b32.xlu1 %v12939_v38, %s13974_s20 }
0x1263   : > { %v4868_v19 = vsel %vm2122_vm4, %v4867_v16, -inf }
0x1264   : > { %v5036_v10 = vpop.f32.mrb[36].mxu0 }
0x1265   : > { %v10521_v58 = vpop.f32.mrb[37].mxu0  ;;  %v5040_v21 = vmul.f32 0.5, %v5036_v10 }
0x1266   : > { %4186 = vrot.lane.b32.xlu0 %v12939_v38, %s13975_s21 }
0x1267   : > { %v5041_v24 = vsel %vm2122_vm4, %v5040_v21, -inf }
0x1268   : > { %v5209_v11 = vpop.f32.mrb[38].mxu0 }
0x1269   : > { %v10531_v13 = vpop.f32.mrb[39].mxu0  ;;  %v5213_v23 = vmul.f32 0.5, %v5209_v11 }
0x126b   : > { %v5214_v25 = vsel %vm2122_vm4, %v5213_v23, -inf }
0x1285   : > { %4350 = vmax.xlane.f32.xlu0 %v4349_v18 }
0x1286   : > { %4869 = vmax.xlane.f32.xlu1 %v4868_v19 }
0x1289   : > { %4523 = vmax.xlane.f32.xlu0 %v4522_v12 }
0x128d   : > { %4696 = vmax.xlane.f32.xlu0 %v4695_v22 }
0x1291   : > { %5042 = vmax.xlane.f32.xlu0 %v5041_v24 }
0x1295   : > { %5215 = vmax.xlane.f32.xlu0 %v5214_v25 }
0x1297   : > { %5224 = vrot.lane.b32.xlu1 %v12939_v38, %s13976_s22 }
0x12ab   : > { %5051 = vrot.lane.b32.xlu0 %v12939_v38, %s13977_s23 }
0x12dd   : > { %v4009_v29 = vpop.xlane.xlu0 %4008 }
0x12de   : > { %v4010_v63 = vsub.f32 %v4006_v55, %v4009_v29  ;;  %v4178_v30 = vpop.xlane.xlu1 %4177 }
0x12df   : > { %v4179_v31 = vsub.f32 %v4175_v59, %v4178_v30 }
0x12e0   : > { %v4011_v32 = vmul.f32 1.442695, %v4010_v63 }
0x12e1   : > { %v4180_v33 = vmul.f32 1.442695, %v4179_v31  ;;  %v4187_v36 = vpop.permute.xlu0 %4186 }
0x12e2   : > { %11446 = vpow2.f32 %v4011_v32  ;;  %v4879_v40 = vpop.permute.xlu1 %4878 }
0x12e3   : > { %11448 = vpow2.f32 %v4180_v33 }
0x12ec   : > { %v13037_v34 = vpop.eup %11446 }
0x12ed   : > { %v11449_v35 = vpop.eup %11448  ;;  %10465 = vmatmul.mubr.msk.f32.vlgmr.msra.gmra.mrb[22].mxu1 %vm2122_vm4, %v13037_v34  ;;  %v4013_v10 = vsel %vm2122_vm4, %v13037_v34, 0.0 }
0x12ee   : > { %10473 = vmatpush3.msra.mxu1 %v4187_v36  ;;  %v4182_v38 = vsel %vm2122_vm4, %v11449_v35, 0.0  ;;  %10474 = vmatprep.mubr.msk.f32.mxu1 %vm12087_vm0, %v12088_v1 }
0x12ef   : > { %4183 = vadd.xlane.f32.xlu0 %v4182_v38  ;;  %10482 = vmatprep.subr.mxu1 %v12088_v1 }
0x12f1   : > { %10475 = vmatmul.mubr.msk.f32.vlgmr.msra.gmra.mrb[24].mxu1 %vm2122_vm4, %v11449_v35 }
0x12f2   : > { %10483 = vmatpush3.msra.mxu1 %v4360_v26  ;;  %10484 = vmatprep.mubr.msk.f32.mxu1 %vm12087_vm0, %v12088_v1 }
0x12f3   : > { %10492 = vmatprep.subr.mxu1 %v12088_v1 }
0x1312   : > { %v4351_v39 = vpop.xlane.xlu0 %4350 }
0x1313   : > { %v4352_v41 = vsub.f32 %v4348_v15, %v4351_v39  ;;  %v4870_v44 = vpop.xlane.xlu1 %4869 }
0x1314   : > { %v4871_v47 = vsub.f32 %v4867_v16, %v4870_v44  ;;  %v5310_v44 = vld [vmem:[%s13979_s25 + $0x18] sm:$0xff] }
0x1315   : > { %v4353_v42 = vmul.f32 1.442695, %v4352_v41  ;;  %v5308_v41 = vld [vmem:[%s13979_s25 + $0x8] sm:$0xff] }
0x1316   : > { %v4524_v43 = vpop.xlane.xlu0 %4523  ;;  %v4872_v50 = vmul.f32 1.442695, %v4871_v47 }
0x1317   : > { %11450 = vpow2.f32 %v4353_v42  ;;  %v4525_v45 = vsub.f32 %v4521_v17, %v4524_v43  ;;  %v5225_v9 = vpop.permute.xlu1 %5224  ;;  %v5309_v43 = vld [vmem:[%s13979_s25 + $0x10] sm:$0xff] }
0x1318   : > { %v10981_v47 = vpack.c.bf16 %v5310_v44, %v5309_v43 }
0x1319   : > { %v4526_v46 = vmul.f32 1.442695, %v4525_v45 }
0x131a   : > { %v4697_v37 = vpop.xlane.xlu0 %4696 }
0x131b   : > { %11452 = vpow2.f32 %v4526_v46  ;;  %v4698_v48 = vsub.f32 %v4694_v20, %v4697_v37 }
0x131d   : > { %v4699_v49 = vmul.f32 1.442695, %v4698_v48 }
0x131e   : > { %v5043_v51 = vpop.xlane.xlu0 %5042 }
0x131f   : > { %11454 = vpow2.f32 %v4699_v49  ;;  %v5044_v52 = vsub.f32 %v5040_v21, %v5043_v51 }
0x1320   : > { %11456 = vpow2.f32 %v4872_v50 }
0x1321   : > { %v11451_v53 = vpop.eup %11450  ;;  %v5045_v54 = vmul.f32 1.442695, %v5044_v52 }
0x1322   : > { %10485 = vmatmul.mubr.msk.f32.vlgmr.msra.gmra.mrb[26].mxu1 %vm2122_vm4, %v11451_v53  ;;  %v5216_v55 = vpop.xlane.xlu0 %5215  ;;  %v4355_v56 = vsel %vm2122_vm4, %v11451_v53, 0.0 }
0x1323   : > { %11458 = vpow2.f32 %v5045_v54  ;;  %10493 = vmatpush3.msra.mxu1 %v4533_v27  ;;  %v5217_v57 = vsub.f32 %v5213_v23, %v5216_v55  ;;  %4356 = vadd.xlane.f32.xlu1 %v4355_v56 }
0x1324   : > { %10494 = vmatprep.mubr.msk.f32.mxu1 %vm12087_vm0, %v12088_v1  ;;  %10502 = vmatprep.subr.mxu1 %v12088_v1 }
0x1325   : > { %v11453_v59 = vpop.eup %11452  ;;  %v5218_v60 = vmul.f32 1.442695, %v5217_v57 }
0x1326   : > { %10495 = vmatmul.mubr.msk.f32.vlgmr.msra.gmra.mrb[28].mxu1 %vm2122_vm4, %v11453_v59  ;;  %v4528_v61 = vsel %vm2122_vm4, %v11453_v59, 0.0  ;;  %v5052_v5 = vpop.permute.xlu0 %5051 }
0x1327   : > { %11460 = vpow2.f32 %v5218_v60  ;;  %10503 = vmatpush3.msra.mxu1 %v4706_v28  ;;  %4529 = vadd.xlane.f32.xlu0 %v4528_v61 }
0x1328   : > { %10504 = vmatprep.mubr.msk.f32.mxu1 %vm12087_vm0, %v12088_v1  ;;  %10512 = vmatprep.subr.mxu1 %v12088_v1 }
0x1329   : > { %v11455_v62 = vpop.eup %11454 }
0x132a   : > { %10505 = vmatmul.mubr.msk.f32.vlgmr.msra.gmra.mrb[30].mxu1 %vm2122_vm4, %v11455_v62  ;;  %v4701_v2 = vsel %vm2122_vm4, %v11455_v62, 0.0  ;;  %v11457_v3 = vpop.eup %11456 }
0x132b   : > { %10513 = vmatpush3.msra.mxu1 %v4879_v40  ;;  %4702 = vadd.xlane.f32.xlu0 %v4701_v2  ;;  %v4874_v7 = vsel %vm2122_vm4, %v11457_v3, 0.0  ;;  %v5307_v40 = vld [vmem:[%s13979_s25] sm:$0xff]  ;;  %s13984_s25 = smov 24  }
0x132c   : > { %10514 = vmatprep.mubr.msk.f32.mxu1 %vm12087_vm0, %v12088_v1  ;;  %10522 = vmatprep.subr.mxu1 %v12088_v1  ;;  %v10978_v42 = vpack.c.bf16 %v5308_v41, %v5307_v40 }
0x132d   : > { %v11459_v4 = vpop.eup %11458 }
0x132e   : > { %10515 = vmatmul.mubr.msk.f32.vlgmr.msra.gmra.mrb[32].mxu1 %vm2122_vm4, %v11457_v3  ;;  %v5047_v6 = vsel %vm2122_vm4, %v11459_v4, 0.0  ;;  %10979 = vmatpush3.bf16.msra.mxu0 %v10978_v42 }
0x132f   : > { %10523 = vmatpush3.msra.mxu1 %v5052_v5  ;;  %5048 = vadd.xlane.f32.xlu1 %v5047_v6  ;;  %v9918_v5 = vld [vmem:[%s13986_s0] ss:$0 sm:$0xff]  ;;  %s13990_s0 = sld [smem:[#allocation57_spill]] }
0x1330   : > { %4875 = vadd.xlane.f32.xlu0 %v4874_v7  ;;  %10524 = vmatprep.mubr.msk.f32.mxu1 %vm12087_vm0, %v12088_v1 }
0x1331   : > { %v11461_v8 = vpop.eup %11460  ;;  %10532 = vmatprep.subr.mxu1 %v12088_v1  ;;  %10980 = vmatprep.subr.bf16.mxu0 %v12086_v0 }
0x1332   : > { %10525 = vmatmul.mubr.msk.f32.vlgmr.msra.gmra.mrb[34].mxu1 %vm2122_vm4, %v11459_v4  ;;  %v5220_v58 = vsel %vm2122_vm4, %v11461_v8, 0.0  ;;  %10982 = vmatpush3.bf16.msra.mxu0 %v10981_v47 }
0x1333   : > { %10533 = vmatpush3.msra.mxu1 %v5225_v9  ;;  %4014 = vadd.xlane.f32.xlu1 %v4013_v10 }
0x1334   : > { %5221 = vadd.xlane.f32.xlu0 %v5220_v58  ;;  %10534 = vmatprep.mubr.msk.f32.mxu1 %vm12087_vm0, %v12088_v1 }
0x1335   : > { %10983 = vmatprep.subr.bf16.mxu1 %v12086_v0  ;;  %10989 = vmatprep.subr.bf16.mxu0 %v12086_v0 }
0x1336   : > { %10535 = vmatmul.mubr.msk.f32.vlgmr.msra.gmra.mrb[36].mxu1 %vm2122_vm4, %v11461_v8 }
0x1337   : > { %10556 = vmatprep.mubr.msk.f32.mxu1 %vm12087_vm0, %v12088_v1 }
0x137c   : > { %v4184_v11 = vpop.xlane.xlu0 %4183 }
0x137d   : > { %11462 = vrcp.f32 %v4184_v11 }
0x1387   : > { %v11463_v19 = vpop.eup %11462 }
0x13b0   : > { %v4357_v13 = vpop.xlane.xlu1 %4356 }
0x13b4   : > { %v4530_v24 = vpop.xlane.xlu0 %4529 }
0x13b8   : > { %v4703_v25 = vpop.xlane.xlu0 %4702 }
0x13bc   : > { %v5049_v15 = vpop.xlane.xlu1 %5048 }
0x13bd   : > { %v4876_v26 = vpop.xlane.xlu0 %4875 }
0x13c0   : > { %v4089_v16 = vpop.f32.mrb[22].mxu1  ;;  %v4015_v17 = vpop.xlane.xlu1 %4014 }
0x13c1   : > { %11464 = vrcp.f32 %v4015_v17  ;;  %v10466_v18 = vpop.f32.mrb[23].mxu1  ;;  %v5222_v34 = vpop.xlane.xlu0 %5221  ;;  %v5421_v17 = vld [vmem:[%s13987_s10] sm:$0xff]  ;;  %s13992_s10 = sld [smem:[#allocation59_spill]] }
0x13c2   : > { %11466 = vrcp.f32 %v4357_v13  ;;  %v5422_v18 = vld [vmem:[%s13988_s29 + $0x8] sm:$0xff] }
0x13c3   : > { %11468 = vrcp.f32 %v4530_v24 }
0x13c4   : > { %v4258_v20 = vpop.f32.mrb[24].mxu1  ;;  %11470 = vrcp.f32 %v4703_v25 }
0x13c5   : > { %v4262_v12 = vmul.f32 %v11463_v19, %v4258_v20  ;;  %v10476_v21 = vpop.f32.mrb[25].mxu1  ;;  %11472 = vrcp.f32 %v4876_v26  ;;  %v10984_v19 = vpack.c.bf16 %v5422_v18, %v5421_v17  ;;  %v5423_v20 = vld [vmem:[%s13988_s29 + $0x10] sm:$0xff] }
0x13c6   : > { %11474 = vrcp.f32 %v5049_v15 }
0x13c7   : > { %4264 = vrot.lane.b32.xlu0 %v4262_v12, %s13978_s24  ;;  %11476 = vrcp.f32 %v5222_v34  ;;  %10985 = vmatpush3.bf16.msra.mxu1 %v10984_v19  ;;  %v5424_v12 = vld [vmem:[%s13988_s29 + $0x18] sm:$0xff]  ;;  %v9922_v42 = vld [vmem:[%s13992_s10] ss:$0 sm:$0xff]  ;;  %s13995_s10 = sld [smem:[#allocation63_spill]]  ;;  %s14004_s29 = sld [smem:[#allocation68_spill]] }
0x13c8   : > { %10986 = vmatprep.subr.bf16.mxu1 %v12086_v0 }
0x13cb   : > { %v11465_v22 = vpop.eup %11464 }
0x13cc   : > { %v4093_v23 = vmul.f32 %v11465_v22, %v4089_v16  ;;  %v11467_v27 = vpop.eup %11466 }
0x13cd   : > { %v11469_v30 = vpop.eup %11468  ;;  %v9926_v19 = vld [vmem:[%s13995_s10] ss:$0 sm:$0xff]  ;;  %s13998_s10 = sld [smem:[#allocation65_spill]] }
0x13ce   : > { %4094 = vst.msk [vmem:[#allocation4] sm:$0xff] %vm2046_vm3, %v4093_v23  ;;  %v11471_v35 = vpop.eup %11470 }
0x13cf   : > { %v11473_v45 = vpop.eup %11472 }
0x13d0   : > { %v11475_v49 = vpop.eup %11474 }
0x13d1   : > { %v11477_v53 = vpop.eup %11476 }
0x13f5   : > { %v4431_v28 = vpop.f32.mrb[26].mxu1 }
0x13f6   : > { %v4435_v29 = vmul.f32 %v11467_v27, %v4431_v28  ;;  %v10486_v63 = vpop.f32.mrb[27].mxu1  ;;  %v9921_v27 = vld [vmem:[%s13990_s0] ss:$0 sm:$0xff]  ;;  %s13994_s0 = sld [smem:[#allocation61_spill]] }
0x13f8   : > { %4437 = vrot.lane.b32.xlu1 %v4435_v29, %s13980_s27 }
0x13f9   : > { %v4604_v31 = vpop.f32.mrb[28].mxu1 }
0x13fa   : > { %v4608_v32 = vmul.f32 %v11469_v30, %v4604_v31  ;;  %v10496_v33 = vpop.f32.mrb[29].mxu1 }
0x13fc   : > { %4610 = vrot.lane.b32.xlu1 %v4608_v32, %s13981_s30 }
0x13fd   : > { %v4777_v36 = vpop.f32.mrb[30].mxu1 }
0x13fe   : > { %v4781_v38 = vmul.f32 %v11471_v35, %v4777_v36  ;;  %v10506_v39 = vpop.f32.mrb[31].mxu1 }
0x1400   : > { %4783 = vrot.lane.b32.xlu1 %v4781_v38, %s13982_s15 }
0x1401   : > { %v4950_v46 = vpop.f32.mrb[32].mxu1 }
0x1402   : > { %v4954_v37 = vmul.f32 %v11473_v45, %v4950_v46  ;;  %v10516_v48 = vpop.f32.mrb[33].mxu1 }
0x1404   : > { %4956 = vrot.lane.b32.xlu0 %v4954_v37, %s13983_s28 }
0x1405   : > { %v5123_v50 = vpop.f32.mrb[34].mxu1 }
0x1406   : > { %v5127_v51 = vmul.f32 %v11475_v49, %v5123_v50  ;;  %v10526_v52 = vpop.f32.mrb[35].mxu1 }
0x1408   : > { %5129 = vrot.lane.b32.xlu1 %v5127_v51, %s13984_s25  ;;  %s13991_s25 = sld [smem:[#allocation60_spill]] }
0x1409   : > { %v5296_v54 = vpop.f32.mrb[36].mxu1 }
0x140a   : > { %v5300_v55 = vmul.f32 %v11477_v53, %v5296_v54  ;;  %v10536_v56 = vpop.f32.mrb[37].mxu1 }
0x140c   : > { %5302 = vrot.lane.b32.xlu0 %v5300_v55, %s13985_s14  ;;  %s13989_s14 = sld [smem:[#allocation56_spill]] }
0x140e   : > { %v5514_v63 = vld [vmem:[%s13991_s25] sm:$0xff]  ;;  %v5515_v30 = vld [vmem:[%s13991_s25 + $0x8] sm:$0xff]  ;;  %v5516_v32 = vld [vmem:[%s13991_s25 + $0x10] sm:$0xff] }
0x140f   : > { %v10990_v31 = vpack.c.bf16 %v5515_v30, %v5514_v63  ;;  %v5517_v33 = vld [vmem:[%s13991_s25 + $0x18] sm:$0xff]  ;;  %v5518_v35 = vld [vmem:[%s13991_s25 + $0x20] sm:$0xff]  ;;  %v5519_v36 = vld [vmem:[%s13991_s25 + $0x28] sm:$0xff] }
0x1410   : > { %v10993_v34 = vpack.c.bf16 %v5517_v33, %v5516_v32  ;;  %v10996_v38 = vpack.c.bf16 %v5519_v36, %v5518_v35  ;;  %v5520_v39 = vld [vmem:[%s13991_s25 + $0x30] sm:$0xff]  ;;  %v5521_v40 = vld [vmem:[%s13991_s25 + $0x38] sm:$0xff]  ;;  %s13996_s25 = sld [smem:[#allocation66_spill]] }
0x1411   : > { %v10999_v41 = vpack.c.bf16 %v5521_v40, %v5520_v39  ;;  %v9929_v39 = vld [vmem:[%s13998_s10] ss:$0 sm:$0xff]  ;;  %s14002_s10 = smov 24  }
0x1412   : > { %v9920_v25 = vld [vmem:[%s13989_s14] ss:$0 sm:$0xff]  ;;  %s13993_s14 = sld [smem:[#allocation62_spill]] }
0x1416   : > { %v5732_v63 = vld [vmem:[%s13996_s25 + $0x10] sm:$0xff]  ;;  %v5733_v30 = vld [vmem:[%s13996_s25 + $0x18] sm:$0xff] }
0x1418   : > { %v5609_v54 = vld [vmem:[%s13993_s14] sm:$0xff]  ;;  %v5610_v55 = vld [vmem:[%s13993_s14 + $0x8] sm:$0xff]  ;;  %v5611_v56 = vld [vmem:[%s13993_s14 + $0x10] sm:$0xff] }
0x1439   : > { %v4265_v57 = vpop.permute.xlu0 %4264 }
0x143a   : > { %4267 = vst.msk [vmem:[#allocation4] sm:$0xff] %vm2383_vm5, %v4265_v57  ;;  %v11002_v57 = vpack.c.bf16 %v5610_v55, %v5609_v54 }
0x146a   : > { %v4438_v59 = vpop.permute.xlu1 %4437 }
0x146b   : > { %4440 = vst.msk [vmem:[#allocation4] sm:$0xff] %vm2557_vm6, %v4438_v59  ;;  %v5612_v59 = vld [vmem:[%s13993_s14 + $0x18] sm:$0xff] }
0x146e   : > { %v4611_v60 = vpop.permute.xlu1 %4610 }
0x146f   : > { %4613 = vst.msk [vmem:[#allocation4] sm:$0xff] %vm2731_vm7, %v4611_v60  ;;  %v11005_v60 = vpack.c.bf16 %v5612_v59, %v5611_v56 }
0x1472   : > { %v4784_v61 = vpop.permute.xlu1 %4783 }
0x1473   : > { %4786 = vst.msk [vmem:[#allocation4] sm:$0xff] %vm2905_vm8, %v4784_v61  ;;  %v5613_v61 = vld [vmem:[%s13993_s14 + $0x20] sm:$0xff] }
0x1476   : > { %v4957_v62 = vpop.permute.xlu0 %4956 }
0x1477   : > { %4959 = vst.msk [vmem:[#allocation4] sm:$0xff] %vm3079_vm9, %v4957_v62  ;;  %v5614_v62 = vld [vmem:[%s13993_s14 + $0x28] sm:$0xff] }
0x147a   : > { %v5130_v2 = vpop.permute.xlu1 %5129 }
0x147b   : > { %5132 = vst.msk [vmem:[#allocation4] sm:$0xff] %vm3253_vm10, %v5130_v2  ;;  %v11008_v2 = vpack.c.bf16 %v5614_v62, %v5613_v61 }
0x147e   : > { %v5303_v3 = vpop.permute.xlu0 %5302 }
0x147f   : > { %5305 = vst.msk [vmem:[#allocation4] sm:$0xff] %vm3427_vm11, %v5303_v3  ;;  %v5615_v3 = vld [vmem:[%s13993_s14 + $0x30] sm:$0xff] }
0x1486   : > { %v5306_v4 = vld [vmem:[#allocation4] sm:$0xff] }
0x1487   : > { %10546 = vmatmul.mubr.msk.f32.vlgmr.msra.gmra.mrb[40].mxu0 %vm1846_vm1, %v5306_v4  ;;  %v5616_v4 = vld [vmem:[%s13993_s14 + $0x38] sm:$0xff] }
0x1488   : > { %10575 = vmatprep.mubr.msk.f32.mxu0 %vm12087_vm0, %v12088_v1  ;;  %10991 = vmatpush3.bf16.msra.mxu0 %v10990_v31  ;;  %v11023_v31 = vpack.c.bf16 %v5733_v30, %v5732_v63 }
0x1489   : > { %10992 = vmatprep.subr.bf16.mxu0 %v12086_v0 }
0x148c   : > { %10994 = vmatpush3.bf16.msra.mxu0 %v10993_v34 }
0x148d   : > { %10995 = vmatprep.subr.bf16.mxu0 %v12086_v0 }
0x1490   : > { %10997 = vmatpush3.bf16.msra.mxu0 %v10996_v38 }
0x1491   : > { %10998 = vmatprep.subr.bf16.mxu0 %v12086_v0 }
0x1494   : > { %11000 = vmatpush3.bf16.msra.mxu0 %v10999_v41 }
0x1495   : > { %11019 = vmatprep.subr.bf16.mxu0 %v12086_v0 }
0x155a   : > { %v5387_v6 = vpop.f32.mrb[40].mxu0 }
0x155b   : > { %v5388_v7 = vadd.f32 %v9918_v5, %v5387_v6  ;;  %v10547_v8 = vpop.f32.mrb[41].mxu0  ;;  %v11011_v5 = vpack.c.bf16 %v5616_v4, %v5615_v3  ;;  %v5617_v6 = vld [vmem:[%s13993_s14 + $0x40] sm:$0xff] }
0x155d   : > { %v5391_v9 = vadd.f32 %v5388_v7, %v12921_v14  ;;  %v10987_v14 = vpack.c.bf16 %v5424_v12, %v5423_v20  ;;  %v5618_v7 = vld [vmem:[%s13993_s14 + $0x48] sm:$0xff] }
0x155e   : > { %v11014_v8 = vpack.c.bf16 %v5618_v7, %v5617_v6 }
0x155f   : > { %v5392_v10 = vsel %vm1846_vm1, %v5391_v9, 0.0  ;;  %10988 = vmatpush3.bf16.msra.mxu1 %v10987_v14 }
0x1560   : > { %5393 = vadd.xlane.f32.xlu1 %v5392_v10  ;;  %11001 = vmatprep.subr.bf16.mxu1 %v12086_v0  ;;  %v5620_v10 = vld [vmem:[%s13993_s14 + $0x58] sm:$0xff] }
0x15ed   : > { %v5394_v58 = vpop.xlane.xlu1 %5393 }
0x15ee   : > { %v5395_v11 = vmul.f32 0.03125, %v5394_v58 }
0x15f0   : > { %v5396_v13 = vsub.f32 %v5391_v9, %v5395_v11  ;;  %v5619_v9 = vld [vmem:[%s13993_s14 + $0x50] sm:$0xff]  ;;  %v9924_v11 = vld [vmem:[%s13994_s0] ss:$0 sm:$0xff]  ;;  %s13997_s0 = sld [smem:[#allocation64_spill]]  ;;  %s13999_s14 = smov 92  }
0x15f1   : > { %v11017_v58 = vpack.c.bf16 %v5620_v10, %v5619_v9 }
0x15f2   : > { %v5397_v15 = vmul.f32 %v5396_v13, %v5396_v13 }
0x15f4   : > { %v5398_v16 = vsel %vm1846_vm1, %v5397_v15, 0.0 }
0x15f5   : > { %5399 = vadd.xlane.f32.xlu0 %v5398_v16 }
0x15f6   : > { %v9928_v36 = vld [vmem:[%s13997_s0] ss:$0 sm:$0xff]  ;;  %s14001_s0 = sld [smem:[#allocation67_spill]] }
0x1682   : > { %v5400_v21 = vpop.xlane.xlu0 %5399 }
0x1683   : > { %v5401_v22 = vmul.f32 0.03125, %v5400_v21 }
0x1685   : > { %v5402_v23 = vadd.f32 1e-05, %v5401_v22 }
0x1687   : > { %11478 = vrsqrt.f32 %v5402_v23 }
0x1691   : > { %v11479_v24 = vpop.eup %11478 }
0x1692   : > { %v5404_v26 = vmul.f32 %v11479_v24, %v5396_v13 }
0x1694   : > { %v5412_v28 = vmul.f32 %v9920_v25, %v5404_v26 }
0x1696   : > { %v5420_v29 = vadd.f32 %v9921_v27, %v5412_v28  ;;  %v5730_v27 = vld [vmem:[%s13996_s25] sm:$0xff]  ;;  %v5731_v28 = vld [vmem:[%s13996_s25 + $0x8] sm:$0xff]  ;;  %s14000_s25 = smov 96  }
0x1698   : > { %10557 = vmatmul.mubr.msk.f32.vlgmr.msra.gmra.mrb[38].mxu1 %vm1846_vm1, %v5420_v29  ;;  %v11020_v29 = vpack.c.bf16 %v5731_v28, %v5730_v27 }
0x1699   : > { %10602 = vmatprep.mubr.msk.f32.mxu1 %vm12087_vm0, %v12088_v1  ;;  %11003 = vmatpush3.bf16.msra.mxu1 %v11002_v57 }
0x169a   : > { %11004 = vmatprep.subr.bf16.mxu1 %v12086_v0 }
0x169d   : > { %11006 = vmatpush3.bf16.msra.mxu1 %v11005_v60 }
0x169e   : > { %11007 = vmatprep.subr.bf16.mxu1 %v12086_v0 }
0x16a1   : > { %11009 = vmatpush3.bf16.msra.mxu1 %v11008_v2 }
0x16a2   : > { %11010 = vmatprep.subr.bf16.mxu1 %v12086_v0 }
0x16a5   : > { %11012 = vmatpush3.bf16.msra.mxu1 %v11011_v5 }
0x16a6   : > { %11013 = vmatprep.subr.bf16.mxu1 %v12086_v0 }
0x16a9   : > { %11015 = vmatpush3.bf16.msra.mxu1 %v11014_v8 }
0x16aa   : > { %11016 = vmatprep.subr.bf16.mxu1 %v12086_v0 }
0x16ad   : > { %11018 = vmatpush3.bf16.msra.mxu1 %v11017_v58 }
0x16ae   : > { %10621 = vmatprep.subr.mxu1 %v12088_v1 }
0x176b   : > { %v5501_v43 = vpop.f32.mrb[38].mxu1 }
0x176c   : > { %v5502_v44 = vadd.f32 %v9922_v42, %v5501_v43  ;;  %v10558_v45 = vpop.f32.mrb[39].mxu1 }
0x176e   : > { %v5506_v46 = vmul.f32 0.044715, %v5502_v44  ;;  %v5505_v51 = vmul.f32 0.5, %v5502_v44 }
0x1770   : > { %v5507_v47 = vmul.f32 %v5506_v46, %v5502_v44 }
0x1772   : > { %v5508_v37 = vmul.f32 %v5507_v47, %v5502_v44 }
0x1774   : > { %v5509_v48 = vadd.f32 %v5508_v37, %v5502_v44 }
0x1776   : > { %v5510_v49 = vmul.f32 0.7978846, %v5509_v48 }
0x1778   : > { %11480 = vtanh.f32 %v5510_v49 }
0x1782   : > { %v11481_v50 = vpop.eup %11480 }
0x1783   : > { %v5512_v52 = vadd.f32 1.0, %v11481_v50 }
0x1785   : > { %v5513_v53 = vmul.f32 %v5512_v52, %v5505_v51 }
0x1787   : > { %10576 = vmatmul.mubr.msk.f32.vlgmr.msra.gmra.mrb[42].mxu0 %vm3652_vm12, %v5513_v53 }
0x1788   : > { %10613 = vmatprep.mubr.msk.f32.mxu0 %vm12087_vm0, %v12088_v1  ;;  %11021 = vmatpush3.bf16.msra.mxu0 %v11020_v29 }
0x1789   : > { %11022 = vmatprep.subr.bf16.mxu0 %v12086_v0 }
0x178c   : > { %11024 = vmatpush3.bf16.msra.mxu0 %v11023_v31 }
0x178d   : > { %10616 = vmatprep.subr.mxu0 %v12088_v1 }
0x185a   : > { %v5598_v13 = vpop.f32.mrb[42].mxu0 }
0x185b   : > { %v5599_v15 = vadd.f32 %v9924_v11, %v5598_v13  ;;  %v10577_v16 = vpop.f32.mrb[43].mxu0 }
0x185d   : > { %5603 = vrot.lane.b32.xlu0 %v5599_v15, %s13970_s12 }
0x18cf   : > { %v5604_v17 = vpop.permute.xlu0 %5603 }
0x18d0   : > { %5607 = vst.msk [vmem:[#allocation2] sm:$0xff] %vm5606_vm14, %v5604_v17 }
0x18d7   : > { %v5608_v18 = vld [vmem:[#allocation2] sm:$0xff] }
0x18d8   : > { %10603 = vmatmul.mubr.msk.f32.vlgmr.msra.gmra.mrb[40].mxu1 %vm2040_vm2, %v5608_v18 }
0x18d9   : > { %10623 = vmatprep.mubr.msk.f32.mxu1 %vm12087_vm0, %v12088_v1 }
0x19ab   : > { %v5697_v20 = vpop.f32.mrb[40].mxu1 }
0x19ac   : > { %v13159_v12 = vadd.f32 %v9926_v19, %v5697_v20  ;;  %v10604_v14 = vpop.f32.mrb[41].mxu1 }
0x19ae   : > { %v5701_v21 = vsel %vm1846_vm1, %v13159_v12, 0.0 }
0x19af   : > { %5702 = vadd.xlane.f32.xlu1 %v5701_v21 }
0x1a3c   : > { %v5703_v22 = vpop.xlane.xlu1 %5702 }
0x1a3d   : > { %v5704_v23 = vmul.f32 0.03125, %v5703_v22 }
0x1a3f   : > { %v5705_v24 = vsub.f32 %v13159_v12, %v5704_v23 }
0x1a41   : > { %v5706_v25 = vmul.f32 %v5705_v24, %v5705_v24 }
0x1a43   : > { %v5707_v26 = vsel %vm1846_vm1, %v5706_v25, 0.0 }
0x1a44   : > { %5708 = vadd.xlane.f32.xlu1 %v5707_v26 }
0x1ad1   : > { %v5709_v32 = vpop.xlane.xlu1 %5708 }
0x1ad2   : > { %v5710_v33 = vmul.f32 0.03125, %v5709_v32 }
0x1ad4   : > { %v5711_v34 = vadd.f32 1e-05, %v5710_v33 }
0x1ad6   : > { %11482 = vrsqrt.f32 %v5711_v34 }
0x1ae0   : > { %v11483_v35 = vpop.eup %11482 }
0x1ae1   : > { %v5713_v38 = vmul.f32 %v11483_v35, %v5705_v24 }
0x1ae3   : > { %v5721_v40 = vmul.f32 %v9928_v36, %v5713_v38 }
0x1ae5   : > { %v5729_v41 = vadd.f32 %v9929_v39, %v5721_v40 }
0x1ae7   : > { %10614 = vmatmul.mubr.msk.f32.vlgmr.msra.gmra.mrb[44].mxu0 %vm1846_vm1, %v5729_v41 }
0x1ae8   : > { %10618 = vmatprep.mubr.msk.f32.mxu0 %vm12087_vm0, %v12088_v1 }
0x1bba   : > { %v5803_v42 = vpop.f32.mrb[44].mxu0 }
0x1bbb   : > { %5807 = vst.msk [vmem:[#allocation3] sm:$0xff] %vm2040_vm2, %v5803_v42  ;;  %v10615_v43 = vpop.f32.mrb[45].mxu0 }
0x1bc2   : > { %v13177_v44 = vld [vmem:[#allocation3] sm:$0xff] }
0x1bc3   : > { %5979 = vrot.lane.b32.xlu0 %v13177_v44, %s13999_s14  ;;  %5810 = vrot.lane.b32.xlu1 %v13177_v44, %s14000_s25 }
0x1bc7   : > { %5977 = vrot.lane.b32.xlu0 %v13177_v44, %s13957_s7  ;;  %6152 = vrot.lane.b32.xlu1 %v13177_v44, %s13959_s11 }
0x1bcb   : > { %6150 = vrot.lane.b32.xlu0 %v13177_v44, %s13958_s16  ;;  %6325 = vrot.lane.b32.xlu1 %v13177_v44, %s13961_s2 }
0x1bcf   : > { %6323 = vrot.lane.b32.xlu0 %v13177_v44, %s13960_s1  ;;  %6498 = vrot.lane.b32.xlu1 %v13177_v44, %s13963_s26 }
0x1bd3   : > { %6496 = vrot.lane.b32.xlu0 %v13177_v44, %s13962_s3  ;;  %6671 = vrot.lane.b32.xlu1 %v13177_v44, %s13965_s4 }
0x1bd7   : > { %6669 = vrot.lane.b32.xlu0 %v13177_v44, %s13964_s18  ;;  %6844 = vrot.lane.b32.xlu1 %v13177_v44, %s13967_s6 }
0x1bdb   : > { %6842 = vrot.lane.b32.xlu0 %v13177_v44, %s13966_s5  ;;  %7017 = vrot.lane.b32.xlu1 %v13177_v44, %s13969_s9 }
0x1bdf   : > { %7015 = vrot.lane.b32.xlu0 %v13177_v44, %s13968_s8  ;;  %6066 = vrot.lane.b32.xlu1 %v13177_v44, %s13975_s21 }
0x1be3   : > { %5897 = vrot.lane.b32.xlu0 %v13177_v44, %s13970_s12  ;;  %6239 = vrot.lane.b32.xlu1 %v13177_v44, %s13971_s13 }
0x1c35   : > { %v5980_v45 = vpop.permute.xlu0 %5979  ;;  %v5811_v46 = vpop.permute.xlu1 %5810 }
0x1c36   : > { %10617 = vmatpush3.xpose.msk.msra.mxu0 %vm2046_vm3, %v5811_v46 }
0x1c37   : > { %10626 = vmatprep.subr.mxu0 %v12088_v1 }
0x1c39   : > { %v5978_v47 = vpop.permute.xlu0 %5977  ;;  %10619 = vmatmul.mubr.msk.f32.vlgmr.msra.gmra.mrb[46].mxu0 %vm2046_vm3, %v13177_v44  ;;  %v6153_v37 = vpop.permute.xlu1 %6152 }
0x1c3a   : > { %10627 = vmatpush3.xpose.msk.msra.mxu0 %vm2046_vm3, %v5980_v45  ;;  %10628 = vmatprep.mubr.msk.f32.mxu0 %vm12087_vm0, %v12088_v1 }
0x1c3b   : > { %10636 = vmatprep.subr.mxu0 %v12088_v1 }
0x1c3d   : > { %v6151_v48 = vpop.permute.xlu0 %6150  ;;  %10629 = vmatmul.mubr.msk.f32.vlgmr.msra.gmra.mrb[48].mxu0 %vm2046_vm3, %v5978_v47  ;;  %v6326_v49 = vpop.permute.xlu1 %6325 }
0x1c3e   : > { %10637 = vmatpush3.xpose.msk.msra.mxu0 %vm2046_vm3, %v6153_v37  ;;  %10638 = vmatprep.mubr.msk.f32.mxu0 %vm12087_vm0, %v12088_v1 }
0x1c3f   : > { %10646 = vmatprep.subr.mxu0 %v12088_v1 }
0x1c41   : > { %v6324_v50 = vpop.permute.xlu0 %6323  ;;  %10639 = vmatmul.mubr.msk.f32.vlgmr.msra.gmra.mrb[50].mxu0 %vm2046_vm3, %v6151_v48  ;;  %v6499_v51 = vpop.permute.xlu1 %6498 }
0x1c42   : > { %10647 = vmatpush3.xpose.msk.msra.mxu0 %vm2046_vm3, %v6326_v49  ;;  %10648 = vmatprep.mubr.msk.f32.mxu0 %vm12087_vm0, %v12088_v1 }
0x1c43   : > { %10656 = vmatprep.subr.mxu0 %v12088_v1 }
0x1c45   : > { %v6497_v52 = vpop.permute.xlu0 %6496  ;;  %10649 = vmatmul.mubr.msk.f32.vlgmr.msra.gmra.mrb[52].mxu0 %vm2046_vm3, %v6324_v50  ;;  %v6672_v53 = vpop.permute.xlu1 %6671 }
0x1c46   : > { %10657 = vmatpush3.xpose.msk.msra.mxu0 %vm2046_vm3, %v6499_v51  ;;  %10658 = vmatprep.mubr.msk.f32.mxu0 %vm12087_vm0, %v12088_v1 }
0x1c47   : > { %10666 = vmatprep.subr.mxu0 %v12088_v1 }
0x1c49   : > { %v6670_v54 = vpop.permute.xlu0 %6669  ;;  %10659 = vmatmul.mubr.msk.f32.vlgmr.msra.gmra.mrb[54].mxu0 %vm2046_vm3, %v6497_v52  ;;  %v6845_v55 = vpop.permute.xlu1 %6844 }
0x1c4a   : > { %10667 = vmatpush3.xpose.msk.msra.mxu0 %vm2046_vm3, %v6672_v53  ;;  %10668 = vmatprep.mubr.msk.f32.mxu0 %vm12087_vm0, %v12088_v1 }
0x1c4b   : > { %10676 = vmatprep.subr.mxu0 %v12088_v1 }
0x1c4d   : > { %v6843_v56 = vpop.permute.xlu0 %6842  ;;  %10669 = vmatmul.mubr.msk.f32.vlgmr.msra.gmra.mrb[56].mxu0 %vm2046_vm3, %v6670_v54  ;;  %v7018_v57 = vpop.permute.xlu1 %7017 }
0x1c4e   : > { %10677 = vmatpush3.xpose.msk.msra.mxu0 %vm2046_vm3, %v6845_v55  ;;  %10678 = vmatprep.mubr.msk.f32.mxu0 %vm12087_vm0, %v12088_v1 }
0x1c4f   : > { %10686 = vmatprep.subr.mxu0 %v12088_v1 }
0x1c51   : > { %v7016_v59 = vpop.permute.xlu0 %7015  ;;  %10679 = vmatmul.mubr.msk.f32.vlgmr.msra.gmra.mrb[58].mxu0 %vm2046_vm3, %v6843_v56  ;;  %v6067_v31 = vpop.permute.xlu1 %6066 }
0x1c52   : > { %10687 = vmatpush3.xpose.msk.msra.mxu0 %vm2046_vm3, %v7018_v57  ;;  %10688 = vmatprep.mubr.msk.f32.mxu0 %vm12087_vm0, %v12088_v1 }
0x1c53   : > { %11025 = vmatprep.subr.bf16.mxu0 %v12086_v0 }
0x1c55   : > { %v5898_v60 = vpop.permute.xlu0 %5897  ;;  %10689 = vmatmul.mubr.msk.f32.vlgmr.msra.gmra.mrb[60].mxu0 %vm2046_vm3, %v7016_v59  ;;  %v6240_v32 = vpop.permute.xlu1 %6239 }
0x1c56   : > { %10622 = vmatpush3.msra.mxu1 %v5898_v60  ;;  %10704 = vmatprep.mubr.msk.f32.mxu0 %vm12087_vm0, %v12088_v1 }
0x1c57   : > { %10631 = vmatprep.subr.mxu1 %v12088_v1 }
0x1d0c   : > { %v5882_v61 = vpop.f32.mrb[46].mxu0 }
0x1d0d   : > { %v5886_v62 = vmul.f32 0.5, %v5882_v61  ;;  %v10620_v2 = vpop.f32.mrb[47].mxu0 }
0x1d0f   : > { %v5887_v3 = vsel %vm2122_vm4, %v5886_v62, -inf }
0x1d10   : > { %5888 = vmax.xlane.f32.xlu1 %v5887_v3  ;;  %v6051_v4 = vpop.f32.mrb[48].mxu0 }
0x1d11   : > { %v6055_v5 = vmul.f32 0.5, %v6051_v4  ;;  %v10630_v6 = vpop.f32.mrb[49].mxu0 }
0x1d13   : > { %v6056_v7 = vsel %vm2122_vm4, %v6055_v5, -inf }
0x1d14   : > { %6057 = vmax.xlane.f32.xlu0 %v6056_v7  ;;  %v6224_v8 = vpop.f32.mrb[50].mxu0 }
0x1d15   : > { %v6228_v9 = vmul.f32 0.5, %v6224_v8  ;;  %v10640_v10 = vpop.f32.mrb[51].mxu0 }
0x1d17   : > { %v6229_v58 = vsel %vm2122_vm4, %v6228_v9, -inf }
0x1d18   : > { %6230 = vmax.xlane.f32.xlu0 %v6229_v58  ;;  %v6397_v11 = vpop.f32.mrb[52].mxu0 }
0x1d19   : > { %v6401_v13 = vmul.f32 0.5, %v6397_v11  ;;  %v10650_v15 = vpop.f32.mrb[53].mxu0 }
0x1d1b   : > { %v6402_v16 = vsel %vm2122_vm4, %v6401_v13, -inf }
0x1d1c   : > { %6403 = vmax.xlane.f32.xlu0 %v6402_v16  ;;  %v6570_v17 = vpop.f32.mrb[54].mxu0 }
0x1d1d   : > { %v10660_v18 = vpop.f32.mrb[55].mxu0  ;;  %v13265_v24 = vmul.f32 0.5, %v6570_v17 }
0x1d1f   : > { %v6575_v26 = vsel %vm2122_vm4, %v13265_v24, -inf }
0x1d20   : > { %v6743_v19 = vpop.f32.mrb[56].mxu0 }
0x1d21   : > { %6585 = vrot.lane.b32.xlu1 %v13177_v44, %s13973_s19  ;;  %v10670_v20 = vpop.f32.mrb[57].mxu0  ;;  %v13275_v29 = vmul.f32 0.5, %v6743_v19 }
0x1d23   : > { %v6748_v30 = vsel %vm2122_vm4, %v13275_v29, -inf }
0x1d24   : > { %v6916_v14 = vpop.f32.mrb[58].mxu0 }
0x1d25   : > { %v10680_v21 = vpop.f32.mrb[59].mxu0  ;;  %v13267_v25 = vmul.f32 0.5, %v6916_v14 }
0x1d27   : > { %v6921_v28 = vsel %vm2122_vm4, %v13267_v25, -inf }
0x1d28   : > { %v7089_v22 = vpop.f32.mrb[60].mxu0 }
0x1d29   : > { %v10690_v23 = vpop.f32.mrb[61].mxu0  ;;  %v13271_v27 = vmul.f32 0.5, %v7089_v22 }
0x1d2b   : > { %v7094_v63 = vsel %vm2122_vm4, %v13271_v27, -inf }
0x1d32   : > { %6412 = vrot.lane.b32.xlu0 %v13177_v44, %s13972_s17 }
0x1d45   : > { %6576 = vmax.xlane.f32.xlu1 %v6575_v26 }
0x1d49   : > { %6922 = vmax.xlane.f32.xlu1 %v6921_v28 }
0x1d4d   : > { %7095 = vmax.xlane.f32.xlu1 %v7094_v63 }
0x1d51   : > { %6749 = vmax.xlane.f32.xlu0 %v6748_v30 }
0x1d5e   : > { %6931 = vrot.lane.b32.xlu1 %v13177_v44, %s13977_s23 }
0x1d67   : > { %6758 = vrot.lane.b32.xlu0 %v13177_v44, %s13974_s20 }
0x1d6b   : > { %7104 = vrot.lane.b32.xlu0 %v13177_v44, %s13976_s22 }
0x1d9d   : > { %v5889_v33 = vpop.xlane.xlu1 %5888 }
0x1d9e   : > { %v5890_v34 = vsub.f32 %v5886_v62, %v5889_v33 }
0x1da0   : > { %v5891_v35 = vmul.f32 1.442695, %v5890_v34 }
0x1da1   : > { %v6058_v36 = vpop.xlane.xlu0 %6057  ;;  %v6586_v52 = vpop.permute.xlu1 %6585 }
0x1da2   : > { %11484 = vpow2.f32 %v5891_v35  ;;  %v6059_v38 = vsub.f32 %v6055_v5, %v6058_v36 }
0x1da4   : > { %v6060_v39 = vmul.f32 1.442695, %v6059_v38 }
0x1da5   : > { %v6231_v40 = vpop.xlane.xlu0 %6230 }
0x1da6   : > { %11486 = vpow2.f32 %v6060_v39  ;;  %v6232_v41 = vsub.f32 %v6228_v9, %v6231_v40 }
0x1da8   : > { %v6233_v42 = vmul.f32 1.442695, %v6232_v41 }
0x1da9   : > { %v6404_v43 = vpop.xlane.xlu0 %6403 }
0x1daa   : > { %11488 = vpow2.f32 %v6233_v42  ;;  %v6405_v45 = vsub.f32 %v6401_v13, %v6404_v43 }
0x1dac   : > { %v11485_v46 = vpop.eup %11484  ;;  %v6406_v47 = vmul.f32 1.442695, %v6405_v45 }
0x1dad   : > { %10624 = vmatmul.mubr.msk.f32.vlgmr.msra.gmra.mrb[42].mxu1 %vm2122_vm4, %v11485_v46  ;;  %v6413_v49 = vpop.permute.xlu0 %6412  ;;  %v5893_v58 = vsel %vm2122_vm4, %v11485_v46, 0.0 }
0x1dae   : > { %11490 = vpow2.f32 %v6406_v47  ;;  %10632 = vmatpush3.msra.mxu1 %v6067_v31  ;;  %10633 = vmatprep.mubr.msk.f32.mxu1 %vm12087_vm0, %v12088_v1  ;;  %v7187_v47 = vld [vmem:[%s14001_s0] sm:$0xff] }
0x1daf   : > { %10641 = vmatprep.subr.mxu1 %v12088_v1 }
0x1db0   : > { %v11487_v44 = vpop.eup %11486 }
0x1db1   : > { %10634 = vmatmul.mubr.msk.f32.vlgmr.msra.gmra.mrb[44].mxu1 %vm2122_vm4, %v11487_v44  ;;  %v6062_v37 = vsel %vm2122_vm4, %v11487_v44, 0.0  ;;  %v7188_v44 = vld [vmem:[%s14001_s0 + $0x8] sm:$0xff] }
0x1db2   : > { %10642 = vmatpush3.msra.mxu1 %v6240_v32  ;;  %6063 = vadd.xlane.f32.xlu1 %v6062_v37  ;;  %v11026_v37 = vpack.c.bf16 %v7188_v44, %v7187_v47 }
0x1db3   : > { %10643 = vmatprep.mubr.msk.f32.mxu1 %vm12087_vm0, %v12088_v1  ;;  %10651 = vmatprep.subr.mxu1 %v12088_v1 }
0x1db4   : > { %v11489_v48 = vpop.eup %11488  ;;  %11027 = vmatpush3.bf16.msra.mxu0 %v11026_v37  ;;  %v9959_v37 = vld [vmem:[#allocation8] ss:$0 sm:$0xff] }
0x1db5   : > { %10644 = vmatmul.mubr.msk.f32.vlgmr.msra.gmra.mrb[46].mxu1 %vm2122_vm4, %v11489_v48  ;;  %v6235_v50 = vsel %vm2122_vm4, %v11489_v48, 0.0  ;;  %v7189_v48 = vld [vmem:[%s14001_s0 + $0x10] sm:$0xff]  ;;  %11028 = vmatprep.subr.bf16.mxu0 %v12086_v0 }
0x1db6   : > { %10652 = vmatpush3.msra.mxu1 %v6413_v49  ;;  %6236 = vadd.xlane.f32.xlu0 %v6235_v50  ;;  %v7190_v49 = vld [vmem:[%s14001_s0 + $0x18] sm:$0xff]  ;;  %s14003_s0 = smov 28  }
0x1db7   : > { %10653 = vmatprep.mubr.msk.f32.mxu1 %vm12087_vm0, %v12088_v1  ;;  %10661 = vmatprep.subr.mxu1 %v12088_v1 }
0x1db8   : > { %v11491_v51 = vpop.eup %11490 }
0x1db9   : > { %10654 = vmatmul.mubr.msk.f32.vlgmr.msra.gmra.mrb[48].mxu1 %vm2122_vm4, %v11491_v51  ;;  %v6408_v53 = vsel %vm2122_vm4, %v11491_v51, 0.0 }
0x1dba   : > { %10662 = vmatpush3.msra.mxu1 %v6586_v52  ;;  %6409 = vadd.xlane.f32.xlu0 %v6408_v53  ;;  %v11029_v52 = vpack.c.bf16 %v7190_v49, %v7189_v48 }
0x1dbb   : > { %10663 = vmatprep.mubr.msk.f32.mxu1 %vm12087_vm0, %v12088_v1  ;;  %10671 = vmatprep.subr.mxu1 %v12088_v1 }
0x1dbc   : > { %11030 = vmatpush3.bf16.msra.mxu0 %v11029_v52 }
0x1dbd   : > { %11037 = vmatprep.subr.bf16.mxu0 %v12086_v0 }
0x1dd2   : > { %v6577_v54 = vpop.xlane.xlu1 %6576 }
0x1dd3   : > { %v6578_v55 = vsub.f32 %v13265_v24, %v6577_v54 }
0x1dd5   : > { %v6579_v56 = vmul.f32 1.442695, %v6578_v55 }
0x1dd6   : > { %v6923_v57 = vpop.xlane.xlu1 %6922 }
0x1dd7   : > { %11492 = vpow2.f32 %v6579_v56  ;;  %v6924_v59 = vsub.f32 %v13267_v25, %v6923_v57 }
0x1dd9   : > { %v6925_v60 = vmul.f32 1.442695, %v6924_v59 }
0x1dda   : > { %v7096_v61 = vpop.xlane.xlu1 %7095 }
0x1ddb   : > { %11494 = vpow2.f32 %v6925_v60  ;;  %v7097_v62 = vsub.f32 %v13271_v27, %v7096_v61 }
0x1ddd   : > { %v7098_v5 = vmul.f32 1.442695, %v7097_v62 }
0x1dde   : > { %v6750_v2 = vpop.xlane.xlu0 %6749  ;;  %v6932_v13 = vpop.permute.xlu1 %6931 }
0x1ddf   : > { %v6751_v3 = vsub.f32 %v13275_v29, %v6750_v2 }
0x1de1   : > { %v11493_v4 = vpop.eup %11492  ;;  %v6752_v6 = vmul.f32 1.442695, %v6751_v3 }
0x1de2   : > { %10664 = vmatmul.mubr.msk.f32.vlgmr.msra.gmra.mrb[50].mxu1 %vm2122_vm4, %v11493_v4  ;;  %v6759_v7 = vpop.permute.xlu0 %6758  ;;  %v6581_v8 = vsel %vm2122_vm4, %v11493_v4, 0.0 }
0x1de3   : > { %11496 = vpow2.f32 %v6752_v6  ;;  %6582 = vadd.xlane.f32.xlu0 %v6581_v8  ;;  %10672 = vmatpush3.msra.mxu1 %v6759_v7 }
0x1de4   : > { %10673 = vmatprep.mubr.msk.f32.mxu1 %vm12087_vm0, %v12088_v1  ;;  %10681 = vmatprep.subr.mxu1 %v12088_v1  ;;  %11498 = vpow2.f32 %v7098_v5 }
0x1de5   : > { %v11495_v9 = vpop.eup %11494 }
0x1de6   : > { %v6927_v10 = vsel %vm2122_vm4, %v11495_v9, 0.0  ;;  %v7105_v17 = vpop.permute.xlu0 %7104 }
0x1de7   : > { %6928 = vadd.xlane.f32.xlu0 %v6927_v10 }
0x1deb   : > { %5894 = vadd.xlane.f32.xlu0 %v5893_v58  ;;  %v9955_v58 = vld [vmem:[%s14004_s29] ss:$0 sm:$0xff]  ;;  %s14007_s29 = sld [smem:[#allocation73_spill]] }
0x1ded   : > { %v11497_v11 = vpop.eup %11496 }
0x1dee   : > { %10674 = vmatmul.mubr.msk.f32.vlgmr.msra.gmra.mrb[52].mxu1 %vm2122_vm4, %v11497_v11  ;;  %v6754_v15 = vsel %vm2122_vm4, %v11497_v11, 0.0  ;;  %v11499_v16 = vpop.eup %11498 }
0x1def   : > { %10682 = vmatpush3.msra.mxu1 %v6932_v13  ;;  %6755 = vadd.xlane.f32.xlu1 %v6754_v15  ;;  %v7100_v18 = vsel %vm2122_vm4, %v11499_v16, 0.0 }
0x1df0   : > { %10683 = vmatprep.mubr.msk.f32.mxu1 %vm12087_vm0, %v12088_v1  ;;  %10691 = vmatprep.subr.mxu1 %v12088_v1 }
0x1df1   : > { %v7401_v47 = vld [vmem:[%s14007_s29 + $0x38] sm:$0xff] }
0x1df2   : > { %10684 = vmatmul.mubr.msk.f32.vlgmr.msra.gmra.mrb[54].mxu1 %vm2122_vm4, %v11495_v9 }
0x1df3   : > { %10692 = vmatpush3.msra.mxu1 %v7105_v17  ;;  %7101 = vadd.xlane.f32.xlu1 %v7100_v18 }
0x1df4   : > { %10693 = vmatprep.mubr.msk.f32.mxu1 %vm12087_vm0, %v12088_v1  ;;  %11031 = vmatprep.subr.bf16.mxu1 %v12086_v0 }
0x1df6   : > { %10694 = vmatmul.mubr.msk.f32.vlgmr.msra.gmra.mrb[56].mxu1 %vm2122_vm4, %v11499_v16 }
0x1df7   : > { %10715 = vmatprep.mubr.msk.f32.mxu1 %vm12087_vm0, %v12088_v1 }
0x1e3f   : > { %v6064_v22 = vpop.xlane.xlu1 %6063 }
0x1e43   : > { %v6237_v19 = vpop.xlane.xlu0 %6236 }
0x1e47   : > { %v6410_v20 = vpop.xlane.xlu0 %6409 }
0x1e70   : > { %v6583_v14 = vpop.xlane.xlu0 %6582 }
0x1e74   : > { %v6929_v21 = vpop.xlane.xlu0 %6928 }
0x1e78   : > { %v5895_v23 = vpop.xlane.xlu0 %5894 }
0x1e79   : > { %11500 = vrcp.f32 %v5895_v23 }
0x1e7a   : > { %11502 = vrcp.f32 %v6064_v22 }
0x1e7b   : > { %11504 = vrcp.f32 %v6237_v19 }
0x1e7c   : > { %11506 = vrcp.f32 %v6410_v20  ;;  %v6756_v40 = vpop.xlane.xlu1 %6755 }
0x1e7d   : > { %11508 = vrcp.f32 %v6583_v14 }
0x1e7e   : > { %11510 = vrcp.f32 %v6756_v40  ;;  %v7397_v40 = vld [vmem:[%s14007_s29 + $0x18] sm:$0xff] }
0x1e7f   : > { %11512 = vrcp.f32 %v6929_v21 }
0x1e80   : > { %v5969_v24 = vpop.f32.mrb[42].mxu1  ;;  %v7102_v46 = vpop.xlane.xlu1 %7101 }
0x1e81   : > { %v10625_v25 = vpop.f32.mrb[43].mxu1  ;;  %11514 = vrcp.f32 %v7102_v46  ;;  %v7400_v46 = vld [vmem:[%s14007_s29 + $0x30] sm:$0xff] }
0x1e82   : > { %v11047_v44 = vpack.c.bf16 %v7401_v47, %v7400_v46 }
0x1e83   : > { %v11501_v26 = vpop.eup %11500 }
0x1e84   : > { %v11503_v27 = vpop.eup %11502  ;;  %v5973_v28 = vmul.f32 %v11501_v26, %v5969_v24  ;;  %v6138_v29 = vpop.f32.mrb[44].mxu1 }
0x1e85   : > { %v6142_v63 = vmul.f32 %v11503_v27, %v6138_v29  ;;  %v10635_v30 = vpop.f32.mrb[45].mxu1  ;;  %v11505_v31 = vpop.eup %11504 }
0x1e86   : > { %5974 = vst.msk [vmem:[#allocation4] sm:$0xff] %vm2046_vm3, %v5973_v28  ;;  %v11507_v35 = vpop.eup %11506 }
0x1e87   : > { %6144 = vrot.lane.b32.xlu1 %v6142_v63, %s13978_s24  ;;  %v11509_v41 = vpop.eup %11508 }
0x1e88   : > { %v6311_v32 = vpop.f32.mrb[46].mxu1  ;;  %v11511_v50 = vpop.eup %11510 }
0x1e89   : > { %v6315_v33 = vmul.f32 %v11505_v31, %v6311_v32  ;;  %v10645_v34 = vpop.f32.mrb[47].mxu1  ;;  %v11513_v55 = vpop.eup %11512  ;;  %v9958_v32 = vld [vmem:[#allocation5] ss:$0 sm:$0xff] }
0x1e8b   : > { %6317 = vrot.lane.b32.xlu0 %v6315_v33, %s13980_s27  ;;  %v11515_v60 = vpop.eup %11514 }
0x1e8c   : > { %v6484_v36 = vpop.f32.mrb[48].mxu1 }
0x1e8d   : > { %v6488_v38 = vmul.f32 %v11507_v35, %v6484_v36  ;;  %v10655_v39 = vpop.f32.mrb[49].mxu1  ;;  %v7394_v35 = vld [vmem:[%s14007_s29] sm:$0xff]  ;;  %v7395_v36 = vld [vmem:[%s14007_s29 + $0x8] sm:$0xff] }
0x1e8e   : > { %v7396_v39 = vld [vmem:[%s14007_s29 + $0x10] sm:$0xff] }
0x1e8f   : > { %6490 = vrot.lane.b32.xlu1 %v6488_v38, %s13981_s30  ;;  %v11038_v38 = vpack.c.bf16 %v7395_v36, %v7394_v35 }
0x1eb5   : > { %v6657_v42 = vpop.f32.mrb[50].mxu1 }
0x1eb6   : > { %v6661_v43 = vmul.f32 %v11509_v41, %v6657_v42  ;;  %v10665_v45 = vpop.f32.mrb[51].mxu1  ;;  %v11041_v41 = vpack.c.bf16 %v7397_v40, %v7396_v39  ;;  %v7398_v42 = vld [vmem:[%s14007_s29 + $0x20] sm:$0xff] }
0x1eb8   : > { %6663 = vrot.lane.b32.xlu1 %v6661_v43, %s13982_s15  ;;  %v7399_v43 = vld [vmem:[%s14007_s29 + $0x28] sm:$0xff] }
0x1eb9   : > { %v11044_v45 = vpack.c.bf16 %v7399_v43, %v7398_v42 }
0x1ec1   : > { %v6830_v51 = vpop.f32.mrb[52].mxu1 }
0x1ec2   : > { %v6834_v53 = vmul.f32 %v11511_v50, %v6830_v51  ;;  %v10675_v54 = vpop.f32.mrb[53].mxu1 }
0x1ec4   : > { %6836 = vrot.lane.b32.xlu1 %v6834_v53, %s13983_s28 }
0x1ec5   : > { %v7003_v56 = vpop.f32.mrb[54].mxu1 }
0x1ec6   : > { %v7007_v57 = vmul.f32 %v11513_v55, %v7003_v56  ;;  %v10685_v59 = vpop.f32.mrb[55].mxu1 }
0x1ec8   : > { %7009 = vrot.lane.b32.xlu0 %v7007_v57, %s14002_s10  ;;  %s14006_s10 = sld [smem:[#allocation69_spill]] }
0x1ec9   : > { %v7176_v61 = vpop.f32.mrb[56].mxu1 }
0x1eca   : > { %v7180_v62 = vmul.f32 %v11515_v60, %v7176_v61  ;;  %v10695_v2 = vpop.f32.mrb[57].mxu1 }
0x1ecc   : > { %7182 = vrot.lane.b32.xlu1 %v7180_v62, %s14003_s0  ;;  %s14005_s0 = sld [smem:[#allocation71_spill]] }
0x1ece   : > { %v9957_v30 = vld [vmem:[%s14006_s10] ss:$0 sm:$0xff]  ;;  %s14008_s10 = sld [smem:[#allocation75_spill]] }
0x1ed2   : > { %v7301_v22 = vld [vmem:[%s14005_s0] sm:$0xff]  ;;  %v7302_v23 = vld [vmem:[%s14005_s0 + $0x8] sm:$0xff]  ;;  %v7303_v25 = vld [vmem:[%s14005_s0 + $0x10] sm:$0xff] }
0x1ed3   : > { %v11032_v24 = vpack.c.bf16 %v7302_v23, %v7301_v22  ;;  %v7304_v26 = vld [vmem:[%s14005_s0 + $0x18] sm:$0xff] }
0x1ed4   : > { %s14009_s0 = smov %s14008_s10  ;;  %v7489_v61 = vld [vmem:[%s14008_s10] sm:$0xff]  ;;  %s14010_s10 = sld [smem:[#allocation79_spill]] }
0x1ed5   : > { %11033 = vmatpush3.bf16.msra.mxu1 %v11032_v24  ;;  %v7490_v62 = vld [vmem:[%s14009_s0 + $0x8] sm:$0xff]  ;;  %v7491_v2 = vld [vmem:[%s14009_s0 + $0x10] sm:$0xff]  ;;  %v7504_v22 = vld [vmem:[%s14009_s0 + $0x78] sm:$0xff] }
0x1ed6   : > { %11034 = vmatprep.subr.bf16.mxu1 %v12086_v0  ;;  %v9961_v24 = vld [vmem:[#allocation10] ss:$0 sm:$0xff] }
0x1eda   : > { %s14011_s29 = smov %s14010_s10  ;;  %v7611_v39 = vld [vmem:[%s14010_s10] sm:$0xff] }
0x1edb   : > { %v7612_v40 = vld [vmem:[%s14011_s29 + $0x8] sm:$0xff]  ;;  %v7613_v42 = vld [vmem:[%s14011_s29 + $0x10] sm:$0xff]  ;;  %v7614_v43 = vld [vmem:[%s14011_s29 + $0x18] sm:$0xff] }
0x1ef9   : > { %v6145_v3 = vpop.permute.xlu1 %6144 }
0x1efa   : > { %6147 = vst.msk [vmem:[#allocation4] sm:$0xff] %vm2383_vm5, %v6145_v3  ;;  %v11050_v3 = vpack.c.bf16 %v7490_v62, %v7489_v61 }
0x1efd   : > { %v6318_v4 = vpop.permute.xlu0 %6317 }
0x1efe   : > { %6320 = vst.msk [vmem:[#allocation4] sm:$0xff] %vm2557_vm6, %v6318_v4  ;;  %v7492_v4 = vld [vmem:[%s14009_s0 + $0x18] sm:$0xff] }
0x1f01   : > { %v6491_v5 = vpop.permute.xlu1 %6490 }
0x1f02   : > { %6493 = vst.msk [vmem:[#allocation4] sm:$0xff] %vm2731_vm7, %v6491_v5  ;;  %v11053_v5 = vpack.c.bf16 %v7492_v4, %v7491_v2 }
0x1f2a   : > { %v6664_v6 = vpop.permute.xlu1 %6663 }
0x1f2b   : > { %6666 = vst.msk [vmem:[#allocation4] sm:$0xff] %vm2905_vm8, %v6664_v6  ;;  %v7493_v6 = vld [vmem:[%s14009_s0 + $0x20] sm:$0xff] }
0x1f36   : > { %v6837_v7 = vpop.permute.xlu1 %6836 }
0x1f37   : > { %6839 = vst.msk [vmem:[#allocation4] sm:$0xff] %vm3079_vm9, %v6837_v7  ;;  %v7494_v7 = vld [vmem:[%s14009_s0 + $0x28] sm:$0xff] }
0x1f3a   : > { %v7010_v8 = vpop.permute.xlu0 %7009 }
0x1f3b   : > { %7012 = vst.msk [vmem:[#allocation4] sm:$0xff] %vm3253_vm10, %v7010_v8  ;;  %v11056_v8 = vpack.c.bf16 %v7494_v7, %v7493_v6 }
0x1f3e   : > { %v7183_v9 = vpop.permute.xlu1 %7182 }
0x1f3f   : > { %7185 = vst.msk [vmem:[#allocation4] sm:$0xff] %vm3427_vm11, %v7183_v9  ;;  %v7495_v9 = vld [vmem:[%s14009_s0 + $0x30] sm:$0xff] }
0x1f46   : > { %v7186_v10 = vld [vmem:[#allocation4] sm:$0xff] }
0x1f47   : > { %10705 = vmatmul.mubr.msk.f32.vlgmr.msra.gmra.mrb[62].mxu0 %vm1846_vm1, %v7186_v10  ;;  %v7496_v10 = vld [vmem:[%s14009_s0 + $0x38] sm:$0xff] }
0x1f48   : > { %10734 = vmatprep.mubr.msk.f32.mxu0 %vm12087_vm0, %v12088_v1  ;;  %11039 = vmatpush3.bf16.msra.mxu0 %v11038_v38 }
0x1f49   : > { %11040 = vmatprep.subr.bf16.mxu0 %v12086_v0 }
0x1f4c   : > { %11042 = vmatpush3.bf16.msra.mxu0 %v11041_v41  ;;  %v11074_v41 = vpack.c.bf16 %v7612_v40, %v7611_v39 }
0x1f4d   : > { %11043 = vmatprep.subr.bf16.mxu0 %v12086_v0 }
0x1f50   : > { %11045 = vmatpush3.bf16.msra.mxu0 %v11044_v45  ;;  %v11077_v45 = vpack.c.bf16 %v7614_v43, %v7613_v42 }
0x1f51   : > { %11046 = vmatprep.subr.bf16.mxu0 %v12086_v0 }
0x1f54   : > { %11048 = vmatpush3.bf16.msra.mxu0 %v11047_v44 }
0x1f55   : > { %11073 = vmatprep.subr.bf16.mxu0 %v12086_v0 }
0x201a   : > { %v7267_v11 = vpop.f32.mrb[62].mxu0 }
0x201b   : > { %v7268_v13 = vadd.f32 %v9955_v58, %v7267_v11  ;;  %v10706_v15 = vpop.f32.mrb[63].mxu0  ;;  %v11059_v58 = vpack.c.bf16 %v7496_v10, %v7495_v9  ;;  %v7497_v11 = vld [vmem:[%s14009_s0 + $0x40] sm:$0xff] }
0x201d   : > { %v7271_v16 = vadd.f32 %v7268_v13, %v13159_v12  ;;  %v11035_v12 = vpack.c.bf16 %v7304_v26, %v7303_v25  ;;  %v7498_v13 = vld [vmem:[%s14009_s0 + $0x48] sm:$0xff] }
0x201e   : > { %v11062_v15 = vpack.c.bf16 %v7498_v13, %v7497_v11 }
0x201f   : > { %v7272_v17 = vsel %vm1846_vm1, %v7271_v16, 0.0  ;;  %11036 = vmatpush3.bf16.msra.mxu1 %v11035_v12 }
0x2020   : > { %7273 = vadd.xlane.f32.xlu0 %v7272_v17  ;;  %11049 = vmatprep.subr.bf16.mxu1 %v12086_v0  ;;  %v7500_v17 = vld [vmem:[%s14009_s0 + $0x58] sm:$0xff] }
0x20ad   : > { %v7274_v18 = vpop.xlane.xlu0 %7273 }
0x20ae   : > { %v7275_v19 = vmul.f32 0.03125, %v7274_v18 }
0x20b0   : > { %v7276_v20 = vsub.f32 %v7271_v16, %v7275_v19  ;;  %v7499_v16 = vld [vmem:[%s14009_s0 + $0x50] sm:$0xff]  ;;  %v7501_v19 = vld [vmem:[%s14009_s0 + $0x60] sm:$0xff] }
0x20b1   : > { %v11065_v18 = vpack.c.bf16 %v7500_v17, %v7499_v16 }
0x20b2   : > { %v7277_v14 = vmul.f32 %v7276_v20, %v7276_v20 }
0x20b4   : > { %v7278_v21 = vsel %vm1846_vm1, %v7277_v14, 0.0 }
0x20b5   : > { %7279 = vadd.xlane.f32.xlu1 %v7278_v21  ;;  %v7503_v21 = vld [vmem:[%s14009_s0 + $0x70] sm:$0xff] }
0x20b6   : > { %v11071_v23 = vpack.c.bf16 %v7504_v22, %v7503_v21 }
0x2142   : > { %v7280_v27 = vpop.xlane.xlu1 %7279 }
0x2143   : > { %v7281_v28 = vmul.f32 0.03125, %v7280_v27 }
0x2145   : > { %v7282_v29 = vadd.f32 1e-05, %v7281_v28 }
0x2147   : > { %11516 = vrsqrt.f32 %v7282_v29  ;;  %v9963_v29 = vld [vmem:[#allocation11] ss:$0 sm:$0xff] }
0x2151   : > { %v11517_v63 = vpop.eup %11516 }
0x2152   : > { %v7284_v31 = vmul.f32 %v11517_v63, %v7276_v20  ;;  %v7502_v20 = vld [vmem:[%s14009_s0 + $0x68] sm:$0xff] }
0x2153   : > { %v11068_v14 = vpack.c.bf16 %v7502_v20, %v7501_v19 }
0x2154   : > { %v7292_v33 = vmul.f32 %v9957_v30, %v7284_v31 }
0x2156   : > { %v7300_v34 = vadd.f32 %v9958_v32, %v7292_v33 }
0x2158   : > { %10716 = vmatmul.mubr.msk.f32.vlgmr.msra.gmra.mrb[58].mxu1 %vm1846_vm1, %v7300_v34 }
0x2159   : > { %10769 = vmatprep.mubr.msk.f32.mxu1 %vm12087_vm0, %v12088_v1  ;;  %11051 = vmatpush3.bf16.msra.mxu1 %v11050_v3 }
0x215a   : > { %11052 = vmatprep.subr.bf16.mxu1 %v12086_v0 }
0x215d   : > { %11054 = vmatpush3.bf16.msra.mxu1 %v11053_v5 }
0x215e   : > { %11055 = vmatprep.subr.bf16.mxu1 %v12086_v0 }
0x2161   : > { %11057 = vmatpush3.bf16.msra.mxu1 %v11056_v8 }
0x2162   : > { %11058 = vmatprep.subr.bf16.mxu1 %v12086_v0 }
0x2165   : > { %11060 = vmatpush3.bf16.msra.mxu1 %v11059_v58 }
0x2166   : > { %11061 = vmatprep.subr.bf16.mxu1 %v12086_v0 }
0x2169   : > { %11063 = vmatpush3.bf16.msra.mxu1 %v11062_v15 }
0x216a   : > { %11064 = vmatprep.subr.bf16.mxu1 %v12086_v0 }
0x216d   : > { %11066 = vmatpush3.bf16.msra.mxu1 %v11065_v18 }
0x216e   : > { %11067 = vmatprep.subr.bf16.mxu1 %v12086_v0 }
0x2171   : > { %11069 = vmatpush3.bf16.msra.mxu1 %v11068_v14 }
0x2172   : > { %11070 = vmatprep.subr.bf16.mxu1 %v12086_v0 }
0x2175   : > { %11072 = vmatpush3.bf16.msra.mxu1 %v11071_v23 }
0x2176   : > { %10798 = vmatprep.subr.mxu1 %v12088_v1 }
0x222b   : > { %v7381_v48 = vpop.f32.mrb[58].mxu1 }
0x222c   : > { %v7382_v49 = vadd.f32 %v9959_v37, %v7381_v48  ;;  %v10717_v50 = vpop.f32.mrb[59].mxu1  ;;  %v9964_v48 = vld [vmem:[#allocation13] ss:$0 sm:$0xff] }
0x222d   : > { %v9965_v50 = vld [vmem:[#allocation14] ss:$0 sm:$0xff] }
0x222e   : > { %v7386_v51 = vmul.f32 0.044715, %v7382_v49  ;;  %v7385_v57 = vmul.f32 0.5, %v7382_v49 }
0x2230   : > { %v7387_v52 = vmul.f32 %v7386_v51, %v7382_v49 }
0x2232   : > { %v7388_v53 = vmul.f32 %v7387_v52, %v7382_v49 }
0x2234   : > { %v7389_v54 = vadd.f32 %v7388_v53, %v7382_v49 }
0x2236   : > { %v7390_v55 = vmul.f32 0.7978846, %v7389_v54 }
0x2238   : > { %11518 = vtanh.f32 %v7390_v55 }
0x2242   : > { %v11519_v56 = vpop.eup %11518 }
0x2243   : > { %v7392_v59 = vadd.f32 1.0, %v11519_v56 }
0x2245   : > { %v7393_v60 = vmul.f32 %v7392_v59, %v7385_v57 }
0x2247   : > { %10735 = vmatmul.mubr.msk.f32.vlgmr.msra.gmra.mrb[64].mxu0 %vm3652_vm12, %v7393_v60 }
0x2248   : > { %10780 = vmatprep.mubr.msk.f32.mxu0 %vm12087_vm0, %v12088_v1  ;;  %11075 = vmatpush3.bf16.msra.mxu0 %v11074_v41 }
0x2249   : > { %11076 = vmatprep.subr.bf16.mxu0 %v12086_v0 }
0x224c   : > { %11078 = vmatpush3.bf16.msra.mxu0 %v11077_v45 }
0x224d   : > { %10783 = vmatprep.subr.mxu0 %v12088_v1 }
0x231a   : > { %v7478_v25 = vpop.f32.mrb[64].mxu0 }
0x231b   : > { %v7479_v26 = vadd.f32 %v9961_v24, %v7478_v25  ;;  %v10736_v12 = vpop.f32.mrb[65].mxu0 }
0x231d   : > { %7483 = vrot.lane.b32.xlu0 %v7479_v26, %s14000_s25 }
0x238f   : > { %v7484_v27 = vpop.permute.xlu0 %7483 }
0x2390   : > { %7487 = vst.msk [vmem:[#allocation2] sm:$0xff] %vm7486_vm15, %v7484_v27 }
0x2397   : > { %v13408_v28 = vld [vmem:[#allocation2] sm:$0xff] }
0x2398   : > { %10770 = vmatmul.mubr.f32.vlgmr.msra.gmra.mrb[60].mxu1 %v13408_v28 }
0x2399   : > { %10800 = vmatprep.mubr.msk.f32.mxu1 %vm12087_vm0, %v12088_v1 }
0x246b   : > { %v7578_v63 = vpop.f32.mrb[60].mxu1 }
0x246c   : > { %v13413_v30 = vadd.f32 %v9963_v29, %v7578_v63  ;;  %v10771_v31 = vpop.f32.mrb[61].mxu1 }
0x246e   : > { %v7582_v32 = vsel %vm1846_vm1, %v13413_v30, 0.0 }
0x246f   : > { %7583 = vadd.xlane.f32.xlu1 %v7582_v32 }
0x24fc   : > { %v7584_v33 = vpop.xlane.xlu1 %7583 }
0x24fd   : > { %v7585_v34 = vmul.f32 0.03125, %v7584_v33 }
0x24ff   : > { %v7586_v35 = vsub.f32 %v13413_v30, %v7585_v34 }
0x2501   : > { %v7587_v36 = vmul.f32 %v7586_v35, %v7586_v35 }
0x2503   : > { %v7588_v38 = vsel %vm1846_vm1, %v7587_v36, 0.0 }
0x2504   : > { %7589 = vadd.xlane.f32.xlu1 %v7588_v38 }
0x2591   : > { %v7590_v46 = vpop.xlane.xlu1 %7589 }
0x2592   : > { %v7591_v47 = vmul.f32 0.03125, %v7590_v46 }
0x2594   : > { %v7592_v44 = vadd.f32 1e-05, %v7591_v47 }
0x2596   : > { %11520 = vrsqrt.f32 %v7592_v44 }
0x25a0   : > { %v11521_v37 = vpop.eup %11520 }
0x25a1   : > { %v7594_v49 = vmul.f32 %v11521_v37, %v7586_v35 }
0x25a3   : > { %v7602_v51 = vmul.f32 %v9964_v48, %v7594_v49 }
0x25a5   : > { %v7610_v52 = vadd.f32 %v9965_v50, %v7602_v51 }
0x25a7   : > { %10781 = vmatmul.mubr.msk.f32.vlgmr.msra.gmra.mrb[66].mxu0 %vm1846_vm1, %v7610_v52 }
0x25a8   : > { %10785 = vmatprep.mubr.msk.f32.mxu0 %vm12087_vm0, %v12088_v1 }
0x267a   : > { %v7684_v53 = vpop.f32.mrb[66].mxu0 }
0x267b   : > { %7688 = vst.msk [vmem:[#allocation3] sm:$0xff] %vm2040_vm2, %v7684_v53  ;;  %v10782_v54 = vpop.f32.mrb[67].mxu0 }
0x2682   : > { %v13429_v55 = vld [vmem:[#allocation3] sm:$0xff] }
0x2683   : > { %7691 = vrot.lane.b32.xlu1 %v13429_v55, %s14000_s25  ;;  %s14017_s25 = sld [smem:[#allocation88_spill]] }
0x2687   : > { %7778 = vrot.lane.b32.xlu1 %v13429_v55, %s13970_s12 }
0x268b   : > { %7860 = vrot.lane.b32.xlu1 %v13429_v55, %s13999_s14 }
0x268f   : > { %7858 = vrot.lane.b32.xlu1 %v13429_v55, %s13957_s7 }
0x2693   : > { %8033 = vrot.lane.b32.xlu1 %v13429_v55, %s13959_s11 }
0x2697   : > { %8031 = vrot.lane.b32.xlu1 %v13429_v55, %s13958_s16 }
0x269b   : > { %8204 = vrot.lane.b32.xlu1 %v13429_v55, %s13960_s1 }
0x269f   : > { %8379 = vrot.lane.b32.xlu1 %v13429_v55, %s13963_s26  ;;  %s12120_s26 = smov [#allocation26]  }
0x26a3   : > { %8377 = vrot.lane.b32.xlu1 %v13429_v55, %s13962_s3  ;;  %s14018_s3 = sld [smem:[#allocation90_spill]] }
0x26a7   : > { %8552 = vrot.lane.b32.xlu1 %v13429_v55, %s13965_s4 }
0x26ab   : > { %8550 = vrot.lane.b32.xlu1 %v13429_v55, %s13964_s18 }
0x26af   : > { %8725 = vrot.lane.b32.xlu1 %v13429_v55, %s13967_s6  ;;  %s14022_s6 = sld [smem:[#allocation100_spill]] }
0x26b3   : > { %8898 = vrot.lane.b32.xlu1 %v13429_v55, %s13969_s9  ;;  %s14013_s9 = smov 24  }
0x26b5   : > { %p14023_p0 = scmp.ne.s32.totalorder %s14022_s6, 0 }
0x26b7   : > { %7947 = vrot.lane.b32.xlu1 %v13429_v55, %s13975_s21  ;;  %s14016_s21 = sld [smem:[#allocation86_spill]] }
0x26bb   : > { %8293 = vrot.lane.b32.xlu1 %v13429_v55, %s13972_s17  ;;  %s14015_s17 = sld [smem:[#allocation84_spill]] }
0x26f5   : > { %v7692_v56 = vpop.permute.xlu1 %7691 }
0x26f6   : > { %10784 = vmatpush3.xpose.msk.msra.mxu0 %vm2046_vm3, %v7692_v56 }
0x26f7   : > { %10788 = vmatprep.subr.mxu0 %v12088_v1 }
0x26f9   : > { %10786 = vmatmul.mubr.msk.f32.vlgmr.msra.gmra.mrb[68].mxu0 %vm2046_vm3, %v13429_v55  ;;  %v7779_v57 = vpop.permute.xlu1 %7778 }
0x26fa   : > { %10789 = vmatpush3.msra.mxu0 %v7779_v57  ;;  %10790 = vmatprep.mubr.msk.f32.mxu0 %vm12087_vm0, %v12088_v1 }
0x26fb   : > { %10793 = vmatprep.subr.mxu0 %v12088_v1 }
0x26fd   : > { %v7861_v59 = vpop.permute.xlu1 %7860 }
0x2701   : > { %v7859_v60 = vpop.permute.xlu1 %7858 }
0x2705   : > { %v8034_v61 = vpop.permute.xlu1 %8033 }
0x2709   : > { %v8032_v62 = vpop.permute.xlu1 %8031 }
0x270d   : > { %v8205_v2 = vpop.permute.xlu1 %8204 }
0x2711   : > { %v8380_v3 = vpop.permute.xlu1 %8379 }
0x2715   : > { %v8378_v4 = vpop.permute.xlu1 %8377 }
0x2719   : > { %v8553_v5 = vpop.permute.xlu1 %8552 }
0x271d   : > { %v8551_v6 = vpop.permute.xlu1 %8550 }
0x2721   : > { %v8726_v7 = vpop.permute.xlu1 %8725 }
0x2725   : > { %v8899_v8 = vpop.permute.xlu1 %8898 }
0x2729   : > { %v7948_v9 = vpop.permute.xlu1 %7947 }
0x272a   : > { %10799 = vmatpush3.msra.mxu1 %v7948_v9 }
0x272b   : > { %10808 = vmatprep.subr.mxu1 %v12088_v1 }
0x272d   : > { %v8294_v51 = vpop.permute.xlu1 %8293 }
0x27cc   : > { %v7763_v10 = vpop.f32.mrb[68].mxu0 }
0x27cd   : > { %v7767_v58 = vmul.f32 0.5, %v7763_v10  ;;  %v10787_v11 = vpop.f32.mrb[69].mxu0 }
0x27cf   : > { %v7768_v13 = vsel %vm2122_vm4, %v7767_v58, -inf }
0x27d0   : > { %7769 = vmax.xlane.f32.xlu0 %v7768_v13 }
0x27e6   : > { %8206 = vrot.lane.b32.xlu0 %v13429_v55, %s13961_s2 }
0x27ea   : > { %8723 = vrot.lane.b32.xlu0 %v13429_v55, %s13966_s5  ;;  %s14012_s5 = sld [smem:[#allocation80_spill]] }
0x27ee   : > { %8896 = vrot.lane.b32.xlu0 %v13429_v55, %s13968_s8  ;;  %s14019_s8 = sld [smem:[#allocation94_spill]] }
0x27f2   : > { %8120 = vrot.lane.b32.xlu0 %v13429_v55, %s13971_s13  ;;  %s14014_s13 = smov 28  }
0x27f4   : > { %s1838_s12 = sand.u32 1, %s14019_s8  }
0x27f5   : > { %s9565_s1 = scalar_lea.sflag [#allocation7], %s1838_s12 }
0x285d   : > { %v7770_v15 = vpop.xlane.xlu0 %7769 }
0x285e   : > { %v7771_v16 = vsub.f32 %v7767_v58, %v7770_v15 }
0x2860   : > { %v7772_v17 = vmul.f32 1.442695, %v7771_v16 }
0x2861   : > { %v8207_v19 = vpop.permute.xlu0 %8206 }
0x2862   : > { %11522 = vpow2.f32 %v7772_v17 }
0x2865   : > { %v8724_v20 = vpop.permute.xlu0 %8723 }
0x2869   : > { %v8897_v14 = vpop.permute.xlu0 %8896 }
0x286c   : > { %v13478_v18 = vpop.eup %11522 }
0x286d   : > { %10791 = vmatmul.mubr.msk.f32.vlgmr.msra.gmra.mrb[70].mxu0 %vm2122_vm4, %v13478_v18  ;;  %v8121_v52 = vpop.permute.xlu0 %8120 }
0x286e   : > { %10794 = vmatpush3.xpose.msk.msra.mxu0 %vm2046_vm3, %v7861_v59  ;;  %10795 = vmatprep.mubr.msk.f32.mxu0 %vm12087_vm0, %v12088_v1 }
0x286f   : > { %10803 = vmatprep.subr.mxu0 %v12088_v1 }
0x2871   : > { %10796 = vmatmul.mubr.msk.f32.vlgmr.msra.gmra.mrb[72].mxu0 %vm2046_vm3, %v7859_v60 }
0x2872   : > { %10804 = vmatpush3.xpose.msk.msra.mxu0 %vm2046_vm3, %v8034_v61  ;;  %10805 = vmatprep.mubr.msk.f32.mxu0 %vm12087_vm0, %v12088_v1 }
0x2873   : > { %10813 = vmatprep.subr.mxu0 %v12088_v1 }
0x2875   : > { %10806 = vmatmul.mubr.msk.f32.vlgmr.msra.gmra.mrb[74].mxu0 %vm2046_vm3, %v8032_v62 }
0x2876   : > { %10814 = vmatpush3.xpose.msk.msra.mxu0 %vm2046_vm3, %v8207_v19  ;;  %10815 = vmatprep.mubr.msk.f32.mxu0 %vm12087_vm0, %v12088_v1 }
0x2877   : > { %10823 = vmatprep.subr.mxu0 %v12088_v1 }
0x2879   : > { %10816 = vmatmul.mubr.msk.f32.vlgmr.msra.gmra.mrb[76].mxu0 %vm2046_vm3, %v8205_v2 }
0x287a   : > { %10824 = vmatpush3.xpose.msk.msra.mxu0 %vm2046_vm3, %v8380_v3  ;;  %10825 = vmatprep.mubr.msk.f32.mxu0 %vm12087_vm0, %v12088_v1 }
0x287b   : > { %10833 = vmatprep.subr.mxu0 %v12088_v1 }
0x287d   : > { %10826 = vmatmul.mubr.msk.f32.vlgmr.msra.gmra.mrb[78].mxu0 %vm2046_vm3, %v8378_v4 }
0x287e   : > { %10834 = vmatpush3.xpose.msk.msra.mxu0 %vm2046_vm3, %v8553_v5  ;;  %10835 = vmatprep.mubr.msk.f32.mxu0 %vm12087_vm0, %v12088_v1 }
0x287f   : > { %10843 = vmatprep.subr.mxu0 %v12088_v1 }
0x2881   : > { %10836 = vmatmul.mubr.msk.f32.vlgmr.msra.gmra.mrb[80].mxu0 %vm2046_vm3, %v8551_v6 }
0x2882   : > { %10844 = vmatpush3.xpose.msk.msra.mxu0 %vm2046_vm3, %v8726_v7  ;;  %10845 = vmatprep.mubr.msk.f32.mxu0 %vm12087_vm0, %v12088_v1 }
0x2883   : > { %10853 = vmatprep.subr.mxu0 %v12088_v1 }
0x2885   : > { %10846 = vmatmul.mubr.msk.f32.vlgmr.msra.gmra.mrb[82].mxu0 %vm2046_vm3, %v8724_v20 }
0x2886   : > { %10854 = vmatpush3.xpose.msk.msra.mxu0 %vm2046_vm3, %v8899_v8  ;;  %10855 = vmatprep.mubr.msk.f32.mxu0 %vm12087_vm0, %v12088_v1 }
0x2887   : > { %11079 = vmatprep.subr.bf16.mxu0 %v12086_v0 }
0x2889   : > { %10856 = vmatmul.mubr.msk.f32.vlgmr.msra.gmra.mrb[84].mxu0 %vm2046_vm3, %v8897_v14 }
0x288a   : > { %10871 = vmatprep.mubr.msk.f32.mxu0 %vm12087_vm0, %v12088_v1 }
0x2940   : > { %v13519_v21 = vpop.f32.mrb[70].mxu0 }
0x2941   : > { %v10792_v22 = vpop.f32.mrb[71].mxu0 }
0x2944   : > { %v7932_v23 = vpop.f32.mrb[72].mxu0 }
0x2945   : > { %v7936_v24 = vmul.f32 0.5, %v7932_v23  ;;  %v10797_v25 = vpop.f32.mrb[73].mxu0 }
0x2947   : > { %v7937_v26 = vsel %vm2122_vm4, %v7936_v24, -inf }
0x2948   : > { %7938 = vmax.xlane.f32.xlu1 %v7937_v26  ;;  %v8105_v12 = vpop.f32.mrb[74].mxu0 }
0x2949   : > { %v8109_v27 = vmul.f32 0.5, %v8105_v12  ;;  %v10807_v29 = vpop.f32.mrb[75].mxu0 }
0x294b   : > { %v8110_v63 = vsel %vm2122_vm4, %v8109_v27, -inf }
0x294c   : > { %8111 = vmax.xlane.f32.xlu0 %v8110_v63  ;;  %v8278_v31 = vpop.f32.mrb[76].mxu0 }
0x294d   : > { %v8282_v32 = vmul.f32 0.5, %v8278_v31  ;;  %v10817_v33 = vpop.f32.mrb[77].mxu0 }
0x294f   : > { %v8283_v34 = vsel %vm2122_vm4, %v8282_v32, -inf }
0x2950   : > { %8284 = vmax.xlane.f32.xlu0 %v8283_v34  ;;  %v8451_v35 = vpop.f32.mrb[78].mxu0 }
0x2951   : > { %v10827_v36 = vpop.f32.mrb[79].mxu0  ;;  %v8455_v47 = vmul.f32 0.5, %v8451_v35 }
0x2953   : > { %v8456_v37 = vsel %vm2122_vm4, %v8455_v47, -inf }
0x2954   : > { %v8624_v38 = vpop.f32.mrb[80].mxu0 }
0x2955   : > { %v8628_v39 = vmul.f32 0.5, %v8624_v38  ;;  %v10837_v40 = vpop.f32.mrb[81].mxu0 }
0x2957   : > { %v8629_v41 = vsel %vm2122_vm4, %v8628_v39, -inf }
0x2958   : > { %8630 = vmax.xlane.f32.xlu0 %v8629_v41  ;;  %v8797_v42 = vpop.f32.mrb[82].mxu0 }
0x2959   : > { %8466 = vrot.lane.b32.xlu1 %v13429_v55, %s13973_s19  ;;  %v10847_v43 = vpop.f32.mrb[83].mxu0  ;;  %v8801_v44 = vmul.f32 0.5, %v8797_v42  ;;  %s14020_s19 = sld [smem:[#allocation97_spill]] }
0x295b   : > { %v8802_v48 = vsel %vm2122_vm4, %v8801_v44, -inf }
0x295c   : > { %v8970_v45 = vpop.f32.mrb[84].mxu0 }
0x295d   : > { %v10857_v46 = vpop.f32.mrb[85].mxu0  ;;  %v13531_v49 = vmul.f32 0.5, %v8970_v45 }
0x295f   : > { %v8975_v50 = vsel %vm2122_vm4, %v13531_v49, -inf }
0x296e   : > { %8639 = vrot.lane.b32.xlu0 %v13429_v55, %s13974_s20  ;;  %s9850_s20 = sshll.u32 %s1838_s12, 3 }
0x297d   : > { %8457 = vmax.xlane.f32.xlu1 %v8456_v37 }
0x2981   : > { %8803 = vmax.xlane.f32.xlu1 %v8802_v48 }
0x298d   : > { %8976 = vmax.xlane.f32.xlu0 %v8975_v50 }
0x2992   : > { %8812 = vrot.lane.b32.xlu1 %v13429_v55, %s13977_s23 }
0x29a3   : > { %8985 = vrot.lane.b32.xlu0 %v13429_v55, %s13976_s22  ;;  %s11928_s22 = sshll.u32 %s12120_s26, 4  ;;  %s11929_s22 = int_to_ptr.vmem [resolvable:$false] %s11928_s22 }
0x29a4   : > { %s11930_s23 = scalar_lea.vmem %s11929_s22, 256 }
0x29d5   : > { %v7939_v53 = vpop.xlane.xlu1 %7938 }
0x29d6   : > { %v7940_v54 = vsub.f32 %v7936_v24, %v7939_v53 }
0x29d8   : > { %v7941_v56 = vmul.f32 1.442695, %v7940_v54 }
0x29d9   : > { %v8112_v57 = vpop.xlane.xlu0 %8111  ;;  %v8467_v10 = vpop.permute.xlu1 %8466 }
0x29da   : > { %11524 = vpow2.f32 %v7941_v56  ;;  %v8113_v59 = vsub.f32 %v8109_v27, %v8112_v57 }
0x29dc   : > { %v8114_v60 = vmul.f32 1.442695, %v8113_v59 }
0x29dd   : > { %v8285_v61 = vpop.xlane.xlu0 %8284 }
0x29de   : > { %11526 = vpow2.f32 %v8114_v60  ;;  %v8286_v62 = vsub.f32 %v8282_v32, %v8285_v61  ;;  %v7774_v32 = vsel %vm2122_vm4, %v13478_v18, 0.0 }
0x29e0   : > { %v8287_v2 = vmul.f32 1.442695, %v8286_v62 }
0x29e2   : > { %11528 = vpow2.f32 %v8287_v2 }
0x29e4   : > { %v11525_v3 = vpop.eup %11524 }
0x29e5   : > { %10801 = vmatmul.mubr.msk.f32.vlgmr.msra.gmra.mrb[62].mxu1 %vm2122_vm4, %v11525_v3  ;;  %v8631_v4 = vpop.xlane.xlu0 %8630  ;;  %v7943_v55 = vsel %vm2122_vm4, %v11525_v3, 0.0 }
0x29e6   : > { %10809 = vmatpush3.msra.mxu1 %v8121_v52  ;;  %v8632_v5 = vsub.f32 %v8628_v39, %v8631_v4  ;;  %7944 = vadd.xlane.f32.xlu1 %v7943_v55  ;;  %v9068_v4 = vld [vmem:[%s14012_s5] sm:$0xff]  ;;  %v9069_v55 = vld [vmem:[%s14012_s5 + $0x8] sm:$0xff] }
0x29e7   : > { %10810 = vmatprep.mubr.msk.f32.mxu1 %vm12087_vm0, %v12088_v1  ;;  %10818 = vmatprep.subr.mxu1 %v12088_v1 }
0x29e8   : > { %v11527_v6 = vpop.eup %11526  ;;  %v8633_v7 = vmul.f32 1.442695, %v8632_v5  ;;  %v11080_v5 = vpack.c.bf16 %v9069_v55, %v9068_v4  ;;  %v9367_v4 = vld [vmem:[%s14017_s25 + $0x8] sm:$0xff]  ;;  %v9368_v55 = vld [vmem:[%s14017_s25 + $0x10] sm:$0xff] }
0x29e9   : > { %10811 = vmatmul.mubr.msk.f32.vlgmr.msra.gmra.mrb[64].mxu1 %vm2122_vm4, %v11527_v6  ;;  %v8116_v8 = vsel %vm2122_vm4, %v11527_v6, 0.0  ;;  %v8640_v22 = vpop.permute.xlu0 %8639  ;;  %v9070_v6 = vld [vmem:[%s14012_s5 + $0x10] sm:$0xff] }
0x29ea   : > { %11530 = vpow2.f32 %v8633_v7  ;;  %10819 = vmatpush3.msra.mxu1 %v8294_v51  ;;  %8117 = vadd.xlane.f32.xlu0 %v8116_v8  ;;  %v9071_v7 = vld [vmem:[%s14012_s5 + $0x18] sm:$0xff] }
0x29eb   : > { %10820 = vmatprep.mubr.msk.f32.mxu1 %vm12087_vm0, %v12088_v1  ;;  %10828 = vmatprep.subr.mxu1 %v12088_v1 }
0x29ec   : > { %v11529_v9 = vpop.eup %11528  ;;  %11081 = vmatpush3.bf16.msra.mxu0 %v11080_v5 }
0x29ed   : > { %10821 = vmatmul.mubr.msk.f32.vlgmr.msra.gmra.mrb[66].mxu1 %vm2122_vm4, %v11529_v9  ;;  %v8289_v58 = vsel %vm2122_vm4, %v11529_v9, 0.0  ;;  %11082 = vmatprep.subr.bf16.mxu0 %v12086_v0 }
0x29ee   : > { %10829 = vmatpush3.msra.mxu1 %v8467_v10  ;;  %8290 = vadd.xlane.f32.xlu0 %v8289_v58  ;;  %v11083_v10 = vpack.c.bf16 %v9071_v7, %v9070_v6  ;;  %v9369_v6 = vld [vmem:[%s14017_s25 + $0x18] sm:$0xff] }
0x29ef   : > { %10830 = vmatprep.mubr.msk.f32.mxu1 %vm12087_vm0, %v12088_v1  ;;  %10838 = vmatprep.subr.mxu1 %v12088_v1  ;;  %v11107_v7 = vpack.c.bf16 %v9369_v6, %v9368_v55 }
0x29f0   : > { %11084 = vmatpush3.bf16.msra.mxu0 %v11083_v10 }
0x29f1   : > { %11091 = vmatprep.subr.bf16.mxu0 %v12086_v0 }
0x29f4   : > { %v11531_v11 = vpop.eup %11530 }
0x29f5   : > { %v8635_v13 = vsel %vm2122_vm4, %v11531_v11, 0.0 }
0x29f6   : > { %8636 = vadd.xlane.f32.xlu0 %v8635_v13 }
0x2a0a   : > { %v8458_v15 = vpop.xlane.xlu1 %8457 }
0x2a0b   : > { %v8459_v16 = vsub.f32 %v8455_v47, %v8458_v15 }
0x2a0d   : > { %v8460_v17 = vmul.f32 1.442695, %v8459_v16 }
0x2a0e   : > { %v8804_v19 = vpop.xlane.xlu1 %8803 }
0x2a0f   : > { %11532 = vpow2.f32 %v8460_v17  ;;  %v8805_v20 = vsub.f32 %v8801_v44, %v8804_v19 }
0x2a11   : > { %v8806_v14 = vmul.f32 1.442695, %v8805_v20 }
0x2a12   : > { %v8813_v29 = vpop.permute.xlu1 %8812 }
0x2a13   : > { %11534 = vpow2.f32 %v8806_v14 }
0x2a19   : > { %v11533_v23 = vpop.eup %11532 }
0x2a1a   : > { %10831 = vmatmul.mubr.msk.f32.vlgmr.msra.gmra.mrb[68].mxu1 %vm2122_vm4, %v11533_v23  ;;  %v8977_v24 = vpop.xlane.xlu0 %8976  ;;  %v8462_v25 = vsel %vm2122_vm4, %v11533_v23, 0.0 }
0x2a1b   : > { %10839 = vmatpush3.msra.mxu1 %v8640_v22  ;;  %v8978_v26 = vsub.f32 %v13531_v49, %v8977_v24  ;;  %8463 = vadd.xlane.f32.xlu1 %v8462_v25 }
0x2a1c   : > { %10840 = vmatprep.mubr.msk.f32.mxu1 %vm12087_vm0, %v12088_v1  ;;  %10848 = vmatprep.subr.mxu1 %v12088_v1 }
0x2a1d   : > { %v11535_v12 = vpop.eup %11534  ;;  %v8979_v27 = vmul.f32 1.442695, %v8978_v26 }
0x2a1e   : > { %10841 = vmatmul.mubr.msk.f32.vlgmr.msra.gmra.mrb[70].mxu1 %vm2122_vm4, %v11531_v11  ;;  %v8808_v63 = vsel %vm2122_vm4, %v11535_v12, 0.0  ;;  %v8986_v31 = vpop.permute.xlu0 %8985 }
0x2a1f   : > { %11536 = vpow2.f32 %v8979_v27  ;;  %10849 = vmatpush3.msra.mxu1 %v8813_v29  ;;  %8809 = vadd.xlane.f32.xlu1 %v8808_v63 }
0x2a20   : > { %10850 = vmatprep.mubr.msk.f32.mxu1 %vm12087_vm0, %v12088_v1  ;;  %10858 = vmatprep.subr.mxu1 %v12088_v1 }
0x2a22   : > { %10851 = vmatmul.mubr.msk.f32.vlgmr.msra.gmra.mrb[72].mxu1 %vm2122_vm4, %v11535_v12  ;;  %v9991_v12 = vld [vmem:[#allocation16] ss:$0 sm:$0xff] }
0x2a23   : > { %10859 = vmatpush3.msra.mxu1 %v8986_v31  ;;  %7775 = vadd.xlane.f32.xlu1 %v7774_v32 }
0x2a24   : > { %10860 = vmatprep.mubr.msk.f32.mxu1 %vm12087_vm0, %v12088_v1  ;;  %11085 = vmatprep.subr.bf16.mxu1 %v12086_v0 }
0x2a29   : > { %v11537_v33 = vpop.eup %11536 }
0x2a2a   : > { %10861 = vmatmul.mubr.msk.f32.vlgmr.msra.gmra.mrb[74].mxu1 %vm2122_vm4, %v11537_v33  ;;  %v8981_v34 = vsel %vm2122_vm4, %v11537_v33, 0.0 }
0x2a2b   : > { %8982 = vadd.xlane.f32.xlu0 %v8981_v34  ;;  %10882 = vmatprep.mubr.msk.f32.mxu1 %vm12087_vm0, %v12088_v1 }
0x2a73   : > { %v7945_v35 = vpop.xlane.xlu1 %7944 }
0x2a74   : > { %11538 = vrcp.f32 %v7945_v35 }
0x2a77   : > { %v8118_v18 = vpop.xlane.xlu0 %8117 }
0x2a7b   : > { %v8291_v40 = vpop.xlane.xlu0 %8290 }
0x2a7e   : > { %v11539_v41 = vpop.eup %11538 }
0x2a83   : > { %v8637_v54 = vpop.xlane.xlu0 %8636 }
0x2aa8   : > { %v8464_v36 = vpop.xlane.xlu1 %8463 }
0x2aac   : > { %v8810_v38 = vpop.xlane.xlu1 %8809 }
0x2ab0   : > { %v7776_v39 = vpop.xlane.xlu1 %7775 }
0x2ab1   : > { %11540 = vrcp.f32 %v7776_v39  ;;  %v9183_v39 = vld [vmem:[%s14015_s17 + $0x8] sm:$0xff] }
0x2ab2   : > { %11542 = vrcp.f32 %v8118_v18  ;;  %v9182_v18 = vld [vmem:[%s14015_s17] sm:$0xff] }
0x2ab3   : > { %11544 = vrcp.f32 %v8291_v40  ;;  %v11086_v40 = vpack.c.bf16 %v9183_v39, %v9182_v18  ;;  %v9380_v18 = vld [vmem:[%s14017_s25 + $0x70] sm:$0xff]  ;;  %v9381_v39 = vld [vmem:[%s14017_s25 + $0x78] sm:$0xff] }
0x2ab4   : > { %11546 = vrcp.f32 %v8464_v36 }
0x2ab5   : > { %11548 = vrcp.f32 %v8637_v54  ;;  %11087 = vmatpush3.bf16.msra.mxu1 %v11086_v40  ;;  %v9277_v54 = vld [vmem:[%s14016_s21 + $0x10] sm:$0xff]  ;;  %v11125_v40 = vpack.c.bf16 %v9381_v39, %v9380_v18 }
0x2ab6   : > { %11550 = vrcp.f32 %v8810_v38  ;;  %11088 = vmatprep.subr.bf16.mxu1 %v12086_v0 }
0x2ab8   : > { %v8019_v42 = vpop.f32.mrb[62].mxu1  ;;  %v8983_v60 = vpop.xlane.xlu0 %8982 }
0x2ab9   : > { %v8023_v43 = vmul.f32 %v11539_v41, %v8019_v42  ;;  %v10802_v45 = vpop.f32.mrb[63].mxu1  ;;  %11552 = vrcp.f32 %v8983_v60  ;;  %v9184_v41 = vld [vmem:[%s14015_s17 + $0x10] sm:$0xff]  ;;  %v9185_v42 = vld [vmem:[%s14015_s17 + $0x18] sm:$0xff] }
0x2abb   : > { %v11541_v46 = vpop.eup %11540  ;;  %8025 = vrot.lane.b32.xlu0 %v8023_v43, %s13978_s24 }
0x2abc   : > { %v11543_v47 = vpop.eup %11542  ;;  %v7854_v44 = vmul.f32 %v11541_v46, %v13519_v21  ;;  %v8192_v37 = vpop.f32.mrb[64].mxu1 }
0x2abd   : > { %v8196_v48 = vmul.f32 %v11543_v47, %v8192_v37  ;;  %v10812_v49 = vpop.f32.mrb[65].mxu1  ;;  %v11545_v50 = vpop.eup %11544 }
0x2abe   : > { %7855 = vst.msk [vmem:[#allocation4] sm:$0xff] %vm2046_vm3, %v7854_v44  ;;  %v11547_v21 = vpop.eup %11546  ;;  %v9993_v44 = vld [vmem:[#allocation17] ss:$0 sm:$0xff] }
0x2abf   : > { %8198 = vrot.lane.b32.xlu1 %v8196_v48, %s13980_s27  ;;  %v11549_v61 = vpop.eup %11548  ;;  %v9994_v48 = vld [vmem:[#allocation19] ss:$0 sm:$0xff]  ;;  %s10004_s27 = sshll.u32 %s14020_s19, 7 }
0x2ac0   : > { %v8365_v51 = vpop.f32.mrb[66].mxu1  ;;  %v11551_v8 = vpop.eup %11550 }
0x2ac1   : > { %v8369_v52 = vmul.f32 %v11545_v50, %v8365_v51  ;;  %v10822_v53 = vpop.f32.mrb[67].mxu1  ;;  %v9275_v51 = vld [vmem:[%s14016_s21] sm:$0xff] }
0x2ac3   : > { %8371 = vrot.lane.b32.xlu1 %v8369_v52, %s13981_s30  ;;  %v11553_v13 = vpop.eup %11552  ;;  %v9276_v52 = vld [vmem:[%s14016_s21 + $0x8] sm:$0xff]  ;;  %s14021_s30 = sld [smem:[#allocation92_spill]] }
0x2ac4   : > { %v11092_v53 = vpack.c.bf16 %v9276_v52, %v9275_v51  ;;  %v9477_v52 = vld [vmem:[%s14018_s3 + $0x10] sm:$0xff] }
0x2ac9   : > { %s13673_s4 = scalar_lea.hbm %s14021_s30, %s10004_s27 }
0x2aed   : > { %v8538_v56 = vpop.f32.mrb[68].mxu1 }
0x2aee   : > { %v8542_v57 = vmul.f32 %v11547_v21, %v8538_v56  ;;  %v10832_v59 = vpop.f32.mrb[69].mxu1  ;;  %v9278_v21 = vld [vmem:[%s14016_s21 + $0x18] sm:$0xff] }
0x2aef   : > { %v11095_v56 = vpack.c.bf16 %v9278_v21, %v9277_v54  ;;  %v9280_v59 = vld [vmem:[%s14016_s21 + $0x28] sm:$0xff]  ;;  %v9479_v21 = vld [vmem:[%s14018_s3 + $0x20] sm:$0xff] }
0x2af0   : > { %8544 = vrot.lane.b32.xlu0 %v8542_v57, %s13982_s15  ;;  %v9279_v57 = vld [vmem:[%s14016_s21 + $0x20] sm:$0xff]  ;;  %s1840_s15 = scalar_lea.vmem [#allocation26], %s9850_s20 }
0x2af1   : > { %v8711_v62 = vpop.f32.mrb[70].mxu1  ;;  %v11098_v60 = vpack.c.bf16 %v9280_v59, %v9279_v57  ;;  %v9481_v59 = vld [vmem:[%s14018_s3 + $0x30] sm:$0xff] }
0x2af2   : > { %v8715_v2 = vmul.f32 %v11549_v61, %v8711_v62  ;;  %v10842_v3 = vpop.f32.mrb[71].mxu1  ;;  %v9281_v61 = vld [vmem:[%s14016_s21 + $0x30] sm:$0xff]  ;;  %v9282_v62 = vld [vmem:[%s14016_s21 + $0x38] sm:$0xff] }
0x2af3   : > { %v9366_v3 = vld [vmem:[%s14017_s25] sm:$0xff] }
0x2af4   : > { %8717 = vrot.lane.b32.xlu1 %v8715_v2, %s13983_s28  ;;  %v11101_v2 = vpack.c.bf16 %v9282_v62, %v9281_v61  ;;  %v11104_v5 = vpack.c.bf16 %v9367_v4, %v9366_v3  ;;  %s9578_s28 = sshll.u32 %s1840_s15, 4  ;;  %s13675_s28 = int_to_ptr.vmem [resolvable:$true] %s9578_s28 }
0x2af5   : > { %v8884_v9 = vpop.f32.mrb[72].mxu1  ;;  %s11924_s18 = scalar_lea.vmem %s13675_s28, 128  ;;  %p11931_p12 = scmp.lt.s32.totalorder %s13675_s28, %s11929_s22 }
0x2af6   : > { %v8888_v58 = vmul.f32 %v11551_v8, %v8884_v9  ;;  %v10852_v11 = vpop.f32.mrb[73].mxu1  ;;  %v9370_v8 = vld [vmem:[%s14017_s25 + $0x20] sm:$0xff]  ;;  %v9371_v9 = vld [vmem:[%s14017_s25 + $0x28] sm:$0xff]  ;;  %p11925_p2 = scmp.ne.s32.totalorder %s13675_s28, %s11924_s18  ;;  %p11932_p5 = scmp.lt.s32.totalorder %s11930_s23, %s11924_s18 }
0x2af7   : > { %v11110_v10 = vpack.c.bf16 %v9371_v9, %v9370_v8  ;;  %v9373_v11 = vld [vmem:[%s14017_s25 + $0x38] sm:$0xff] }
0x2af8   : > { %8890 = vrot.lane.b32.xlu0 %v8888_v58, %s14013_s9  ;;  %v9372_v58 = vld [vmem:[%s14017_s25 + $0x30] sm:$0xff]  ;;  %p11926_p3 = pnand %p11925_p2, %p14023_p0  ;;  %p11933_p6 = por %p11932_p5, %p11931_p12 }
0x2afa   : > { %p11927_p4 = pneg %p11926_p3 }
0x2afc   : > { %p11934_p9 = pnand %p11933_p6, %p11927_p4 }
0x2afd   : > { %v9057_v15 = vpop.f32.mrb[74].mxu1 }
0x2afe   : > { %v9061_v16 = vmul.f32 %v11553_v13, %v9057_v15  ;;  %v10862_v17 = vpop.f32.mrb[75].mxu1  ;;  %v11113_v13 = vpack.c.bf16 %v9373_v11, %v9372_v58  ;;  %v9374_v15 = vld [vmem:[%s14017_s25 + $0x40] sm:$0xff] }
0x2b00   : > { %9063 = vrot.lane.b32.xlu1 %v9061_v16, %s14014_s13  ;;  %v9375_v16 = vld [vmem:[%s14017_s25 + $0x48] sm:$0xff] }
0x2b01   : > { %v11116_v17 = vpack.c.bf16 %v9375_v16, %v9374_v15 }
0x2b2d   : > { %v8026_v19 = vpop.permute.xlu0 %8025 }
0x2b2e   : > { %8028 = vst.msk [vmem:[#allocation4] sm:$0xff] %vm2383_vm5, %v8026_v19  ;;  %v9376_v19 = vld [vmem:[%s14017_s25 + $0x50] sm:$0xff] }
0x2b31   : > { %v8199_v20 = vpop.permute.xlu1 %8198 }
0x2b32   : > { %8201 = vst.msk [vmem:[#allocation4] sm:$0xff] %vm2557_vm6, %v8199_v20  ;;  %v9377_v20 = vld [vmem:[%s14017_s25 + $0x58] sm:$0xff] }
0x2b35   : > { %v8372_v14 = vpop.permute.xlu1 %8371 }
0x2b36   : > { %8374 = vst.msk [vmem:[#allocation4] sm:$0xff] %vm2731_vm7, %v8372_v14  ;;  %v11119_v14 = vpack.c.bf16 %v9377_v20, %v9376_v19 }
0x2b62   : > { %v8545_v22 = vpop.permute.xlu0 %8544 }
0x2b63   : > { %8547 = vst.msk [vmem:[#allocation4] sm:$0xff] %vm2905_vm8, %v8545_v22  ;;  %v9378_v22 = vld [vmem:[%s14017_s25 + $0x60] sm:$0xff] }
0x2b66   : > { %v8718_v23 = vpop.permute.xlu1 %8717 }
0x2b67   : > { %8720 = vst.msk [vmem:[#allocation4] sm:$0xff] %vm3079_vm9, %v8718_v23  ;;  %v9379_v23 = vld [vmem:[%s14017_s25 + $0x68] sm:$0xff] }
0x2b6a   : > { %v8891_v24 = vpop.permute.xlu0 %8890 }
0x2b6b   : > { %8893 = vst.msk [vmem:[#allocation4] sm:$0xff] %vm3253_vm10, %v8891_v24  ;;  %v11122_v24 = vpack.c.bf16 %v9379_v23, %v9378_v22 }
0x2b72   : > { %v9064_v25 = vpop.permute.xlu1 %9063 }
0x2b73   : > { %9066 = vst.msk [vmem:[#allocation4] sm:$0xff] %vm3427_vm11, %v9064_v25  ;;  %v9995_v25 = vld [vmem:[#allocation20] ss:$0 sm:$0xff] }
0x2b7a   : > { %v9067_v26 = vld [vmem:[#allocation4] sm:$0xff] }
0x2b7b   : > { %10872 = vmatmul.mubr.msk.f32.vlgmr.msra.gmra.mrb[86].mxu0 %vm1846_vm1, %v9067_v26 }
0x2b7c   : > { %10901 = vmatprep.mubr.msk.f32.mxu0 %vm12087_vm0, %v12088_v1  ;;  %11093 = vmatpush3.bf16.msra.mxu0 %v11092_v53  ;;  %v9478_v53 = vld [vmem:[%s14018_s3 + $0x18] sm:$0xff] }
0x2b7d   : > { %11094 = vmatprep.subr.bf16.mxu0 %v12086_v0  ;;  %v11137_v54 = vpack.c.bf16 %v9478_v53, %v9477_v52 }
0x2b80   : > { %11096 = vmatpush3.bf16.msra.mxu0 %v11095_v56  ;;  %v9480_v56 = vld [vmem:[%s14018_s3 + $0x28] sm:$0xff] }
0x2b81   : > { %11097 = vmatprep.subr.bf16.mxu0 %v12086_v0  ;;  %v11140_v57 = vpack.c.bf16 %v9480_v56, %v9479_v21 }
0x2b84   : > { %11099 = vmatpush3.bf16.msra.mxu0 %v11098_v60  ;;  %v9482_v60 = vld [vmem:[%s14018_s3 + $0x38] sm:$0xff] }
0x2b85   : > { %11100 = vmatprep.subr.bf16.mxu0 %v12086_v0  ;;  %v11143_v61 = vpack.c.bf16 %v9482_v60, %v9481_v59 }
0x2b88   : > { %11102 = vmatpush3.bf16.msra.mxu0 %v11101_v2 }
0x2b89   : > { %11133 = vmatprep.subr.bf16.mxu0 %v12086_v0 }
0x2c4e   : > { %v9148_v27 = vpop.f32.mrb[86].mxu0 }
0x2c4f   : > { %v9149_v29 = vadd.f32 %v9991_v12, %v9148_v27  ;;  %v10873_v63 = vpop.f32.mrb[87].mxu0 }
0x2c51   : > { %v9152_v31 = vadd.f32 %v9149_v29, %v13413_v30  ;;  %v11089_v30 = vpack.c.bf16 %v9185_v42, %v9184_v41  ;;  %v9382_v41 = vld [vmem:[%s14017_s25 + $0x80] sm:$0xff]  ;;  %v9383_v42 = vld [vmem:[%s14017_s25 + $0x88] sm:$0xff] }
0x2c53   : > { %v9153_v32 = vsel %vm1846_vm1, %v9152_v31, 0.0  ;;  %11090 = vmatpush3.bf16.msra.mxu1 %v11089_v30  ;;  %v9384_v30 = vld [vmem:[%s14017_s25 + $0x90] sm:$0xff] }
0x2c54   : > { %9154 = vadd.xlane.f32.xlu0 %v9153_v32  ;;  %11103 = vmatprep.subr.bf16.mxu1 %v12086_v0 }
0x2ce1   : > { %v9155_v33 = vpop.xlane.xlu0 %9154 }
0x2ce2   : > { %v9156_v34 = vmul.f32 0.03125, %v9155_v33 }
0x2ce4   : > { %v9157_v35 = vsub.f32 %v9152_v31, %v9156_v34 }
0x2ce6   : > { %v9158_v36 = vmul.f32 %v9157_v35, %v9157_v35 }
0x2ce8   : > { %v9159_v38 = vsel %vm1846_vm1, %v9158_v36, 0.0 }
0x2ce9   : > { %9160 = vadd.xlane.f32.xlu1 %v9159_v38 }
0x2d76   : > { %v9161_v43 = vpop.xlane.xlu1 %9160 }
0x2d77   : > { %v9162_v45 = vmul.f32 0.03125, %v9161_v43  ;;  %v11128_v43 = vpack.c.bf16 %v9383_v42, %v9382_v41 }
0x2d79   : > { %v9163_v46 = vadd.f32 1e-05, %v9162_v45  ;;  %v9385_v45 = vld [vmem:[%s14017_s25 + $0x98] sm:$0xff] }
0x2d7b   : > { %11554 = vrsqrt.f32 %v9163_v46  ;;  %v11131_v46 = vpack.c.bf16 %v9385_v45, %v9384_v30 }
0x2d85   : > { %v11555_v47 = vpop.eup %11554 }
0x2d86   : > { %v9165_v37 = vmul.f32 %v11555_v47, %v9157_v35 }
0x2d88   : > { %v9173_v49 = vmul.f32 %v9993_v44, %v9165_v37 }
0x2d8a   : > { %v9181_v50 = vadd.f32 %v9994_v48, %v9173_v49  ;;  %v9475_v49 = vld [vmem:[%s14018_s3] sm:$0xff] }
0x2d8c   : > { %10883 = vmatmul.mubr.msk.f32.vlgmr.msra.gmra.mrb[76].mxu1 %vm1846_vm1, %v9181_v50  ;;  %v9476_v50 = vld [vmem:[%s14018_s3 + $0x8] sm:$0xff] }
0x2d8d   : > { %11105 = vmatpush1.bf16.msra.mxu1 %v11104_v5  ;;  %v11134_v51 = vpack.c.bf16 %v9476_v50, %v9475_v49 }
0x2d8e   : > { %11106 = vmatprep.subr.bf16.mxu1 %v12086_v0 }
0x2d91   : > { %11108 = vmatpush1.bf16.msra.mxu1 %v11107_v7 }
0x2d92   : > { %11109 = vmatprep.subr.bf16.mxu1 %v12086_v0 }
0x2d95   : > { %11111 = vmatpush1.bf16.msra.mxu1 %v11110_v10 }
0x2d96   : > { %11112 = vmatprep.subr.bf16.mxu1 %v12086_v0 }
0x2d99   : > { %11114 = vmatpush1.bf16.msra.mxu1 %v11113_v13 }
0x2d9a   : > { %11115 = vmatprep.subr.bf16.mxu1 %v12086_v0 }
0x2d9d   : > { %11117 = vmatpush1.bf16.msra.mxu1 %v11116_v17 }
0x2d9e   : > { %11118 = vmatprep.subr.bf16.mxu1 %v12086_v0 }
0x2da1   : > { %11120 = vmatpush1.bf16.msra.mxu1 %v11119_v14 }
0x2da2   : > { %11121 = vmatprep.subr.bf16.mxu1 %v12086_v0 }
0x2da5   : > { %11123 = vmatpush1.bf16.msra.mxu1 %v11122_v24 }
0x2da6   : > { %11124 = vmatprep.subr.bf16.mxu1 %v12086_v0 }
0x2da9   : > { %11126 = vmatpush1.bf16.msra.mxu1 %v11125_v40 }
0x2daa   : > { %11127 = vmatprep.subr.bf16.mxu1 %v12086_v0 }
0x2dad   : > { %11129 = vmatpush1.bf16.msra.mxu1 %v11128_v43 }
0x2dae   : > { %11130 = vmatprep.subr.bf16.mxu1 %v12086_v0 }
0x2db1   : > { %11132 = vmatpush1.bf16.msra.mxu1 %v11131_v46 }
0x2e5f   : > { %v9262_v26 = vpop.f32.mrb[76].mxu1 }
0x2e60   : > { %v9263_v12 = vadd.f32 %v9995_v25, %v9262_v26  ;;  %v10884_v27 = vpop.f32.mrb[77].mxu1 }
0x2e62   : > { %v9267_v29 = vmul.f32 0.044715, %v9263_v12  ;;  %v9266_v35 = vmul.f32 0.5, %v9263_v12 }
0x2e64   : > { %v9268_v63 = vmul.f32 %v9267_v29, %v9263_v12 }
0x2e66   : > { %v9269_v31 = vmul.f32 %v9268_v63, %v9263_v12 }
0x2e68   : > { %v9270_v32 = vadd.f32 %v9269_v31, %v9263_v12 }
0x2e6a   : > { %v9271_v33 = vmul.f32 0.7978846, %v9270_v32 }
0x2e6c   : > { %11556 = vtanh.f32 %v9271_v33 }
0x2e76   : > { %v11557_v34 = vpop.eup %11556 }
0x2e77   : > { %v9273_v36 = vadd.f32 1.0, %v11557_v34 }
0x2e79   : > { %v9274_v38 = vmul.f32 %v9273_v36, %v9266_v35 }
0x2e7b   : > { %10902 = vmatmul.mubr.msk.f32.vlgmr.msra.gmra.mrb[88].mxu0 %vm3652_vm12, %v9274_v38 }
0x2e7c   : > { %10920 = vmatprep.mubr.msk.f32.mxu0 %vm12087_vm0, %v12088_v1  ;;  %v9997_v1 = vld [vmem:[#allocation22] ss:$0 sm:$0xff]  ;;  %11135 = vmatpush3.bf16.msra.mxu0 %v11134_v51 }
0x2e7d   : > { %11136 = vmatprep.subr.bf16.mxu0 %v12086_v0 }
0x2e80   : > { %11138 = vmatpush3.bf16.msra.mxu0 %v11137_v54 }
0x2e81   : > { %11139 = vmatprep.subr.bf16.mxu0 %v12086_v0 }
0x2e84   : > { %11141 = vmatpush3.bf16.msra.mxu0 %v11140_v57 }
0x2e85   : > { %11142 = vmatprep.subr.bf16.mxu0 %v12086_v0  ;;  %v10001_v0 = vld [vmem:[#allocation25] ss:$0 sm:$0xff] }
0x2e88   : > { %11144 = vmatpush3.bf16.msra.mxu0 %v11143_v61 }
0x2f4e   : > { %v9359_v47 = vpop.f32.mrb[88].mxu0 }
0x2f4f   : > { %v9360_v44 = vadd.f32 %v9997_v1, %v9359_v47  ;;  %v10903_v37 = vpop.f32.mrb[89].mxu0 }
0x2f51   : > { %9363 = vst.msk [vmem:[#allocation2 + $0x8] sm:$0xff] %vm1846_vm1, %v9360_v44 }
0x2f58   : > { %v9365_v48 = vld [vmem:[#allocation2 + $0x8] sm:$0xff] }
0x2f59   : > { %10000 = vmatprep.mubr.msk.f32.mxu1 %vm1846_vm1, %v9365_v48 }
0x2f5a   : > { %9461 = vmatmul.mubr.f32.vlgmr.msra.gmra.mrb[78].mxu1 %v13408_v28  ;;  %v9999_v28 = vld [vmem:[#allocation23] ss:$0 sm:$0xff] }
0x302d   : > { %v9462_v62 = vpop.f32.mrb[78].mxu1 }
0x302e   : > { %v9463_v2 = vadd.f32 %v9999_v28, %v9462_v62  ;;  %v9464_v3 = vpop.f32.mrb[79].mxu1 }
0x3030   : > { %v9467_v4 = vmul.f32 0.044715, %v9463_v2  ;;  %v9466_v9 = vmul.f32 0.5, %v9463_v2 }
0x3032   : > { %v9468_v55 = vmul.f32 %v9467_v4, %v9463_v2 }
0x3034   : > { %v9469_v5 = vmul.f32 %v9468_v55, %v9463_v2 }
0x3036   : > { %v9470_v6 = vadd.f32 %v9469_v5, %v9463_v2 }
0x3038   : > { %v9471_v7 = vmul.f32 0.7978846, %v9470_v6 }
0x303a   : > { %11558 = vtanh.f32 %v9471_v7 }
0x3044   : > { %v11559_v8 = vpop.eup %11558 }
0x3045   : > { %v9473_v10 = vadd.f32 1.0, %v11559_v8 }
0x3047   : > { %v9474_v58 = vmul.f32 %v9473_v10, %v9466_v9 }
0x3049   : > { %10921 = vmatmul.mubr.msk.f32.vlgmr.msra.gmra.mrb[90].mxu0 %vm3652_vm12, %v9474_v58 }
0x311c   : > { %v9559_v11 = vpop.f32.mrb[90].mxu0 }
0x311d   : > { %v9560_v13 = vadd.f32 %v10001_v0, %v9559_v11  ;;  %v10922_v15 = vpop.f32.mrb[91].mxu0 }
0x311f   : > { %9563 = vst.msk [vmem:[%s1840_s15] sm:$0xff] %vm1846_vm1, %v9560_v13 }
0x3120   : > { %11937 = shalt.err (!%p11934_p9)
}
0x3121   : > { %s11938_s24 = scalar_lea.hbm %s13673_s4, 128  ;;  %s11942_s2 = scalar_lea.hbm %s14021_s30, 256 }
0x3122   : > { %p11939_p10 = scmp.ne.s32.totalorder %s13673_s4, %s11938_s24  ;;  %p11943_p11 = scmp.lt.u32.totalorder %s13673_s4, %s14021_s30 }
0x3123   : > { %p11944_p13 = scmp.lt.u32.totalorder %s11942_s2, %s11938_s24  ;;  %p11946_p2 = scmp.lt.u32.totalorder %s11938_s24, %s13673_s4 }
0x3124   : > { %p11940_p7 = pnand %p11939_p10, %p14023_p0 }
0x3125   : > { %p11945_p1 = por %p11944_p13, %p11943_p11 }
0x3126   : > { %p11941_p8 = pneg %p11940_p7 }
0x3127   : > { %p11947_p3 = por %p11946_p2, %p11945_p1 }
0x3129   : > { %p11948_p4 = pnand %p11947_p3, %p11941_p8 }
0x312b   : > { %11951 = shalt.err (!%p11948_p4)
}
0x312c   : > { %11197 = dma.vmem_to_hbm [thread:$0]  (%p14023_p0), %s13675_s28, 128, %s13673_s4, %s9565_s1  }
0x312d PF: > { %s14024_s7 = sld [smem:[#allocation96_spill]]  ;;  %s14025_s16 = sld [smem:[#allocation93_spill]] }
0x312e   : > { %s14026_s11 = sld [smem:[#allocation101_spill]] }
0x3133   : > { %p11269_p12 = scmp.ge.s32.totalorder %s14024_s7, 2  ;;  %s9590_s14 = sand.u32 1, %s14025_s16  }
0x3134   : > { %p14027_p5 = scmp.ne.s32.totalorder %s14026_s11, 0  ;;  %s9591_s10 = scalar_lea.sflag [#allocation7], %s9590_s14 }
0x3136   : > { %p11240_p6 = pnand %p11269_p12, %p14027_p5 }
0x3138   : > { %11997 = dma.done.wait (!%p11240_p6), %s9591_s10, 128  }
0x3139   : > { %11999 = vsyncadd (!%p11240_p6), %s9591_s10, 4294967168  ;;  %s14028_s15 = sld [smem:[#allocation98_spill]]  ;;  %s14029_s7 = sld [smem:[#allocation94_spill]] }
0x313a   : > { %s14030_s10 = sld [smem:[#allocation95_spill]]  ;;  %s14031_s11 = sld [smem:[#allocation99_spill]] }
0x313f   : > { %p132_p9 = scmp.ge.s32.totalorder %s14028_s15, 4  }
0x3141   :  { %134 = sbr.rel (!%p132_p9) target bundleno = 137 (0x89), region = 393 }
0x3148   :  { %9596 = vsyncpa [#allocation6], 1 }
0x3149   :  { %9598 = vsyncpa [#allocation6 + $0x1], 1 }
0x314a   :  { %9599 = vsyncpa [#allocation9], 1 }
0x314b   :  { %9600 = vsyncpa [#allocation12], 1 }
0x314c   :  { %9601 = vsyncpa [#allocation15], 1 }
0x314d   :  { %9602 = vsyncpa [#allocation18], 1 }
0x314e   :  { %9603 = vsyncpa [#allocation21], 1 }
0x314f   :  { %9604 = vsyncpa [#allocation24], 1 }
0x3150   :  { %9605 = vsyncpa [#allocation7], 1 }
0x3151   :  { %9607 = vsyncpa [#allocation7 + $0x1], 1 }

</bundles_post_ra>
